<compile_context>
chip_gen: v7x
topology: tpu7x:2x2x1
jax: 0.10.0
libtpu: 0.0.40
codegen_flags: <defaults>
</compile_context>

<pallas_src>
import functools

import jax
import jax.numpy as jnp
from jax.experimental import pallas as pl
from jax.experimental.pallas import tpu as pltpu

K = 5
PAD = 2
H1 = W1 = 32            # conv1 spatial
C0, C1 = 3, 16          # conv1 in/out channels
H2 = W2 = 16            # conv2 spatial (after pool1)
C2 = 32                 # conv2 out channels
HP2 = WP2 = 8           # spatial after pool2
NCLS = 10
NCLS_PAD = 128          # lane-dense logits block (sliced back to NCLS on host)

K1 = C0 * W1            # 96   raw conv1 contraction depth
K1P = 128               # padded to one aligned (8,128) vreg
K2 = C1 * W2            # 256  conv2 contraction depth
HALF1 = C1 * (W1 // 2)  # 256 lanes per x-parity half of the conv1 output
HALF2 = C2 * (W2 // 2)  # 256 lanes per x-parity half of the conv2 output

NB_MAX = 32             # images per grid step (v6e/v7x; use 16 on v5e)


# ----------------------------------------------------------------------------
# Fused kernel: conv1+BN+ReLU+pool1 -> conv2+BN+ReLU+pool2 -> fc (NB images)
# ----------------------------------------------------------------------------
def convnet_kernel(x1_ref, b1_ref, s1_ref, t1_ref,
                   b2_ref, s2_ref, t2_ref,
                   wfc_ref, bfc_ref, o_ref,
                   x2e_ref, x2o_ref):
    f32 = jnp.float32
    bf16 = jnp.bfloat16
    nb = x1_ref.shape[0]
    m1 = nb * (H1 // 4)          # M rows per conv1 accumulator (images stacked)
    m2 = nb * (H2 // 2)          # M rows per conv2 accumulator

    s1 = s1_ref[...]
    t1 = t1_ref[...]

    # ---- conv1 (+ folded BN affine) -----------------------------------------
    # conv1_rows(r)[i*8 + s, :] = conv1 row 4*s + r of image i (BN applied),
    # lanes ordered px*256 + co*16 + x2 so pool1's horizontal max is 2 slices.
    def conv1_rows(r):
        acc = jnp.zeros((m1, 2 * HALF1), f32)
        for kh in range(K):
            m = (r + kh) % 4
            j = (r + kh) // 4
            lhs = x1_ref[:, m, j:j + H1 // 4, :].reshape(m1, K1P)   # (8*NB,128) bf16
            acc = acc + jnp.dot(lhs, b1_ref[kh], preferred_element_type=f32)
        return acc * s1 + t1

    zrow = jnp.zeros((nb, 1, HALF1), bf16)

    # ---- pool1 (2x2/2) + ReLU, staged as vertically-padded conv2 LHS --------
    def stage_pool1(dst_ref, acc_a, acc_b):
        v = jnp.maximum(acc_a, acc_b)                                # vertical pair
        p = jnp.maximum(jnp.maximum(v[:, :HALF1], v[:, HALF1:]), 0.0)  # horiz + ReLU
        dst_ref[:, 0:1, :] = zrow
        dst_ref[:, 1:H2 // 2 + 1, :] = p.reshape(nb, H2 // 2, HALF1).astype(bf16)
        dst_ref[:, H2 // 2 + 1:H2 // 2 + 2, :] = zrow

    stage_pool1(x2e_ref, conv1_rows(0), conv1_rows(1))   # pool1 rows 0,2,...,14
    stage_pool1(x2o_ref, conv1_rows(2), conv1_rows(3))   # pool1 rows 1,3,...,15

    s2 = s2_ref[...]
    t2 = t2_ref[...]

    # ---- conv2 (+ folded BN affine); output rows split by parity ------------
    def conv2_rows(par):
        acc = jnp.zeros((m2, 2 * HALF2), f32)
        for kh in range(K):
            src = x2e_ref if (par + kh) % 2 == 0 else x2o_ref
            off = (par + kh) // 2
            lhs = src[:, off:off + H2 // 2, :].reshape(m2, K2)       # (8*NB,256) bf16
            acc = acc + jnp.dot(lhs, b2_ref[kh], preferred_element_type=f32)
        return acc * s2 + t2

    # ---- pool2 (2x2/2) + ReLU ------------------------------------------------
    v2 = jnp.maximum(conv2_rows(0), conv2_rows(1))                   # (8*NB, 512)
    p2 = jnp.maximum(jnp.maximum(v2[:, :HALF2], v2[:, HALF2:]), 0.0) # (8*NB, 256)
    # p2 rows: image i, pool2 row y at i*8 + y; lanes = co*8 + x

    # ---- fully connected: 8 dots, each with M = NB (not M = 1) --------------
    p2b = p2.reshape(nb, HP2, C2 * WP2).astype(bf16)                 # (NB, 8, 256)
    out = jnp.zeros((nb, NCLS_PAD), f32)
    for y in range(HP2):
        out = out + jnp.dot(p2b[:, y, :], wfc_ref[y], preferred_element_type=f32)
    o_ref[...] = (out + bfc_ref[...]).astype(o_ref.dtype)


# ----------------------------------------------------------------------------
# Host-side packing: banded conv weights, BN folding, input layout
# ----------------------------------------------------------------------------
def _banded_conv_weight(w_oihw, width, pad=PAD):
    """B[kh][ci*width + xi, px*(cout*width//2) + co*(width//2) + x2]
         = w[co, ci, kh, xi - (2*x2 + px) + pad]   (0 if the tap is o.o.b.)
    so conv_out[y, :] = sum_kh X_rows[y + kh, :] @ B[kh] with X_rows the
    (ci*width)-lane row-flattened, vertically zero-padded input. The output
    column order (x-parity, channel, x//2) makes the 2x2 pool two slices."""
    cout, cin, k, _ = w_oihw.shape
    w = jnp.transpose(w_oihw, (2, 3, 1, 0))                  # (kh, kw, ci, co)
    xi = jnp.arange(width)[:, None]
    xo = jnp.arange(width)[None, :]
    kw = xi - xo + pad
    valid = ((kw >= 0) & (kw < k)).astype(w.dtype)
    band = w[:, jnp.clip(kw, 0, k - 1), :, :]                # (k, xi, xo, ci, co)
    band = band * valid[None, :, :, None, None]
    band = band.reshape(k, width, width // 2, 2, cin, cout)  # xo -> (x2, px)
    band = jnp.transpose(band, (0, 4, 1, 3, 5, 2))           # (k, ci, xi, px, co, x2)
    return band.reshape(k, cin * width, cout * width)


def _fold_bn(conv_b, gamma, beta, mean, var, reps, eps=1e-5):
    scale = gamma / jnp.sqrt(var + eps)
    bias = (conv_b - mean) * scale + beta
    svec = jnp.tile(jnp.repeat(scale, reps), 2).reshape(1, -1)
    bvec = jnp.tile(jnp.repeat(bias, reps), 2).reshape(1, -1)
    return svec.astype(jnp.float32), bvec.astype(jnp.float32)


def _pack_params(p, eps=1e-5):
    b1 = _banded_conv_weight(p["w1"], W1)                            # (5, 96, 512)
    b1 = jnp.pad(b1, ((0, 0), (0, K1P - K1), (0, 0))).astype(jnp.bfloat16)
    b2 = _banded_conv_weight(p["w2"], W2).astype(jnp.bfloat16)       # (5, 256, 512)
    s1, t1 = _fold_bn(p["b1"], p["g1"], p["beta1"], p["m1"], p["v1"], W1 // 2, eps)
    s2, t2 = _fold_bn(p["b2"], p["g2"], p["beta2"], p["m2"], p["v2"], W2 // 2, eps)
    # fc: PyTorch flattens CHW -> co*64 + y*8 + x ; kernel row y has lanes co*8+x.
    wfc = (p["wfc"].reshape(NCLS, C2, HP2, WP2)
           .transpose(2, 1, 3, 0)                                    # (y, co, x, cls)
           .reshape(HP2, C2 * WP2, NCLS))
    wfc = jnp.pad(wfc, ((0, 0), (0, 0), (0, NCLS_PAD - NCLS))).astype(jnp.bfloat16)
    bfc = jnp.pad(p["bfc"].reshape(1, NCLS),
                  ((0, 0), (0, NCLS_PAD - NCLS))).astype(jnp.float32)
    return b1, s1, t1, b2, s2, t2, wfc, bfc


def _prep_input(x_nchw, n_pad):
    """NCHW -> per-row (channel, column)-flattened, vertically padded, split by
    (padded row mod 4): result[n, m, j, c*W + w] = xpad[n, 4*j + m, c, w];
    lanes zero-padded 96 -> 128, batch zero-padded to n_pad, cast bf16."""
    n = x_nchw.shape[0]
    x = jnp.transpose(x_nchw, (0, 2, 1, 3)).reshape(n, H1, C0 * W1)
    x = jnp.pad(x, ((0, 0), (PAD, PAD), (0, 0)))                     # (n, 36, 96)
    x = x.reshape(n, (H1 + 2 * PAD) // 4, 4, C0 * W1).transpose(0, 2, 1, 3)
    x = jnp.pad(x, ((0, n_pad - n), (0, 0), (0, 0), (0, K1P - K1)))
    return x.astype(jnp.bfloat16)                                    # (n_pad, 4, 9, 128)


def _ceil_to(a, b):
    return -(-a // b) * b


def _choose_nb(n, nb_max=NB_MAX):
    """Images per grid step.  Tiny batches: NB == batch (block == full dim).
    Larger batches: NB multiple of 8, >= 2 grid steps so v7x's two TensorCores
    both get work via the 'parallel' batch axis."""
    if n <= nb_max:
        return n
    if n < 2 * nb_max:
        return _ceil_to(_ceil_to(n, 2) // 2, 8)
    return nb_max


# ----------------------------------------------------------------------------
# Full forward (matches ConvNet.forward, eval-mode BatchNorm)
# ----------------------------------------------------------------------------
def convnet_forward(x_nchw, p):
    n = x_nchw.shape[0]
    nb = _choose_nb(n)
    n_pad = _ceil_to(n, nb)
    x1 = _prep_input(x_nchw.astype(jnp.float32), n_pad)
    b1, s1, t1, b2, s2, t2, wfc, bfc = _pack_params(p)

    def full(shape):
        return pl.BlockSpec(shape, lambda i: (0,) * len(shape))

    out = pl.pallas_call(
        convnet_kernel,
        out_shape=jax.ShapeDtypeStruct((n_pad, NCLS_PAD), jnp.float32),
        grid=(n_pad // nb,),
        in_specs=[
            pl.BlockSpec((nb, 4, (H1 + 2 * PAD) // 4, K1P),
                         lambda i: (i, 0, 0, 0)),
            full((K, K1P, 2 * HALF1)),
            full((1, 2 * HALF1)),
            full((1, 2 * HALF1)),
            full((K, K2, 2 * HALF2)),
            full((1, 2 * HALF2)),
            full((1, 2 * HALF2)),
            full((HP2, C2 * WP2, NCLS_PAD)),
            full((1, NCLS_PAD)),
        ],
        out_specs=pl.BlockSpec((nb, NCLS_PAD), lambda i: (i, 0)),
        scratch_shapes=[
            pltpu.VMEM((nb, H2 // 2 + 2, HALF1), jnp.bfloat16),
            pltpu.VMEM((nb, H2 // 2 + 2, HALF1), jnp.bfloat16),
        ],
        compiler_params=pltpu.CompilerParams(
            dimension_semantics=("parallel",)),
    )(x1, b1, s1, t1, b2, s2, t2, wfc, bfc)
    return out[:n, :NCLS]


# ----------------------------------------------------------------------------
# Deterministic parameters (PyTorch-convention layouts)
# ----------------------------------------------------------------------------
def init_params(key, num_classes=NCLS):
    ks = jax.random.split(key, 14)
    f32 = jnp.float32
    return {
        "w1": 0.10 * jax.random.normal(ks[0], (C1, C0, K, K), f32),   # OIHW
        "b1": 0.10 * jax.random.normal(ks[1], (C1,), f32),
        "g1": 1.0 + 0.10 * jax.random.normal(ks[2], (C1,), f32),
        "beta1": 0.10 * jax.random.normal(ks[3], (C1,), f32),
        "m1": 0.10 * jax.random.normal(ks[4], (C1,), f32),
        "v1": 0.5 + jnp.abs(jax.random.normal(ks[5], (C1,), f32)),
        "w2": 0.05 * jax.random.normal(ks[6], (C2, C1, K, K), f32),   # OIHW
        "b2": 0.10 * jax.random.normal(ks[7], (C2,), f32),
        "g2": 1.0 + 0.10 * jax.random.normal(ks[8], (C2,), f32),
        "beta2": 0.10 * jax.random.normal(ks[9], (C2,), f32),
        "m2": 0.10 * jax.random.normal(ks[10], (C2,), f32),
        "v2": 0.5 + jnp.abs(jax.random.normal(ks[11], (C2,), f32)),
        "wfc": 0.02 * jax.random.normal(ks[12], (num_classes, C2 * HP2 * WP2), f32),
        "bfc": 0.10 * jax.random.normal(ks[13], (num_classes,), f32),
    }


# ----------------------------------------------------------------------------
# Pure-JAX f32 reference (PyTorch semantics) for the correctness check
# ----------------------------------------------------------------------------
def reference_forward(x_nchw, p, eps=1e-5):
    def block(x, w_oihw, b, g, beta, m, v):
        w_hwio = jnp.transpose(w_oihw, (2, 3, 1, 0))
        y = jax.lax.conv_general_dilated(
            x, w_hwio, (1, 1), "SAME",
            dimension_numbers=("NHWC", "HWIO", "NHWC"))
        y = y + b.reshape(1, 1, 1, -1)
        y = (y - m) / jnp.sqrt(v + eps) * g + beta
        y = jnp.maximum(y, 0.0)
        return jax.lax.reduce_window(y, -jnp.inf, jax.lax.max,
                                     (1, 2, 2, 1), (1, 2, 2, 1), "VALID")

    x = jnp.transpose(x_nchw, (0, 2, 3, 1)).astype(jnp.float32)
    h = block(x, p["w1"], p["b1"], p["g1"], p["beta1"], p["m1"], p["v1"])
    h = block(h, p["w2"], p["b2"], p["g2"], p["beta2"], p["m2"], p["v2"])
    h = jnp.transpose(h, (0, 3, 1, 2)).reshape(h.shape[0], -1)   # CHW flatten
    return h @ p["wfc"].T + p["bfc"]


if __name__ == "__main__":
    key = jax.random.PRNGKey(0)
    k_x, k_p = jax.random.split(key)

    batch = 2
    # fc(8*8*32) implies a 3x32x32 input.
    x = jax.random.normal(k_x, (batch, C0, H1, W1), jnp.float32)
    params = init_params(k_p)

    fwd = jax.jit(functools.partial(convnet_forward, p=params))
    out = jax.block_until_ready(fwd(x))

    assert out.shape == (batch, NCLS)
    ref = reference_forward(x, params)
    max_err = float(jnp.max(jnp.abs(out - ref)))
    assert bool(jnp.allclose(out, ref, rtol=5e-2, atol=5e-2)), max_err
    print("KERNEL_OK")
</pallas_src>

<mosaic_0001>
module attributes {stable_mosaic.version = 11 : i64} {
  func.func @convnet_kernel(%arg0: i32, %arg1: memref<2x4x9x128xbf16, #tpu.memory_space<vmem>>, %arg2: memref<5x128x512xbf16, #tpu.memory_space<vmem>>, %arg3: memref<1x512xf32, #tpu.memory_space<vmem>>, %arg4: memref<1x512xf32, #tpu.memory_space<vmem>>, %arg5: memref<5x256x512xbf16, #tpu.memory_space<vmem>>, %arg6: memref<1x512xf32, #tpu.memory_space<vmem>>, %arg7: memref<1x512xf32, #tpu.memory_space<vmem>>, %arg8: memref<8x256x128xbf16, #tpu.memory_space<vmem>>, %arg9: memref<1x128xf32, #tpu.memory_space<vmem>>, %arg10: memref<2x128xf32, #tpu.memory_space<vmem>>, %arg11: memref<2x10x256xbf16, #tpu.memory_space<vmem>>, %arg12: memref<2x10x256xbf16, #tpu.memory_space<vmem>>) attributes {dimension_semantics = [#tpu.dimension_semantics<parallel>], iteration_bounds = array<i64: 1>, scalar_prefetch = 0 : i64, scratch_operands = 2 : i64, tpu.core_type = #tpu.core_type<tc>, window_params = [{transform_indices = @transform_0, window_bounds = array<i64: 2, 4, 9, 128>}, {pipeline_mode = #tpu.pipeline_mode<synchronous>, transform_indices = @transform_1, window_bounds = array<i64: 5, 128, 512>}, {pipeline_mode = #tpu.pipeline_mode<synchronous>, transform_indices = @transform_2, window_bounds = array<i64: 1, 512>}, {pipeline_mode = #tpu.pipeline_mode<synchronous>, transform_indices = @transform_3, window_bounds = array<i64: 1, 512>}, {pipeline_mode = #tpu.pipeline_mode<synchronous>, transform_indices = @transform_4, window_bounds = array<i64: 5, 256, 512>}, {pipeline_mode = #tpu.pipeline_mode<synchronous>, transform_indices = @transform_5, window_bounds = array<i64: 1, 512>}, {pipeline_mode = #tpu.pipeline_mode<synchronous>, transform_indices = @transform_6, window_bounds = array<i64: 1, 512>}, {pipeline_mode = #tpu.pipeline_mode<synchronous>, transform_indices = @transform_7, window_bounds = array<i64: 8, 256, 128>}, {pipeline_mode = #tpu.pipeline_mode<synchronous>, transform_indices = @transform_8, window_bounds = array<i64: 1, 128>}, {transform_indices = @transform_9, window_bounds = array<i64: 2, 128>}]} {
    %c0 = arith.constant 0 : index
    %c0_0 = arith.constant 0 : index
    %0 = vector.load %arg3[%c0, %c0_0] : memref<1x512xf32, #tpu.memory_space<vmem>>, vector<1x512xf32>
    %c0_1 = arith.constant 0 : index
    %c0_2 = arith.constant 0 : index
    %1 = vector.load %arg4[%c0_1, %c0_2] : memref<1x512xf32, #tpu.memory_space<vmem>>, vector<1x512xf32>
    %cst = arith.constant 0.000000e+00 : bf16
    %2 = vector.broadcast %cst : bf16 to vector<2x1x256xbf16>
    %cst_3 = arith.constant 0.000000e+00 : f32
    %3 = vector.broadcast %cst_3 : f32 to vector<16x512xf32>
    %c0_4 = arith.constant 0 : index
    %c0_5 = arith.constant 0 : index
    %c0_6 = arith.constant 0 : index
    %c0_7 = arith.constant 0 : index
    %4 = vector.load %arg1[%c0_4, %c0_5, %c0_6, %c0_7] : memref<2x4x9x128xbf16, #tpu.memory_space<vmem>>, vector<2x1x8x128xbf16>
    %5 = vector.shape_cast %4 : vector<2x1x8x128xbf16> to vector<2x8x128xbf16>
    %6 = vector.shape_cast %5 : vector<2x8x128xbf16> to vector<16x128xbf16>
    %c0_8 = arith.constant 0 : index
    %c0_9 = arith.constant 0 : index
    %c0_10 = arith.constant 0 : index
    %7 = vector.load %arg2[%c0_8, %c0_9, %c0_10] : memref<5x128x512xbf16, #tpu.memory_space<vmem>>, vector<1x128x512xbf16>
    %8 = vector.shape_cast %7 : vector<1x128x512xbf16> to vector<128x512xbf16>
    %cst_11 = arith.constant dense<0.000000e+00> : vector<16x512xf32>
    %9 = tpu.matmul %6, %8, %cst_11 {dimension_numbers = #tpu.dot_dimension_numbers<[1], [0], [0], [1], [0, 0, 1, 1], [], []>} : vector<16x128xbf16>, vector<128x512xbf16>, vector<16x512xf32> -> vector<16x512xf32>
    %10 = arith.addf %3, %9 : vector<16x512xf32>
    %c0_12 = arith.constant 0 : index
    %c1 = arith.constant 1 : index
    %c0_13 = arith.constant 0 : index
    %c0_14 = arith.constant 0 : index
    %11 = vector.load %arg1[%c0_12, %c1, %c0_13, %c0_14] : memref<2x4x9x128xbf16, #tpu.memory_space<vmem>>, vector<2x1x8x128xbf16>
    %12 = vector.shape_cast %11 : vector<2x1x8x128xbf16> to vector<2x8x128xbf16>
    %13 = vector.shape_cast %12 : vector<2x8x128xbf16> to vector<16x128xbf16>
    %c1_15 = arith.constant 1 : index
    %c0_16 = arith.constant 0 : index
    %c0_17 = arith.constant 0 : index
    %14 = vector.load %arg2[%c1_15, %c0_16, %c0_17] : memref<5x128x512xbf16, #tpu.memory_space<vmem>>, vector<1x128x512xbf16>
    %15 = vector.shape_cast %14 : vector<1x128x512xbf16> to vector<128x512xbf16>
    %cst_18 = arith.constant dense<0.000000e+00> : vector<16x512xf32>
    %16 = tpu.matmul %13, %15, %cst_18 {dimension_numbers = #tpu.dot_dimension_numbers<[1], [0], [0], [1], [0, 0, 1, 1], [], []>} : vector<16x128xbf16>, vector<128x512xbf16>, vector<16x512xf32> -> vector<16x512xf32>
    %17 = arith.addf %10, %16 : vector<16x512xf32>
    %c0_19 = arith.constant 0 : index
    %c2 = arith.constant 2 : index
    %c0_20 = arith.constant 0 : index
    %c0_21 = arith.constant 0 : index
    %18 = vector.load %arg1[%c0_19, %c2, %c0_20, %c0_21] : memref<2x4x9x128xbf16, #tpu.memory_space<vmem>>, vector<2x1x8x128xbf16>
    %19 = vector.shape_cast %18 : vector<2x1x8x128xbf16> to vector<2x8x128xbf16>
    %20 = vector.shape_cast %19 : vector<2x8x128xbf16> to vector<16x128xbf16>
    %c2_22 = arith.constant 2 : index
    %c0_23 = arith.constant 0 : index
    %c0_24 = arith.constant 0 : index
    %21 = vector.load %arg2[%c2_22, %c0_23, %c0_24] : memref<5x128x512xbf16, #tpu.memory_space<vmem>>, vector<1x128x512xbf16>
    %22 = vector.shape_cast %21 : vector<1x128x512xbf16> to vector<128x512xbf16>
    %cst_25 = arith.constant dense<0.000000e+00> : vector<16x512xf32>
    %23 = tpu.matmul %20, %22, %cst_25 {dimension_numbers = #tpu.dot_dimension_numbers<[1], [0], [0], [1], [0, 0, 1, 1], [], []>} : vector<16x128xbf16>, vector<128x512xbf16>, vector<16x512xf32> -> vector<16x512xf32>
    %24 = arith.addf %17, %23 : vector<16x512xf32>
    %c0_26 = arith.constant 0 : index
    %c3 = arith.constant 3 : index
    %c0_27 = arith.constant 0 : index
    %c0_28 = arith.constant 0 : index
    %25 = vector.load %arg1[%c0_26, %c3, %c0_27, %c0_28] : memref<2x4x9x128xbf16, #tpu.memory_space<vmem>>, vector<2x1x8x128xbf16>
    %26 = vector.shape_cast %25 : vector<2x1x8x128xbf16> to vector<2x8x128xbf16>
    %27 = vector.shape_cast %26 : vector<2x8x128xbf16> to vector<16x128xbf16>
    %c3_29 = arith.constant 3 : index
    %c0_30 = arith.constant 0 : index
    %c0_31 = arith.constant 0 : index
    %28 = vector.load %arg2[%c3_29, %c0_30, %c0_31] : memref<5x128x512xbf16, #tpu.memory_space<vmem>>, vector<1x128x512xbf16>
    %29 = vector.shape_cast %28 : vector<1x128x512xbf16> to vector<128x512xbf16>
    %cst_32 = arith.constant dense<0.000000e+00> : vector<16x512xf32>
    %30 = tpu.matmul %27, %29, %cst_32 {dimension_numbers = #tpu.dot_dimension_numbers<[1], [0], [0], [1], [0, 0, 1, 1], [], []>} : vector<16x128xbf16>, vector<128x512xbf16>, vector<16x512xf32> -> vector<16x512xf32>
    %31 = arith.addf %24, %30 : vector<16x512xf32>
    %c0_33 = arith.constant 0 : index
    %c0_34 = arith.constant 0 : index
    %c1_35 = arith.constant 1 : index
    %c0_36 = arith.constant 0 : index
    %32 = vector.load %arg1[%c0_33, %c0_34, %c1_35, %c0_36] : memref<2x4x9x128xbf16, #tpu.memory_space<vmem>>, vector<2x1x8x128xbf16>
    %33 = vector.shape_cast %32 : vector<2x1x8x128xbf16> to vector<2x8x128xbf16>
    %34 = vector.shape_cast %33 : vector<2x8x128xbf16> to vector<16x128xbf16>
    %c4 = arith.constant 4 : index
    %c0_37 = arith.constant 0 : index
    %c0_38 = arith.constant 0 : index
    %35 = vector.load %arg2[%c4, %c0_37, %c0_38] : memref<5x128x512xbf16, #tpu.memory_space<vmem>>, vector<1x128x512xbf16>
    %36 = vector.shape_cast %35 : vector<1x128x512xbf16> to vector<128x512xbf16>
    %cst_39 = arith.constant dense<0.000000e+00> : vector<16x512xf32>
    %37 = tpu.matmul %34, %36, %cst_39 {dimension_numbers = #tpu.dot_dimension_numbers<[1], [0], [0], [1], [0, 0, 1, 1], [], []>} : vector<16x128xbf16>, vector<128x512xbf16>, vector<16x512xf32> -> vector<16x512xf32>
    %38 = arith.addf %31, %37 : vector<16x512xf32>
    %39 = vector.broadcast %0 : vector<1x512xf32> to vector<16x512xf32>
    %40 = arith.mulf %38, %39 : vector<16x512xf32>
    %41 = vector.broadcast %1 : vector<1x512xf32> to vector<16x512xf32>
    %42 = arith.addf %40, %41 : vector<16x512xf32>
    %cst_40 = arith.constant 0.000000e+00 : f32
    %43 = vector.broadcast %cst_40 : f32 to vector<16x512xf32>
    %c0_41 = arith.constant 0 : index
    %c1_42 = arith.constant 1 : index
    %c0_43 = arith.constant 0 : index
    %c0_44 = arith.constant 0 : index
    %44 = vector.load %arg1[%c0_41, %c1_42, %c0_43, %c0_44] : memref<2x4x9x128xbf16, #tpu.memory_space<vmem>>, vector<2x1x8x128xbf16>
    %45 = vector.shape_cast %44 : vector<2x1x8x128xbf16> to vector<2x8x128xbf16>
    %46 = vector.shape_cast %45 : vector<2x8x128xbf16> to vector<16x128xbf16>
    %c0_45 = arith.constant 0 : index
    %c0_46 = arith.constant 0 : index
    %c0_47 = arith.constant 0 : index
    %47 = vector.load %arg2[%c0_45, %c0_46, %c0_47] : memref<5x128x512xbf16, #tpu.memory_space<vmem>>, vector<1x128x512xbf16>
    %48 = vector.shape_cast %47 : vector<1x128x512xbf16> to vector<128x512xbf16>
    %cst_48 = arith.constant dense<0.000000e+00> : vector<16x512xf32>
    %49 = tpu.matmul %46, %48, %cst_48 {dimension_numbers = #tpu.dot_dimension_numbers<[1], [0], [0], [1], [0, 0, 1, 1], [], []>} : vector<16x128xbf16>, vector<128x512xbf16>, vector<16x512xf32> -> vector<16x512xf32>
    %50 = arith.addf %43, %49 : vector<16x512xf32>
    %c0_49 = arith.constant 0 : index
    %c2_50 = arith.constant 2 : index
    %c0_51 = arith.constant 0 : index
    %c0_52 = arith.constant 0 : index
    %51 = vector.load %arg1[%c0_49, %c2_50, %c0_51, %c0_52] : memref<2x4x9x128xbf16, #tpu.memory_space<vmem>>, vector<2x1x8x128xbf16>
    %52 = vector.shape_cast %51 : vector<2x1x8x128xbf16> to vector<2x8x128xbf16>
    %53 = vector.shape_cast %52 : vector<2x8x128xbf16> to vector<16x128xbf16>
    %c1_53 = arith.constant 1 : index
    %c0_54 = arith.constant 0 : index
    %c0_55 = arith.constant 0 : index
    %54 = vector.load %arg2[%c1_53, %c0_54, %c0_55] : memref<5x128x512xbf16, #tpu.memory_space<vmem>>, vector<1x128x512xbf16>
    %55 = vector.shape_cast %54 : vector<1x128x512xbf16> to vector<128x512xbf16>
    %cst_56 = arith.constant dense<0.000000e+00> : vector<16x512xf32>
    %56 = tpu.matmul %53, %55, %cst_56 {dimension_numbers = #tpu.dot_dimension_numbers<[1], [0], [0], [1], [0, 0, 1, 1], [], []>} : vector<16x128xbf16>, vector<128x512xbf16>, vector<16x512xf32> -> vector<16x512xf32>
    %57 = arith.addf %50, %56 : vector<16x512xf32>
    %c0_57 = arith.constant 0 : index
    %c3_58 = arith.constant 3 : index
    %c0_59 = arith.constant 0 : index
    %c0_60 = arith.constant 0 : index
    %58 = vector.load %arg1[%c0_57, %c3_58, %c0_59, %c0_60] : memref<2x4x9x128xbf16, #tpu.memory_space<vmem>>, vector<2x1x8x128xbf16>
    %59 = vector.shape_cast %58 : vector<2x1x8x128xbf16> to vector<2x8x128xbf16>
    %60 = vector.shape_cast %59 : vector<2x8x128xbf16> to vector<16x128xbf16>
    %c2_61 = arith.constant 2 : index
    %c0_62 = arith.constant 0 : index
    %c0_63 = arith.constant 0 : index
    %61 = vector.load %arg2[%c2_61, %c0_62, %c0_63] : memref<5x128x512xbf16, #tpu.memory_space<vmem>>, vector<1x128x512xbf16>
    %62 = vector.shape_cast %61 : vector<1x128x512xbf16> to vector<128x512xbf16>
    %cst_64 = arith.constant dense<0.000000e+00> : vector<16x512xf32>
    %63 = tpu.matmul %60, %62, %cst_64 {dimension_numbers = #tpu.dot_dimension_numbers<[1], [0], [0], [1], [0, 0, 1, 1], [], []>} : vector<16x128xbf16>, vector<128x512xbf16>, vector<16x512xf32> -> vector<16x512xf32>
    %64 = arith.addf %57, %63 : vector<16x512xf32>
    %c0_65 = arith.constant 0 : index
    %c0_66 = arith.constant 0 : index
    %c1_67 = arith.constant 1 : index
    %c0_68 = arith.constant 0 : index
    %65 = vector.load %arg1[%c0_65, %c0_66, %c1_67, %c0_68] : memref<2x4x9x128xbf16, #tpu.memory_space<vmem>>, vector<2x1x8x128xbf16>
    %66 = vector.shape_cast %65 : vector<2x1x8x128xbf16> to vector<2x8x128xbf16>
    %67 = vector.shape_cast %66 : vector<2x8x128xbf16> to vector<16x128xbf16>
    %c3_69 = arith.constant 3 : index
    %c0_70 = arith.constant 0 : index
    %c0_71 = arith.constant 0 : index
    %68 = vector.load %arg2[%c3_69, %c0_70, %c0_71] : memref<5x128x512xbf16, #tpu.memory_space<vmem>>, vector<1x128x512xbf16>
    %69 = vector.shape_cast %68 : vector<1x128x512xbf16> to vector<128x512xbf16>
    %cst_72 = arith.constant dense<0.000000e+00> : vector<16x512xf32>
    %70 = tpu.matmul %67, %69, %cst_72 {dimension_numbers = #tpu.dot_dimension_numbers<[1], [0], [0], [1], [0, 0, 1, 1], [], []>} : vector<16x128xbf16>, vector<128x512xbf16>, vector<16x512xf32> -> vector<16x512xf32>
    %71 = arith.addf %64, %70 : vector<16x512xf32>
    %c0_73 = arith.constant 0 : index
    %c1_74 = arith.constant 1 : index
    %c1_75 = arith.constant 1 : index
    %c0_76 = arith.constant 0 : index
    %72 = vector.load %arg1[%c0_73, %c1_74, %c1_75, %c0_76] : memref<2x4x9x128xbf16, #tpu.memory_space<vmem>>, vector<2x1x8x128xbf16>
    %73 = vector.shape_cast %72 : vector<2x1x8x128xbf16> to vector<2x8x128xbf16>
    %74 = vector.shape_cast %73 : vector<2x8x128xbf16> to vector<16x128xbf16>
    %c4_77 = arith.constant 4 : index
    %c0_78 = arith.constant 0 : index
    %c0_79 = arith.constant 0 : index
    %75 = vector.load %arg2[%c4_77, %c0_78, %c0_79] : memref<5x128x512xbf16, #tpu.memory_space<vmem>>, vector<1x128x512xbf16>
    %76 = vector.shape_cast %75 : vector<1x128x512xbf16> to vector<128x512xbf16>
    %cst_80 = arith.constant dense<0.000000e+00> : vector<16x512xf32>
    %77 = tpu.matmul %74, %76, %cst_80 {dimension_numbers = #tpu.dot_dimension_numbers<[1], [0], [0], [1], [0, 0, 1, 1], [], []>} : vector<16x128xbf16>, vector<128x512xbf16>, vector<16x512xf32> -> vector<16x512xf32>
    %78 = arith.addf %71, %77 : vector<16x512xf32>
    %79 = vector.broadcast %0 : vector<1x512xf32> to vector<16x512xf32>
    %80 = arith.mulf %78, %79 : vector<16x512xf32>
    %81 = vector.broadcast %1 : vector<1x512xf32> to vector<16x512xf32>
    %82 = arith.addf %80, %81 : vector<16x512xf32>
    %83 = arith.maximumf %42, %82 : vector<16x512xf32>
    %84 = vector.extract_strided_slice %83 {offsets = [0, 0], sizes = [16, 256], strides = [1, 1]} : vector<16x512xf32> to vector<16x256xf32>
    %85 = vector.extract_strided_slice %83 {offsets = [0, 256], sizes = [16, 256], strides = [1, 1]} : vector<16x512xf32> to vector<16x256xf32>
    %86 = arith.maximumf %84, %85 : vector<16x256xf32>
    %cst_81 = arith.constant 0.000000e+00 : f32
    %87 = vector.broadcast %cst_81 : f32 to vector<16x256xf32>
    %88 = arith.maximumf %86, %87 : vector<16x256xf32>
    %c0_82 = arith.constant 0 : index
    %c0_83 = arith.constant 0 : index
    %c0_84 = arith.constant 0 : index
    %89 = vector.load %arg11[%c0_82, %c0_83, %c0_84] : memref<2x10x256xbf16, #tpu.memory_space<vmem>>, vector<2x1x256xbf16>
    tpu.vector_store %arg11[%c0_82, %c0_83, %c0_84], %2 {strides = array<i32>} : memref<2x10x256xbf16, #tpu.memory_space<vmem>>, vector<2x1x256xbf16>,
    %90 = vector.shape_cast %88 : vector<16x256xf32> to vector<2x8x256xf32>
    %91 = arith.truncf %90 : vector<2x8x256xf32> to vector<2x8x256xbf16>
    %c0_85 = arith.constant 0 : index
    %c1_86 = arith.constant 1 : index
    %c0_87 = arith.constant 0 : index
    %92 = vector.load %arg11[%c0_85, %c1_86, %c0_87] : memref<2x10x256xbf16, #tpu.memory_space<vmem>>, vector<2x8x256xbf16>
    tpu.vector_store %arg11[%c0_85, %c1_86, %c0_87], %91 {strides = array<i32>} : memref<2x10x256xbf16, #tpu.memory_space<vmem>>, vector<2x8x256xbf16>,
    %c0_88 = arith.constant 0 : index
    %c9 = arith.constant 9 : index
    %c0_89 = arith.constant 0 : index
    %93 = vector.load %arg11[%c0_88, %c9, %c0_89] : memref<2x10x256xbf16, #tpu.memory_space<vmem>>, vector<2x1x256xbf16>
    tpu.vector_store %arg11[%c0_88, %c9, %c0_89], %2 {strides = array<i32>} : memref<2x10x256xbf16, #tpu.memory_space<vmem>>, vector<2x1x256xbf16>,
    %cst_90 = arith.constant 0.000000e+00 : f32
    %94 = vector.broadcast %cst_90 : f32 to vector<16x512xf32>
    %c0_91 = arith.constant 0 : index
    %c2_92 = arith.constant 2 : index
    %c0_93 = arith.constant 0 : index
    %c0_94 = arith.constant 0 : index
    %95 = vector.load %arg1[%c0_91, %c2_92, %c0_93, %c0_94] : memref<2x4x9x128xbf16, #tpu.memory_space<vmem>>, vector<2x1x8x128xbf16>
    %96 = vector.shape_cast %95 : vector<2x1x8x128xbf16> to vector<2x8x128xbf16>
    %97 = vector.shape_cast %96 : vector<2x8x128xbf16> to vector<16x128xbf16>
    %c0_95 = arith.constant 0 : index
    %c0_96 = arith.constant 0 : index
    %c0_97 = arith.constant 0 : index
    %98 = vector.load %arg2[%c0_95, %c0_96, %c0_97] : memref<5x128x512xbf16, #tpu.memory_space<vmem>>, vector<1x128x512xbf16>
    %99 = vector.shape_cast %98 : vector<1x128x512xbf16> to vector<128x512xbf16>
    %cst_98 = arith.constant dense<0.000000e+00> : vector<16x512xf32>
    %100 = tpu.matmul %97, %99, %cst_98 {dimension_numbers = #tpu.dot_dimension_numbers<[1], [0], [0], [1], [0, 0, 1, 1], [], []>} : vector<16x128xbf16>, vector<128x512xbf16>, vector<16x512xf32> -> vector<16x512xf32>
    %101 = arith.addf %94, %100 : vector<16x512xf32>
    %c0_99 = arith.constant 0 : index
    %c3_100 = arith.constant 3 : index
    %c0_101 = arith.constant 0 : index
    %c0_102 = arith.constant 0 : index
    %102 = vector.load %arg1[%c0_99, %c3_100, %c0_101, %c0_102] : memref<2x4x9x128xbf16, #tpu.memory_space<vmem>>, vector<2x1x8x128xbf16>
    %103 = vector.shape_cast %102 : vector<2x1x8x128xbf16> to vector<2x8x128xbf16>
    %104 = vector.shape_cast %103 : vector<2x8x128xbf16> to vector<16x128xbf16>
    %c1_103 = arith.constant 1 : index
    %c0_104 = arith.constant 0 : index
    %c0_105 = arith.constant 0 : index
    %105 = vector.load %arg2[%c1_103, %c0_104, %c0_105] : memref<5x128x512xbf16, #tpu.memory_space<vmem>>, vector<1x128x512xbf16>
    %106 = vector.shape_cast %105 : vector<1x128x512xbf16> to vector<128x512xbf16>
    %cst_106 = arith.constant dense<0.000000e+00> : vector<16x512xf32>
    %107 = tpu.matmul %104, %106, %cst_106 {dimension_numbers = #tpu.dot_dimension_numbers<[1], [0], [0], [1], [0, 0, 1, 1], [], []>} : vector<16x128xbf16>, vector<128x512xbf16>, vector<16x512xf32> -> vector<16x512xf32>
    %108 = arith.addf %101, %107 : vector<16x512xf32>
    %c0_107 = arith.constant 0 : index
    %c0_108 = arith.constant 0 : index
    %c1_109 = arith.constant 1 : index
    %c0_110 = arith.constant 0 : index
    %109 = vector.load %arg1[%c0_107, %c0_108, %c1_109, %c0_110] : memref<2x4x9x128xbf16, #tpu.memory_space<vmem>>, vector<2x1x8x128xbf16>
    %110 = vector.shape_cast %109 : vector<2x1x8x128xbf16> to vector<2x8x128xbf16>
    %111 = vector.shape_cast %110 : vector<2x8x128xbf16> to vector<16x128xbf16>
    %c2_111 = arith.constant 2 : index
    %c0_112 = arith.constant 0 : index
    %c0_113 = arith.constant 0 : index
    %112 = vector.load %arg2[%c2_111, %c0_112, %c0_113] : memref<5x128x512xbf16, #tpu.memory_space<vmem>>, vector<1x128x512xbf16>
    %113 = vector.shape_cast %112 : vector<1x128x512xbf16> to vector<128x512xbf16>
    %cst_114 = arith.constant dense<0.000000e+00> : vector<16x512xf32>
    %114 = tpu.matmul %111, %113, %cst_114 {dimension_numbers = #tpu.dot_dimension_numbers<[1], [0], [0], [1], [0, 0, 1, 1], [], []>} : vector<16x128xbf16>, vector<128x512xbf16>, vector<16x512xf32> -> vector<16x512xf32>
    %115 = arith.addf %108, %114 : vector<16x512xf32>
    %c0_115 = arith.constant 0 : index
    %c1_116 = arith.constant 1 : index
    %c1_117 = arith.constant 1 : index
    %c0_118 = arith.constant 0 : index
    %116 = vector.load %arg1[%c0_115, %c1_116, %c1_117, %c0_118] : memref<2x4x9x128xbf16, #tpu.memory_space<vmem>>, vector<2x1x8x128xbf16>
    %117 = vector.shape_cast %116 : vector<2x1x8x128xbf16> to vector<2x8x128xbf16>
    %118 = vector.shape_cast %117 : vector<2x8x128xbf16> to vector<16x128xbf16>
    %c3_119 = arith.constant 3 : index
    %c0_120 = arith.constant 0 : index
    %c0_121 = arith.constant 0 : index
    %119 = vector.load %arg2[%c3_119, %c0_120, %c0_121] : memref<5x128x512xbf16, #tpu.memory_space<vmem>>, vector<1x128x512xbf16>
    %120 = vector.shape_cast %119 : vector<1x128x512xbf16> to vector<128x512xbf16>
    %cst_122 = arith.constant dense<0.000000e+00> : vector<16x512xf32>
    %121 = tpu.matmul %118, %120, %cst_122 {dimension_numbers = #tpu.dot_dimension_numbers<[1], [0], [0], [1], [0, 0, 1, 1], [], []>} : vector<16x128xbf16>, vector<128x512xbf16>, vector<16x512xf32> -> vector<16x512xf32>
    %122 = arith.addf %115, %121 : vector<16x512xf32>
    %c0_123 = arith.constant 0 : index
    %c2_124 = arith.constant 2 : index
    %c1_125 = arith.constant 1 : index
    %c0_126 = arith.constant 0 : index
    %123 = vector.load %arg1[%c0_123, %c2_124, %c1_125, %c0_126] : memref<2x4x9x128xbf16, #tpu.memory_space<vmem>>, vector<2x1x8x128xbf16>
    %124 = vector.shape_cast %123 : vector<2x1x8x128xbf16> to vector<2x8x128xbf16>
    %125 = vector.shape_cast %124 : vector<2x8x128xbf16> to vector<16x128xbf16>
    %c4_127 = arith.constant 4 : index
    %c0_128 = arith.constant 0 : index
    %c0_129 = arith.constant 0 : index
    %126 = vector.load %arg2[%c4_127, %c0_128, %c0_129] : memref<5x128x512xbf16, #tpu.memory_space<vmem>>, vector<1x128x512xbf16>
    %127 = vector.shape_cast %126 : vector<1x128x512xbf16> to vector<128x512xbf16>
    %cst_130 = arith.constant dense<0.000000e+00> : vector<16x512xf32>
    %128 = tpu.matmul %125, %127, %cst_130 {dimension_numbers = #tpu.dot_dimension_numbers<[1], [0], [0], [1], [0, 0, 1, 1], [], []>} : vector<16x128xbf16>, vector<128x512xbf16>, vector<16x512xf32> -> vector<16x512xf32>
    %129 = arith.addf %122, %128 : vector<16x512xf32>
    %130 = vector.broadcast %0 : vector<1x512xf32> to vector<16x512xf32>
    %131 = arith.mulf %129, %130 : vector<16x512xf32>
    %132 = vector.broadcast %1 : vector<1x512xf32> to vector<16x512xf32>
    %133 = arith.addf %131, %132 : vector<16x512xf32>
    %cst_131 = arith.constant 0.000000e+00 : f32
    %134 = vector.broadcast %cst_131 : f32 to vector<16x512xf32>
    %c0_132 = arith.constant 0 : index
    %c3_133 = arith.constant 3 : index
    %c0_134 = arith.constant 0 : index
    %c0_135 = arith.constant 0 : index
    %135 = vector.load %arg1[%c0_132, %c3_133, %c0_134, %c0_135] : memref<2x4x9x128xbf16, #tpu.memory_space<vmem>>, vector<2x1x8x128xbf16>
    %136 = vector.shape_cast %135 : vector<2x1x8x128xbf16> to vector<2x8x128xbf16>
    %137 = vector.shape_cast %136 : vector<2x8x128xbf16> to vector<16x128xbf16>
    %c0_136 = arith.constant 0 : index
    %c0_137 = arith.constant 0 : index
    %c0_138 = arith.constant 0 : index
    %138 = vector.load %arg2[%c0_136, %c0_137, %c0_138] : memref<5x128x512xbf16, #tpu.memory_space<vmem>>, vector<1x128x512xbf16>
    %139 = vector.shape_cast %138 : vector<1x128x512xbf16> to vector<128x512xbf16>
    %cst_139 = arith.constant dense<0.000000e+00> : vector<16x512xf32>
    %140 = tpu.matmul %137, %139, %cst_139 {dimension_numbers = #tpu.dot_dimension_numbers<[1], [0], [0], [1], [0, 0, 1, 1], [], []>} : vector<16x128xbf16>, vector<128x512xbf16>, vector<16x512xf32> -> vector<16x512xf32>
    %141 = arith.addf %134, %140 : vector<16x512xf32>
    %c0_140 = arith.constant 0 : index
    %c0_141 = arith.constant 0 : index
    %c1_142 = arith.constant 1 : index
    %c0_143 = arith.constant 0 : index
    %142 = vector.load %arg1[%c0_140, %c0_141, %c1_142, %c0_143] : memref<2x4x9x128xbf16, #tpu.memory_space<vmem>>, vector<2x1x8x128xbf16>
    %143 = vector.shape_cast %142 : vector<2x1x8x128xbf16> to vector<2x8x128xbf16>
    %144 = vector.shape_cast %143 : vector<2x8x128xbf16> to vector<16x128xbf16>
    %c1_144 = arith.constant 1 : index
    %c0_145 = arith.constant 0 : index
    %c0_146 = arith.constant 0 : index
    %145 = vector.load %arg2[%c1_144, %c0_145, %c0_146] : memref<5x128x512xbf16, #tpu.memory_space<vmem>>, vector<1x128x512xbf16>
    %146 = vector.shape_cast %145 : vector<1x128x512xbf16> to vector<128x512xbf16>
    %cst_147 = arith.constant dense<0.000000e+00> : vector<16x512xf32>
    %147 = tpu.matmul %144, %146, %cst_147 {dimension_numbers = #tpu.dot_dimension_numbers<[1], [0], [0], [1], [0, 0, 1, 1], [], []>} : vector<16x128xbf16>, vector<128x512xbf16>, vector<16x512xf32> -> vector<16x512xf32>
    %148 = arith.addf %141, %147 : vector<16x512xf32>
    %c0_148 = arith.constant 0 : index
    %c1_149 = arith.constant 1 : index
    %c1_150 = arith.constant 1 : index
    %c0_151 = arith.constant 0 : index
    %149 = vector.load %arg1[%c0_148, %c1_149, %c1_150, %c0_151] : memref<2x4x9x128xbf16, #tpu.memory_space<vmem>>, vector<2x1x8x128xbf16>
    %150 = vector.shape_cast %149 : vector<2x1x8x128xbf16> to vector<2x8x128xbf16>
    %151 = vector.shape_cast %150 : vector<2x8x128xbf16> to vector<16x128xbf16>
    %c2_152 = arith.constant 2 : index
    %c0_153 = arith.constant 0 : index
    %c0_154 = arith.constant 0 : index
    %152 = vector.load %arg2[%c2_152, %c0_153, %c0_154] : memref<5x128x512xbf16, #tpu.memory_space<vmem>>, vector<1x128x512xbf16>
    %153 = vector.shape_cast %152 : vector<1x128x512xbf16> to vector<128x512xbf16>
    %cst_155 = arith.constant dense<0.000000e+00> : vector<16x512xf32>
    %154 = tpu.matmul %151, %153, %cst_155 {dimension_numbers = #tpu.dot_dimension_numbers<[1], [0], [0], [1], [0, 0, 1, 1], [], []>} : vector<16x128xbf16>, vector<128x512xbf16>, vector<16x512xf32> -> vector<16x512xf32>
    %155 = arith.addf %148, %154 : vector<16x512xf32>
    %c0_156 = arith.constant 0 : index
    %c2_157 = arith.constant 2 : index
    %c1_158 = arith.constant 1 : index
    %c0_159 = arith.constant 0 : index
    %156 = vector.load %arg1[%c0_156, %c2_157, %c1_158, %c0_159] : memref<2x4x9x128xbf16, #tpu.memory_space<vmem>>, vector<2x1x8x128xbf16>
    %157 = vector.shape_cast %156 : vector<2x1x8x128xbf16> to vector<2x8x128xbf16>
    %158 = vector.shape_cast %157 : vector<2x8x128xbf16> to vector<16x128xbf16>
    %c3_160 = arith.constant 3 : index
    %c0_161 = arith.constant 0 : index
    %c0_162 = arith.constant 0 : index
    %159 = vector.load %arg2[%c3_160, %c0_161, %c0_162] : memref<5x128x512xbf16, #tpu.memory_space<vmem>>, vector<1x128x512xbf16>
    %160 = vector.shape_cast %159 : vector<1x128x512xbf16> to vector<128x512xbf16>
    %cst_163 = arith.constant dense<0.000000e+00> : vector<16x512xf32>
    %161 = tpu.matmul %158, %160, %cst_163 {dimension_numbers = #tpu.dot_dimension_numbers<[1], [0], [0], [1], [0, 0, 1, 1], [], []>} : vector<16x128xbf16>, vector<128x512xbf16>, vector<16x512xf32> -> vector<16x512xf32>
    %162 = arith.addf %155, %161 : vector<16x512xf32>
    %c0_164 = arith.constant 0 : index
    %c3_165 = arith.constant 3 : index
    %c1_166 = arith.constant 1 : index
    %c0_167 = arith.constant 0 : index
    %163 = vector.load %arg1[%c0_164, %c3_165, %c1_166, %c0_167] : memref<2x4x9x128xbf16, #tpu.memory_space<vmem>>, vector<2x1x8x128xbf16>
    %164 = vector.shape_cast %163 : vector<2x1x8x128xbf16> to vector<2x8x128xbf16>
    %165 = vector.shape_cast %164 : vector<2x8x128xbf16> to vector<16x128xbf16>
    %c4_168 = arith.constant 4 : index
    %c0_169 = arith.constant 0 : index
    %c0_170 = arith.constant 0 : index
    %166 = vector.load %arg2[%c4_168, %c0_169, %c0_170] : memref<5x128x512xbf16, #tpu.memory_space<vmem>>, vector<1x128x512xbf16>
    %167 = vector.shape_cast %166 : vector<1x128x512xbf16> to vector<128x512xbf16>
    %cst_171 = arith.constant dense<0.000000e+00> : vector<16x512xf32>
    %168 = tpu.matmul %165, %167, %cst_171 {dimension_numbers = #tpu.dot_dimension_numbers<[1], [0], [0], [1], [0, 0, 1, 1], [], []>} : vector<16x128xbf16>, vector<128x512xbf16>, vector<16x512xf32> -> vector<16x512xf32>
    %169 = arith.addf %162, %168 : vector<16x512xf32>
    %170 = vector.broadcast %0 : vector<1x512xf32> to vector<16x512xf32>
    %171 = arith.mulf %169, %170 : vector<16x512xf32>
    %172 = vector.broadcast %1 : vector<1x512xf32> to vector<16x512xf32>
    %173 = arith.addf %171, %172 : vector<16x512xf32>
    %174 = arith.maximumf %133, %173 : vector<16x512xf32>
    %175 = vector.extract_strided_slice %174 {offsets = [0, 0], sizes = [16, 256], strides = [1, 1]} : vector<16x512xf32> to vector<16x256xf32>
    %176 = vector.extract_strided_slice %174 {offsets = [0, 256], sizes = [16, 256], strides = [1, 1]} : vector<16x512xf32> to vector<16x256xf32>
    %177 = arith.maximumf %175, %176 : vector<16x256xf32>
    %cst_172 = arith.constant 0.000000e+00 : f32
    %178 = vector.broadcast %cst_172 : f32 to vector<16x256xf32>
    %179 = arith.maximumf %177, %178 : vector<16x256xf32>
    %c0_173 = arith.constant 0 : index
    %c0_174 = arith.constant 0 : index
    %c0_175 = arith.constant 0 : index
    %180 = vector.load %arg12[%c0_173, %c0_174, %c0_175] : memref<2x10x256xbf16, #tpu.memory_space<vmem>>, vector<2x1x256xbf16>
    tpu.vector_store %arg12[%c0_173, %c0_174, %c0_175], %2 {strides = array<i32>} : memref<2x10x256xbf16, #tpu.memory_space<vmem>>, vector<2x1x256xbf16>,
    %181 = vector.shape_cast %179 : vector<16x256xf32> to vector<2x8x256xf32>
    %182 = arith.truncf %181 : vector<2x8x256xf32> to vector<2x8x256xbf16>
    %c0_176 = arith.constant 0 : index
    %c1_177 = arith.constant 1 : index
    %c0_178 = arith.constant 0 : index
    %183 = vector.load %arg12[%c0_176, %c1_177, %c0_178] : memref<2x10x256xbf16, #tpu.memory_space<vmem>>, vector<2x8x256xbf16>
    tpu.vector_store %arg12[%c0_176, %c1_177, %c0_178], %182 {strides = array<i32>} : memref<2x10x256xbf16, #tpu.memory_space<vmem>>, vector<2x8x256xbf16>,
    %c0_179 = arith.constant 0 : index
    %c9_180 = arith.constant 9 : index
    %c0_181 = arith.constant 0 : index
    %184 = vector.load %arg12[%c0_179, %c9_180, %c0_181] : memref<2x10x256xbf16, #tpu.memory_space<vmem>>, vector<2x1x256xbf16>
    tpu.vector_store %arg12[%c0_179, %c9_180, %c0_181], %2 {strides = array<i32>} : memref<2x10x256xbf16, #tpu.memory_space<vmem>>, vector<2x1x256xbf16>,
    %c0_182 = arith.constant 0 : index
    %c0_183 = arith.constant 0 : index
    %185 = vector.load %arg6[%c0_182, %c0_183] : memref<1x512xf32, #tpu.memory_space<vmem>>, vector<1x512xf32>
    %c0_184 = arith.constant 0 : index
    %c0_185 = arith.constant 0 : index
    %186 = vector.load %arg7[%c0_184, %c0_185] : memref<1x512xf32, #tpu.memory_space<vmem>>, vector<1x512xf32>
    %cst_186 = arith.constant 0.000000e+00 : f32
    %187 = vector.broadcast %cst_186 : f32 to vector<16x512xf32>
    %c0_187 = arith.constant 0 : index
    %c0_188 = arith.constant 0 : index
    %c0_189 = arith.constant 0 : index
    %188 = vector.load %arg11[%c0_187, %c0_188, %c0_189] : memref<2x10x256xbf16, #tpu.memory_space<vmem>>, vector<2x8x256xbf16>
    %189 = vector.shape_cast %188 : vector<2x8x256xbf16> to vector<16x256xbf16>
    %c0_190 = arith.constant 0 : index
    %c0_191 = arith.constant 0 : index
    %c0_192 = arith.constant 0 : index
    %190 = vector.load %arg5[%c0_190, %c0_191, %c0_192] : memref<5x256x512xbf16, #tpu.memory_space<vmem>>, vector<1x256x512xbf16>
    %191 = vector.shape_cast %190 : vector<1x256x512xbf16> to vector<256x512xbf16>
    %cst_193 = arith.constant dense<0.000000e+00> : vector<16x512xf32>
    %192 = tpu.matmul %189, %191, %cst_193 {dimension_numbers = #tpu.dot_dimension_numbers<[1], [0], [0], [1], [0, 0, 1, 1], [], []>} : vector<16x256xbf16>, vector<256x512xbf16>, vector<16x512xf32> -> vector<16x512xf32>
    %193 = arith.addf %187, %192 : vector<16x512xf32>
    %c0_194 = arith.constant 0 : index
    %c0_195 = arith.constant 0 : index
    %c0_196 = arith.constant 0 : index
    %194 = vector.load %arg12[%c0_194, %c0_195, %c0_196] : memref<2x10x256xbf16, #tpu.memory_space<vmem>>, vector<2x8x256xbf16>
    %195 = vector.shape_cast %194 : vector<2x8x256xbf16> to vector<16x256xbf16>
    %c1_197 = arith.constant 1 : index
    %c0_198 = arith.constant 0 : index
    %c0_199 = arith.constant 0 : index
    %196 = vector.load %arg5[%c1_197, %c0_198, %c0_199] : memref<5x256x512xbf16, #tpu.memory_space<vmem>>, vector<1x256x512xbf16>
    %197 = vector.shape_cast %196 : vector<1x256x512xbf16> to vector<256x512xbf16>
    %cst_200 = arith.constant dense<0.000000e+00> : vector<16x512xf32>
    %198 = tpu.matmul %195, %197, %cst_200 {dimension_numbers = #tpu.dot_dimension_numbers<[1], [0], [0], [1], [0, 0, 1, 1], [], []>} : vector<16x256xbf16>, vector<256x512xbf16>, vector<16x512xf32> -> vector<16x512xf32>
    %199 = arith.addf %193, %198 : vector<16x512xf32>
    %c0_201 = arith.constant 0 : index
    %c1_202 = arith.constant 1 : index
    %c0_203 = arith.constant 0 : index
    %200 = vector.load %arg11[%c0_201, %c1_202, %c0_203] : memref<2x10x256xbf16, #tpu.memory_space<vmem>>, vector<2x8x256xbf16>
    %201 = vector.shape_cast %200 : vector<2x8x256xbf16> to vector<16x256xbf16>
    %c2_204 = arith.constant 2 : index
    %c0_205 = arith.constant 0 : index
    %c0_206 = arith.constant 0 : index
    %202 = vector.load %arg5[%c2_204, %c0_205, %c0_206] : memref<5x256x512xbf16, #tpu.memory_space<vmem>>, vector<1x256x512xbf16>
    %203 = vector.shape_cast %202 : vector<1x256x512xbf16> to vector<256x512xbf16>
    %cst_207 = arith.constant dense<0.000000e+00> : vector<16x512xf32>
    %204 = tpu.matmul %201, %203, %cst_207 {dimension_numbers = #tpu.dot_dimension_numbers<[1], [0], [0], [1], [0, 0, 1, 1], [], []>} : vector<16x256xbf16>, vector<256x512xbf16>, vector<16x512xf32> -> vector<16x512xf32>
    %205 = arith.addf %199, %204 : vector<16x512xf32>
    %c0_208 = arith.constant 0 : index
    %c1_209 = arith.constant 1 : index
    %c0_210 = arith.constant 0 : index
    %206 = vector.load %arg12[%c0_208, %c1_209, %c0_210] : memref<2x10x256xbf16, #tpu.memory_space<vmem>>, vector<2x8x256xbf16>
    %207 = vector.shape_cast %206 : vector<2x8x256xbf16> to vector<16x256xbf16>
    %c3_211 = arith.constant 3 : index
    %c0_212 = arith.constant 0 : index
    %c0_213 = arith.constant 0 : index
    %208 = vector.load %arg5[%c3_211, %c0_212, %c0_213] : memref<5x256x512xbf16, #tpu.memory_space<vmem>>, vector<1x256x512xbf16>
    %209 = vector.shape_cast %208 : vector<1x256x512xbf16> to vector<256x512xbf16>
    %cst_214 = arith.constant dense<0.000000e+00> : vector<16x512xf32>
    %210 = tpu.matmul %207, %209, %cst_214 {dimension_numbers = #tpu.dot_dimension_numbers<[1], [0], [0], [1], [0, 0, 1, 1], [], []>} : vector<16x256xbf16>, vector<256x512xbf16>, vector<16x512xf32> -> vector<16x512xf32>
    %211 = arith.addf %205, %210 : vector<16x512xf32>
    %c0_215 = arith.constant 0 : index
    %c2_216 = arith.constant 2 : index
    %c0_217 = arith.constant 0 : index
    %212 = vector.load %arg11[%c0_215, %c2_216, %c0_217] : memref<2x10x256xbf16, #tpu.memory_space<vmem>>, vector<2x8x256xbf16>
    %213 = vector.shape_cast %212 : vector<2x8x256xbf16> to vector<16x256xbf16>
    %c4_218 = arith.constant 4 : index
    %c0_219 = arith.constant 0 : index
    %c0_220 = arith.constant 0 : index
    %214 = vector.load %arg5[%c4_218, %c0_219, %c0_220] : memref<5x256x512xbf16, #tpu.memory_space<vmem>>, vector<1x256x512xbf16>
    %215 = vector.shape_cast %214 : vector<1x256x512xbf16> to vector<256x512xbf16>
    %cst_221 = arith.constant dense<0.000000e+00> : vector<16x512xf32>
    %216 = tpu.matmul %213, %215, %cst_221 {dimension_numbers = #tpu.dot_dimension_numbers<[1], [0], [0], [1], [0, 0, 1, 1], [], []>} : vector<16x256xbf16>, vector<256x512xbf16>, vector<16x512xf32> -> vector<16x512xf32>
    %217 = arith.addf %211, %216 : vector<16x512xf32>
    %218 = vector.broadcast %185 : vector<1x512xf32> to vector<16x512xf32>
    %219 = arith.mulf %217, %218 : vector<16x512xf32>
    %220 = vector.broadcast %186 : vector<1x512xf32> to vector<16x512xf32>
    %221 = arith.addf %219, %220 : vector<16x512xf32>
    %cst_222 = arith.constant 0.000000e+00 : f32
    %222 = vector.broadcast %cst_222 : f32 to vector<16x512xf32>
    %c0_223 = arith.constant 0 : index
    %c0_224 = arith.constant 0 : index
    %c0_225 = arith.constant 0 : index
    %223 = vector.load %arg12[%c0_223, %c0_224, %c0_225] : memref<2x10x256xbf16, #tpu.memory_space<vmem>>, vector<2x8x256xbf16>
    %224 = vector.shape_cast %223 : vector<2x8x256xbf16> to vector<16x256xbf16>
    %c0_226 = arith.constant 0 : index
    %c0_227 = arith.constant 0 : index
    %c0_228 = arith.constant 0 : index
    %225 = vector.load %arg5[%c0_226, %c0_227, %c0_228] : memref<5x256x512xbf16, #tpu.memory_space<vmem>>, vector<1x256x512xbf16>
    %226 = vector.shape_cast %225 : vector<1x256x512xbf16> to vector<256x512xbf16>
    %cst_229 = arith.constant dense<0.000000e+00> : vector<16x512xf32>
    %227 = tpu.matmul %224, %226, %cst_229 {dimension_numbers = #tpu.dot_dimension_numbers<[1], [0], [0], [1], [0, 0, 1, 1], [], []>} : vector<16x256xbf16>, vector<256x512xbf16>, vector<16x512xf32> -> vector<16x512xf32>
    %228 = arith.addf %222, %227 : vector<16x512xf32>
    %c0_230 = arith.constant 0 : index
    %c1_231 = arith.constant 1 : index
    %c0_232 = arith.constant 0 : index
    %229 = vector.load %arg11[%c0_230, %c1_231, %c0_232] : memref<2x10x256xbf16, #tpu.memory_space<vmem>>, vector<2x8x256xbf16>
    %230 = vector.shape_cast %229 : vector<2x8x256xbf16> to vector<16x256xbf16>
    %c1_233 = arith.constant 1 : index
    %c0_234 = arith.constant 0 : index
    %c0_235 = arith.constant 0 : index
    %231 = vector.load %arg5[%c1_233, %c0_234, %c0_235] : memref<5x256x512xbf16, #tpu.memory_space<vmem>>, vector<1x256x512xbf16>
    %232 = vector.shape_cast %231 : vector<1x256x512xbf16> to vector<256x512xbf16>
    %cst_236 = arith.constant dense<0.000000e+00> : vector<16x512xf32>
    %233 = tpu.matmul %230, %232, %cst_236 {dimension_numbers = #tpu.dot_dimension_numbers<[1], [0], [0], [1], [0, 0, 1, 1], [], []>} : vector<16x256xbf16>, vector<256x512xbf16>, vector<16x512xf32> -> vector<16x512xf32>
    %234 = arith.addf %228, %233 : vector<16x512xf32>
    %c0_237 = arith.constant 0 : index
    %c1_238 = arith.constant 1 : index
    %c0_239 = arith.constant 0 : index
    %235 = vector.load %arg12[%c0_237, %c1_238, %c0_239] : memref<2x10x256xbf16, #tpu.memory_space<vmem>>, vector<2x8x256xbf16>
    %236 = vector.shape_cast %235 : vector<2x8x256xbf16> to vector<16x256xbf16>
    %c2_240 = arith.constant 2 : index
    %c0_241 = arith.constant 0 : index
    %c0_242 = arith.constant 0 : index
    %237 = vector.load %arg5[%c2_240, %c0_241, %c0_242] : memref<5x256x512xbf16, #tpu.memory_space<vmem>>, vector<1x256x512xbf16>
    %238 = vector.shape_cast %237 : vector<1x256x512xbf16> to vector<256x512xbf16>
    %cst_243 = arith.constant dense<0.000000e+00> : vector<16x512xf32>
    %239 = tpu.matmul %236, %238, %cst_243 {dimension_numbers = #tpu.dot_dimension_numbers<[1], [0], [0], [1], [0, 0, 1, 1], [], []>} : vector<16x256xbf16>, vector<256x512xbf16>, vector<16x512xf32> -> vector<16x512xf32>
    %240 = arith.addf %234, %239 : vector<16x512xf32>
    %c0_244 = arith.constant 0 : index
    %c2_245 = arith.constant 2 : index
    %c0_246 = arith.constant 0 : index
    %241 = vector.load %arg11[%c0_244, %c2_245, %c0_246] : memref<2x10x256xbf16, #tpu.memory_space<vmem>>, vector<2x8x256xbf16>
    %242 = vector.shape_cast %241 : vector<2x8x256xbf16> to vector<16x256xbf16>
    %c3_247 = arith.constant 3 : index
    %c0_248 = arith.constant 0 : index
    %c0_249 = arith.constant 0 : index
    %243 = vector.load %arg5[%c3_247, %c0_248, %c0_249] : memref<5x256x512xbf16, #tpu.memory_space<vmem>>, vector<1x256x512xbf16>
    %244 = vector.shape_cast %243 : vector<1x256x512xbf16> to vector<256x512xbf16>
    %cst_250 = arith.constant dense<0.000000e+00> : vector<16x512xf32>
    %245 = tpu.matmul %242, %244, %cst_250 {dimension_numbers = #tpu.dot_dimension_numbers<[1], [0], [0], [1], [0, 0, 1, 1], [], []>} : vector<16x256xbf16>, vector<256x512xbf16>, vector<16x512xf32> -> vector<16x512xf32>
    %246 = arith.addf %240, %245 : vector<16x512xf32>
    %c0_251 = arith.constant 0 : index
    %c2_252 = arith.constant 2 : index
    %c0_253 = arith.constant 0 : index
    %247 = vector.load %arg12[%c0_251, %c2_252, %c0_253] : memref<2x10x256xbf16, #tpu.memory_space<vmem>>, vector<2x8x256xbf16>
    %248 = vector.shape_cast %247 : vector<2x8x256xbf16> to vector<16x256xbf16>
    %c4_254 = arith.constant 4 : index
    %c0_255 = arith.constant 0 : index
    %c0_256 = arith.constant 0 : index
    %249 = vector.load %arg5[%c4_254, %c0_255, %c0_256] : memref<5x256x512xbf16, #tpu.memory_space<vmem>>, vector<1x256x512xbf16>
    %250 = vector.shape_cast %249 : vector<1x256x512xbf16> to vector<256x512xbf16>
    %cst_257 = arith.constant dense<0.000000e+00> : vector<16x512xf32>
    %251 = tpu.matmul %248, %250, %cst_257 {dimension_numbers = #tpu.dot_dimension_numbers<[1], [0], [0], [1], [0, 0, 1, 1], [], []>} : vector<16x256xbf16>, vector<256x512xbf16>, vector<16x512xf32> -> vector<16x512xf32>
    %252 = arith.addf %246, %251 : vector<16x512xf32>
    %253 = vector.broadcast %185 : vector<1x512xf32> to vector<16x512xf32>
    %254 = arith.mulf %252, %253 : vector<16x512xf32>
    %255 = vector.broadcast %186 : vector<1x512xf32> to vector<16x512xf32>
    %256 = arith.addf %254, %255 : vector<16x512xf32>
    %257 = arith.maximumf %221, %256 : vector<16x512xf32>
    %258 = vector.extract_strided_slice %257 {offsets = [0, 0], sizes = [16, 256], strides = [1, 1]} : vector<16x512xf32> to vector<16x256xf32>
    %259 = vector.extract_strided_slice %257 {offsets = [0, 256], sizes = [16, 256], strides = [1, 1]} : vector<16x512xf32> to vector<16x256xf32>
    %260 = arith.maximumf %258, %259 : vector<16x256xf32>
    %cst_258 = arith.constant 0.000000e+00 : f32
    %261 = vector.broadcast %cst_258 : f32 to vector<16x256xf32>
    %262 = arith.maximumf %260, %261 : vector<16x256xf32>
    %263 = vector.shape_cast %262 : vector<16x256xf32> to vector<2x8x256xf32>
    %264 = arith.truncf %263 : vector<2x8x256xf32> to vector<2x8x256xbf16>
    %cst_259 = arith.constant 0.000000e+00 : f32
    %265 = vector.broadcast %cst_259 : f32 to vector<2x128xf32>
    %266 = vector.extract_strided_slice %264 {offsets = [0, 0, 0], sizes = [2, 1, 256], strides = [1, 1, 1]} : vector<2x8x256xbf16> to vector<2x1x256xbf16>
    %267 = vector.shape_cast %266 : vector<2x1x256xbf16> to vector<2x256xbf16>
    %c0_260 = arith.constant 0 : index
    %c0_261 = arith.constant 0 : index
    %c0_262 = arith.constant 0 : index
    %268 = vector.load %arg8[%c0_260, %c0_261, %c0_262] : memref<8x256x128xbf16, #tpu.memory_space<vmem>>, vector<1x256x128xbf16>
    %269 = vector.shape_cast %268 : vector<1x256x128xbf16> to vector<256x128xbf16>
    %cst_263 = arith.constant dense<0.000000e+00> : vector<2x128xf32>
    %270 = tpu.matmul %267, %269, %cst_263 {dimension_numbers = #tpu.dot_dimension_numbers<[1], [0], [0], [1], [0, 0, 1, 1], [], []>} : vector<2x256xbf16>, vector<256x128xbf16>, vector<2x128xf32> -> vector<2x128xf32>
    %271 = arith.addf %265, %270 : vector<2x128xf32>
    %272 = vector.extract_strided_slice %264 {offsets = [0, 1, 0], sizes = [2, 1, 256], strides = [1, 1, 1]} : vector<2x8x256xbf16> to vector<2x1x256xbf16>
    %273 = vector.shape_cast %272 : vector<2x1x256xbf16> to vector<2x256xbf16>
    %c1_264 = arith.constant 1 : index
    %c0_265 = arith.constant 0 : index
    %c0_266 = arith.constant 0 : index
    %274 = vector.load %arg8[%c1_264, %c0_265, %c0_266] : memref<8x256x128xbf16, #tpu.memory_space<vmem>>, vector<1x256x128xbf16>
    %275 = vector.shape_cast %274 : vector<1x256x128xbf16> to vector<256x128xbf16>
    %cst_267 = arith.constant dense<0.000000e+00> : vector<2x128xf32>
    %276 = tpu.matmul %273, %275, %cst_267 {dimension_numbers = #tpu.dot_dimension_numbers<[1], [0], [0], [1], [0, 0, 1, 1], [], []>} : vector<2x256xbf16>, vector<256x128xbf16>, vector<2x128xf32> -> vector<2x128xf32>
    %277 = arith.addf %271, %276 : vector<2x128xf32>
    %278 = vector.extract_strided_slice %264 {offsets = [0, 2, 0], sizes = [2, 1, 256], strides = [1, 1, 1]} : vector<2x8x256xbf16> to vector<2x1x256xbf16>
    %279 = vector.shape_cast %278 : vector<2x1x256xbf16> to vector<2x256xbf16>
    %c2_268 = arith.constant 2 : index
    %c0_269 = arith.constant 0 : index
    %c0_270 = arith.constant 0 : index
    %280 = vector.load %arg8[%c2_268, %c0_269, %c0_270] : memref<8x256x128xbf16, #tpu.memory_space<vmem>>, vector<1x256x128xbf16>
    %281 = vector.shape_cast %280 : vector<1x256x128xbf16> to vector<256x128xbf16>
    %cst_271 = arith.constant dense<0.000000e+00> : vector<2x128xf32>
    %282 = tpu.matmul %279, %281, %cst_271 {dimension_numbers = #tpu.dot_dimension_numbers<[1], [0], [0], [1], [0, 0, 1, 1], [], []>} : vector<2x256xbf16>, vector<256x128xbf16>, vector<2x128xf32> -> vector<2x128xf32>
    %283 = arith.addf %277, %282 : vector<2x128xf32>
    %284 = vector.extract_strided_slice %264 {offsets = [0, 3, 0], sizes = [2, 1, 256], strides = [1, 1, 1]} : vector<2x8x256xbf16> to vector<2x1x256xbf16>
    %285 = vector.shape_cast %284 : vector<2x1x256xbf16> to vector<2x256xbf16>
    %c3_272 = arith.constant 3 : index
    %c0_273 = arith.constant 0 : index
    %c0_274 = arith.constant 0 : index
    %286 = vector.load %arg8[%c3_272, %c0_273, %c0_274] : memref<8x256x128xbf16, #tpu.memory_space<vmem>>, vector<1x256x128xbf16>
    %287 = vector.shape_cast %286 : vector<1x256x128xbf16> to vector<256x128xbf16>
    %cst_275 = arith.constant dense<0.000000e+00> : vector<2x128xf32>
    %288 = tpu.matmul %285, %287, %cst_275 {dimension_numbers = #tpu.dot_dimension_numbers<[1], [0], [0], [1], [0, 0, 1, 1], [], []>} : vector<2x256xbf16>, vector<256x128xbf16>, vector<2x128xf32> -> vector<2x128xf32>
    %289 = arith.addf %283, %288 : vector<2x128xf32>
    %290 = vector.extract_strided_slice %264 {offsets = [0, 4, 0], sizes = [2, 1, 256], strides = [1, 1, 1]} : vector<2x8x256xbf16> to vector<2x1x256xbf16>
    %291 = vector.shape_cast %290 : vector<2x1x256xbf16> to vector<2x256xbf16>
    %c4_276 = arith.constant 4 : index
    %c0_277 = arith.constant 0 : index
    %c0_278 = arith.constant 0 : index
    %292 = vector.load %arg8[%c4_276, %c0_277, %c0_278] : memref<8x256x128xbf16, #tpu.memory_space<vmem>>, vector<1x256x128xbf16>
    %293 = vector.shape_cast %292 : vector<1x256x128xbf16> to vector<256x128xbf16>
    %cst_279 = arith.constant dense<0.000000e+00> : vector<2x128xf32>
    %294 = tpu.matmul %291, %293, %cst_279 {dimension_numbers = #tpu.dot_dimension_numbers<[1], [0], [0], [1], [0, 0, 1, 1], [], []>} : vector<2x256xbf16>, vector<256x128xbf16>, vector<2x128xf32> -> vector<2x128xf32>
    %295 = arith.addf %289, %294 : vector<2x128xf32>
    %296 = vector.extract_strided_slice %264 {offsets = [0, 5, 0], sizes = [2, 1, 256], strides = [1, 1, 1]} : vector<2x8x256xbf16> to vector<2x1x256xbf16>
    %297 = vector.shape_cast %296 : vector<2x1x256xbf16> to vector<2x256xbf16>
    %c5 = arith.constant 5 : index
    %c0_280 = arith.constant 0 : index
    %c0_281 = arith.constant 0 : index
    %298 = vector.load %arg8[%c5, %c0_280, %c0_281] : memref<8x256x128xbf16, #tpu.memory_space<vmem>>, vector<1x256x128xbf16>
    %299 = vector.shape_cast %298 : vector<1x256x128xbf16> to vector<256x128xbf16>
    %cst_282 = arith.constant dense<0.000000e+00> : vector<2x128xf32>
    %300 = tpu.matmul %297, %299, %cst_282 {dimension_numbers = #tpu.dot_dimension_numbers<[1], [0], [0], [1], [0, 0, 1, 1], [], []>} : vector<2x256xbf16>, vector<256x128xbf16>, vector<2x128xf32> -> vector<2x128xf32>
    %301 = arith.addf %295, %300 : vector<2x128xf32>
    %302 = vector.extract_strided_slice %264 {offsets = [0, 6, 0], sizes = [2, 1, 256], strides = [1, 1, 1]} : vector<2x8x256xbf16> to vector<2x1x256xbf16>
    %303 = vector.shape_cast %302 : vector<2x1x256xbf16> to vector<2x256xbf16>
    %c6 = arith.constant 6 : index
    %c0_283 = arith.constant 0 : index
    %c0_284 = arith.constant 0 : index
    %304 = vector.load %arg8[%c6, %c0_283, %c0_284] : memref<8x256x128xbf16, #tpu.memory_space<vmem>>, vector<1x256x128xbf16>
    %305 = vector.shape_cast %304 : vector<1x256x128xbf16> to vector<256x128xbf16>
    %cst_285 = arith.constant dense<0.000000e+00> : vector<2x128xf32>
    %306 = tpu.matmul %303, %305, %cst_285 {dimension_numbers = #tpu.dot_dimension_numbers<[1], [0], [0], [1], [0, 0, 1, 1], [], []>} : vector<2x256xbf16>, vector<256x128xbf16>, vector<2x128xf32> -> vector<2x128xf32>
    %307 = arith.addf %301, %306 : vector<2x128xf32>
    %308 = vector.extract_strided_slice %264 {offsets = [0, 7, 0], sizes = [2, 1, 256], strides = [1, 1, 1]} : vector<2x8x256xbf16> to vector<2x1x256xbf16>
    %309 = vector.shape_cast %308 : vector<2x1x256xbf16> to vector<2x256xbf16>
    %c7 = arith.constant 7 : index
    %c0_286 = arith.constant 0 : index
    %c0_287 = arith.constant 0 : index
    %310 = vector.load %arg8[%c7, %c0_286, %c0_287] : memref<8x256x128xbf16, #tpu.memory_space<vmem>>, vector<1x256x128xbf16>
    %311 = vector.shape_cast %310 : vector<1x256x128xbf16> to vector<256x128xbf16>
    %cst_288 = arith.constant dense<0.000000e+00> : vector<2x128xf32>
    %312 = tpu.matmul %309, %311, %cst_288 {dimension_numbers = #tpu.dot_dimension_numbers<[1], [0], [0], [1], [0, 0, 1, 1], [], []>} : vector<2x256xbf16>, vector<256x128xbf16>, vector<2x128xf32> -> vector<2x128xf32>
    %313 = arith.addf %307, %312 : vector<2x128xf32>
    %c0_289 = arith.constant 0 : index
    %c0_290 = arith.constant 0 : index
    %314 = vector.load %arg9[%c0_289, %c0_290] : memref<1x128xf32, #tpu.memory_space<vmem>>, vector<1x128xf32>
    %315 = vector.broadcast %314 : vector<1x128xf32> to vector<2x128xf32>
    %316 = arith.addf %313, %315 : vector<2x128xf32>
    %c0_291 = arith.constant 0 : index
    %c0_292 = arith.constant 0 : index
    %317 = vector.load %arg10[%c0_291, %c0_292] : memref<2x128xf32, #tpu.memory_space<vmem>>, vector<2x128xf32>
    tpu.vector_store %arg10[%c0_291, %c0_292], %316 {strides = array<i32>} : memref<2x128xf32, #tpu.memory_space<vmem>>, vector<2x128xf32>,
    return
  }
  func.func @transform_0(%arg0: i32) -> (i32, i32, i32, i32) {
    %c0_i32 = arith.constant 0 : i32
    %c0_i32_0 = arith.constant 0 : i32
    %c0_i32_1 = arith.constant 0 : i32
    %c0_i32_2 = arith.constant 0 : i32
    return %arg0, %c0_i32, %c0_i32_0, %c0_i32_1 : i32, i32, i32, i32
  }
  func.func @transform_1(%arg0: i32) -> (i32, i32, i32) {
    %c0_i32 = arith.constant 0 : i32
    %c0_i32_0 = arith.constant 0 : i32
    %c0_i32_1 = arith.constant 0 : i32
    %c0_i32_2 = arith.constant 0 : i32
    return %c0_i32, %c0_i32_0, %c0_i32_1 : i32, i32, i32
  }
  func.func @transform_2(%arg0: i32) -> (i32, i32) {
    %c0_i32 = arith.constant 0 : i32
    %c0_i32_0 = arith.constant 0 : i32
    %c0_i32_1 = arith.constant 0 : i32
    return %c0_i32, %c0_i32_0 : i32, i32
  }
  func.func @transform_3(%arg0: i32) -> (i32, i32) {
    %c0_i32 = arith.constant 0 : i32
    %c0_i32_0 = arith.constant 0 : i32
    %c0_i32_1 = arith.constant 0 : i32
    return %c0_i32, %c0_i32_0 : i32, i32
  }
  func.func @transform_4(%arg0: i32) -> (i32, i32, i32) {
    %c0_i32 = arith.constant 0 : i32
    %c0_i32_0 = arith.constant 0 : i32
    %c0_i32_1 = arith.constant 0 : i32
    %c0_i32_2 = arith.constant 0 : i32
    return %c0_i32, %c0_i32_0, %c0_i32_1 : i32, i32, i32
  }
  func.func @transform_5(%arg0: i32) -> (i32, i32) {
    %c0_i32 = arith.constant 0 : i32
    %c0_i32_0 = arith.constant 0 : i32
    %c0_i32_1 = arith.constant 0 : i32
    return %c0_i32, %c0_i32_0 : i32, i32
  }
  func.func @transform_6(%arg0: i32) -> (i32, i32) {
    %c0_i32 = arith.constant 0 : i32
    %c0_i32_0 = arith.constant 0 : i32
    %c0_i32_1 = arith.constant 0 : i32
    return %c0_i32, %c0_i32_0 : i32, i32
  }
  func.func @transform_7(%arg0: i32) -> (i32, i32, i32) {
    %c0_i32 = arith.constant 0 : i32
    %c0_i32_0 = arith.constant 0 : i32
    %c0_i32_1 = arith.constant 0 : i32
    %c0_i32_2 = arith.constant 0 : i32
    return %c0_i32, %c0_i32_0, %c0_i32_1 : i32, i32, i32
  }
  func.func @transform_8(%arg0: i32) -> (i32, i32) {
    %c0_i32 = arith.constant 0 : i32
    %c0_i32_0 = arith.constant 0 : i32
    %c0_i32_1 = arith.constant 0 : i32
    return %c0_i32, %c0_i32_0 : i32, i32
  }
  func.func @transform_9(%arg0: i32) -> (i32, i32) {
    %c0_i32 = arith.constant 0 : i32
    %c0_i32_0 = arith.constant 0 : i32
    return %arg0, %c0_i32 : i32, i32
  }
}

</mosaic_0001>

<bundles_post_ra>
// kernel: tile.25
= control target key start
LH: loop header
LB: loop body
LE: loop exit
PB: predicated region body
PF: predicated region fallthrough
CT: control target
= control target key end

     0   :  { %s7_s6 = smov 3  ;;  %s21_s9 = smov 3  ;;  %vm4_vm0 = vcmask 64512   ;;  %vm11_vm1 = vcmask 1048512   ;;  %vm18_vm2 = vcmask 982912   ;;  %vm25_vm3 = vcmask 917312   ;;  %s223_s0 = inlined_call_operand.vmem [shape: f32[32,8], index: 0, kind: input, shape index: {}]   ;;  %s224_s1 = inlined_call_operand.vmem [shape: f32[256], index: 1, kind: output, shape index: {}]  }
   0x1   :  { %v117_v0 = vld [vmem:[%s223_s0 + $0xf] ss:$16 sm:%s7_s6]   ;;  %s147_s10 = smov 120   ;;  %v119_v1 = vld [vmem:[%s223_s0 + $0xd] ss:$16 sm:%s21_s9]   ;;  %s14_s13 = smov 3 }
   0x2   :  { %9 = vrot.lane.b32.xlu0 %v117_v0, %s147_s10  ;;  %s148_s14 = smov 104   ;;  %v118_v2 = vld [vmem:[%s223_s0 + $0xe] ss:$16 sm:%s14_s13]   ;;  %s28_s17 = smov 3  ;;  %vm32_vm4 = vcmask 851712   ;;  %vm39_vm5 = vcmask 786112  }
   0x3   :  { %23 = vrot.lane.b32.xlu1 %v119_v1, %s148_s14  ;;  %v120_v3 = vld [vmem:[%s223_s0 + $0xc] ss:$16 sm:%s28_s17]   ;;  %s35_s20 = smov 3  ;;  %s42_s21 = smov 3  ;;  %vm46_vm6 = vcmask 720512   ;;  %vm53_vm7 = vcmask 654912  }
   0x4   :  { %s149_s22 = smov 112   ;;  %s150_s23 = smov 96   ;;  %v121_v4 = vld [vmem:[%s223_s0 + $0xb] ss:$16 sm:%s35_s20]   ;;  %v122_v5 = vld [vmem:[%s223_s0 + $0xa] ss:$16 sm:%s42_s21]  }
   0x5   :  { %s49_s28 = smov 3  ;;  %s56_s29 = smov 3  ;;  %vm60_vm8 = vcmask 589312   ;;  %vm67_vm9 = vcmask 523712   ;;  %vm74_vm10 = vcmask 458112   ;;  %vm81_vm11 = vcmask 392512  }
   0x6   :  { %16 = vrot.lane.b32.xlu0 %v118_v2, %s149_s22  ;;  %s151_s30 = smov 88   ;;  %s152_s2 = smov 80   ;;  %v123_v6 = vld [vmem:[%s223_s0 + $0x9] ss:$16 sm:%s49_s28]   ;;  %vm88_vm12 = vcmask 326912   ;;  %vm95_vm13 = vcmask 261312  }
   0x7   :  { %30 = vrot.lane.b32.xlu1 %v120_v3, %s150_s23  ;;  %v124_v7 = vld [vmem:[%s223_s0 + $0x8] ss:$16 sm:%s56_s29]   ;;  %s63_s7 = smov 3  ;;  %s70_s8 = smov 3  ;;  %vm102_vm14 = vcmask 195712   ;;  %vm109_vm15 = vcmask 130112  }
   0x8   :  { %s153_s9 = smov 72   ;;  %s154_s10 = smov 64   ;;  %v125_v8 = vld [vmem:[%s223_s0 + $0x7] ss:$16 sm:%s63_s7]   ;;  %v126_v9 = vld [vmem:[%s223_s0 + $0x6] ss:$16 sm:%s70_s8]  }
   0x9   :  { %s2_s13 = smov 3  ;;  %s77_s16 = smov 3 }
   0xa   :  { %37 = vrot.lane.b32.xlu0 %v121_v4, %s151_s30  ;;  %v3_v10 = vld [vmem:[%s223_s0] ss:$16 sm:%s2_s13]   ;;  %s84_s19 = smov 3  ;;  %s155_s20 = smov 56  }
   0xb   :  { %44 = vrot.lane.b32.xlu1 %v122_v5, %s152_s2  ;;  %5 = vst.msk [vmem:[#allocation0] sm:$0x3] %vm4_vm0, %v3_v10   ;;  %s156_s21 = smov 48   ;;  %v127_v11 = vld [vmem:[%s223_s0 + $0x5] ss:$16 sm:%s77_s16]   ;;  %s91_s26 = smov 3 }
   0xc   :  { %v128_v12 = vld [vmem:[%s223_s0 + $0x4] ss:$16 sm:%s84_s19]   ;;  %s98_s27 = smov 3  ;;  %s157_s28 = smov 40   ;;  %v129_v13 = vld [vmem:[%s223_s0 + $0x3] ss:$16 sm:%s91_s26]  }
   0xd   :  { %s158_s29 = smov 32   ;;  %v130_v14 = vld [vmem:[%s223_s0 + $0x2] ss:$16 sm:%s98_s27]   ;;  %s105_s5 = smov 3 }
   0xe   :  { %51 = vrot.lane.b32.xlu0 %v123_v6, %s153_s9  ;;  %s159_s6 = smov 24   ;;  %s160_s7 = smov 16   ;;  %v131_v15 = vld [vmem:[%s223_s0 + $0x1] ss:$16 sm:%s105_s5]  }
   0xf   :  { %58 = vrot.lane.b32.xlu1 %v124_v7, %s154_s10  ;;  %s161_s0 = smov 8  }
  0x12   :  { %65 = vrot.lane.b32.xlu0 %v125_v8, %s155_s20 }
  0x13   :  { %72 = vrot.lane.b32.xlu1 %v126_v9, %s156_s21 }
  0x16   :  { %79 = vrot.lane.b32.xlu0 %v127_v11, %s157_s28 }
  0x17   :  { %86 = vrot.lane.b32.xlu1 %v128_v12, %s158_s29 }
  0x1a   :  { %93 = vrot.lane.b32.xlu0 %v129_v13, %s159_s6 }
  0x1b   :  { %100 = vrot.lane.b32.xlu1 %v130_v14, %s160_s7 }
  0x1e   :  { %107 = vrot.lane.b32.xlu0 %v131_v15, %s161_s0 }
  0x74   :  { %v10_v16 = vpop.permute.xlu0 %9  }
  0x75   :  { %12 = vst.msk [vmem:[#allocation0] sm:$0x3] %vm11_vm1, %v10_v16   ;;  %v24_v17 = vpop.permute.xlu1 %23  }
  0x78   :  { %v17_v18 = vpop.permute.xlu0 %16  }
  0x79   :  { %19 = vst.msk [vmem:[#allocation0] sm:$0x3] %vm18_vm2, %v17_v18   ;;  %v31_v19 = vpop.permute.xlu1 %30  }
  0x7a   :  { %26 = vst.msk [vmem:[#allocation0] sm:$0x3] %vm25_vm3, %v24_v17  }
  0x7b   :  { %33 = vst.msk [vmem:[#allocation0] sm:$0x3] %vm32_vm4, %v31_v19  }
  0x7c   :  { %v38_v20 = vpop.permute.xlu0 %37  }
  0x7d   :  { %40 = vst.msk [vmem:[#allocation0] sm:$0x3] %vm39_vm5, %v38_v20   ;;  %v45_v21 = vpop.permute.xlu1 %44  }
  0x7e   :  { %47 = vst.msk [vmem:[#allocation0] sm:$0x3] %vm46_vm6, %v45_v21  }
  0x80   :  { %v52_v22 = vpop.permute.xlu0 %51  }
  0x81   :  { %54 = vst.msk [vmem:[#allocation0] sm:$0x3] %vm53_vm7, %v52_v22   ;;  %v59_v23 = vpop.permute.xlu1 %58  }
  0x82   :  { %61 = vst.msk [vmem:[#allocation0] sm:$0x3] %vm60_vm8, %v59_v23  }
  0x84   :  { %v66_v24 = vpop.permute.xlu0 %65  }
  0x85   :  { %68 = vst.msk [vmem:[#allocation0] sm:$0x3] %vm67_vm9, %v66_v24   ;;  %v73_v25 = vpop.permute.xlu1 %72  }
  0x86   :  { %75 = vst.msk [vmem:[#allocation0] sm:$0x3] %vm74_vm10, %v73_v25  }
  0x88   :  { %v80_v26 = vpop.permute.xlu0 %79  }
  0x89   :  { %82 = vst.msk [vmem:[#allocation0] sm:$0x3] %vm81_vm11, %v80_v26   ;;  %v87_v27 = vpop.permute.xlu1 %86  }
  0x8a   :  { %89 = vst.msk [vmem:[#allocation0] sm:$0x3] %vm88_vm12, %v87_v27  }
  0x8c   :  { %v94_v28 = vpop.permute.xlu0 %93  }
  0x8d   :  { %96 = vst.msk [vmem:[#allocation0] sm:$0x3] %vm95_vm13, %v94_v28   ;;  %v101_v29 = vpop.permute.xlu1 %100  }
  0x8e   :  { %103 = vst.msk [vmem:[#allocation0] sm:$0x3] %vm102_vm14, %v101_v29  }
  0x90   :  { %v108_v30 = vpop.permute.xlu0 %107  }
  0x91   :  { %110 = vst.msk [vmem:[#allocation0] sm:$0x3] %vm109_vm15, %v108_v30  }
  0x98   :  { %v114_v31 = vld [vmem:[#allocation0] sm:$0x3] }
  0x99   :  { %116 = vst [vmem:[%s224_s1] sm:$0x3] %v114_v31 }

// kernel: tile.17
= control target key start
LH: loop header
LB: loop body
LE: loop exit
PB: predicated region body
PF: predicated region fallthrough
CT: control target
= control target key end

     0   :  { %s7_s6 = smov 3  ;;  %s21_s9 = smov 3  ;;  %vm4_vm0 = vcmask 130048   ;;  %vm11_vm1 = vcmask 1048448   ;;  %vm18_vm2 = vcmask 917248   ;;  %vm25_vm3 = vcmask 786048   ;;  %s119_s0 = inlined_call_operand.vmem [shape: f32[16,16], index: 0, kind: input, shape index: {}]   ;;  %s120_s1 = inlined_call_operand.vmem [shape: f32[256], index: 1, kind: output, shape index: {}]  }
   0x1   :  { %v61_v0 = vld [vmem:[%s119_s0 + $0x7] ss:$8 sm:%s7_s6]   ;;  %s75_s10 = smov 112   ;;  %v63_v1 = vld [vmem:[%s119_s0 + $0x5] ss:$8 sm:%s21_s9]   ;;  %s14_s13 = smov 3 }
   0x2   :  { %9 = vrot.lane.b32.xlu0 %v61_v0, %s75_s10  ;;  %s76_s14 = smov 80   ;;  %v62_v2 = vld [vmem:[%s119_s0 + $0x6] ss:$8 sm:%s14_s13]   ;;  %s28_s17 = smov 3  ;;  %vm32_vm4 = vcmask 654848   ;;  %vm39_vm5 = vcmask 523648  }
   0x3   :  { %23 = vrot.lane.b32.xlu1 %v63_v1, %s76_s14  ;;  %v64_v3 = vld [vmem:[%s119_s0 + $0x4] ss:$8 sm:%s28_s17]   ;;  %s35_s20 = smov 3  ;;  %s42_s21 = smov 3  ;;  %vm46_vm6 = vcmask 392448   ;;  %vm53_vm7 = vcmask 261248  }
   0x4   :  { %s77_s22 = smov 96   ;;  %s78_s23 = smov 64   ;;  %v65_v4 = vld [vmem:[%s119_s0 + $0x3] ss:$8 sm:%s35_s20]   ;;  %v66_v5 = vld [vmem:[%s119_s0 + $0x2] ss:$8 sm:%s42_s21]  }
   0x5   :  { %s2_s26 = smov 3  ;;  %s49_s29 = smov 3 }
   0x6   :  { %16 = vrot.lane.b32.xlu0 %v62_v2, %s77_s22  ;;  %v3_v6 = vld [vmem:[%s119_s0] ss:$8 sm:%s2_s26]   ;;  %s79_s3 = smov 48   ;;  %s80_s4 = smov 32  }
   0x7   :  { %30 = vrot.lane.b32.xlu1 %v64_v3, %s78_s23  ;;  %5 = vst.msk [vmem:[#allocation0] sm:$0x3] %vm4_vm0, %v3_v6   ;;  %v67_v7 = vld [vmem:[%s119_s0 + $0x1] ss:$8 sm:%s49_s29]   ;;  %s81_s0 = smov 16  }
   0xa   :  { %37 = vrot.lane.b32.xlu0 %v65_v4, %s79_s3 }
   0xb   :  { %44 = vrot.lane.b32.xlu1 %v66_v5, %s80_s4 }
   0xe   :  { %51 = vrot.lane.b32.xlu0 %v67_v7, %s81_s0 }
  0x74   :  { %v10_v8 = vpop.permute.xlu0 %9  }
  0x75   :  { %12 = vst.msk [vmem:[#allocation0] sm:$0x3] %vm11_vm1, %v10_v8   ;;  %v24_v9 = vpop.permute.xlu1 %23  }
  0x78   :  { %v17_v10 = vpop.permute.xlu0 %16  }
  0x79   :  { %19 = vst.msk [vmem:[#allocation0] sm:$0x3] %vm18_vm2, %v17_v10   ;;  %v31_v11 = vpop.permute.xlu1 %30  }
  0x7a   :  { %26 = vst.msk [vmem:[#allocation0] sm:$0x3] %vm25_vm3, %v24_v9  }
  0x7b   :  { %33 = vst.msk [vmem:[#allocation0] sm:$0x3] %vm32_vm4, %v31_v11  }
  0x7c   :  { %v38_v12 = vpop.permute.xlu0 %37  }
  0x7d   :  { %40 = vst.msk [vmem:[#allocation0] sm:$0x3] %vm39_vm5, %v38_v12   ;;  %v45_v13 = vpop.permute.xlu1 %44  }
  0x7e   :  { %47 = vst.msk [vmem:[#allocation0] sm:$0x3] %vm46_vm6, %v45_v13  }
  0x80   :  { %v52_v14 = vpop.permute.xlu0 %51  }
  0x81   :  { %54 = vst.msk [vmem:[#allocation0] sm:$0x3] %vm53_vm7, %v52_v14  }
  0x88   :  { %v58_v15 = vld [vmem:[#allocation0] sm:$0x3] }
  0x89   :  { %60 = vst [vmem:[%s120_s1] sm:$0x3] %v58_v15 }

// kernel: convnet_forward.1
= control target key start
LH: loop header
LB: loop body
LE: loop exit
PB: predicated region body
PF: predicated region fallthrough
CT: control target
= control target key end

     0   :  { %v17552_v2 = vmov 0   ;;  %vm1206_vm0 = vsmask.f32 3328  ;;  %vm1207_vm1 = vsmask.f32 7440  ;;  %vm2108_vm3 = vcmask 1040384   ;;  %s17542_s0 = inlined_call_operand.vmem [shape: bf16[2,4,9,128], index: 0, kind: input, shape index: {}]   ;;  %s17543_s1 = inlined_call_operand.vmem [shape: bf16[5,128,512], index: 1, kind: input, shape index: {}]   ;;  %s17544_s2 = inlined_call_operand.vmem [shape: f32[1,512], index: 2, kind: input, shape index: {}]   ;;  %s17545_s3 = inlined_call_operand.vmem [shape: f32[1,512], index: 3, kind: input, shape index: {}]   ;;  %s17546_s4 = inlined_call_operand.vmem [shape: bf16[5,256,512], index: 4, kind: input, shape index: {}]   ;;  %s17547_s5 = inlined_call_operand.vmem [shape: f32[1,512], index: 5, kind: input, shape index: {}]   ;;  %s17548_s6 = inlined_call_operand.vmem [shape: f32[1,512], index: 6, kind: input, shape index: {}]   ;;  %s17549_s7 = inlined_call_operand.vmem [shape: bf16[8,256,128], index: 7, kind: input, shape index: {}]   ;;  %s17550_s8 = inlined_call_operand.vmem [shape: f32[1,128], index: 8, kind: input, shape index: {}]   ;;  %s17551_s9 = inlined_call_operand.hbm [shape: f32[2,128], index: 9, kind: output, shape index: {}]  }
   0x1   :  { %v10798_v0 = vld [vmem:[%s17543_s1 + $0x104] ss:$16 sps:$4 sm:$0xff]   ;;  %v10800_v1 = vld [vmem:[%s17543_s1 + $0x10c] ss:$16 sps:$4 sm:$0xff]   ;;  %304 = vmatprep.mubr.bf16.mxu0 %v17552_v2  ;;  %347 = vmatprep.mubr.bf16.mxu1 %v17552_v2  ;;  %v10802_v3 = vld [vmem:[%s17543_s1 + $0x100] ss:$16 sps:$4 sm:$0xff]  }
   0x2   :  { %272 = vmatprep.subr.bf16.mxu0 %v10798_v0  ;;  %v10803_v4 = vld [vmem:[%s17543_s1 + $0x108] ss:$16 sps:$4 sm:$0xff]   ;;  %315 = vmatprep.subr.bf16.mxu1 %v10800_v1  ;;  %v10804_v5 = vld [vmem:[%s17543_s1 + $0x124] ss:$16 sps:$4 sm:$0xff]   ;;  %v10806_v6 = vld [vmem:[%s17543_s1 + $0x12c] ss:$16 sps:$4 sm:$0xff]  }
   0x3   :  { %273 = vmatpush1.bf16.msra.mxu0 %v10802_v3  ;;  %316 = vmatpush1.bf16.msra.mxu1 %v10803_v4  ;;  %v10808_v7 = vld [vmem:[%s17543_s1 + $0x120] ss:$16 sps:$4 sm:$0xff]   ;;  %v10809_v8 = vld [vmem:[%s17543_s1 + $0x128] ss:$16 sps:$4 sm:$0xff]   ;;  %v10810_v9 = vld [vmem:[%s17543_s1 + $0x144] ss:$16 sps:$4 sm:$0xff]  }
   0x4   :  { %274 = vmatprep.subr.bf16.mxu0 %v10804_v5  ;;  %317 = vmatprep.subr.bf16.mxu1 %v10806_v6  ;;  %v10812_v10 = vld [vmem:[%s17543_s1 + $0x14c] ss:$16 sps:$4 sm:$0xff]   ;;  %v10814_v11 = vld [vmem:[%s17543_s1 + $0x140] ss:$16 sps:$4 sm:$0xff]   ;;  %v10815_v12 = vld [vmem:[%s17543_s1 + $0x148] ss:$16 sps:$4 sm:$0xff]  }
   0x5   :  { %v10816_v13 = vld [vmem:[%s17543_s1 + $0x164] ss:$16 sps:$4 sm:$0xff]   ;;  %v10818_v14 = vld [vmem:[%s17543_s1 + $0x16c] ss:$16 sps:$4 sm:$0xff]   ;;  %v10820_v15 = vld [vmem:[%s17543_s1 + $0x160] ss:$16 sps:$4 sm:$0xff]  }
   0x6   :  { %v10821_v16 = vld [vmem:[%s17543_s1 + $0x168] ss:$16 sps:$4 sm:$0xff]   ;;  %v10822_v17 = vld [vmem:[%s17543_s1 + $0x184] ss:$16 sps:$4 sm:$0xff]   ;;  %v10824_v18 = vld [vmem:[%s17543_s1 + $0x18c] ss:$16 sps:$4 sm:$0xff]  }
   0x7   :  { %275 = vmatpush1.bf16.msra.mxu0 %v10808_v7  ;;  %318 = vmatpush1.bf16.msra.mxu1 %v10809_v8  ;;  %v10826_v19 = vld [vmem:[%s17543_s1 + $0x180] ss:$16 sps:$4 sm:$0xff]   ;;  %v10827_v20 = vld [vmem:[%s17543_s1 + $0x188] ss:$16 sps:$4 sm:$0xff]   ;;  %v10828_v21 = vld [vmem:[%s17543_s1 + $0x1a4] ss:$16 sps:$4 sm:$0xff]  }
   0x8   :  { %276 = vmatprep.subr.bf16.mxu0 %v10810_v9  ;;  %319 = vmatprep.subr.bf16.mxu1 %v10812_v10  ;;  %v10830_v22 = vld [vmem:[%s17543_s1 + $0x1ac] ss:$16 sps:$4 sm:$0xff]   ;;  %v10832_v23 = vld [vmem:[%s17543_s1 + $0x1a0] ss:$16 sps:$4 sm:$0xff]   ;;  %v10833_v24 = vld [vmem:[%s17543_s1 + $0x1a8] ss:$16 sps:$4 sm:$0xff]  }
   0x9   :  { %v10834_v25 = vld [vmem:[%s17543_s1 + $0x1c4] ss:$16 sps:$4 sm:$0xff]   ;;  %v10836_v26 = vld [vmem:[%s17543_s1 + $0x1cc] ss:$16 sps:$4 sm:$0xff]   ;;  %v10838_v27 = vld [vmem:[%s17543_s1 + $0x1c0] ss:$16 sps:$4 sm:$0xff]  }
   0xa   :  { %v10839_v28 = vld [vmem:[%s17543_s1 + $0x1c8] ss:$16 sps:$4 sm:$0xff]   ;;  %v10840_v29 = vld [vmem:[%s17543_s1 + $0x1e4] ss:$16 sps:$4 sm:$0xff]   ;;  %v10842_v30 = vld [vmem:[%s17543_s1 + $0x1ec] ss:$16 sps:$4 sm:$0xff]  }
   0xb   :  { %277 = vmatpush1.bf16.msra.mxu0 %v10814_v11  ;;  %320 = vmatpush1.bf16.msra.mxu1 %v10815_v12  ;;  %v10844_v31 = vld [vmem:[%s17543_s1 + $0x1e0] ss:$16 sps:$4 sm:$0xff]   ;;  %v10845_v32 = vld [vmem:[%s17543_s1 + $0x1e8] ss:$16 sps:$4 sm:$0xff]   ;;  %v10848_v35 = vld [vmem:[%s17543_s1 + $0x4] ss:$16 sps:$4 sm:$0xff]  }
   0xc   :  { %278 = vmatprep.subr.bf16.mxu0 %v10816_v13  ;;  %321 = vmatprep.subr.bf16.mxu1 %v10818_v14  ;;  %v8861_v33 = vld [vmem:[%s17542_s0 + $0x8] sm:$0xf]  ;;  %v10851_v36 = vld [vmem:[%s17543_s1 + $0xc] ss:$16 sps:$4 sm:$0xff]   ;;  %v10846_v38 = vld [vmem:[%s17543_s1] ss:$16 sps:$4 sm:$0xff]  }
   0xd   :  { %v8862_v34 = vld [vmem:[%s17542_s0 + $0x28] sm:$0xf]  ;;  %v10854_v40 = vld [vmem:[%s17543_s1 + $0x24] ss:$16 sps:$4 sm:$0xff]   ;;  %v10857_v41 = vld [vmem:[%s17543_s1 + $0x2c] ss:$16 sps:$4 sm:$0xff]  }
   0xe   :  { %v12493_v37 = vcombine.low %v8861_v33, %v8862_v34  ;;  %v10849_v39 = vld [vmem:[%s17543_s1 + $0x8] ss:$16 sps:$4 sm:$0xff]   ;;  %v10852_v42 = vld [vmem:[%s17543_s1 + $0x20] ss:$16 sps:$4 sm:$0xff]   ;;  %v10860_v44 = vld [vmem:[%s17543_s1 + $0x44] ss:$16 sps:$4 sm:$0xff]  }
   0xf   :  { %279 = vmatpush1.bf16.msra.mxu0 %v10820_v15  ;;  %322 = vmatpush1.bf16.msra.mxu1 %v10821_v16  ;;  %v10855_v43 = vld [vmem:[%s17543_s1 + $0x28] ss:$16 sps:$4 sm:$0xff]   ;;  %v10863_v45 = vld [vmem:[%s17543_s1 + $0x4c] ss:$16 sps:$4 sm:$0xff]   ;;  %v10858_v46 = vld [vmem:[%s17543_s1 + $0x40] ss:$16 sps:$4 sm:$0xff]  }
  0x10   :  { %280 = vmatprep.subr.bf16.mxu0 %v10822_v17  ;;  %323 = vmatprep.subr.bf16.mxu1 %v10824_v18  ;;  %v10861_v47 = vld [vmem:[%s17543_s1 + $0x48] ss:$16 sps:$4 sm:$0xff]   ;;  %v10866_v48 = vld [vmem:[%s17543_s1 + $0x64] ss:$16 sps:$4 sm:$0xff]   ;;  %v10869_v49 = vld [vmem:[%s17543_s1 + $0x6c] ss:$16 sps:$4 sm:$0xff]  }
  0x11   :  { %v10864_v50 = vld [vmem:[%s17543_s1 + $0x60] ss:$16 sps:$4 sm:$0xff]   ;;  %v10867_v51 = vld [vmem:[%s17543_s1 + $0x68] ss:$16 sps:$4 sm:$0xff]   ;;  %v10872_v52 = vld [vmem:[%s17543_s1 + $0x84] ss:$16 sps:$4 sm:$0xff]  }
  0x12   :  { %v10875_v53 = vld [vmem:[%s17543_s1 + $0x8c] ss:$16 sps:$4 sm:$0xff]   ;;  %v10870_v54 = vld [vmem:[%s17543_s1 + $0x80] ss:$16 sps:$4 sm:$0xff]   ;;  %v10873_v55 = vld [vmem:[%s17543_s1 + $0x88] ss:$16 sps:$4 sm:$0xff]  }
  0x13   :  { %281 = vmatpush1.bf16.msra.mxu0 %v10826_v19  ;;  %324 = vmatpush1.bf16.msra.mxu1 %v10827_v20  ;;  %v10878_v56 = vld [vmem:[%s17543_s1 + $0xa4] ss:$16 sps:$4 sm:$0xff]   ;;  %v10881_v57 = vld [vmem:[%s17543_s1 + $0xac] ss:$16 sps:$4 sm:$0xff]   ;;  %v10876_v58 = vld [vmem:[%s17543_s1 + $0xa0] ss:$16 sps:$4 sm:$0xff]  }
  0x14   :  { %282 = vmatprep.subr.bf16.mxu0 %v10828_v21  ;;  %325 = vmatprep.subr.bf16.mxu1 %v10830_v22  ;;  %v10879_v59 = vld [vmem:[%s17543_s1 + $0xa8] ss:$16 sps:$4 sm:$0xff]   ;;  %v10884_v60 = vld [vmem:[%s17543_s1 + $0xc4] ss:$16 sps:$4 sm:$0xff]   ;;  %v10887_v61 = vld [vmem:[%s17543_s1 + $0xcc] ss:$16 sps:$4 sm:$0xff]  }
  0x15   :  { %v10882_v62 = vld [vmem:[%s17543_s1 + $0xc0] ss:$16 sps:$4 sm:$0xff]   ;;  %v10885_v63 = vld [vmem:[%s17543_s1 + $0xc8] ss:$16 sps:$4 sm:$0xff]   ;;  %v10890_v0 = vld [vmem:[%s17543_s1 + $0xe4] ss:$16 sps:$4 sm:$0xff]  }
  0x16   :  { %v10893_v1 = vld [vmem:[%s17543_s1 + $0xec] ss:$16 sps:$4 sm:$0xff]   ;;  %v10888_v3 = vld [vmem:[%s17543_s1 + $0xe0] ss:$16 sps:$4 sm:$0xff]   ;;  %v10891_v4 = vld [vmem:[%s17543_s1 + $0xe8] ss:$16 sps:$4 sm:$0xff]  }
  0x17   :  { %283 = vmatpush1.bf16.msra.mxu0 %v10832_v23  ;;  %326 = vmatpush1.bf16.msra.mxu1 %v10833_v24  ;;  %v10896_v5 = vld [vmem:[%s17543_s1 + $0x204] ss:$16 sps:$4 sm:$0xff]   ;;  %v36_v6 = vld [vmem:[%s17542_s0] sm:$0xf]  ;;  %v10899_v8 = vld [vmem:[%s17543_s1 + $0x20c] ss:$16 sps:$4 sm:$0xff]  }
  0x18   :  { %284 = vmatprep.subr.bf16.mxu0 %v10834_v25  ;;  %327 = vmatprep.subr.bf16.mxu1 %v10836_v26  ;;  %v37_v7 = vld [vmem:[%s17542_s0 + $0x20] sm:$0xf]  ;;  %v10897_v10 = vld [vmem:[%s17543_s1 + $0x208] ss:$16 sps:$4 sm:$0xff]   ;;  %v10902_v12 = vld [vmem:[%s17543_s1 + $0x224] ss:$16 sps:$4 sm:$0xff]  }
  0x19   :  { %v10894_v9 = vld [vmem:[%s17543_s1 + $0x200] ss:$16 sps:$4 sm:$0xff]   ;;  %v8928_v11 = vcombine.low %v36_v6, %v37_v7  ;;  %v10905_v13 = vld [vmem:[%s17543_s1 + $0x22c] ss:$16 sps:$4 sm:$0xff]   ;;  %v10903_v15 = vld [vmem:[%s17543_s1 + $0x228] ss:$16 sps:$4 sm:$0xff]  }
  0x1a   :  { %v10900_v14 = vld [vmem:[%s17543_s1 + $0x220] ss:$16 sps:$4 sm:$0xff]   ;;  %v10908_v16 = vld [vmem:[%s17543_s1 + $0x244] ss:$16 sps:$4 sm:$0xff]   ;;  %v10911_v17 = vld [vmem:[%s17543_s1 + $0x24c] ss:$16 sps:$4 sm:$0xff]  }
  0x1b   :  { %285 = vmatpush1.bf16.msra.mxu0 %v10838_v27  ;;  %328 = vmatpush1.bf16.msra.mxu1 %v10839_v28  ;;  %v10906_v18 = vld [vmem:[%s17543_s1 + $0x240] ss:$16 sps:$4 sm:$0xff]   ;;  %v10909_v19 = vld [vmem:[%s17543_s1 + $0x248] ss:$16 sps:$4 sm:$0xff]   ;;  %v10914_v20 = vld [vmem:[%s17543_s1 + $0x264] ss:$16 sps:$4 sm:$0xff]  }
  0x1c   :  { %286 = vmatprep.subr.bf16.mxu0 %v10840_v29  ;;  %329 = vmatprep.subr.bf16.mxu1 %v10842_v30  ;;  %v10917_v21 = vld [vmem:[%s17543_s1 + $0x26c] ss:$16 sps:$4 sm:$0xff]   ;;  %v10912_v22 = vld [vmem:[%s17543_s1 + $0x260] ss:$16 sps:$4 sm:$0xff]   ;;  %v10915_v23 = vld [vmem:[%s17543_s1 + $0x268] ss:$16 sps:$4 sm:$0xff]  }
  0x1d   :  { %v10920_v24 = vld [vmem:[%s17543_s1 + $0x284] ss:$16 sps:$4 sm:$0xff]   ;;  %v10923_v25 = vld [vmem:[%s17543_s1 + $0x28c] ss:$16 sps:$4 sm:$0xff]   ;;  %v10918_v26 = vld [vmem:[%s17543_s1 + $0x280] ss:$16 sps:$4 sm:$0xff]  }
  0x1e   :  { %v10921_v27 = vld [vmem:[%s17543_s1 + $0x288] ss:$16 sps:$4 sm:$0xff]   ;;  %v10926_v28 = vld [vmem:[%s17543_s1 + $0x2a4] ss:$16 sps:$4 sm:$0xff]   ;;  %v10929_v29 = vld [vmem:[%s17543_s1 + $0x2ac] ss:$16 sps:$4 sm:$0xff]  }
  0x1f   :  { %287 = vmatpush1.bf16.msra.mxu0 %v10844_v31  ;;  %330 = vmatpush1.bf16.msra.mxu1 %v10845_v32  ;;  %v10924_v30 = vld [vmem:[%s17543_s1 + $0x2a0] ss:$16 sps:$4 sm:$0xff]   ;;  %v10927_v31 = vld [vmem:[%s17543_s1 + $0x2a8] ss:$16 sps:$4 sm:$0xff]   ;;  %v10932_v32 = vld [vmem:[%s17543_s1 + $0x2c4] ss:$16 sps:$4 sm:$0xff]  }
  0x20   :  { %524 = vmatprep.subr.bf16.mxu0 %v10848_v35  ;;  %567 = vmatprep.subr.bf16.mxu1 %v10851_v36  ;;  %v10935_v33 = vld [vmem:[%s17543_s1 + $0x2cc] ss:$16 sps:$4 sm:$0xff]   ;;  %v10930_v34 = vld [vmem:[%s17543_s1 + $0x2c0] ss:$16 sps:$4 sm:$0xff]   ;;  %v10933_v35 = vld [vmem:[%s17543_s1 + $0x2c8] ss:$16 sps:$4 sm:$0xff]  }
  0x21   :  { %v10938_v36 = vld [vmem:[%s17543_s1 + $0x2e4] ss:$16 sps:$4 sm:$0xff]   ;;  %v10983_v6 = vld [vmem:[%s17543_s1 + $0x3cc] ss:$16 sps:$4 sm:$0xff]   ;;  %v10978_v7 = vld [vmem:[%s17543_s1 + $0x3c0] ss:$16 sps:$4 sm:$0xff]  }
  0x22   :  { %305 = vmatmul.mubr.bf16.vlgmr.msra.gmra.mrb[0].mxu0 %v12493_v37  ;;  %348 = vmatmul.mubr.bf16.vlgmr.msra.gmra.mrb[0].mxu1 %v12493_v37  ;;  %vm12892_vm2 = vmor %vm1206_vm0, %vm1207_vm1  ;;  %vm2109_vm4 = vsmask.f32 256  ;;  %vm2111_vm5 = vcmask 1044484   ;;  %vm2112_vm6 = vsmask.f32 4352 }
  0x23   :  { %525 = vmatpush1.bf16.msra.mxu0 %v10846_v38  ;;  %568 = vmatpush1.bf16.msra.mxu1 %v10849_v39  ;;  %v10941_v38 = vld [vmem:[%s17543_s1 + $0x2ec] ss:$16 sps:$4 sm:$0xff]   ;;  %v10936_v39 = vld [vmem:[%s17543_s1 + $0x2e0] ss:$16 sps:$4 sm:$0xff]   ;;  %vm2110_vm7 = vmand %vm2108_vm3, %vm2109_vm4  ;;  %vm2156_vm10 = vsmask.f32 7938 }
  0x24   :  { %526 = vmatprep.subr.bf16.mxu0 %v10854_v40  ;;  %569 = vmatprep.subr.bf16.mxu1 %v10857_v41  ;;  %v10939_v40 = vld [vmem:[%s17543_s1 + $0x2e8] ss:$16 sps:$4 sm:$0xff]   ;;  %v10944_v41 = vld [vmem:[%s17543_s1 + $0x304] ss:$16 sps:$4 sm:$0xff]   ;;  %vm2113_vm8 = vmand %vm2111_vm5, %vm2112_vm6  ;;  %vm2159_vm11 = vsmask.f32 7954 }
  0x25   :  { %556 = vmatprep.mubr.bf16.mxu0 %v17552_v2  ;;  %599 = vmatprep.mubr.bf16.mxu1 %v17552_v2  ;;  %vm13868_vm9 = vmor %vm2113_vm8, %vm2110_vm7 }
  0x26   :  { %vm2174_vm12 = vmand %vm2108_vm3, %vm2156_vm10 }
  0x27   :  { %527 = vmatpush1.bf16.msra.mxu0 %v10852_v42  ;;  %570 = vmatpush1.bf16.msra.mxu1 %v10855_v43  ;;  %v8961_v42 = vld [vmem:[%s17542_s0 + $0x10] sm:$0xf]  ;;  %vm2175_vm13 = vmand %vm2111_vm5, %vm2159_vm11 }
  0x28   :  { %528 = vmatprep.subr.bf16.mxu0 %v10860_v44  ;;  %571 = vmatprep.subr.bf16.mxu1 %v10863_v45  ;;  %v8962_v43 = vld [vmem:[%s17542_s0 + $0x30] sm:$0xf]  ;;  %v10947_v44 = vld [vmem:[%s17543_s1 + $0x30c] ss:$16 sps:$4 sm:$0xff]   ;;  %vm13962_vm14 = vmor %vm2175_vm13, %vm2174_vm12 }
  0x29   :  { %v10942_v45 = vld [vmem:[%s17543_s1 + $0x300] ss:$16 sps:$4 sm:$0xff]  }
  0x2b   :  { %529 = vmatpush1.bf16.msra.mxu0 %v10858_v46  ;;  %572 = vmatpush1.bf16.msra.mxu1 %v10861_v47  ;;  %v10945_v46 = vld [vmem:[%s17543_s1 + $0x308] ss:$16 sps:$4 sm:$0xff]   ;;  %v12711_v47 = vcombine.low %v8961_v42, %v8962_v43  ;;  %v1203_v43 = vld [vmem:[%s17542_s0 + $0x4] sm:$0x1] }
  0x2c   :  { %530 = vmatprep.subr.bf16.mxu0 %v10866_v48  ;;  %573 = vmatprep.subr.bf16.mxu1 %v10869_v49  ;;  %v10950_v48 = vld [vmem:[%s17543_s1 + $0x324] ss:$16 sps:$4 sm:$0xff]   ;;  %v10953_v49 = vld [vmem:[%s17543_s1 + $0x32c] ss:$16 sps:$4 sm:$0xff]   ;;  %v11017_v42 = vld [vmem:[%s17543_s1 + $0x488] ss:$16 sps:$4 sm:$0xff]  }
  0x2f   :  { %531 = vmatpush1.bf16.msra.mxu0 %v10864_v50  ;;  %574 = vmatpush1.bf16.msra.mxu1 %v10867_v51  ;;  %v10948_v50 = vld [vmem:[%s17543_s1 + $0x320] ss:$16 sps:$4 sm:$0xff]   ;;  %v10951_v51 = vld [vmem:[%s17543_s1 + $0x328] ss:$16 sps:$4 sm:$0xff]  }
  0x30   :  { %532 = vmatprep.subr.bf16.mxu0 %v10872_v52  ;;  %575 = vmatprep.subr.bf16.mxu1 %v10875_v53  ;;  %v10956_v52 = vld [vmem:[%s17543_s1 + $0x344] ss:$16 sps:$4 sm:$0xff]   ;;  %v10959_v53 = vld [vmem:[%s17543_s1 + $0x34c] ss:$16 sps:$4 sm:$0xff]  }
  0x33   :  { %533 = vmatpush1.bf16.msra.mxu0 %v10870_v54  ;;  %576 = vmatpush1.bf16.msra.mxu1 %v10873_v55  ;;  %v10954_v54 = vld [vmem:[%s17543_s1 + $0x340] ss:$16 sps:$4 sm:$0xff]   ;;  %v10957_v55 = vld [vmem:[%s17543_s1 + $0x348] ss:$16 sps:$4 sm:$0xff]  }
  0x34   :  { %534 = vmatprep.subr.bf16.mxu0 %v10878_v56  ;;  %577 = vmatprep.subr.bf16.mxu1 %v10881_v57  ;;  %v10962_v56 = vld [vmem:[%s17543_s1 + $0x364] ss:$16 sps:$4 sm:$0xff]   ;;  %v10965_v57 = vld [vmem:[%s17543_s1 + $0x36c] ss:$16 sps:$4 sm:$0xff]  }
  0x37   :  { %535 = vmatpush1.bf16.msra.mxu0 %v10876_v58  ;;  %578 = vmatpush1.bf16.msra.mxu1 %v10879_v59  ;;  %v10960_v58 = vld [vmem:[%s17543_s1 + $0x360] ss:$16 sps:$4 sm:$0xff]   ;;  %v10963_v59 = vld [vmem:[%s17543_s1 + $0x368] ss:$16 sps:$4 sm:$0xff]  }
  0x38   :  { %536 = vmatprep.subr.bf16.mxu0 %v10884_v60  ;;  %579 = vmatprep.subr.bf16.mxu1 %v10887_v61  ;;  %v10968_v60 = vld [vmem:[%s17543_s1 + $0x384] ss:$16 sps:$4 sm:$0xff]   ;;  %v10971_v61 = vld [vmem:[%s17543_s1 + $0x38c] ss:$16 sps:$4 sm:$0xff]  }
  0x3b   :  { %537 = vmatpush1.bf16.msra.mxu0 %v10882_v62  ;;  %580 = vmatpush1.bf16.msra.mxu1 %v10885_v63  ;;  %v10966_v62 = vld [vmem:[%s17543_s1 + $0x380] ss:$16 sps:$4 sm:$0xff]   ;;  %v10969_v63 = vld [vmem:[%s17543_s1 + $0x388] ss:$16 sps:$4 sm:$0xff]  }
  0x3c   :  { %538 = vmatprep.subr.bf16.mxu0 %v10890_v0  ;;  %581 = vmatprep.subr.bf16.mxu1 %v10893_v1  ;;  %v10974_v0 = vld [vmem:[%s17543_s1 + $0x3a4] ss:$16 sps:$4 sm:$0xff]   ;;  %v10977_v1 = vld [vmem:[%s17543_s1 + $0x3ac] ss:$16 sps:$4 sm:$0xff]  }
  0x3f   :  { %539 = vmatpush1.bf16.msra.mxu0 %v10888_v3  ;;  %582 = vmatpush1.bf16.msra.mxu1 %v10891_v4  ;;  %v10972_v3 = vld [vmem:[%s17543_s1 + $0x3a0] ss:$16 sps:$4 sm:$0xff]   ;;  %v10975_v4 = vld [vmem:[%s17543_s1 + $0x3a8] ss:$16 sps:$4 sm:$0xff]  }
  0x40   :  { %812 = vmatprep.subr.bf16.mxu0 %v10896_v5  ;;  %855 = vmatprep.subr.bf16.mxu1 %v10899_v8  ;;  %v10980_v5 = vld [vmem:[%s17543_s1 + $0x3c4] ss:$16 sps:$4 sm:$0xff]   ;;  %v10981_v8 = vld [vmem:[%s17543_s1 + $0x3c8] ss:$16 sps:$4 sm:$0xff]  }
  0x42   :  { %557 = vmatmul.mubr.bf16.vlgmr.msra.gmra.mrb[0].mxu0 %v8928_v11  ;;  %600 = vmatmul.mubr.bf16.vlgmr.msra.gmra.mrb[0].mxu1 %v8928_v11  ;;  %v10984_v11 = vld [vmem:[%s17543_s1 + $0x3e0] ss:$16 sps:$4 sm:$0xff]  }
  0x43   :  { %813 = vmatpush1.bf16.msra.mxu0 %v10894_v9  ;;  %856 = vmatpush1.bf16.msra.mxu1 %v10897_v10  ;;  %v10986_v9 = vld [vmem:[%s17543_s1 + $0x3e4] ss:$16 sps:$4 sm:$0xff]   ;;  %v10989_v10 = vld [vmem:[%s17543_s1 + $0x3ec] ss:$16 sps:$4 sm:$0xff]  }
  0x44   :  { %814 = vmatprep.subr.bf16.mxu0 %v10902_v12  ;;  %857 = vmatprep.subr.bf16.mxu1 %v10905_v13  ;;  %v10987_v12 = vld [vmem:[%s17543_s1 + $0x3e8] ss:$16 sps:$4 sm:$0xff]  }
  0x45   :  { %844 = vmatprep.mubr.bf16.mxu0 %v17552_v2  ;;  %887 = vmatprep.mubr.bf16.mxu1 %v17552_v2  ;;  %v9028_v13 = vld [vmem:[%s17542_s0 + $0x18] sm:$0xf] }
  0x47   :  { %815 = vmatpush1.bf16.msra.mxu0 %v10900_v14  ;;  %858 = vmatpush1.bf16.msra.mxu1 %v10903_v15  ;;  %v9029_v14 = vld [vmem:[%s17542_s0 + $0x38] sm:$0xf]  ;;  %v10992_v15 = vld [vmem:[%s17543_s1 + $0x404] ss:$16 sps:$4 sm:$0xff]  }
  0x48   :  { %816 = vmatprep.subr.bf16.mxu0 %v10908_v16  ;;  %859 = vmatprep.subr.bf16.mxu1 %v10911_v17  ;;  %v10995_v16 = vld [vmem:[%s17543_s1 + $0x40c] ss:$16 sps:$4 sm:$0xff]   ;;  %v10990_v17 = vld [vmem:[%s17543_s1 + $0x400] ss:$16 sps:$4 sm:$0xff]  }
  0x4b   :  { %817 = vmatpush1.bf16.msra.mxu0 %v10906_v18  ;;  %860 = vmatpush1.bf16.msra.mxu1 %v10909_v19  ;;  %v10993_v18 = vld [vmem:[%s17543_s1 + $0x408] ss:$16 sps:$4 sm:$0xff]   ;;  %v12819_v19 = vcombine.low %v9028_v13, %v9029_v14  ;;  %v11888_v13 = vld [vmem:[%s17543_s1 + $0x100] ss:$16 sps:$4 sm:$0xff]  }
  0x4c   :  { %818 = vmatprep.subr.bf16.mxu0 %v10914_v20  ;;  %861 = vmatprep.subr.bf16.mxu1 %v10917_v21  ;;  %v10998_v20 = vld [vmem:[%s17543_s1 + $0x424] ss:$16 sps:$4 sm:$0xff]   ;;  %v11001_v21 = vld [vmem:[%s17543_s1 + $0x42c] ss:$16 sps:$4 sm:$0xff]   ;;  %v11889_v14 = vld [vmem:[%s17543_s1 + $0x108] ss:$16 sps:$4 sm:$0xff]  }
  0x4f   :  { %819 = vmatpush1.bf16.msra.mxu0 %v10912_v22  ;;  %862 = vmatpush1.bf16.msra.mxu1 %v10915_v23  ;;  %v10996_v22 = vld [vmem:[%s17543_s1 + $0x420] ss:$16 sps:$4 sm:$0xff]   ;;  %v10999_v23 = vld [vmem:[%s17543_s1 + $0x428] ss:$16 sps:$4 sm:$0xff]  }
  0x50   :  { %820 = vmatprep.subr.bf16.mxu0 %v10920_v24  ;;  %863 = vmatprep.subr.bf16.mxu1 %v10923_v25  ;;  %v11004_v24 = vld [vmem:[%s17543_s1 + $0x444] ss:$16 sps:$4 sm:$0xff]   ;;  %v11007_v25 = vld [vmem:[%s17543_s1 + $0x44c] ss:$16 sps:$4 sm:$0xff]  }
  0x53   :  { %821 = vmatpush1.bf16.msra.mxu0 %v10918_v26  ;;  %864 = vmatpush1.bf16.msra.mxu1 %v10921_v27  ;;  %v11002_v26 = vld [vmem:[%s17543_s1 + $0x440] ss:$16 sps:$4 sm:$0xff]   ;;  %v11005_v27 = vld [vmem:[%s17543_s1 + $0x448] ss:$16 sps:$4 sm:$0xff]  }
  0x54   :  { %822 = vmatprep.subr.bf16.mxu0 %v10926_v28  ;;  %865 = vmatprep.subr.bf16.mxu1 %v10929_v29  ;;  %v1202_v28 = vld [vmem:[%s17542_s0] sm:$0xf]  ;;  %v11010_v29 = vld [vmem:[%s17543_s1 + $0x464] ss:$16 sps:$4 sm:$0xff]  }
  0x57   :  { %823 = vmatpush1.bf16.msra.mxu0 %v10924_v30  ;;  %866 = vmatpush1.bf16.msra.mxu1 %v10927_v31  ;;  %v11013_v30 = vld [vmem:[%s17543_s1 + $0x46c] ss:$16 sps:$4 sm:$0xff]   ;;  %v1204_v31 = vld [vmem:[%s17542_s0 + $0x20] sm:$0xf] }
  0x58   :  { %824 = vmatprep.subr.bf16.mxu0 %v10932_v32  ;;  %867 = vmatprep.subr.bf16.mxu1 %v10935_v33  ;;  %v11008_v32 = vld [vmem:[%s17543_s1 + $0x460] ss:$16 sps:$4 sm:$0xff]   ;;  %v11011_v33 = vld [vmem:[%s17543_s1 + $0x468] ss:$16 sps:$4 sm:$0xff]  }
  0x5b   :  { %825 = vmatpush1.bf16.msra.mxu0 %v10930_v34  ;;  %868 = vmatpush1.bf16.msra.mxu1 %v10933_v35  ;;  %v11016_v34 = vld [vmem:[%s17543_s1 + $0x484] ss:$16 sps:$4 sm:$0xff]   ;;  %v11019_v35 = vld [vmem:[%s17543_s1 + $0x48c] ss:$16 sps:$4 sm:$0xff]  }
  0x5c   :  { %826 = vmatprep.subr.bf16.mxu0 %v10938_v36  ;;  %869 = vmatprep.subr.bf16.mxu1 %v10941_v38  ;;  %v1210_v36 = vshrl.u32 %v1202_v28, 16  ;;  %v1213_v38 = vshll.u32 %v1202_v28, 16  ;;  %v11902_v28 = vld [vmem:[%s17543_s1 + $0x184] ss:$16 sps:$4 sm:$0xff]  }
  0x5f   :  { %827 = vmatpush1.bf16.msra.mxu0 %v10936_v39  ;;  %870 = vmatpush1.bf16.msra.mxu1 %v10939_v40  ;;  %v1224_v39 = vshrl.u32 %v1204_v31, 16  ;;  %v1227_v40 = vshll.u32 %v1204_v31, 16  ;;  %v11905_v31 = vld [vmem:[%s17543_s1 + $0x188] ss:$16 sps:$4 sm:$0xff]  }
  0x60   :  { %1108 = vmatprep.subr.bf16.mxu0 %v10944_v41  ;;  %1151 = vmatprep.subr.bf16.mxu1 %v10947_v44  ;;  %v11014_v41 = vld [vmem:[%s17543_s1 + $0x480] ss:$16 sps:$4 sm:$0xff]   ;;  %v11022_v44 = vld [vmem:[%s17543_s1 + $0x4a4] ss:$16 sps:$4 sm:$0xff]  }
  0x62   :  { %845 = vmatmul.mubr.bf16.vlgmr.msra.gmra.mrb[0].mxu0 %v12711_v47  ;;  %888 = vmatmul.mubr.bf16.vlgmr.msra.gmra.mrb[0].mxu1 %v12711_v47 }
  0x63   :  { %1109 = vmatpush1.bf16.msra.mxu0 %v10942_v45  ;;  %1152 = vmatpush1.bf16.msra.mxu1 %v10945_v46  ;;  %v11025_v45 = vld [vmem:[%s17543_s1 + $0x4ac] ss:$16 sps:$4 sm:$0xff]   ;;  %v1205_v46 = vld [vmem:[%s17542_s0 + $0x24] sm:$0x1] }
  0x64   :  { %1110 = vmatprep.subr.bf16.mxu0 %v10950_v48  ;;  %1153 = vmatprep.subr.bf16.mxu1 %v10953_v49  ;;  %v1212_v48 = vrot.slane %v1210_v36, 4  ;;  %v1215_v49 = vrot.slane %v1213_v38, 5  ;;  %v11910_v36 = vld [vmem:[%s17543_s1 + $0x1c4] ss:$16 sps:$4 sm:$0xff]   ;;  %v11911_v38 = vld [vmem:[%s17543_s1 + $0x1cc] ss:$16 sps:$4 sm:$0xff]  }
  0x65   :  { %1140 = vmatprep.mubr.bf16.mxu0 %v17552_v2  ;;  %1183 = vmatprep.mubr.bf16.mxu1 %v17552_v2 }
  0x67   :  { %1111 = vmatpush1.bf16.msra.mxu0 %v10948_v50  ;;  %1154 = vmatpush1.bf16.msra.mxu1 %v10951_v51  ;;  %v1226_v50 = vrot.slane %v1224_v39, 4  ;;  %v1229_v51 = vrot.slane %v1227_v40, 5  ;;  %v11912_v39 = vld [vmem:[%s17543_s1 + $0x1c0] ss:$16 sps:$4 sm:$0xff]   ;;  %v11913_v40 = vld [vmem:[%s17543_s1 + $0x1c8] ss:$16 sps:$4 sm:$0xff]  }
  0x68   :  { %1112 = vmatprep.subr.bf16.mxu0 %v10956_v52  ;;  %1155 = vmatprep.subr.bf16.mxu1 %v10959_v53  ;;  %v17715_v52 = vmov 0  ;;  %v11020_v53 = vld [vmem:[%s17543_s1 + $0x4a0] ss:$16 sps:$4 sm:$0xff]  }
  0x69   :  { %v17716_v52 = vsel %vm12892_vm2, 4294967295, %v17715_v52 }
  0x6a   :  { %17717 = vst [vmem:[#allocation7_spill] sm:$0xff] %v17716_v52 }
  0x6b   :  { %1113 = vmatpush1.bf16.msra.mxu0 %v10954_v54  ;;  %1156 = vmatpush1.bf16.msra.mxu1 %v10957_v55  ;;  %v11023_v54 = vld [vmem:[%s17543_s1 + $0x4a8] ss:$16 sps:$4 sm:$0xff]   ;;  %v11028_v55 = vld [vmem:[%s17543_s1 + $0x4c4] ss:$16 sps:$4 sm:$0xff]  }
  0x6c   :  { %1114 = vmatprep.subr.bf16.mxu0 %v10962_v56  ;;  %1157 = vmatprep.subr.bf16.mxu1 %v10965_v57  ;;  %v11031_v56 = vld [vmem:[%s17543_s1 + $0x4cc] ss:$16 sps:$4 sm:$0xff]   ;;  %v1219_v57 = vshll.u32 %v1203_v43, 16  ;;  %v11916_v43 = vld [vmem:[%s17543_s1 + $0x1e0] ss:$16 sps:$4 sm:$0xff]  }
  0x6f   :  { %1115 = vmatpush1.bf16.msra.mxu0 %v10960_v58  ;;  %1158 = vmatpush1.bf16.msra.mxu1 %v10963_v59  ;;  %v1216_v58 = vor.u32 %v1215_v49, %v1212_v48  ;;  %v1230_v59 = vor.u32 %v1229_v51, %v1226_v50  ;;  %v11920_v48 = vld [vmem:[%s17543_s1] ss:$16 sps:$4 sm:$0xff]   ;;  %v11921_v49 = vld [vmem:[%s17543_s1 + $0x8] ss:$16 sps:$4 sm:$0xff]   ;;  %v11922_v50 = vld [vmem:[%s17543_s1 + $0x24] ss:$16 sps:$4 sm:$0xff]  }
  0x70   :  { %1116 = vmatprep.subr.bf16.mxu0 %v10968_v60  ;;  %1159 = vmatprep.subr.bf16.mxu1 %v10971_v61  ;;  %v1233_v60 = vshll.u32 %v1205_v46, 16  ;;  %v11026_v61 = vld [vmem:[%s17543_s1 + $0x4c0] ss:$16 sps:$4 sm:$0xff]   ;;  %v11919_v46 = vld [vmem:[%s17543_s1 + $0xc] ss:$16 sps:$4 sm:$0xff]  }
  0x71   :  { %v11923_v51 = vld [vmem:[%s17543_s1 + $0x2c] ss:$16 sps:$4 sm:$0xff]  }
  0x73   :  { %1117 = vmatpush1.bf16.msra.mxu0 %v10966_v62  ;;  %1160 = vmatpush1.bf16.msra.mxu1 %v10969_v63  ;;  %v11029_v62 = vld [vmem:[%s17543_s1 + $0x4c8] ss:$16 sps:$4 sm:$0xff]   ;;  %v11034_v63 = vld [vmem:[%s17543_s1 + $0x4e4] ss:$16 sps:$4 sm:$0xff]  }
  0x74   :  { %1118 = vmatprep.subr.bf16.mxu0 %v10974_v0  ;;  %1161 = vmatprep.subr.bf16.mxu1 %v10977_v1  ;;  %v11037_v0 = vld [vmem:[%s17543_s1 + $0x4ec] ss:$16 sps:$4 sm:$0xff]   ;;  %v1221_v1 = vrot.slane %v1219_v57, 5  ;;  %v11929_v57 = vld [vmem:[%s17543_s1 + $0x48] ss:$16 sps:$4 sm:$0xff]  }
  0x77   :  { %1119 = vmatpush1.bf16.msra.mxu0 %v10972_v3  ;;  %1162 = vmatpush1.bf16.msra.mxu1 %v10975_v4  ;;  %v1217_v3 = vrot.slane %v1216_v58, 4  ;;  %v1231_v4 = vrot.slane %v1230_v59, 4  ;;  %v11930_v58 = vld [vmem:[%s17543_s1 + $0x64] ss:$16 sps:$4 sm:$0xff]   ;;  %v11931_v59 = vld [vmem:[%s17543_s1 + $0x6c] ss:$16 sps:$4 sm:$0xff]  }
  0x78   :  { %1120 = vmatprep.subr.bf16.mxu0 %v10980_v5  ;;  %1163 = vmatprep.subr.bf16.mxu1 %v10983_v6  ;;  %v1235_v5 = vrot.slane %v1233_v60, 5  ;;  %v11032_v6 = vld [vmem:[%s17543_s1 + $0x4e0] ss:$16 sps:$4 sm:$0xff]  }
  0x79   :  { %v11932_v60 = vld [vmem:[%s17543_s1 + $0x60] ss:$16 sps:$4 sm:$0xff]  }
  0x7b   :  { %1121 = vmatpush1.bf16.msra.mxu0 %v10978_v7  ;;  %1164 = vmatpush1.bf16.msra.mxu1 %v10981_v8  ;;  %v11035_v7 = vld [vmem:[%s17543_s1 + $0x4e8] ss:$16 sps:$4 sm:$0xff]   ;;  %v1222_v8 = vsel %vm12892_vm2, %v1217_v3, %v1221_v1  ;;  %v11938_v3 = vld [vmem:[%s17543_s1 + $0xa4] ss:$16 sps:$4 sm:$0xff]  }
  0x7c   :  { %1122 = vmatprep.subr.bf16.mxu0 %v10986_v9  ;;  %1165 = vmatprep.subr.bf16.mxu1 %v10989_v10  ;;  %v1236_v9 = vsel %vm12892_vm2, %v1231_v4, %v1235_v5  ;;  %v11937_v1 = vld [vmem:[%s17543_s1 + $0x88] ss:$16 sps:$4 sm:$0xff]   ;;  %v11939_v4 = vld [vmem:[%s17543_s1 + $0xac] ss:$16 sps:$4 sm:$0xff]   ;;  %v11940_v5 = vld [vmem:[%s17543_s1 + $0xa0] ss:$16 sps:$4 sm:$0xff]  }
  0x7d   :  { %v12930_v10 = vcombine.low %v1222_v8, %v1236_v9  ;;  %v11943_v8 = vld [vmem:[%s17543_s1 + $0xcc] ss:$16 sps:$4 sm:$0xff]   ;;  %v11944_v9 = vld [vmem:[%s17543_s1 + $0xc0] ss:$16 sps:$4 sm:$0xff]  }
  0x7f   :  { %1123 = vmatpush1.bf16.msra.mxu0 %v10984_v11  ;;  %1166 = vmatpush1.bf16.msra.mxu1 %v10987_v12  ;;  %v11886_v11 = vld [vmem:[%s17543_s1 + $0x104] ss:$16 sps:$4 sm:$0xff]   ;;  %v11887_v12 = vld [vmem:[%s17543_s1 + $0x10c] ss:$16 sps:$4 sm:$0xff]  }
  0x80   :  { %1434 = vmatprep.subr.bf16.mxu0 %v10992_v15  ;;  %1477 = vmatprep.subr.bf16.mxu1 %v10995_v16  ;;  %v11890_v15 = vld [vmem:[%s17543_s1 + $0x124] ss:$16 sps:$4 sm:$0xff]   ;;  %v11891_v16 = vld [vmem:[%s17543_s1 + $0x12c] ss:$16 sps:$4 sm:$0xff]  }
  0x82   :  { %1141 = vmatmul.mubr.bf16.vlgmr.msra.gmra.mrb[0].mxu0 %v12819_v19  ;;  %1184 = vmatmul.mubr.bf16.vlgmr.msra.gmra.mrb[0].mxu1 %v12819_v19 }
  0x83   :  { %1435 = vmatpush1.bf16.msra.mxu0 %v10990_v17  ;;  %1478 = vmatpush1.bf16.msra.mxu1 %v10993_v18  ;;  %v11892_v17 = vld [vmem:[%s17543_s1 + $0x120] ss:$16 sps:$4 sm:$0xff]   ;;  %v11893_v18 = vld [vmem:[%s17543_s1 + $0x128] ss:$16 sps:$4 sm:$0xff]  }
  0x84   :  { %1436 = vmatprep.subr.bf16.mxu0 %v10998_v20  ;;  %1479 = vmatprep.subr.bf16.mxu1 %v11001_v21  ;;  %v11894_v20 = vld [vmem:[%s17543_s1 + $0x144] ss:$16 sps:$4 sm:$0xff]   ;;  %v11895_v21 = vld [vmem:[%s17543_s1 + $0x14c] ss:$16 sps:$4 sm:$0xff]  }
  0x85   :  { %1466 = vmatprep.mubr.bf16.mxu0 %v17552_v2  ;;  %1509 = vmatprep.mubr.bf16.mxu1 %v17552_v2 }
  0x87   :  { %1437 = vmatpush1.bf16.msra.mxu0 %v10996_v22  ;;  %1480 = vmatpush1.bf16.msra.mxu1 %v10999_v23  ;;  %v11896_v22 = vld [vmem:[%s17543_s1 + $0x140] ss:$16 sps:$4 sm:$0xff]   ;;  %v11897_v23 = vld [vmem:[%s17543_s1 + $0x148] ss:$16 sps:$4 sm:$0xff]  }
  0x88   :  { %1438 = vmatprep.subr.bf16.mxu0 %v11004_v24  ;;  %1481 = vmatprep.subr.bf16.mxu1 %v11007_v25  ;;  %v11898_v24 = vld [vmem:[%s17543_s1 + $0x164] ss:$16 sps:$4 sm:$0xff]   ;;  %v11899_v25 = vld [vmem:[%s17543_s1 + $0x16c] ss:$16 sps:$4 sm:$0xff]  }
  0x8b   :  { %1439 = vmatpush1.bf16.msra.mxu0 %v11002_v26  ;;  %1482 = vmatpush1.bf16.msra.mxu1 %v11005_v27  ;;  %v11900_v26 = vld [vmem:[%s17543_s1 + $0x160] ss:$16 sps:$4 sm:$0xff]   ;;  %v11901_v27 = vld [vmem:[%s17543_s1 + $0x168] ss:$16 sps:$4 sm:$0xff]  }
  0x8c   :  { %1440 = vmatprep.subr.bf16.mxu0 %v11010_v29  ;;  %1483 = vmatprep.subr.bf16.mxu1 %v11013_v30  ;;  %v11903_v29 = vld [vmem:[%s17543_s1 + $0x18c] ss:$16 sps:$4 sm:$0xff]   ;;  %v11904_v30 = vld [vmem:[%s17543_s1 + $0x180] ss:$16 sps:$4 sm:$0xff]  }
  0x8f   :  { %1441 = vmatpush1.bf16.msra.mxu0 %v11008_v32  ;;  %1484 = vmatpush1.bf16.msra.mxu1 %v11011_v33  ;;  %v11906_v32 = vld [vmem:[%s17543_s1 + $0x1a4] ss:$16 sps:$4 sm:$0xff]   ;;  %v11907_v33 = vld [vmem:[%s17543_s1 + $0x1ac] ss:$16 sps:$4 sm:$0xff]  }
  0x90   :  { %1442 = vmatprep.subr.bf16.mxu0 %v11016_v34  ;;  %1485 = vmatprep.subr.bf16.mxu1 %v11019_v35  ;;  %v11908_v34 = vld [vmem:[%s17543_s1 + $0x1a0] ss:$16 sps:$4 sm:$0xff]   ;;  %v11909_v35 = vld [vmem:[%s17543_s1 + $0x1a8] ss:$16 sps:$4 sm:$0xff]  }
  0x93   :  { %1443 = vmatpush1.bf16.msra.mxu0 %v11014_v41  ;;  %1486 = vmatpush1.bf16.msra.mxu1 %v11017_v42  ;;  %v11914_v41 = vld [vmem:[%s17543_s1 + $0x1e4] ss:$16 sps:$4 sm:$0xff]   ;;  %v11915_v42 = vld [vmem:[%s17543_s1 + $0x1ec] ss:$16 sps:$4 sm:$0xff]  }
  0x94   :  { %1444 = vmatprep.subr.bf16.mxu0 %v11022_v44  ;;  %1487 = vmatprep.subr.bf16.mxu1 %v11025_v45  ;;  %v11917_v44 = vld [vmem:[%s17543_s1 + $0x1e8] ss:$16 sps:$4 sm:$0xff]   ;;  %v11918_v45 = vld [vmem:[%s17543_s1 + $0x4] ss:$16 sps:$4 sm:$0xff]  }
  0x97   :  { %1445 = vmatpush1.bf16.msra.mxu0 %v11020_v53  ;;  %1488 = vmatpush1.bf16.msra.mxu1 %v11023_v54  ;;  %v11925_v53 = vld [vmem:[%s17543_s1 + $0x28] ss:$16 sps:$4 sm:$0xff]   ;;  %v11926_v54 = vld [vmem:[%s17543_s1 + $0x44] ss:$16 sps:$4 sm:$0xff]  }
  0x98   :  { %1446 = vmatprep.subr.bf16.mxu0 %v11028_v55  ;;  %1489 = vmatprep.subr.bf16.mxu1 %v11031_v56  ;;  %v11927_v55 = vld [vmem:[%s17543_s1 + $0x4c] ss:$16 sps:$4 sm:$0xff]   ;;  %v11928_v56 = vld [vmem:[%s17543_s1 + $0x40] ss:$16 sps:$4 sm:$0xff]  }
  0x9b   :  { %1447 = vmatpush1.bf16.msra.mxu0 %v11026_v61  ;;  %1490 = vmatpush1.bf16.msra.mxu1 %v11029_v62  ;;  %v11933_v61 = vld [vmem:[%s17543_s1 + $0x68] ss:$16 sps:$4 sm:$0xff]   ;;  %v11934_v62 = vld [vmem:[%s17543_s1 + $0x84] ss:$16 sps:$4 sm:$0xff]  }
  0x9c   :  { %1448 = vmatprep.subr.bf16.mxu0 %v11034_v63  ;;  %1491 = vmatprep.subr.bf16.mxu1 %v11037_v0  ;;  %v11935_v63 = vld [vmem:[%s17543_s1 + $0x8c] ss:$16 sps:$4 sm:$0xff]   ;;  %v11936_v0 = vld [vmem:[%s17543_s1 + $0x80] ss:$16 sps:$4 sm:$0xff]  }
  0x9f   :  { %1449 = vmatpush1.bf16.msra.mxu0 %v11032_v6  ;;  %1492 = vmatpush1.bf16.msra.mxu1 %v11035_v7  ;;  %v11941_v6 = vld [vmem:[%s17543_s1 + $0xa8] ss:$16 sps:$4 sm:$0xff]   ;;  %v11942_v7 = vld [vmem:[%s17543_s1 + $0xc4] ss:$16 sps:$4 sm:$0xff]  }
  0xa0   :  { %1586 = vmatprep.subr.bf16.mxu0 %v11886_v11  ;;  %1629 = vmatprep.subr.bf16.mxu1 %v11887_v12  ;;  %v11945_v11 = vld [vmem:[%s17543_s1 + $0xc8] ss:$16 sps:$4 sm:$0xff]   ;;  %v11946_v12 = vld [vmem:[%s17543_s1 + $0xe4] ss:$16 sps:$4 sm:$0xff]  }
  0xa2   :  { %1467 = vmatmul.mubr.bf16.vlgmr.msra.gmra.mrb[0].mxu0 %v12930_v10  ;;  %1510 = vmatmul.mubr.bf16.vlgmr.msra.gmra.mrb[0].mxu1 %v12930_v10 }
  0xa3   :  { %1587 = vmatpush1.bf16.msra.mxu0 %v11888_v13  ;;  %1630 = vmatpush1.bf16.msra.mxu1 %v11889_v14  ;;  %v11947_v13 = vld [vmem:[%s17543_s1 + $0xec] ss:$16 sps:$4 sm:$0xff]   ;;  %v11948_v14 = vld [vmem:[%s17543_s1 + $0xe0] ss:$16 sps:$4 sm:$0xff]  }
  0xa4   :  { %1588 = vmatprep.subr.bf16.mxu0 %v11890_v15  ;;  %1631 = vmatprep.subr.bf16.mxu1 %v11891_v16  ;;  %v11949_v15 = vld [vmem:[%s17543_s1 + $0xe8] ss:$16 sps:$4 sm:$0xff]   ;;  %v11950_v16 = vld [vmem:[%s17543_s1 + $0x204] ss:$16 sps:$4 sm:$0xff]  }
  0xa5   :  { %1618 = vmatprep.mubr.bf16.mxu0 %v17552_v2  ;;  %1661 = vmatprep.mubr.bf16.mxu1 %v17552_v2 }
  0xa7   :  { %1589 = vmatpush1.bf16.msra.mxu0 %v11892_v17  ;;  %1632 = vmatpush1.bf16.msra.mxu1 %v11893_v18  ;;  %v11951_v17 = vld [vmem:[%s17543_s1 + $0x20c] ss:$16 sps:$4 sm:$0xff]   ;;  %v11952_v18 = vld [vmem:[%s17543_s1 + $0x200] ss:$16 sps:$4 sm:$0xff]  }
  0xa8   :  { %1590 = vmatprep.subr.bf16.mxu0 %v11894_v20  ;;  %1633 = vmatprep.subr.bf16.mxu1 %v11895_v21  ;;  %v11953_v20 = vld [vmem:[%s17543_s1 + $0x208] ss:$16 sps:$4 sm:$0xff]   ;;  %v11954_v21 = vld [vmem:[%s17543_s1 + $0x224] ss:$16 sps:$4 sm:$0xff]  }
  0xab   :  { %1591 = vmatpush1.bf16.msra.mxu0 %v11896_v22  ;;  %1634 = vmatpush1.bf16.msra.mxu1 %v11897_v23  ;;  %v11955_v22 = vld [vmem:[%s17543_s1 + $0x22c] ss:$16 sps:$4 sm:$0xff]   ;;  %v11957_v23 = vld [vmem:[%s17543_s1 + $0x228] ss:$16 sps:$4 sm:$0xff]  }
  0xac   :  { %1592 = vmatprep.subr.bf16.mxu0 %v11898_v24  ;;  %1635 = vmatprep.subr.bf16.mxu1 %v11899_v25  ;;  %v11958_v24 = vld [vmem:[%s17543_s1 + $0x244] ss:$16 sps:$4 sm:$0xff]   ;;  %v11959_v25 = vld [vmem:[%s17543_s1 + $0x24c] ss:$16 sps:$4 sm:$0xff]  }
  0xaf   :  { %1593 = vmatpush1.bf16.msra.mxu0 %v11900_v26  ;;  %1636 = vmatpush1.bf16.msra.mxu1 %v11901_v27  ;;  %v11960_v26 = vld [vmem:[%s17543_s1 + $0x240] ss:$16 sps:$4 sm:$0xff]   ;;  %v11961_v27 = vld [vmem:[%s17543_s1 + $0x248] ss:$16 sps:$4 sm:$0xff]  }
  0xb0   :  { %1594 = vmatprep.subr.bf16.mxu0 %v11902_v28  ;;  %1637 = vmatprep.subr.bf16.mxu1 %v11903_v29  ;;  %v11962_v28 = vld [vmem:[%s17543_s1 + $0x264] ss:$16 sps:$4 sm:$0xff]   ;;  %v11963_v29 = vld [vmem:[%s17543_s1 + $0x26c] ss:$16 sps:$4 sm:$0xff]  }
  0xb3   :  { %1595 = vmatpush1.bf16.msra.mxu0 %v11904_v30  ;;  %1638 = vmatpush1.bf16.msra.mxu1 %v11905_v31  ;;  %v11964_v30 = vld [vmem:[%s17543_s1 + $0x260] ss:$16 sps:$4 sm:$0xff]   ;;  %v11965_v31 = vld [vmem:[%s17543_s1 + $0x268] ss:$16 sps:$4 sm:$0xff]  }
  0xb4   :  { %1596 = vmatprep.subr.bf16.mxu0 %v11906_v32  ;;  %1639 = vmatprep.subr.bf16.mxu1 %v11907_v33  ;;  %v11966_v32 = vld [vmem:[%s17543_s1 + $0x284] ss:$16 sps:$4 sm:$0xff]   ;;  %v11967_v33 = vld [vmem:[%s17543_s1 + $0x28c] ss:$16 sps:$4 sm:$0xff]  }
  0xb7   :  { %1597 = vmatpush1.bf16.msra.mxu0 %v11908_v34  ;;  %1640 = vmatpush1.bf16.msra.mxu1 %v11909_v35  ;;  %v11968_v34 = vld [vmem:[%s17543_s1 + $0x280] ss:$16 sps:$4 sm:$0xff]   ;;  %v11969_v35 = vld [vmem:[%s17543_s1 + $0x288] ss:$16 sps:$4 sm:$0xff]  }
  0xb8   :  { %1598 = vmatprep.subr.bf16.mxu0 %v11910_v36  ;;  %1641 = vmatprep.subr.bf16.mxu1 %v11911_v38  ;;  %v11970_v36 = vld [vmem:[%s17543_s1 + $0x2a4] ss:$16 sps:$4 sm:$0xff]   ;;  %v11971_v38 = vld [vmem:[%s17543_s1 + $0x2ac] ss:$16 sps:$4 sm:$0xff]  }
  0xbb   :  { %1599 = vmatpush1.bf16.msra.mxu0 %v11912_v39  ;;  %1642 = vmatpush1.bf16.msra.mxu1 %v11913_v40  ;;  %v11972_v39 = vld [vmem:[%s17543_s1 + $0x2a0] ss:$16 sps:$4 sm:$0xff]   ;;  %v11973_v40 = vld [vmem:[%s17543_s1 + $0x2a8] ss:$16 sps:$4 sm:$0xff]  }
  0xbc   :  { %1600 = vmatprep.subr.bf16.mxu0 %v11914_v41  ;;  %1643 = vmatprep.subr.bf16.mxu1 %v11915_v42  ;;  %v11974_v41 = vld [vmem:[%s17543_s1 + $0x2c4] ss:$16 sps:$4 sm:$0xff]   ;;  %v11975_v42 = vld [vmem:[%s17543_s1 + $0x2cc] ss:$16 sps:$4 sm:$0xff]  }
  0xbf   :  { %1601 = vmatpush1.bf16.msra.mxu0 %v11916_v43  ;;  %1644 = vmatpush1.bf16.msra.mxu1 %v11917_v44  ;;  %v11976_v43 = vld [vmem:[%s17543_s1 + $0x2c0] ss:$16 sps:$4 sm:$0xff]   ;;  %v11977_v44 = vld [vmem:[%s17543_s1 + $0x2c8] ss:$16 sps:$4 sm:$0xff]  }
  0xc0   :  { %1672 = vmatprep.subr.bf16.mxu0 %v11918_v45  ;;  %1715 = vmatprep.subr.bf16.mxu1 %v11919_v46  ;;  %v11978_v45 = vld [vmem:[%s17543_s1 + $0x2e4] ss:$16 sps:$4 sm:$0xff]   ;;  %v11979_v46 = vld [vmem:[%s17543_s1 + $0x2ec] ss:$16 sps:$4 sm:$0xff]  }
  0xc2   :  { %1619 = vmatmul.mubr.bf16.vlgmr.msra.gmra.mrb[4].mxu0 %v12711_v47  ;;  %1662 = vmatmul.mubr.bf16.vlgmr.msra.gmra.mrb[4].mxu1 %v12711_v47  ;;  %v11924_v47 = vld [vmem:[%s17543_s1 + $0x20] ss:$16 sps:$4 sm:$0xff]  }
  0xc3   :  { %1673 = vmatpush1.bf16.msra.mxu0 %v11920_v48  ;;  %1716 = vmatpush1.bf16.msra.mxu1 %v11921_v49  ;;  %v11980_v48 = vld [vmem:[%s17543_s1 + $0x2e0] ss:$16 sps:$4 sm:$0xff]   ;;  %v11981_v49 = vld [vmem:[%s17543_s1 + $0x2e8] ss:$16 sps:$4 sm:$0xff]  }
  0xc4   :  { %1674 = vmatprep.subr.bf16.mxu0 %v11922_v50  ;;  %1717 = vmatprep.subr.bf16.mxu1 %v11923_v51  ;;  %v11982_v50 = vld [vmem:[%s17543_s1 + $0x304] ss:$16 sps:$4 sm:$0xff]   ;;  %v11983_v51 = vld [vmem:[%s17543_s1 + $0x30c] ss:$16 sps:$4 sm:$0xff]  }
  0xc5   :  { %1704 = vmatprep.mubr.bf16.mxu0 %v17552_v2  ;;  %1747 = vmatprep.mubr.bf16.mxu1 %v17552_v2 }
  0xc7   :  { %1675 = vmatpush1.bf16.msra.mxu0 %v11924_v47  ;;  %1718 = vmatpush1.bf16.msra.mxu1 %v11925_v53  ;;  %v11984_v47 = vld [vmem:[%s17543_s1 + $0x300] ss:$16 sps:$4 sm:$0xff]   ;;  %v11985_v53 = vld [vmem:[%s17543_s1 + $0x308] ss:$16 sps:$4 sm:$0xff]  }
  0xc8   :  { %1676 = vmatprep.subr.bf16.mxu0 %v11926_v54  ;;  %1719 = vmatprep.subr.bf16.mxu1 %v11927_v55  ;;  %v11986_v54 = vld [vmem:[%s17543_s1 + $0x324] ss:$16 sps:$4 sm:$0xff]   ;;  %v11987_v55 = vld [vmem:[%s17543_s1 + $0x32c] ss:$16 sps:$4 sm:$0xff]  }
  0xcb   :  { %1677 = vmatpush1.bf16.msra.mxu0 %v11928_v56  ;;  %1720 = vmatpush1.bf16.msra.mxu1 %v11929_v57  ;;  %v11989_v56 = vld [vmem:[%s17543_s1 + $0x328] ss:$16 sps:$4 sm:$0xff]   ;;  %v11990_v57 = vld [vmem:[%s17543_s1 + $0x344] ss:$16 sps:$4 sm:$0xff]  }
  0xcc   :  { %1678 = vmatprep.subr.bf16.mxu0 %v11930_v58  ;;  %1721 = vmatprep.subr.bf16.mxu1 %v11931_v59  ;;  %v11991_v58 = vld [vmem:[%s17543_s1 + $0x34c] ss:$16 sps:$4 sm:$0xff]   ;;  %v11992_v59 = vld [vmem:[%s17543_s1 + $0x340] ss:$16 sps:$4 sm:$0xff]  }
  0xcf   :  { %1679 = vmatpush1.bf16.msra.mxu0 %v11932_v60  ;;  %1722 = vmatpush1.bf16.msra.mxu1 %v11933_v61  ;;  %v11993_v60 = vld [vmem:[%s17543_s1 + $0x348] ss:$16 sps:$4 sm:$0xff]   ;;  %v11994_v61 = vld [vmem:[%s17543_s1 + $0x364] ss:$16 sps:$4 sm:$0xff]  }
  0xd0   :  { %1680 = vmatprep.subr.bf16.mxu0 %v11934_v62  ;;  %1723 = vmatprep.subr.bf16.mxu1 %v11935_v63  ;;  %v11995_v62 = vld [vmem:[%s17543_s1 + $0x36c] ss:$16 sps:$4 sm:$0xff]   ;;  %v11996_v63 = vld [vmem:[%s17543_s1 + $0x360] ss:$16 sps:$4 sm:$0xff]  }
  0xd3   :  { %1681 = vmatpush1.bf16.msra.mxu0 %v11936_v0  ;;  %1724 = vmatpush1.bf16.msra.mxu1 %v11937_v1  ;;  %v11997_v0 = vld [vmem:[%s17543_s1 + $0x368] ss:$16 sps:$4 sm:$0xff]   ;;  %v11998_v1 = vld [vmem:[%s17543_s1 + $0x384] ss:$16 sps:$4 sm:$0xff]  }
  0xd4   :  { %1682 = vmatprep.subr.bf16.mxu0 %v11938_v3  ;;  %1725 = vmatprep.subr.bf16.mxu1 %v11939_v4  ;;  %v11999_v3 = vld [vmem:[%s17543_s1 + $0x38c] ss:$16 sps:$4 sm:$0xff]   ;;  %v12000_v4 = vld [vmem:[%s17543_s1 + $0x380] ss:$16 sps:$4 sm:$0xff]  }
  0xd7   :  { %1683 = vmatpush1.bf16.msra.mxu0 %v11940_v5  ;;  %1726 = vmatpush1.bf16.msra.mxu1 %v11941_v6  ;;  %v12001_v5 = vld [vmem:[%s17543_s1 + $0x388] ss:$16 sps:$4 sm:$0xff]   ;;  %v12002_v6 = vld [vmem:[%s17543_s1 + $0x3a4] ss:$16 sps:$4 sm:$0xff]  }
  0xd8   :  { %1684 = vmatprep.subr.bf16.mxu0 %v11942_v7  ;;  %1727 = vmatprep.subr.bf16.mxu1 %v11943_v8  ;;  %v12003_v7 = vld [vmem:[%s17543_s1 + $0x3ac] ss:$16 sps:$4 sm:$0xff]   ;;  %v12004_v8 = vld [vmem:[%s17543_s1 + $0x3a0] ss:$16 sps:$4 sm:$0xff]  }
  0xdb   :  { %1685 = vmatpush1.bf16.msra.mxu0 %v11944_v9  ;;  %1728 = vmatpush1.bf16.msra.mxu1 %v11945_v11  ;;  %v12005_v9 = vld [vmem:[%s17543_s1 + $0x3a8] ss:$16 sps:$4 sm:$0xff]   ;;  %v12006_v11 = vld [vmem:[%s17543_s1 + $0x3c4] ss:$16 sps:$4 sm:$0xff]  }
  0xdc   :  { %1686 = vmatprep.subr.bf16.mxu0 %v11946_v12  ;;  %1729 = vmatprep.subr.bf16.mxu1 %v11947_v13  ;;  %v12007_v12 = vld [vmem:[%s17543_s1 + $0x3cc] ss:$16 sps:$4 sm:$0xff]   ;;  %v12008_v13 = vld [vmem:[%s17543_s1 + $0x3c0] ss:$16 sps:$4 sm:$0xff]  }
  0xdf   :  { %1687 = vmatpush1.bf16.msra.mxu0 %v11948_v14  ;;  %1730 = vmatpush1.bf16.msra.mxu1 %v11949_v15  ;;  %v12009_v14 = vld [vmem:[%s17543_s1 + $0x3c8] ss:$16 sps:$4 sm:$0xff]   ;;  %v12010_v15 = vld [vmem:[%s17543_s1 + $0x3e4] ss:$16 sps:$4 sm:$0xff]  }
  0xe0   :  { %1758 = vmatprep.subr.bf16.mxu0 %v11950_v16  ;;  %1801 = vmatprep.subr.bf16.mxu1 %v11951_v17  ;;  %v12011_v16 = vld [vmem:[%s17543_s1 + $0x3ec] ss:$16 sps:$4 sm:$0xff]   ;;  %v12012_v17 = vld [vmem:[%s17543_s1 + $0x3e0] ss:$16 sps:$4 sm:$0xff]  }
  0xe2   :  { %1705 = vmatmul.mubr.bf16.vlgmr.msra.gmra.mrb[4].mxu0 %v12493_v37  ;;  %1748 = vmatmul.mubr.bf16.vlgmr.msra.gmra.mrb[4].mxu1 %v12493_v37  ;;  %v11956_v37 = vld [vmem:[%s17543_s1 + $0x220] ss:$16 sps:$4 sm:$0xff]  }
  0xe3   :  { %1759 = vmatpush1.bf16.msra.mxu0 %v11952_v18  ;;  %1802 = vmatpush1.bf16.msra.mxu1 %v11953_v20  ;;  %v12013_v18 = vld [vmem:[%s17543_s1 + $0x3e8] ss:$16 sps:$4 sm:$0xff]   ;;  %v12014_v20 = vld [vmem:[%s17543_s1 + $0x404] ss:$16 sps:$4 sm:$0xff]  }
  0xe4   :  { %1760 = vmatprep.subr.bf16.mxu0 %v11954_v21  ;;  %1803 = vmatprep.subr.bf16.mxu1 %v11955_v22  ;;  %v12015_v21 = vld [vmem:[%s17543_s1 + $0x40c] ss:$16 sps:$4 sm:$0xff]   ;;  %v12016_v22 = vld [vmem:[%s17543_s1 + $0x400] ss:$16 sps:$4 sm:$0xff]  }
  0xe5   :  { %1790 = vmatprep.mubr.bf16.mxu0 %v17552_v2  ;;  %1833 = vmatprep.mubr.bf16.mxu1 %v17552_v2 }
  0xe7   :  { %1761 = vmatpush1.bf16.msra.mxu0 %v11956_v37  ;;  %1804 = vmatpush1.bf16.msra.mxu1 %v11957_v23  ;;  %v12017_v37 = vld [vmem:[%s17543_s1 + $0x408] ss:$16 sps:$4 sm:$0xff]   ;;  %v12018_v23 = vld [vmem:[%s17543_s1 + $0x424] ss:$16 sps:$4 sm:$0xff]  }
  0xe8   :  { %1762 = vmatprep.subr.bf16.mxu0 %v11958_v24  ;;  %1805 = vmatprep.subr.bf16.mxu1 %v11959_v25  ;;  %v12019_v24 = vld [vmem:[%s17543_s1 + $0x42c] ss:$16 sps:$4 sm:$0xff]   ;;  %v12021_v25 = vld [vmem:[%s17543_s1 + $0x428] ss:$16 sps:$4 sm:$0xff]  }
  0xeb   :  { %1763 = vmatpush1.bf16.msra.mxu0 %v11960_v26  ;;  %1806 = vmatpush1.bf16.msra.mxu1 %v11961_v27  ;;  %v12022_v26 = vld [vmem:[%s17543_s1 + $0x444] ss:$16 sps:$4 sm:$0xff]   ;;  %v12023_v27 = vld [vmem:[%s17543_s1 + $0x44c] ss:$16 sps:$4 sm:$0xff]  }
  0xec   :  { %1764 = vmatprep.subr.bf16.mxu0 %v11962_v28  ;;  %1807 = vmatprep.subr.bf16.mxu1 %v11963_v29  ;;  %v9160_v28 = vld [vmem:[%s17542_s0 + $0x8] sm:$0xf] }
  0xed   :  { %v9162_v29 = vld [vmem:[%s17542_s0 + $0x28] sm:$0xf] }
  0xef   :  { %1765 = vmatpush1.bf16.msra.mxu0 %v11964_v30  ;;  %1808 = vmatpush1.bf16.msra.mxu1 %v11965_v31  ;;  %v12024_v30 = vld [vmem:[%s17543_s1 + $0x440] ss:$16 sps:$4 sm:$0xff]   ;;  %v12025_v31 = vld [vmem:[%s17543_s1 + $0x448] ss:$16 sps:$4 sm:$0xff]  }
  0xf0   :  { %1766 = vmatprep.subr.bf16.mxu0 %v11966_v32  ;;  %1809 = vmatprep.subr.bf16.mxu1 %v11967_v33  ;;  %v1951_v32 = vshrl.u32 %v9160_v28, 16  ;;  %v1954_v33 = vshll.u32 %v9160_v28, 16  ;;  %v11067_v28 = vld [vmem:[%s17543_s1 + $0x18c] ss:$16 sps:$4 sm:$0xff]  }
  0xf3   :  { %1767 = vmatpush1.bf16.msra.mxu0 %v11968_v34  ;;  %1810 = vmatpush1.bf16.msra.mxu1 %v11969_v35  ;;  %v1965_v34 = vshrl.u32 %v9162_v29, 16  ;;  %v1968_v35 = vshll.u32 %v9162_v29, 16  ;;  %v2755_v29 = vld [vmem:[%s17542_s0] sm:$0xf] }
  0xf4   :  { %1768 = vmatprep.subr.bf16.mxu0 %v11970_v36  ;;  %1811 = vmatprep.subr.bf16.mxu1 %v11971_v38  ;;  %v12026_v36 = vld [vmem:[%s17543_s1 + $0x464] ss:$16 sps:$4 sm:$0xff]   ;;  %v12027_v38 = vld [vmem:[%s17543_s1 + $0x46c] ss:$16 sps:$4 sm:$0xff]  }
  0xf7   :  { %1769 = vmatpush1.bf16.msra.mxu0 %v11972_v39  ;;  %1812 = vmatpush1.bf16.msra.mxu1 %v11973_v40  ;;  %v12028_v39 = vld [vmem:[%s17543_s1 + $0x460] ss:$16 sps:$4 sm:$0xff]   ;;  %v12029_v40 = vld [vmem:[%s17543_s1 + $0x468] ss:$16 sps:$4 sm:$0xff]  }
  0xf8   :  { %1770 = vmatprep.subr.bf16.mxu0 %v11974_v41  ;;  %1813 = vmatprep.subr.bf16.mxu1 %v11975_v42  ;;  %v1953_v41 = vrot.slane %v1951_v32, 4  ;;  %v1956_v42 = vrot.slane %v1954_v33, 5  ;;  %v11065_v32 = vld [vmem:[%s17543_s1 + $0x188] ss:$16 sps:$4 sm:$0xff]   ;;  %v11070_v33 = vld [vmem:[%s17543_s1 + $0x1a4] ss:$16 sps:$4 sm:$0xff]  }
  0xfb   :  { %1771 = vmatpush1.bf16.msra.mxu0 %v11976_v43  ;;  %1814 = vmatpush1.bf16.msra.mxu1 %v11977_v44  ;;  %v1967_v43 = vrot.slane %v1965_v34, 4  ;;  %v1970_v44 = vrot.slane %v1968_v35, 5  ;;  %v11073_v34 = vld [vmem:[%s17543_s1 + $0x1ac] ss:$16 sps:$4 sm:$0xff]   ;;  %v2760_v35 = vshrl.u32 %v2755_v29, 16 }
  0xfc   :  { %1772 = vmatprep.subr.bf16.mxu0 %v11978_v45  ;;  %1815 = vmatprep.subr.bf16.mxu1 %v11979_v46  ;;  %v12030_v45 = vld [vmem:[%s17543_s1 + $0x484] ss:$16 sps:$4 sm:$0xff]   ;;  %v12031_v46 = vld [vmem:[%s17543_s1 + $0x48c] ss:$16 sps:$4 sm:$0xff]  }
  0xff   :  { %1773 = vmatpush1.bf16.msra.mxu0 %v11980_v48  ;;  %1816 = vmatpush1.bf16.msra.mxu1 %v11981_v49  ;;  %v9161_v48 = vld [vmem:[%s17542_s0 + $0xc] sm:$0x1] }
 0x100   :  { %1852 = vmatprep.subr.bf16.mxu0 %v11982_v50  ;;  %1895 = vmatprep.subr.bf16.mxu1 %v11983_v51  ;;  %v9163_v49 = vld [vmem:[%s17542_s0 + $0x2c] sm:$0x1]  ;;  %v12032_v50 = vld [vmem:[%s17543_s1 + $0x480] ss:$16 sps:$4 sm:$0xff]   ;;  %v12033_v51 = vld [vmem:[%s17543_s1 + $0x488] ss:$16 sps:$4 sm:$0xff]  }
 0x102   :  { %1791 = vmatmul.mubr.bf16.vlgmr.msra.gmra.mrb[4].mxu0 %v12819_v19  ;;  %1834 = vmatmul.mubr.bf16.vlgmr.msra.gmra.mrb[4].mxu1 %v12819_v19  ;;  %v11988_v19 = vld [vmem:[%s17543_s1 + $0x320] ss:$16 sps:$4 sm:$0xff]  }
 0x103   :  { %1853 = vmatpush1.bf16.msra.mxu0 %v11984_v47  ;;  %1896 = vmatpush1.bf16.msra.mxu1 %v11985_v53  ;;  %v1957_v47 = vor.u32 %v1956_v42, %v1953_v41  ;;  %v1960_v53 = vshll.u32 %v9161_v48, 16  ;;  %v11071_v41 = vld [vmem:[%s17543_s1 + $0x1a8] ss:$16 sps:$4 sm:$0xff]   ;;  %v11076_v42 = vld [vmem:[%s17543_s1 + $0x1c4] ss:$16 sps:$4 sm:$0xff]  }
 0x104   :  { %1854 = vmatprep.subr.bf16.mxu0 %v11986_v54  ;;  %1897 = vmatprep.subr.bf16.mxu1 %v11987_v55  ;;  %v1971_v54 = vor.u32 %v1970_v44, %v1967_v43  ;;  %v1974_v55 = vshll.u32 %v9163_v49, 16  ;;  %v11079_v43 = vld [vmem:[%s17543_s1 + $0x1cc] ss:$16 sps:$4 sm:$0xff]   ;;  %v2756_v44 = vld [vmem:[%s17542_s0 + $0x4] sm:$0x1] }
 0x105   :  { %1884 = vmatprep.mubr.bf16.mxu0 %v17552_v2  ;;  %1927 = vmatprep.mubr.bf16.mxu1 %v17552_v2 }
 0x107   :  { %1855 = vmatpush1.bf16.msra.mxu0 %v11988_v19  ;;  %1898 = vmatpush1.bf16.msra.mxu1 %v11989_v56  ;;  %v12034_v19 = vld [vmem:[%s17543_s1 + $0x4a4] ss:$16 sps:$4 sm:$0xff]   ;;  %v12035_v56 = vld [vmem:[%s17543_s1 + $0x4ac] ss:$16 sps:$4 sm:$0xff]  }
 0x108   :  { %1856 = vmatprep.subr.bf16.mxu0 %v11990_v57  ;;  %1899 = vmatprep.subr.bf16.mxu1 %v11991_v58  ;;  %v12036_v57 = vld [vmem:[%s17543_s1 + $0x4a0] ss:$16 sps:$4 sm:$0xff]   ;;  %v12037_v58 = vld [vmem:[%s17543_s1 + $0x4a8] ss:$16 sps:$4 sm:$0xff]  }
 0x10b   :  { %1857 = vmatpush1.bf16.msra.mxu0 %v11992_v59  ;;  %1900 = vmatpush1.bf16.msra.mxu1 %v11993_v60  ;;  %v1958_v59 = vrot.slane %v1957_v47, 4  ;;  %v1962_v60 = vrot.slane %v1960_v53, 5  ;;  %v11077_v47 = vld [vmem:[%s17543_s1 + $0x1c8] ss:$16 sps:$4 sm:$0xff]   ;;  %v11082_v53 = vld [vmem:[%s17543_s1 + $0x1e4] ss:$16 sps:$4 sm:$0xff]  }
 0x10c   :  { %1858 = vmatprep.subr.bf16.mxu0 %v11994_v61  ;;  %1901 = vmatprep.subr.bf16.mxu1 %v11995_v62  ;;  %v1972_v61 = vrot.slane %v1971_v54, 4  ;;  %v1976_v62 = vrot.slane %v1974_v55, 5  ;;  %v11085_v54 = vld [vmem:[%s17543_s1 + $0x1ec] ss:$16 sps:$4 sm:$0xff]   ;;  %v2769_v55 = vshll.u32 %v2756_v44, 16 }
 0x10d   :  { %v11131_v44 = vld [vmem:[%s17543_s1 + $0xe8] ss:$16 sps:$4 sm:$0xff]  }
 0x10f   :  { %1859 = vmatpush1.bf16.msra.mxu0 %v11996_v63  ;;  %1902 = vmatpush1.bf16.msra.mxu1 %v11997_v0  ;;  %v12038_v63 = vld [vmem:[%s17543_s1 + $0x4c4] ss:$16 sps:$4 sm:$0xff]   ;;  %v12039_v0 = vld [vmem:[%s17543_s1 + $0x4cc] ss:$16 sps:$4 sm:$0xff]  }
 0x110   :  { %1860 = vmatprep.subr.bf16.mxu0 %v11998_v1  ;;  %1903 = vmatprep.subr.bf16.mxu1 %v11999_v3  ;;  %v12040_v1 = vld [vmem:[%s17543_s1 + $0x4c0] ss:$16 sps:$4 sm:$0xff]   ;;  %v12041_v3 = vld [vmem:[%s17543_s1 + $0x4c8] ss:$16 sps:$4 sm:$0xff]  }
 0x113   :  { %1861 = vmatpush1.bf16.msra.mxu0 %v12000_v4  ;;  %1904 = vmatpush1.bf16.msra.mxu1 %v12001_v5  ;;  %v1963_v4 = vsel %vm12892_vm2, %v1958_v59, %v1962_v60  ;;  %v1977_v5 = vsel %vm12892_vm2, %v1972_v61, %v1976_v62  ;;  %v11083_v59 = vld [vmem:[%s17543_s1 + $0x1e8] ss:$16 sps:$4 sm:$0xff]   ;;  %v11088_v62 = vld [vmem:[%s17543_s1 + $0x4] ss:$16 sps:$4 sm:$0xff]  }
 0x114   :  { %1862 = vmatprep.subr.bf16.mxu0 %v12002_v6  ;;  %1905 = vmatprep.subr.bf16.mxu1 %v12003_v7  ;;  %v12042_v6 = vld [vmem:[%s17543_s1 + $0x4e4] ss:$16 sps:$4 sm:$0xff]   ;;  %v12043_v7 = vld [vmem:[%s17543_s1 + $0x4ec] ss:$16 sps:$4 sm:$0xff]   ;;  %v9169_v60 = vld [vmem:[%s17542_s0 + $0x18] sm:$0xf] }
 0x115   :  { %v9170_v61 = vld [vmem:[%s17542_s0 + $0x38] sm:$0xf] }
 0x117   :  { %1863 = vmatpush1.bf16.msra.mxu0 %v12004_v8  ;;  %1906 = vmatpush1.bf16.msra.mxu1 %v12005_v9  ;;  %v11040_v8 = vld [vmem:[%s17543_s1 + $0x104] ss:$16 sps:$4 sm:$0xff]   ;;  %v11043_v9 = vld [vmem:[%s17543_s1 + $0x10c] ss:$16 sps:$4 sm:$0xff]  }
 0x118   :  { %1864 = vmatprep.subr.bf16.mxu0 %v12006_v11  ;;  %1907 = vmatprep.subr.bf16.mxu1 %v12007_v12  ;;  %v9164_v11 = vcombine.low %v1963_v4, %v1977_v5  ;;  %v12044_v12 = vld [vmem:[%s17543_s1 + $0x4e0] ss:$16 sps:$4 sm:$0xff]   ;;  %v13580_v5 = vcombine.low %v9169_v60, %v9170_v61  ;;  %v11154_v60 = vld [vmem:[%s17543_s1 + $0x264] ss:$16 sps:$4 sm:$0xff]   ;;  %v11157_v61 = vld [vmem:[%s17543_s1 + $0x26c] ss:$16 sps:$4 sm:$0xff]  }
 0x11b   :  { %1865 = vmatpush1.bf16.msra.mxu0 %v12008_v13  ;;  %1908 = vmatpush1.bf16.msra.mxu1 %v12009_v14  ;;  %v12045_v13 = vld [vmem:[%s17543_s1 + $0x4e8] ss:$16 sps:$4 sm:$0xff]   ;;  %v11038_v14 = vld [vmem:[%s17543_s1 + $0x100] ss:$16 sps:$4 sm:$0xff]  }
 0x11c   :  { %1866 = vmatprep.subr.bf16.mxu0 %v12010_v15  ;;  %1909 = vmatprep.subr.bf16.mxu1 %v12011_v16  ;;  %v11041_v15 = vld [vmem:[%s17543_s1 + $0x108] ss:$16 sps:$4 sm:$0xff]   ;;  %v11046_v16 = vld [vmem:[%s17543_s1 + $0x124] ss:$16 sps:$4 sm:$0xff]  }
 0x11f   :  { %1867 = vmatpush1.bf16.msra.mxu0 %v12012_v17  ;;  %1910 = vmatpush1.bf16.msra.mxu1 %v12013_v18  ;;  %v11049_v17 = vld [vmem:[%s17543_s1 + $0x12c] ss:$16 sps:$4 sm:$0xff]   ;;  %v11044_v18 = vld [vmem:[%s17543_s1 + $0x120] ss:$16 sps:$4 sm:$0xff]  }
 0x120   :  { %1982 = vmatprep.subr.bf16.mxu0 %v12014_v20  ;;  %2025 = vmatprep.subr.bf16.mxu1 %v12015_v21  ;;  %v11047_v20 = vld [vmem:[%s17543_s1 + $0x128] ss:$16 sps:$4 sm:$0xff]   ;;  %v11052_v21 = vld [vmem:[%s17543_s1 + $0x144] ss:$16 sps:$4 sm:$0xff]  }
 0x122   :  { %1885 = vmatmul.mubr.bf16.vlgmr.msra.gmra.mrb[4].mxu0 %v12930_v10  ;;  %1928 = vmatmul.mubr.bf16.vlgmr.msra.gmra.mrb[4].mxu1 %v12930_v10  ;;  %v12020_v10 = vld [vmem:[%s17543_s1 + $0x420] ss:$16 sps:$4 sm:$0xff]  }
 0x123   :  { %1983 = vmatpush1.bf16.msra.mxu0 %v12016_v22  ;;  %2026 = vmatpush1.bf16.msra.mxu1 %v12017_v37  ;;  %v11055_v22 = vld [vmem:[%s17543_s1 + $0x14c] ss:$16 sps:$4 sm:$0xff]   ;;  %v11050_v37 = vld [vmem:[%s17543_s1 + $0x140] ss:$16 sps:$4 sm:$0xff]  }
 0x124   :  { %1984 = vmatprep.subr.bf16.mxu0 %v12018_v23  ;;  %2027 = vmatprep.subr.bf16.mxu1 %v12019_v24  ;;  %v11053_v23 = vld [vmem:[%s17543_s1 + $0x148] ss:$16 sps:$4 sm:$0xff]   ;;  %v11058_v24 = vld [vmem:[%s17543_s1 + $0x164] ss:$16 sps:$4 sm:$0xff]  }
 0x125   :  { %2014 = vmatprep.mubr.bf16.mxu0 %v17552_v2  ;;  %2057 = vmatprep.mubr.bf16.mxu1 %v17552_v2 }
 0x127   :  { %1985 = vmatpush1.bf16.msra.mxu0 %v12020_v10  ;;  %2028 = vmatpush1.bf16.msra.mxu1 %v12021_v25  ;;  %v11061_v10 = vld [vmem:[%s17543_s1 + $0x16c] ss:$16 sps:$4 sm:$0xff]   ;;  %v11056_v25 = vld [vmem:[%s17543_s1 + $0x160] ss:$16 sps:$4 sm:$0xff]  }
 0x128   :  { %1986 = vmatprep.subr.bf16.mxu0 %v12022_v26  ;;  %2029 = vmatprep.subr.bf16.mxu1 %v12023_v27  ;;  %v11059_v26 = vld [vmem:[%s17543_s1 + $0x168] ss:$16 sps:$4 sm:$0xff]   ;;  %v11064_v27 = vld [vmem:[%s17543_s1 + $0x184] ss:$16 sps:$4 sm:$0xff]  }
 0x12b   :  { %1987 = vmatpush1.bf16.msra.mxu0 %v12024_v30  ;;  %2030 = vmatpush1.bf16.msra.mxu1 %v12025_v31  ;;  %v2757_v30 = vld [vmem:[%s17542_s0 + $0x20] sm:$0xf] }
 0x12c   :  { %1988 = vmatprep.subr.bf16.mxu0 %v12026_v36  ;;  %2031 = vmatprep.subr.bf16.mxu1 %v12027_v38  ;;  %v11062_v31 = vld [vmem:[%s17543_s1 + $0x180] ss:$16 sps:$4 sm:$0xff]   ;;  %v2763_v36 = vshll.u32 %v2755_v29, 16  ;;  %v2774_v38 = vshrl.u32 %v2757_v30, 16  ;;  %v11127_v29 = vld [vmem:[%s17543_s1 + $0xcc] ss:$16 sps:$4 sm:$0xff]  }
 0x12e   :  { %v2765_v48 = vrot.slane %v2763_v36, 5  ;;  %v2776_v49 = vrot.slane %v2774_v38, 4  ;;  %v11130_v36 = vld [vmem:[%s17543_s1 + $0xe4] ss:$16 sps:$4 sm:$0xff]   ;;  %v11133_v38 = vld [vmem:[%s17543_s1 + $0xec] ss:$16 sps:$4 sm:$0xff]  }
 0x12f   :  { %1989 = vmatpush1.bf16.msra.mxu0 %v12028_v39  ;;  %2032 = vmatpush1.bf16.msra.mxu1 %v12029_v40  ;;  %v2777_v39 = vshll.u32 %v2757_v30, 16  ;;  %v11068_v40 = vld [vmem:[%s17543_s1 + $0x1a0] ss:$16 sps:$4 sm:$0xff]  }
 0x130   :  { %1990 = vmatprep.subr.bf16.mxu0 %v12030_v45  ;;  %2033 = vmatprep.subr.bf16.mxu1 %v12031_v46  ;;  %v2758_v45 = vld [vmem:[%s17542_s0 + $0x24] sm:$0x1]  ;;  %v2762_v46 = vrot.slane %v2760_v35, 4 }
 0x133   :  { %1991 = vmatpush1.bf16.msra.mxu0 %v12032_v50  ;;  %2034 = vmatpush1.bf16.msra.mxu1 %v12033_v51  ;;  %v2779_v50 = vrot.slane %v2777_v39, 5  ;;  %v11074_v51 = vld [vmem:[%s17543_s1 + $0x1c0] ss:$16 sps:$4 sm:$0xff]  }
 0x134   :  { %1992 = vmatprep.subr.bf16.mxu0 %v12034_v19  ;;  %2035 = vmatprep.subr.bf16.mxu1 %v12035_v56  ;;  %v2783_v19 = vshll.u32 %v2758_v45, 16  ;;  %v11080_v56 = vld [vmem:[%s17543_s1 + $0x1e0] ss:$16 sps:$4 sm:$0xff]  }
 0x135   :  { %v9167_v45 = vld [vmem:[%s17542_s0 + $0x10] sm:$0xf] }
 0x136   :  { %v13578_v4 = vrot.slane %v2783_v19, 5  ;;  %v11143_v19 = vld [vmem:[%s17543_s1 + $0x228] ss:$16 sps:$4 sm:$0xff]  }
 0x137   :  { %1993 = vmatpush1.bf16.msra.mxu0 %v12036_v57  ;;  %2036 = vmatpush1.bf16.msra.mxu1 %v12037_v58  ;;  %v2766_v57 = vor.u32 %v2765_v48, %v2762_v46  ;;  %v2780_v58 = vor.u32 %v2779_v50, %v2776_v49  ;;  %v9168_v46 = vld [vmem:[%s17542_s0 + $0x30] sm:$0xf]  ;;  %v11136_v48 = vld [vmem:[%s17543_s1 + $0x204] ss:$16 sps:$4 sm:$0xff]   ;;  %v11139_v49 = vld [vmem:[%s17543_s1 + $0x20c] ss:$16 sps:$4 sm:$0xff]  }
 0x138   :  { %1994 = vmatprep.subr.bf16.mxu0 %v12038_v63  ;;  %2037 = vmatprep.subr.bf16.mxu1 %v12039_v0  ;;  %v11091_v63 = vld [vmem:[%s17543_s1 + $0xc] ss:$16 sps:$4 sm:$0xff]   ;;  %v11086_v0 = vld [vmem:[%s17543_s1] ss:$16 sps:$4 sm:$0xff]  }
 0x139   :  { %v11134_v50 = vld [vmem:[%s17543_s1 + $0x200] ss:$16 sps:$4 sm:$0xff]  }
 0x13b   :  { %1995 = vmatpush1.bf16.msra.mxu0 %v12040_v1  ;;  %2038 = vmatpush1.bf16.msra.mxu1 %v12041_v3  ;;  %v11089_v1 = vld [vmem:[%s17543_s1 + $0x8] ss:$16 sps:$4 sm:$0xff]   ;;  %v13576_v3 = vrot.slane %v2769_v55, 5  ;;  %v11140_v55 = vld [vmem:[%s17543_s1 + $0x220] ss:$16 sps:$4 sm:$0xff]  }
 0x13c   :  { %1996 = vmatprep.subr.bf16.mxu0 %v12042_v6  ;;  %2039 = vmatprep.subr.bf16.mxu1 %v12043_v7  ;;  %v11094_v6 = vld [vmem:[%s17543_s1 + $0x24] ss:$16 sps:$4 sm:$0xff]   ;;  %v11097_v7 = vld [vmem:[%s17543_s1 + $0x2c] ss:$16 sps:$4 sm:$0xff]  }
 0x13f   :  { %1997 = vmatpush1.bf16.msra.mxu0 %v12044_v12  ;;  %2040 = vmatpush1.bf16.msra.mxu1 %v12045_v13  ;;  %v11095_v12 = vld [vmem:[%s17543_s1 + $0x28] ss:$16 sps:$4 sm:$0xff]   ;;  %v11100_v13 = vld [vmem:[%s17543_s1 + $0x44] ss:$16 sps:$4 sm:$0xff]  }
 0x140   :  { %2417 = vmatprep.subr.bf16.mxu0 %v11040_v8  ;;  %2460 = vmatprep.subr.bf16.mxu1 %v11043_v9  ;;  %v13588_v8 = vrot.slane %v2766_v57, 4  ;;  %v13590_v9 = vrot.slane %v2780_v58, 4  ;;  %v11151_v57 = vld [vmem:[%s17543_s1 + $0x24c] ss:$16 sps:$4 sm:$0xff]   ;;  %v11146_v58 = vld [vmem:[%s17543_s1 + $0x240] ss:$16 sps:$4 sm:$0xff]  }
 0x142   :  { %2015 = vmatmul.mubr.bf16.vlgmr.msra.gmra.mrb[4].mxu0 %v9164_v11  ;;  %2058 = vmatmul.mubr.bf16.vlgmr.msra.gmra.mrb[4].mxu1 %v9164_v11  ;;  %v11092_v11 = vld [vmem:[%s17543_s1 + $0x20] ss:$16 sps:$4 sm:$0xff]  }
 0x143   :  { %2418 = vmatpush1.bf16.msra.mxu0 %v11038_v14  ;;  %2461 = vmatpush1.bf16.msra.mxu1 %v11041_v15  ;;  %v11103_v14 = vld [vmem:[%s17543_s1 + $0x4c] ss:$16 sps:$4 sm:$0xff]   ;;  %v11098_v15 = vld [vmem:[%s17543_s1 + $0x40] ss:$16 sps:$4 sm:$0xff]  }
 0x144   :  { %2419 = vmatprep.subr.bf16.mxu0 %v11046_v16  ;;  %2462 = vmatprep.subr.bf16.mxu1 %v11049_v17  ;;  %v11101_v16 = vld [vmem:[%s17543_s1 + $0x48] ss:$16 sps:$4 sm:$0xff]   ;;  %v11106_v17 = vld [vmem:[%s17543_s1 + $0x64] ss:$16 sps:$4 sm:$0xff]  }
 0x145   :  { %2449 = vmatprep.mubr.bf16.mxu0 %v17552_v2  ;;  %2492 = vmatprep.mubr.bf16.mxu1 %v17552_v2 }
 0x147   :  { %2420 = vmatpush1.bf16.msra.mxu0 %v11044_v18  ;;  %2463 = vmatpush1.bf16.msra.mxu1 %v11047_v20  ;;  %v11109_v18 = vld [vmem:[%s17543_s1 + $0x6c] ss:$16 sps:$4 sm:$0xff]   ;;  %v11104_v20 = vld [vmem:[%s17543_s1 + $0x60] ss:$16 sps:$4 sm:$0xff]  }
 0x148   :  { %2421 = vmatprep.subr.bf16.mxu0 %v11052_v21  ;;  %2464 = vmatprep.subr.bf16.mxu1 %v11055_v22  ;;  %v11107_v21 = vld [vmem:[%s17543_s1 + $0x68] ss:$16 sps:$4 sm:$0xff]   ;;  %v11112_v22 = vld [vmem:[%s17543_s1 + $0x84] ss:$16 sps:$4 sm:$0xff]  }
 0x14b   :  { %2422 = vmatpush1.bf16.msra.mxu0 %v11050_v37  ;;  %2465 = vmatpush1.bf16.msra.mxu1 %v11053_v23  ;;  %v11115_v37 = vld [vmem:[%s17543_s1 + $0x8c] ss:$16 sps:$4 sm:$0xff]   ;;  %v11110_v23 = vld [vmem:[%s17543_s1 + $0x80] ss:$16 sps:$4 sm:$0xff]  }
 0x14c   :  { %2423 = vmatprep.subr.bf16.mxu0 %v11058_v24  ;;  %2466 = vmatprep.subr.bf16.mxu1 %v11061_v10  ;;  %v11113_v24 = vld [vmem:[%s17543_s1 + $0x88] ss:$16 sps:$4 sm:$0xff]   ;;  %v11118_v10 = vld [vmem:[%s17543_s1 + $0xa4] ss:$16 sps:$4 sm:$0xff]  }
 0x14f   :  { %2424 = vmatpush1.bf16.msra.mxu0 %v11056_v25  ;;  %2467 = vmatpush1.bf16.msra.mxu1 %v11059_v26  ;;  %v11121_v25 = vld [vmem:[%s17543_s1 + $0xac] ss:$16 sps:$4 sm:$0xff]   ;;  %v11116_v26 = vld [vmem:[%s17543_s1 + $0xa0] ss:$16 sps:$4 sm:$0xff]  }
 0x150   :  { %2425 = vmatprep.subr.bf16.mxu0 %v11064_v27  ;;  %2468 = vmatprep.subr.bf16.mxu1 %v11067_v28  ;;  %v11119_v27 = vld [vmem:[%s17543_s1 + $0xa8] ss:$16 sps:$4 sm:$0xff]   ;;  %v11124_v28 = vld [vmem:[%s17543_s1 + $0xc4] ss:$16 sps:$4 sm:$0xff]  }
 0x153   :  { %2426 = vmatpush1.bf16.msra.mxu0 %v11062_v31  ;;  %2469 = vmatpush1.bf16.msra.mxu1 %v11065_v32  ;;  %v11122_v32 = vld [vmem:[%s17543_s1 + $0xc0] ss:$16 sps:$4 sm:$0xff]  }
 0x154   :  { %2427 = vmatprep.subr.bf16.mxu0 %v11070_v33  ;;  %2470 = vmatprep.subr.bf16.mxu1 %v11073_v34  ;;  %v11125_v33 = vld [vmem:[%s17543_s1 + $0xc8] ss:$16 sps:$4 sm:$0xff]  }
 0x157   :  { %2428 = vmatpush1.bf16.msra.mxu0 %v11068_v40  ;;  %2471 = vmatpush1.bf16.msra.mxu1 %v11071_v41 }
 0x158   :  { %2429 = vmatprep.subr.bf16.mxu0 %v11076_v42  ;;  %2472 = vmatprep.subr.bf16.mxu1 %v11079_v43  ;;  %v11128_v43 = vld [vmem:[%s17543_s1 + $0xe0] ss:$16 sps:$4 sm:$0xff]  }
 0x15b   :  { %2430 = vmatpush1.bf16.msra.mxu0 %v11074_v51  ;;  %2473 = vmatpush1.bf16.msra.mxu1 %v11077_v47  ;;  %v11137_v51 = vld [vmem:[%s17543_s1 + $0x208] ss:$16 sps:$4 sm:$0xff]   ;;  %v9236_v47 = vcombine.low %v9167_v45, %v9168_v46  ;;  %v13907_v45 = vld [vmem:[%s17543_s1 + $0x340] ss:$16 sps:$4 sm:$0xff]  }
 0x15c   :  { %2431 = vmatprep.subr.bf16.mxu0 %v11082_v53  ;;  %2474 = vmatprep.subr.bf16.mxu1 %v11085_v54  ;;  %v11142_v53 = vld [vmem:[%s17543_s1 + $0x224] ss:$16 sps:$4 sm:$0xff]   ;;  %v11145_v54 = vld [vmem:[%s17543_s1 + $0x22c] ss:$16 sps:$4 sm:$0xff]   ;;  %v13912_v46 = vld [vmem:[%s17543_s1 + $0x348] ss:$16 sps:$4 sm:$0xff]  }
 0x15f   :  { %2432 = vmatpush1.bf16.msra.mxu0 %v11080_v56  ;;  %2475 = vmatpush1.bf16.msra.mxu1 %v11083_v59  ;;  %v11148_v56 = vld [vmem:[%s17543_s1 + $0x244] ss:$16 sps:$4 sm:$0xff]   ;;  %v11149_v59 = vld [vmem:[%s17543_s1 + $0x248] ss:$16 sps:$4 sm:$0xff]  }
 0x160   :  { %2669 = vmatprep.subr.bf16.mxu0 %v11088_v62  ;;  %2712 = vmatprep.subr.bf16.mxu1 %v11091_v63  ;;  %v11152_v62 = vld [vmem:[%s17543_s1 + $0x260] ss:$16 sps:$4 sm:$0xff]   ;;  %v11155_v63 = vld [vmem:[%s17543_s1 + $0x268] ss:$16 sps:$4 sm:$0xff]  }
 0x162   :  { %2450 = vmatmul.mubr.bf16.vlgmr.msra.gmra.mrb[8].mxu0 %v13580_v5  ;;  %2493 = vmatmul.mubr.bf16.vlgmr.msra.gmra.mrb[8].mxu1 %v13580_v5 }
 0x163   :  { %2670 = vmatpush1.bf16.msra.mxu0 %v11086_v0  ;;  %2713 = vmatpush1.bf16.msra.mxu1 %v11089_v1  ;;  %v11160_v0 = vld [vmem:[%s17543_s1 + $0x284] ss:$16 sps:$4 sm:$0xff]   ;;  %v11163_v1 = vld [vmem:[%s17543_s1 + $0x28c] ss:$16 sps:$4 sm:$0xff]  }
 0x164   :  { %2671 = vmatprep.subr.bf16.mxu0 %v11094_v6  ;;  %2714 = vmatprep.subr.bf16.mxu1 %v11097_v7  ;;  %v11158_v6 = vld [vmem:[%s17543_s1 + $0x280] ss:$16 sps:$4 sm:$0xff]   ;;  %v11161_v7 = vld [vmem:[%s17543_s1 + $0x288] ss:$16 sps:$4 sm:$0xff]  }
 0x165   :  { %2701 = vmatprep.mubr.bf16.mxu0 %v17552_v2  ;;  %2744 = vmatprep.mubr.bf16.mxu1 %v17552_v2 }
 0x167   :  { %2672 = vmatpush1.bf16.msra.mxu0 %v11092_v11  ;;  %2715 = vmatpush1.bf16.msra.mxu1 %v11095_v12  ;;  %v11166_v11 = vld [vmem:[%s17543_s1 + $0x2a4] ss:$16 sps:$4 sm:$0xff]   ;;  %v11169_v12 = vld [vmem:[%s17543_s1 + $0x2ac] ss:$16 sps:$4 sm:$0xff]  }
 0x168   :  { %2673 = vmatprep.subr.bf16.mxu0 %v11100_v13  ;;  %2716 = vmatprep.subr.bf16.mxu1 %v11103_v14  ;;  %v13767_v13 = vld [vmem:[%s17543_s1 + $0x2a0] ss:$16 sps:$4 sm:$0xff]   ;;  %v13772_v14 = vld [vmem:[%s17543_s1 + $0x2a8] ss:$16 sps:$4 sm:$0xff]  }
 0x16b   :  { %2674 = vmatpush1.bf16.msra.mxu0 %v11098_v15  ;;  %2717 = vmatpush1.bf16.msra.mxu1 %v11101_v16  ;;  %v13777_v15 = vld [vmem:[%s17543_s1 + $0x2c4] ss:$16 sps:$4 sm:$0xff]   ;;  %v13782_v16 = vld [vmem:[%s17543_s1 + $0x2cc] ss:$16 sps:$4 sm:$0xff]  }
 0x16c   :  { %2675 = vmatprep.subr.bf16.mxu0 %v11106_v17  ;;  %2718 = vmatprep.subr.bf16.mxu1 %v11109_v18  ;;  %v13787_v17 = vld [vmem:[%s17543_s1 + $0x2c0] ss:$16 sps:$4 sm:$0xff]   ;;  %v13792_v18 = vld [vmem:[%s17543_s1 + $0x2c8] ss:$16 sps:$4 sm:$0xff]  }
 0x16f   :  { %2676 = vmatpush1.bf16.msra.mxu0 %v11104_v20  ;;  %2719 = vmatpush1.bf16.msra.mxu1 %v11107_v21  ;;  %v13797_v20 = vld [vmem:[%s17543_s1 + $0x2e4] ss:$16 sps:$4 sm:$0xff]   ;;  %v13802_v21 = vld [vmem:[%s17543_s1 + $0x2ec] ss:$16 sps:$4 sm:$0xff]  }
 0x170   :  { %2677 = vmatprep.subr.bf16.mxu0 %v11112_v22  ;;  %2720 = vmatprep.subr.bf16.mxu1 %v11115_v37  ;;  %v13811_v22 = vld [vmem:[%s17543_s1 + $0x2e0] ss:$16 sps:$4 sm:$0xff]   ;;  %v13816_v37 = vld [vmem:[%s17543_s1 + $0x2e8] ss:$16 sps:$4 sm:$0xff]  }
 0x173   :  { %2678 = vmatpush1.bf16.msra.mxu0 %v11110_v23  ;;  %2721 = vmatpush1.bf16.msra.mxu1 %v11113_v24  ;;  %v13821_v23 = vld [vmem:[%s17543_s1 + $0x304] ss:$16 sps:$4 sm:$0xff]   ;;  %v13826_v24 = vld [vmem:[%s17543_s1 + $0x30c] ss:$16 sps:$4 sm:$0xff]  }
 0x174   :  { %2679 = vmatprep.subr.bf16.mxu0 %v11118_v10  ;;  %2722 = vmatprep.subr.bf16.mxu1 %v11121_v25  ;;  %v2772_v10 = vsel %vm12892_vm2, %v13588_v8, %v13576_v3  ;;  %v2786_v25 = vsel %vm12892_vm2, %v13590_v9, %v13578_v4  ;;  %v13855_v4 = vld [vmem:[%s17543_s1 + $0x324] ss:$16 sps:$4 sm:$0xff]   ;;  %v13860_v8 = vld [vmem:[%s17543_s1 + $0x32c] ss:$16 sps:$4 sm:$0xff]  }
 0x175   :  { %v13656_v30 = vpop.f32.mrb[0].mxu0  ;;  %v13658_v31 = vpop.f32.mrb[0].mxu1  ;;  %v13850_v3 = vcombine.low %v2772_v10, %v2786_v25  ;;  %v2115_v9 = vld [vmem:[#allocation2] sm:$0x11] }
 0x176   :  { %v13666_v34 = vpop.f32.mrb[1].mxu0  ;;  %v13668_v35 = vpop.f32.mrb[1].mxu1 }
 0x177   :  { %v13676_v39 = vpop.f32.mrb[2].mxu0  ;;  %v13678_v40 = vpop.f32.mrb[2].mxu1  ;;  %2680 = vmatpush1.bf16.msra.mxu0 %v11116_v26  ;;  %2723 = vmatpush1.bf16.msra.mxu1 %v11119_v27  ;;  %v13843_v26 = vld [vmem:[%s17543_s1 + $0x300] ss:$16 sps:$4 sm:$0xff]   ;;  %v13848_v27 = vld [vmem:[%s17543_s1 + $0x308] ss:$16 sps:$4 sm:$0xff]  }
 0x178   :  { %v13680_v41 = vpop.f32.mrb[3].mxu0  ;;  %v13682_v42 = vpop.f32.mrb[3].mxu1  ;;  %2681 = vmatprep.subr.bf16.mxu0 %v11124_v28  ;;  %2724 = vmatprep.subr.bf16.mxu1 %v11127_v29  ;;  %v13875_v29 = vld [vmem:[%s17543_s1 + $0x320] ss:$16 sps:$4 sm:$0xff]  }
 0x17b   :  { %2682 = vmatpush1.bf16.msra.mxu0 %v11122_v32  ;;  %2725 = vmatpush1.bf16.msra.mxu1 %v11125_v33  ;;  %v13880_v32 = vld [vmem:[%s17543_s1 + $0x328] ss:$16 sps:$4 sm:$0xff]   ;;  %v2116_v33 = vsel %vm13868_vm9, 0, %v2115_v9 }
 0x17c   :  { %2683 = vmatprep.subr.bf16.mxu0 %v11130_v36  ;;  %2726 = vmatprep.subr.bf16.mxu1 %v11133_v38  ;;  %v2118_v36 = vld [vmem:[#allocation2 + $0x10] sm:$0x11]  ;;  %2117 = vst [vmem:[#allocation2] sm:$0x11] %v2116_v33 }
 0x17d   :  { %v13889_v38 = vld [vmem:[%s17543_s1 + $0x344] ss:$16 sps:$4 sm:$0xff]  }
 0x17f   :  { %2684 = vmatpush1.bf16.msra.mxu0 %v11128_v43  ;;  %2727 = vmatpush1.bf16.msra.mxu1 %v11131_v44  ;;  %v13894_v43 = vld [vmem:[%s17543_s1 + $0x34c] ss:$16 sps:$4 sm:$0xff]   ;;  %v2119_v44 = vsel %vm13868_vm9, 0, %v2118_v36 }
 0x180   :  { %2983 = vmatprep.subr.bf16.mxu0 %v11136_v48  ;;  %3026 = vmatprep.subr.bf16.mxu1 %v11139_v49  ;;  %2120 = vst [vmem:[#allocation2 + $0x10] sm:$0x11] %v2119_v44  ;;  %v13917_v48 = vld [vmem:[%s17543_s1 + $0x364] ss:$16 sps:$4 sm:$0xff]   ;;  %v9334_v49 = vld [vmem:[%s17542_s0 + $0x8] sm:$0xf] }
 0x182   :  { %2702 = vmatmul.mubr.bf16.vlgmr.msra.gmra.mrb[8].mxu0 %v9236_v47  ;;  %2745 = vmatmul.mubr.bf16.vlgmr.msra.gmra.mrb[8].mxu1 %v9236_v47  ;;  %v13937_v47 = vld [vmem:[%s17543_s1 + $0x360] ss:$16 sps:$4 sm:$0xff]  }
 0x183   :  { %2984 = vmatpush1.bf16.msra.mxu0 %v11134_v50  ;;  %3027 = vmatpush1.bf16.msra.mxu1 %v11137_v51  ;;  %v13929_v50 = vld [vmem:[%s17543_s1 + $0x36c] ss:$16 sps:$4 sm:$0xff]   ;;  %v9336_v51 = vld [vmem:[%s17542_s0 + $0x28] sm:$0xf] }
 0x184   :  { %2985 = vmatprep.subr.bf16.mxu0 %v11142_v53  ;;  %3028 = vmatprep.subr.bf16.mxu1 %v11145_v54  ;;  %v13942_v53 = vld [vmem:[%s17543_s1 + $0x368] ss:$16 sps:$4 sm:$0xff]   ;;  %v13947_v54 = vld [vmem:[%s17543_s1 + $0x384] ss:$16 sps:$4 sm:$0xff]  }
 0x185   :  { %3015 = vmatprep.mubr.bf16.mxu0 %v17552_v2  ;;  %3058 = vmatprep.mubr.bf16.mxu1 %v17552_v2  ;;  %17720 = vst [vmem:[#allocation8_spill] sm:$0xff] %v13947_v54 }
 0x187   :  { %2986 = vmatpush1.bf16.msra.mxu0 %v11140_v55  ;;  %3029 = vmatpush1.bf16.msra.mxu1 %v11143_v19  ;;  %v13952_v55 = vld [vmem:[%s17543_s1 + $0x38c] ss:$16 sps:$4 sm:$0xff]   ;;  %v3082_v19 = vshrl.u32 %v9334_v49, 16 }
 0x188   :  { %2987 = vmatprep.subr.bf16.mxu0 %v11148_v56  ;;  %3030 = vmatprep.subr.bf16.mxu1 %v11151_v57  ;;  %17721 = vst [vmem:[#allocation9_spill] sm:$0xff] %v13952_v55  ;;  %v3085_v56 = vshll.u32 %v9334_v49, 16  ;;  %v3096_v57 = vshrl.u32 %v9336_v51, 16 }
 0x18b   :  { %2988 = vmatpush1.bf16.msra.mxu0 %v11146_v58  ;;  %3031 = vmatpush1.bf16.msra.mxu1 %v11149_v59  ;;  %v3099_v58 = vshll.u32 %v9336_v51, 16 }
 0x18c   :  { %2989 = vmatprep.subr.bf16.mxu0 %v11154_v60  ;;  %3032 = vmatprep.subr.bf16.mxu1 %v11157_v61  ;;  %v13969_v60 = vld [vmem:[%s17543_s1 + $0x380] ss:$16 sps:$4 sm:$0xff]   ;;  %v13974_v61 = vld [vmem:[%s17543_s1 + $0x388] ss:$16 sps:$4 sm:$0xff]  }
 0x18d   :  { %17724 = vst [vmem:[#allocation10_spill] sm:$0xff] %v13969_v60  ;;  %17725 = vst [vmem:[#allocation11_spill] sm:$0xff] %v13974_v61 }
 0x18f   :  { %2990 = vmatpush1.bf16.msra.mxu0 %v11152_v62  ;;  %3033 = vmatpush1.bf16.msra.mxu1 %v11155_v63  ;;  %v13979_v62 = vld [vmem:[%s17543_s1 + $0x3a4] ss:$16 sps:$4 sm:$0xff]   ;;  %v3084_v63 = vrot.slane %v3082_v19, 4 }
 0x190   :  { %2991 = vmatprep.subr.bf16.mxu0 %v11160_v0  ;;  %3034 = vmatprep.subr.bf16.mxu1 %v11163_v1  ;;  %17726 = vst [vmem:[#allocation12_spill] sm:$0xff] %v13979_v62  ;;  %v3087_v0 = vrot.slane %v3085_v56, 5  ;;  %v3098_v1 = vrot.slane %v3096_v57, 4 }
 0x193   :  { %2992 = vmatpush1.bf16.msra.mxu0 %v11158_v6  ;;  %3035 = vmatpush1.bf16.msra.mxu1 %v11161_v7  ;;  %v3101_v6 = vrot.slane %v3099_v58, 5 }
 0x194   :  { %2993 = vmatprep.subr.bf16.mxu0 %v11166_v11  ;;  %3036 = vmatprep.subr.bf16.mxu1 %v11169_v12 }
 0x197   :  { %2994 = vmatpush1.bf16.msra.mxu0 %v13767_v13  ;;  %3037 = vmatpush1.bf16.msra.mxu1 %v13772_v14 }
 0x198   :  { %2995 = vmatprep.subr.bf16.mxu0 %v13777_v15  ;;  %3038 = vmatprep.subr.bf16.mxu1 %v13782_v16 }
 0x19b   :  { %2996 = vmatpush1.bf16.msra.mxu0 %v13787_v17  ;;  %3039 = vmatpush1.bf16.msra.mxu1 %v13792_v18 }
 0x19c   :  { %2997 = vmatprep.subr.bf16.mxu0 %v13797_v20  ;;  %3040 = vmatprep.subr.bf16.mxu1 %v13802_v21 }
 0x19f   :  { %2998 = vmatpush1.bf16.msra.mxu0 %v13811_v22  ;;  %3041 = vmatpush1.bf16.msra.mxu1 %v13816_v37 }
 0x1a0   :  { %3305 = vmatprep.subr.bf16.mxu0 %v13821_v23  ;;  %3348 = vmatprep.subr.bf16.mxu1 %v13826_v24 }
 0x1a2   :  { %3016 = vmatmul.mubr.bf16.vlgmr.msra.gmra.mrb[8].mxu0 %v13850_v3  ;;  %3059 = vmatmul.mubr.bf16.vlgmr.msra.gmra.mrb[8].mxu1 %v13850_v3 }
 0x1a3   :  { %3306 = vmatpush1.bf16.msra.mxu0 %v13843_v26  ;;  %3349 = vmatpush1.bf16.msra.mxu1 %v13848_v27 }
 0x1a4   :  { %3307 = vmatprep.subr.bf16.mxu0 %v13855_v4  ;;  %3350 = vmatprep.subr.bf16.mxu1 %v13860_v8 }
 0x1a5   :  { %3337 = vmatprep.mubr.bf16.mxu0 %v17552_v2  ;;  %3380 = vmatprep.mubr.bf16.mxu1 %v17552_v2 }
 0x1a7   :  { %3308 = vmatpush1.bf16.msra.mxu0 %v13875_v29  ;;  %3351 = vmatpush1.bf16.msra.mxu1 %v13880_v32 }
 0x1a8   :  { %3309 = vmatprep.subr.bf16.mxu0 %v13889_v38  ;;  %3352 = vmatprep.subr.bf16.mxu1 %v13894_v43 }
 0x1ab   :  { %3310 = vmatpush1.bf16.msra.mxu0 %v13907_v45  ;;  %3353 = vmatpush1.bf16.msra.mxu1 %v13912_v46 }
 0x1ac   :  { %3311 = vmatprep.subr.bf16.mxu0 %v13917_v48  ;;  %3354 = vmatprep.subr.bf16.mxu1 %v13929_v50 }
 0x1af   :  { %3312 = vmatpush1.bf16.msra.mxu0 %v13937_v47  ;;  %3355 = vmatpush1.bf16.msra.mxu1 %v13942_v53 }
 0x1b0   :  { %14 = vsyncpa [#allocation5], 0  ;;  %3313 = vmatprep.subr.bf16.mxu0 %v13947_v54  ;;  %3356 = vmatprep.subr.bf16.mxu1 %v13952_v55  ;;  %v13988_v7 = vld [vmem:[%s17543_s1 + $0x3ac] ss:$16 sps:$4 sm:$0xff]   ;;  %v14001_v10 = vld [vmem:[%s17543_s1 + $0x3a0] ss:$16 sps:$4 sm:$0xff]   ;;  %v3088_v9 = vor.u32 %v3087_v0, %v3084_v63  ;;  %v3102_v36 = vor.u32 %v3101_v6, %v3098_v1 }
 0x1b1   :  { %17727 = vst [vmem:[#allocation13_spill] sm:$0xff] %v13988_v7  ;;  %v9335_v11 = vld [vmem:[%s17542_s0 + $0xc] sm:$0x1]  ;;  %17728 = vst [vmem:[#allocation14_spill] sm:$0xff] %v14001_v10  ;;  %v14006_v25 = vld [vmem:[%s17543_s1 + $0x3a8] ss:$16 sps:$4 sm:$0xff]  }
 0x1b2   :  { %v9337_v12 = vld [vmem:[%s17542_s0 + $0x2c] sm:$0x1]  ;;  %17729 = vst [vmem:[#allocation15_spill] sm:$0xff] %v14006_v25  ;;  %v3091_v33 = vshll.u32 %v9335_v11, 16  ;;  %v14013_v49 = vld [vmem:[%s17543_s1 + $0x3c4] ss:$16 sps:$4 sm:$0xff]  }
 0x1b3   :  { %3314 = vmatpush1.bf16.msra.mxu0 %v13969_v60  ;;  %3357 = vmatpush1.bf16.msra.mxu1 %v13974_v61  ;;  %v3105_v44 = vshll.u32 %v9337_v12, 16  ;;  %17730 = vst [vmem:[#allocation16_spill] sm:$0xff] %v14013_v49  ;;  %v14018_v51 = vld [vmem:[%s17543_s1 + $0x3cc] ss:$16 sps:$4 sm:$0xff]   ;;  %v14023_v19 = vld [vmem:[%s17543_s1 + $0x3c0] ss:$16 sps:$4 sm:$0xff]  }
 0x1b4   :  { %3315 = vmatprep.subr.bf16.mxu0 %v13979_v62  ;;  %3358 = vmatprep.subr.bf16.mxu1 %v13988_v7  ;;  %17731 = vst [vmem:[#allocation17_spill] sm:$0xff] %v14018_v51  ;;  %17732 = vst [vmem:[#allocation18_spill] sm:$0xff] %v14023_v19  ;;  %v14030_v56 = vld [vmem:[%s17543_s1 + $0x3c8] ss:$16 sps:$4 sm:$0xff]   ;;  %v3089_v57 = vrot.slane %v3088_v9, 4  ;;  %v3093_v58 = vrot.slane %v3091_v33, 5 }
 0x1b5   :  { %17733 = vst [vmem:[#allocation19_spill] sm:$0xff] %v14030_v56  ;;  %v3103_v63 = vrot.slane %v3102_v36, 4  ;;  %v3107_v0 = vrot.slane %v3105_v44, 5  ;;  %v14037_v1 = vld [vmem:[%s17543_s1 + $0x3e4] ss:$16 sps:$4 sm:$0xff]   ;;  %vm2155_vm15 = vcmask 1043456  }
 0x1b6   :  { %17734 = vst [vmem:[#allocation20_spill] sm:$0xff] %v14037_v1  ;;  %v14042_v6 = vld [vmem:[%s17543_s1 + $0x3ec] ss:$16 sps:$4 sm:$0xff]   ;;  %v14049_v11 = vld [vmem:[%s17543_s1 + $0x3e0] ss:$16 sps:$4 sm:$0xff]   ;;  %v3094_v9 = vsel %vm12892_vm2, %v3089_v57, %v3093_v58  ;;  %vm2158_vm0 = vcmask 1047556   ;;  %vm14565_vm1 = vmand %vm2155_vm15, %vm2156_vm10 }
 0x1b7   :  { %3316 = vmatpush1.bf16.msra.mxu0 %v14001_v10  ;;  %3359 = vmatpush1.bf16.msra.mxu1 %v14006_v25  ;;  %17735 = vst [vmem:[#allocation21_spill] sm:$0xff] %v14042_v6  ;;  %17736 = vst [vmem:[#allocation22_spill] sm:$0xff] %v14049_v11  ;;  %v14054_v12 = vld [vmem:[%s17543_s1 + $0x3e8] ss:$16 sps:$4 sm:$0xff]   ;;  %v3108_v33 = vsel %vm12892_vm2, %v3103_v63, %v3107_v0  ;;  %v14065_v36 = vld [vmem:[%s17543_s1 + $0x404] ss:$16 sps:$4 sm:$0xff]  }
 0x1b8   :  { %3317 = vmatprep.subr.bf16.mxu0 %v14013_v49  ;;  %3360 = vmatprep.subr.bf16.mxu1 %v14018_v51  ;;  %17737 = vst [vmem:[#allocation23_spill] sm:$0xff] %v14054_v12  ;;  %17738 = vst [vmem:[#allocation24_spill] sm:$0xff] %v14065_v36  ;;  %v14070_v44 = vld [vmem:[%s17543_s1 + $0x40c] ss:$16 sps:$4 sm:$0xff]   ;;  %v14072_v2 = vcombine.low %v3094_v9, %v3108_v33  ;;  %v14079_v57 = vld [vmem:[%s17543_s1 + $0x400] ss:$16 sps:$4 sm:$0xff]  }
 0x1b9   :  { %17739 = vst [vmem:[#allocation25_spill] sm:$0xff] %v14070_v44  ;;  %17740 = vst [vmem:[#allocation26_spill] sm:$0xff] %v14079_v57  ;;  %v14084_v58 = vld [vmem:[%s17543_s1 + $0x408] ss:$16 sps:$4 sm:$0xff]   ;;  %v14091_v63 = vld [vmem:[%s17543_s1 + $0x424] ss:$16 sps:$4 sm:$0xff]  }
 0x1ba   :  { %17741 = vst [vmem:[#allocation27_spill] sm:$0xff] %v14084_v58  ;;  %17742 = vst [vmem:[#allocation28_spill] sm:$0xff] %v14091_v63  ;;  %v14096_v0 = vld [vmem:[%s17543_s1 + $0x42c] ss:$16 sps:$4 sm:$0xff]   ;;  %v14105_v9 = vld [vmem:[%s17543_s1 + $0x420] ss:$16 sps:$4 sm:$0xff]  }
 0x1bb   :  { %3318 = vmatpush1.bf16.msra.mxu0 %v14023_v19  ;;  %3361 = vmatpush1.bf16.msra.mxu1 %v14030_v56  ;;  %17743 = vst [vmem:[#allocation29_spill] sm:$0xff] %v14096_v0  ;;  %17744 = vst [vmem:[#allocation30_spill] sm:$0xff] %v14105_v9  ;;  %v14110_v33 = vld [vmem:[%s17543_s1 + $0x428] ss:$16 sps:$4 sm:$0xff]   ;;  %v14173_v19 = vld [vmem:[%s17543_s1 + $0x484] ss:$16 sps:$4 sm:$0xff]  }
 0x1bc   :  { %3319 = vmatprep.subr.bf16.mxu0 %v14037_v1  ;;  %3362 = vmatprep.subr.bf16.mxu1 %v14042_v6  ;;  %17745 = vst [vmem:[#allocation31_spill] sm:$0xff] %v14110_v33  ;;  %17755 = vst [vmem:[#allocation40_spill] sm:$0xff] %v14173_v19  ;;  %v14202_v25 = vld [vmem:[%s17543_s1 + $0x4ac] ss:$16 sps:$4 sm:$0xff]   ;;  %v12102_v60 = vld [vmem:[%s17543_s1 + $0xc4] ss:$16 sps:$4 sm:$0xff]  }
 0x1bd   :  { %17760 = vst [vmem:[#allocation45_spill] sm:$0xff] %v14202_v25  ;;  %vm14571_vm3 = vmand %vm2158_vm0, %vm2159_vm11  ;;  %vm6328_vm5 = vcmask 1042432   ;;  %vm6329_vm6 = vcmask 1046532   ;;  %v11382_v28 = vld [vmem:[%s17546_s4 + $0x24] ss:$16 sps:$4 sm:$0xff]  }
 0x1be   :  { %vm14593_vm4 = vmor %vm14571_vm3, %vm14565_vm1  ;;  %v11397_v59 = vld [vmem:[%s17546_s4 + $0x6c] ss:$16 sps:$4 sm:$0xff]  }
 0x1bf   :  { %3320 = vmatpush1.bf16.msra.mxu0 %v14049_v11  ;;  %3363 = vmatpush1.bf16.msra.mxu1 %v14054_v12  ;;  %v9405_v12 = vld [vmem:[%s17542_s0 + $0x30] sm:$0xf]  ;;  %vm14686_vm7 = vmor %vm6328_vm5, %vm6329_vm6 }
 0x1c0   :  { %3627 = vmatprep.subr.bf16.mxu0 %v14065_v36  ;;  %3670 = vmatprep.subr.bf16.mxu1 %v14070_v44  ;;  %v17748_v44 = vmov 0   ;;  %v14141_v36 = vld [vmem:[%s17543_s1 + $0x464] ss:$16 sps:$4 sm:$0xff]   ;;  %v14159_v11 = vld [vmem:[%s17543_s1 + $0x460] ss:$16 sps:$4 sm:$0xff]   ;;  %v3418_v1 = vshrl.u32 %v9405_v12, 16 }
 0x1c1   :  { %17751 = vst [vmem:[#allocation36_spill] sm:$0xff] %v14141_v36  ;;  %17753 = vst [vmem:[#allocation38_spill] sm:$0xff] %v14159_v11  ;;  %v3421_v56 = vshll.u32 %v9405_v12, 16  ;;  %v14188_v12 = vld [vmem:[%s17543_s1 + $0x488] ss:$16 sps:$4 sm:$0xff]  }
 0x1c2   :  { %3338 = vmatmul.mubr.bf16.vlgmr.msra.gmra.mrb[8].mxu0 %v14072_v2  ;;  %3381 = vmatmul.mubr.bf16.vlgmr.msra.gmra.mrb[8].mxu1 %v14072_v2  ;;  %17758 = vst [vmem:[#allocation43_spill] sm:$0xff] %v14188_v12  ;;  %v3420_v51 = vrot.slane %v3418_v1, 4  ;;  %v14220_v1 = vld [vmem:[%s17543_s1 + $0x4a8] ss:$16 sps:$4 sm:$0xff]  }
 0x1c3   :  { %3628 = vmatpush1.bf16.msra.mxu0 %v14079_v57  ;;  %3671 = vmatpush1.bf16.msra.mxu1 %v14084_v58  ;;  %v14117_v57 = vld [vmem:[%s17543_s1 + $0x444] ss:$16 sps:$4 sm:$0xff]   ;;  %v14122_v58 = vld [vmem:[%s17543_s1 + $0x44c] ss:$16 sps:$4 sm:$0xff]   ;;  %v3423_v49 = vrot.slane %v3421_v56, 5  ;;  %17762 = vst [vmem:[#allocation47_spill] sm:$0xff] %v14220_v1 }
 0x1c4   :  { %3629 = vmatprep.subr.bf16.mxu0 %v14091_v63  ;;  %3672 = vmatprep.subr.bf16.mxu1 %v14096_v0  ;;  %17746 = vst [vmem:[#allocation32_spill] sm:$0xff] %v14117_v57  ;;  %17747 = vst [vmem:[#allocation33_spill] sm:$0xff] %v14122_v58  ;;  %v14131_v0 = vld [vmem:[%s17543_s1 + $0x440] ss:$16 sps:$4 sm:$0xff]   ;;  %v14136_v63 = vld [vmem:[%s17543_s1 + $0x448] ss:$16 sps:$4 sm:$0xff]  }
 0x1c5   :  { %3659 = vmatprep.mubr.bf16.mxu0 %v17748_v44  ;;  %3702 = vmatprep.mubr.bf16.mxu1 %v17748_v44  ;;  %17749 = vst [vmem:[#allocation34_spill] sm:$0xff] %v14131_v0  ;;  %17750 = vst [vmem:[#allocation35_spill] sm:$0xff] %v14136_v63  ;;  %v14215_v56 = vld [vmem:[%s17543_s1 + $0x4a0] ss:$16 sps:$4 sm:$0xff]  }
 0x1c6   :  { %17761 = vst [vmem:[#allocation46_spill] sm:$0xff] %v14215_v56 }
 0x1c7   :  { %3630 = vmatpush1.bf16.msra.mxu0 %v14105_v9  ;;  %3673 = vmatpush1.bf16.msra.mxu1 %v14110_v33  ;;  %v14148_v33 = vld [vmem:[%s17543_s1 + $0x46c] ss:$16 sps:$4 sm:$0xff]   ;;  %v9403_v9 = vld [vmem:[%s17542_s0 + $0x10] sm:$0xf] }
 0x1c8   :  { %3631 = vmatprep.subr.bf16.mxu0 %v14117_v57  ;;  %3674 = vmatprep.subr.bf16.mxu1 %v14122_v58  ;;  %17752 = vst [vmem:[#allocation37_spill] sm:$0xff] %v14148_v33  ;;  %v14166_v58 = vld [vmem:[%s17543_s1 + $0x468] ss:$16 sps:$4 sm:$0xff]   ;;  %v3404_v57 = vshrl.u32 %v9403_v9, 16  ;;  %v3407_v6 = vshll.u32 %v9403_v9, 16 }
 0x1c9   :  { %17754 = vst [vmem:[#allocation39_spill] sm:$0xff] %v14166_v58  ;;  %v14183_v9 = vld [vmem:[%s17543_s1 + $0x480] ss:$16 sps:$4 sm:$0xff]  }
 0x1ca   :  { %17757 = vst [vmem:[#allocation42_spill] sm:$0xff] %v14183_v9 }
 0x1cb   :  { %3632 = vmatpush1.bf16.msra.mxu0 %v14131_v0  ;;  %3675 = vmatpush1.bf16.msra.mxu1 %v14136_v63  ;;  %v14178_v63 = vld [vmem:[%s17543_s1 + $0x48c] ss:$16 sps:$4 sm:$0xff]   ;;  %v3409_v0 = vrot.slane %v3407_v6, 5 }
 0x1cc   :  { %3633 = vmatprep.subr.bf16.mxu0 %v14141_v36  ;;  %3676 = vmatprep.subr.bf16.mxu1 %v14148_v33  ;;  %17756 = vst [vmem:[#allocation41_spill] sm:$0xff] %v14178_v63  ;;  %v14195_v33 = vld [vmem:[%s17543_s1 + $0x4a4] ss:$16 sps:$4 sm:$0xff]   ;;  %v3406_v36 = vrot.slane %v3404_v57, 4 }
 0x1cd   :  { %17759 = vst [vmem:[#allocation44_spill] sm:$0xff] %v14195_v33  ;;  %v9406_v57 = vld [vmem:[%s17542_s0 + $0x34] sm:$0x1] }
 0x1ce   :  { %v3410_v6 = vor.u32 %v3409_v0, %v3406_v36  ;;  %v14237_v36 = vld [vmem:[%s17543_s1 + $0x4c0] ss:$16 sps:$4 sm:$0xff]  }
 0x1cf   :  { %3634 = vmatpush1.bf16.msra.mxu0 %v14159_v11  ;;  %3677 = vmatpush1.bf16.msra.mxu1 %v14166_v58  ;;  %v9404_v58 = vld [vmem:[%s17542_s0 + $0x14] sm:$0x1]  ;;  %v3427_v11 = vshll.u32 %v9406_v57, 16  ;;  %17765 = vst [vmem:[#allocation50_spill] sm:$0xff] %v14237_v36 }
 0x1d0   :  { %3635 = vmatprep.subr.bf16.mxu0 %v14173_v19  ;;  %3678 = vmatprep.subr.bf16.mxu1 %v14178_v63  ;;  %v3413_v63 = vshll.u32 %v9404_v58, 16  ;;  %v3424_v19 = vor.u32 %v3423_v49, %v3420_v51  ;;  %v14244_v49 = vld [vmem:[%s17543_s1 + $0x4c8] ss:$16 sps:$4 sm:$0xff]   ;;  %v3411_v51 = vrot.slane %v3410_v6, 4 }
 0x1d1   :  { %17766 = vst [vmem:[#allocation51_spill] sm:$0xff] %v14244_v49  ;;  %v3429_v57 = vrot.slane %v3427_v11, 5  ;;  %v14268_v11 = vld [vmem:[%s17543_s1 + $0x4e8] ss:$16 sps:$4 sm:$0xff]  }
 0x1d2   :  { %v3415_v58 = vrot.slane %v3413_v63, 5  ;;  %v3425_v0 = vrot.slane %v3424_v19, 4  ;;  %v14263_v19 = vld [vmem:[%s17543_s1 + $0x4e0] ss:$16 sps:$4 sm:$0xff]   ;;  %17770 = vst [vmem:[#allocation55_spill] sm:$0xff] %v14268_v11 }
 0x1d3   :  { %3636 = vmatpush1.bf16.msra.mxu0 %v14183_v9  ;;  %3679 = vmatpush1.bf16.msra.mxu1 %v14188_v12  ;;  %v14227_v12 = vld [vmem:[%s17543_s1 + $0x4c4] ss:$16 sps:$4 sm:$0xff]   ;;  %v14232_v9 = vld [vmem:[%s17543_s1 + $0x4cc] ss:$16 sps:$4 sm:$0xff]   ;;  %17769 = vst [vmem:[#allocation54_spill] sm:$0xff] %v14263_v19 }
 0x1d4   :  { %3637 = vmatprep.subr.bf16.mxu0 %v14195_v33  ;;  %3680 = vmatprep.subr.bf16.mxu1 %v14202_v25  ;;  %17763 = vst [vmem:[#allocation48_spill] sm:$0xff] %v14227_v12  ;;  %17764 = vst [vmem:[#allocation49_spill] sm:$0xff] %v14232_v9  ;;  %v14251_v25 = vld [vmem:[%s17543_s1 + $0x4e4] ss:$16 sps:$4 sm:$0xff]   ;;  %v3416_v63 = vsel %vm12892_vm2, %v3411_v51, %v3415_v58  ;;  %v3430_v6 = vsel %vm12892_vm2, %v3425_v0, %v3429_v57  ;;  %v12047_v51 = vld [vmem:[%s17543_s1 + $0x10c] ss:$16 sps:$4 sm:$0xff]  }
 0x1d5   :  { %17767 = vst [vmem:[#allocation52_spill] sm:$0xff] %v14251_v25  ;;  %v12048_v58 = vld [vmem:[%s17543_s1 + $0x100] ss:$16 sps:$4 sm:$0xff]   ;;  %v12049_v0 = vld [vmem:[%s17543_s1 + $0x108] ss:$16 sps:$4 sm:$0xff]  }
 0x1d6   :  { %v12051_v57 = vld [vmem:[%s17543_s1 + $0x12c] ss:$16 sps:$4 sm:$0xff]  }
 0x1d7   :  { %3638 = vmatpush1.bf16.msra.mxu0 %v14215_v56  ;;  %3681 = vmatpush1.bf16.msra.mxu1 %v14220_v1  ;;  %v14256_v1 = vld [vmem:[%s17543_s1 + $0x4ec] ss:$16 sps:$4 sm:$0xff]  }
 0x1d8   :  { %3639 = vmatprep.subr.bf16.mxu0 %v14227_v12  ;;  %3682 = vmatprep.subr.bf16.mxu1 %v14232_v9  ;;  %17768 = vst [vmem:[#allocation53_spill] sm:$0xff] %v14256_v1 }
 0x1db   :  { %3640 = vmatpush1.bf16.msra.mxu0 %v14237_v36  ;;  %3683 = vmatpush1.bf16.msra.mxu1 %v14244_v49  ;;  %v14276_v49 = vcombine.low %v3416_v63, %v3430_v6  ;;  %v12046_v36 = vld [vmem:[%s17543_s1 + $0x104] ss:$16 sps:$4 sm:$0xff]   ;;  %v12052_v63 = vld [vmem:[%s17543_s1 + $0x120] ss:$16 sps:$4 sm:$0xff]   ;;  %v12053_v6 = vld [vmem:[%s17543_s1 + $0x128] ss:$16 sps:$4 sm:$0xff]  }
 0x1dc   :  { %3641 = vmatprep.subr.bf16.mxu0 %v14251_v25  ;;  %3684 = vmatprep.subr.bf16.mxu1 %v14256_v1 }
 0x1dd   :  { %17771 = vst [vmem:[#allocation56_spill] sm:$0xff] %v14276_v49 }
 0x1df   :  { %3642 = vmatpush1.bf16.msra.mxu0 %v14263_v19  ;;  %3685 = vmatpush1.bf16.msra.mxu1 %v14268_v11  ;;  %v12088_v11 = vld [vmem:[%s17543_s1 + $0x40] ss:$16 sps:$4 sm:$0xff]  }
 0x1e0   :  { %3737 = vmatprep.subr.bf16.mxu0 %v12046_v36  ;;  %3780 = vmatprep.subr.bf16.mxu1 %v12047_v51  ;;  %v12050_v36 = vld [vmem:[%s17543_s1 + $0x124] ss:$16 sps:$4 sm:$0xff]  }
 0x1e1   :  { %v12054_v51 = vld [vmem:[%s17543_s1 + $0x144] ss:$16 sps:$4 sm:$0xff]  }
 0x1e2   :  { %3660 = vmatmul.mubr.bf16.vlgmr.msra.gmra.mrb[8].mxu0 %v14276_v49  ;;  %3703 = vmatmul.mubr.bf16.vlgmr.msra.gmra.mrb[8].mxu1 %v14276_v49 }
 0x1e3   :  { %3738 = vmatpush1.bf16.msra.mxu0 %v12048_v58  ;;  %3781 = vmatpush1.bf16.msra.mxu1 %v12049_v0  ;;  %v12055_v58 = vld [vmem:[%s17543_s1 + $0x14c] ss:$16 sps:$4 sm:$0xff]   ;;  %v12056_v0 = vld [vmem:[%s17543_s1 + $0x140] ss:$16 sps:$4 sm:$0xff]  }
 0x1e4   :  { %3739 = vmatprep.subr.bf16.mxu0 %v12050_v36  ;;  %3782 = vmatprep.subr.bf16.mxu1 %v12051_v57  ;;  %v12057_v36 = vld [vmem:[%s17543_s1 + $0x148] ss:$16 sps:$4 sm:$0xff]   ;;  %v12058_v57 = vld [vmem:[%s17543_s1 + $0x164] ss:$16 sps:$4 sm:$0xff]  }
 0x1e5   :  { %3769 = vmatprep.mubr.bf16.mxu0 %v17748_v44  ;;  %3812 = vmatprep.mubr.bf16.mxu1 %v17748_v44 }
 0x1e7   :  { %3740 = vmatpush1.bf16.msra.mxu0 %v12052_v63  ;;  %3783 = vmatpush1.bf16.msra.mxu1 %v12053_v6  ;;  %v12059_v63 = vld [vmem:[%s17543_s1 + $0x16c] ss:$16 sps:$4 sm:$0xff]   ;;  %v12060_v6 = vld [vmem:[%s17543_s1 + $0x160] ss:$16 sps:$4 sm:$0xff]  }
 0x1e8   :  { %3741 = vmatprep.subr.bf16.mxu0 %v12054_v51  ;;  %3784 = vmatprep.subr.bf16.mxu1 %v12055_v58  ;;  %v12061_v51 = vld [vmem:[%s17543_s1 + $0x168] ss:$16 sps:$4 sm:$0xff]   ;;  %v12062_v58 = vld [vmem:[%s17543_s1 + $0x184] ss:$16 sps:$4 sm:$0xff]  }
 0x1eb   :  { %3742 = vmatpush1.bf16.msra.mxu0 %v12056_v0  ;;  %3785 = vmatpush1.bf16.msra.mxu1 %v12057_v36  ;;  %v12063_v0 = vld [vmem:[%s17543_s1 + $0x18c] ss:$16 sps:$4 sm:$0xff]   ;;  %v12064_v36 = vld [vmem:[%s17543_s1 + $0x180] ss:$16 sps:$4 sm:$0xff]  }
 0x1ec   :  { %3743 = vmatprep.subr.bf16.mxu0 %v12058_v57  ;;  %3786 = vmatprep.subr.bf16.mxu1 %v12059_v63  ;;  %v12065_v57 = vld [vmem:[%s17543_s1 + $0x188] ss:$16 sps:$4 sm:$0xff]   ;;  %v12066_v63 = vld [vmem:[%s17543_s1 + $0x1a4] ss:$16 sps:$4 sm:$0xff]  }
 0x1ef   :  { %3744 = vmatpush1.bf16.msra.mxu0 %v12060_v6  ;;  %3787 = vmatpush1.bf16.msra.mxu1 %v12061_v51  ;;  %v12067_v6 = vld [vmem:[%s17543_s1 + $0x1ac] ss:$16 sps:$4 sm:$0xff]   ;;  %v12068_v51 = vld [vmem:[%s17543_s1 + $0x1a0] ss:$16 sps:$4 sm:$0xff]  }
 0x1f0   :  { %3745 = vmatprep.subr.bf16.mxu0 %v12062_v58  ;;  %3788 = vmatprep.subr.bf16.mxu1 %v12063_v0  ;;  %v12069_v58 = vld [vmem:[%s17543_s1 + $0x1a8] ss:$16 sps:$4 sm:$0xff]   ;;  %v12070_v0 = vld [vmem:[%s17543_s1 + $0x1c4] ss:$16 sps:$4 sm:$0xff]  }
 0x1f3   :  { %3746 = vmatpush1.bf16.msra.mxu0 %v12064_v36  ;;  %3789 = vmatpush1.bf16.msra.mxu1 %v12065_v57  ;;  %v12071_v36 = vld [vmem:[%s17543_s1 + $0x1cc] ss:$16 sps:$4 sm:$0xff]   ;;  %v12072_v57 = vld [vmem:[%s17543_s1 + $0x1c0] ss:$16 sps:$4 sm:$0xff]  }
 0x1f4   :  { %3747 = vmatprep.subr.bf16.mxu0 %v12066_v63  ;;  %3790 = vmatprep.subr.bf16.mxu1 %v12067_v6  ;;  %v12073_v63 = vld [vmem:[%s17543_s1 + $0x1c8] ss:$16 sps:$4 sm:$0xff]   ;;  %v12074_v6 = vld [vmem:[%s17543_s1 + $0x1e4] ss:$16 sps:$4 sm:$0xff]  }
 0x1f7   :  { %3748 = vmatpush1.bf16.msra.mxu0 %v12068_v51  ;;  %3791 = vmatpush1.bf16.msra.mxu1 %v12069_v58  ;;  %v12075_v51 = vld [vmem:[%s17543_s1 + $0x1ec] ss:$16 sps:$4 sm:$0xff]   ;;  %v12076_v58 = vld [vmem:[%s17543_s1 + $0x1e0] ss:$16 sps:$4 sm:$0xff]  }
 0x1f8   :  { %3749 = vmatprep.subr.bf16.mxu0 %v12070_v0  ;;  %3792 = vmatprep.subr.bf16.mxu1 %v12071_v36  ;;  %v12077_v0 = vld [vmem:[%s17543_s1 + $0x1e8] ss:$16 sps:$4 sm:$0xff]   ;;  %v1529_v36 = vlaneseq }
 0x1fb   :  { %3750 = vmatpush1.bf16.msra.mxu0 %v12072_v57  ;;  %3793 = vmatpush1.bf16.msra.mxu1 %v12073_v63  ;;  %v12078_v57 = vld [vmem:[%s17543_s1 + $0x4] ss:$16 sps:$4 sm:$0xff]   ;;  %v12079_v63 = vld [vmem:[%s17543_s1 + $0xc] ss:$16 sps:$4 sm:$0xff]  }
 0x1fc   :  { %3751 = vmatprep.subr.bf16.mxu0 %v12074_v6  ;;  %3794 = vmatprep.subr.bf16.mxu1 %v12075_v51  ;;  %v12080_v6 = vld [vmem:[%s17543_s1] ss:$16 sps:$4 sm:$0xff]   ;;  %v12081_v51 = vld [vmem:[%s17543_s1 + $0x8] ss:$16 sps:$4 sm:$0xff]  }
 0x1ff   :  { %3752 = vmatpush1.bf16.msra.mxu0 %v12076_v58  ;;  %3795 = vmatpush1.bf16.msra.mxu1 %v12077_v0  ;;  %v1530_v58 = vshrl.u32 %v1529_v36, 7  ;;  %v12082_v0 = vld [vmem:[%s17543_s1 + $0x24] ss:$16 sps:$4 sm:$0xff]   ;;  %v12085_v36 = vld [vmem:[%s17543_s1 + $0x28] ss:$16 sps:$4 sm:$0xff]  }
 0x200   :  { %3823 = vmatprep.subr.bf16.mxu0 %v12078_v57  ;;  %3866 = vmatprep.subr.bf16.mxu1 %v12079_v63  ;;  %v12084_v57 = vld [vmem:[%s17543_s1 + $0x20] ss:$16 sps:$4 sm:$0xff]  }
 0x201   :  { %v14408_v63 = vsub.s32 0, %v1530_v58 }
 0x202   :  { %3770 = vmatmul.mubr.bf16.vlgmr.msra.gmra.mrb[12].mxu0 %v13850_v3  ;;  %3813 = vmatmul.mubr.bf16.vlgmr.msra.gmra.mrb[12].mxu1 %v13850_v3  ;;  %v12083_v3 = vld [vmem:[%s17543_s1 + $0x2c] ss:$16 sps:$4 sm:$0xff]  }
 0x203   :  { %3824 = vmatpush1.bf16.msra.mxu0 %v12080_v6  ;;  %3867 = vmatpush1.bf16.msra.mxu1 %v12081_v51  ;;  %17772 = vst [vmem:[#allocation57_spill] sm:$0xff] %v14408_v63  ;;  %v12086_v6 = vld [vmem:[%s17543_s1 + $0x44] ss:$16 sps:$4 sm:$0xff]   ;;  %v12087_v51 = vld [vmem:[%s17543_s1 + $0x4c] ss:$16 sps:$4 sm:$0xff]  }
 0x204   :  { %3825 = vmatprep.subr.bf16.mxu0 %v12082_v0  ;;  %3868 = vmatprep.subr.bf16.mxu1 %v12083_v3  ;;  %v34_v0 = vld [vmem:[%s17544_s2] sm:$0xf]  ;;  %v14419_v3 = vsub.s32 2, %v1530_v58  ;;  %s12332_s2 = smov [#allocation4]  }
 0x205   :  { %3855 = vmatprep.mubr.bf16.mxu0 %v17748_v44  ;;  %3898 = vmatprep.mubr.bf16.mxu1 %v17748_v44  ;;  %v14435_v19 = vrot.slane %v34_v0, %v14408_v63  ;;  %s8853_s12 = sshll.u32 %s12332_s2, 4  ;;  %s8854_s12 = int_to_ptr.vmem [resolvable:$true] %s8853_s12 }
 0x206   :  { %17773 = vst [vmem:[#allocation58_spill] sm:$0xff] %v14419_v3  ;;  %v14444_v1 = vrot.slane %v34_v0, %v14419_v3  ;;  %s12307_s13 = scalar_lea.vmem %s8854_s12, 32  ;;  %p12312_p1 = scmp.lt.s32.totalorder %s8854_s12, %s8854_s12 }
 0x207   :  { %3826 = vmatpush1.bf16.msra.mxu0 %v12084_v57  ;;  %3869 = vmatpush1.bf16.msra.mxu1 %v12085_v36  ;;  %v14421_v57 = vsub.s32 1, %v1530_v58  ;;  %v14423_v36 = vsub.s32 3, %v1530_v58  ;;  %17776 = vst [vmem:[#allocation61_spill] sm:$0xff] %v14435_v19  ;;  %v12090_v58 = vld [vmem:[%s17543_s1 + $0x64] ss:$16 sps:$4 sm:$0xff]   ;;  %p12308_p0 = scmp.ne.s32.totalorder %s8854_s12, %s12307_s13  ;;  %p12313_p2 = scmp.lt.s32.totalorder %s12307_s13, %s12307_s13 }
 0x208   :  { %3827 = vmatprep.subr.bf16.mxu0 %v12086_v6  ;;  %3870 = vmatprep.subr.bf16.mxu1 %v12087_v51  ;;  %v12089_v6 = vld [vmem:[%s17543_s1 + $0x48] ss:$16 sps:$4 sm:$0xff]   ;;  %v35_v51 = vld [vmem:[%s17545_s3] sm:$0xf]  ;;  %17777 = vst [vmem:[#allocation62_spill] sm:$0xff] %v14444_v1 }
 0x209   :  { %17774 = vst [vmem:[#allocation59_spill] sm:$0xff] %v14421_v57  ;;  %17775 = vst [vmem:[#allocation60_spill] sm:$0xff] %v14423_v36  ;;  %v14450_v25 = vrot.slane %v34_v0, %v14423_v36  ;;  %v14453_v52 = vrot.slane %v35_v51, %v14408_v63  ;;  %v14456_v9 = vrot.slane %v35_v51, %v14419_v3  ;;  %v12094_v3 = vld [vmem:[%s17543_s1 + $0x84] ss:$16 sps:$4 sm:$0xff]   ;;  %p12314_p3 = por %p12313_p2, %p12312_p1 }
 0x20a   :  { %v14467_v12 = vrot.slane %v35_v51, %v14421_v57  ;;  %v14470_v63 = vrot.slane %v35_v51, %v14423_v36  ;;  %v1553_v36 = vmul.f32 %v14435_v19, %v13676_v39  ;;  %v12098_v39 = vld [vmem:[%s17543_s1 + $0xa4] ss:$16 sps:$4 sm:$0xff]  }
 0x20b   :  { %3828 = vmatpush1.bf16.msra.mxu0 %v12088_v11  ;;  %3871 = vmatpush1.bf16.msra.mxu1 %v12089_v6  ;;  %v12091_v11 = vld [vmem:[%s17543_s1 + $0x6c] ss:$16 sps:$4 sm:$0xff]   ;;  %v14447_v6 = vrot.slane %v34_v0, %v14421_v57  ;;  %17778 = vst [vmem:[#allocation63_spill] sm:$0xff] %v14450_v25  ;;  %v1549_v0 = vmul.f32 %v14435_v19, %v13656_v30  ;;  %p12315_p4 = pnand %p12314_p3, %p12308_p0 }
 0x20c   :  { %3829 = vmatprep.subr.bf16.mxu0 %v12090_v58  ;;  %3872 = vmatprep.subr.bf16.mxu1 %v12091_v11  ;;  %v12092_v58 = vld [vmem:[%s17543_s1 + $0x60] ss:$16 sps:$4 sm:$0xff]   ;;  %v12093_v11 = vld [vmem:[%s17543_s1 + $0x68] ss:$16 sps:$4 sm:$0xff]   ;;  %v1552_v51 = vmul.f32 %v14450_v25, %v13668_v35 }
 0x20d   :  { %v1550_v30 = vmul.f32 %v14447_v6, %v13666_v34  ;;  %v1554_v57 = vmul.f32 %v14447_v6, %v13680_v41  ;;  %v12097_v34 = vld [vmem:[%s17543_s1 + $0x88] ss:$16 sps:$4 sm:$0xff]   ;;  %v1578_v35 = vadd.f32 %v14453_v52, %v1549_v0 }
 0x20f   :  { %3830 = vmatpush1.bf16.msra.mxu0 %v12092_v58  ;;  %3873 = vmatpush1.bf16.msra.mxu1 %v12093_v11  ;;  %v12095_v58 = vld [vmem:[%s17543_s1 + $0x8c] ss:$16 sps:$4 sm:$0xff]   ;;  %v1551_v11 = vmul.f32 %v14444_v1, %v13658_v31  ;;  %v12096_v31 = vld [vmem:[%s17543_s1 + $0x80] ss:$16 sps:$4 sm:$0xff]   ;;  %v1583_v49 = vadd.f32 %v14467_v12, %v1554_v57 }
 0x210   :  { %3831 = vmatprep.subr.bf16.mxu0 %v12094_v3  ;;  %3874 = vmatprep.subr.bf16.mxu1 %v12095_v58  ;;  %v1555_v3 = vmul.f32 %v14444_v1, %v13678_v40  ;;  %v1556_v58 = vmul.f32 %v14450_v25, %v13682_v42  ;;  %v12099_v40 = vld [vmem:[%s17543_s1 + $0xac] ss:$16 sps:$4 sm:$0xff]   ;;  %v1579_v42 = vadd.f32 %v14467_v12, %v1550_v30 }
 0x211   :  { %v1580_v41 = vadd.f32 %v14456_v9, %v1551_v11 }
 0x212   :  { %v1584_v33 = vadd.f32 %v14456_v9, %v1555_v3  ;;  %v1585_v11 = vadd.f32 %v14470_v63, %v1556_v58  ;;  %v12100_v3 = vld [vmem:[%s17543_s1 + $0xa0] ss:$16 sps:$4 sm:$0xff]  }
 0x213   :  { %3832 = vmatpush1.bf16.msra.mxu0 %v12096_v31  ;;  %3875 = vmatpush1.bf16.msra.mxu1 %v12097_v34  ;;  %v1581_v31 = vadd.f32 %v14470_v63, %v1552_v51  ;;  %v1582_v34 = vadd.f32 %v14453_v52, %v1553_v36 }
 0x214   :  { %3833 = vmatprep.subr.bf16.mxu0 %v12098_v39  ;;  %3876 = vmatprep.subr.bf16.mxu1 %v12099_v40 }
 0x215   :  { %v2016_v56 = vpop.f32.mrb[4].mxu0  ;;  %v2059_v0 = vpop.f32.mrb[4].mxu1 }
 0x216   :  { %v2076_v39 = vmul.f32 %v2016_v56, %v14435_v19  ;;  %v2078_v10 = vmul.f32 %v2059_v0, %v14444_v1  ;;  %v2018_v7 = vpop.f32.mrb[5].mxu0  ;;  %v2061_v40 = vpop.f32.mrb[5].mxu1  ;;  %v12101_v56 = vld [vmem:[%s17543_s1 + $0xa8] ss:$16 sps:$4 sm:$0xff]  }
 0x217   :  { %v2077_v30 = vmul.f32 %v2018_v7, %v14447_v6  ;;  %v2079_v51 = vmul.f32 %v2061_v40, %v14450_v25  ;;  %v2020_v62 = vpop.f32.mrb[6].mxu0  ;;  %v2063_v36 = vpop.f32.mrb[6].mxu1  ;;  %3834 = vmatpush1.bf16.msra.mxu0 %v12100_v3  ;;  %3877 = vmatpush1.bf16.msra.mxu1 %v12101_v56 }
 0x218   :  { %v2084_v57 = vadd.f32 %v2076_v39, %v14453_v52  ;;  %v2086_v58 = vadd.f32 %v2078_v10, %v14456_v9  ;;  %v2080_v7 = vmul.f32 %v2020_v62, %v14435_v19  ;;  %v2082_v0 = vmul.f32 %v2063_v36, %v14444_v1  ;;  %v2022_v40 = vpop.f32.mrb[7].mxu0  ;;  %v2065_v61 = vpop.f32.mrb[7].mxu1  ;;  %3835 = vmatprep.subr.bf16.mxu0 %v12102_v60  ;;  %v12103_v62 = vld [vmem:[%s17543_s1 + $0xcc] ss:$16 sps:$4 sm:$0xff]  }
 0x219   :  { %v2085_v3 = vadd.f32 %v2077_v30, %v14467_v12  ;;  %v2087_v55 = vadd.f32 %v2079_v51, %v14470_v63  ;;  %v2081_v56 = vmul.f32 %v2022_v40, %v14447_v6  ;;  %v2083_v39 = vmul.f32 %v2065_v61, %v14450_v25  ;;  %3878 = vmatprep.subr.bf16.mxu1 %v12103_v62  ;;  %v12104_v61 = vld [vmem:[%s17543_s1 + $0xc0] ss:$16 sps:$4 sm:$0xff]  }
 0x21a   :  { %v2092_v10 = vmax.f32 %v1578_v35, %v2084_v57  ;;  %v2094_v36 = vmax.f32 %v1580_v41, %v2086_v58  ;;  %v2088_v1 = vadd.f32 %v2080_v7, %v14453_v52  ;;  %v2090_v19 = vadd.f32 %v2082_v0, %v14456_v9  ;;  %v12105_v35 = vld [vmem:[%s17543_s1 + $0xc8] ss:$16 sps:$4 sm:$0xff]   ;;  %v12107_v57 = vld [vmem:[%s17543_s1 + $0xec] ss:$16 sps:$4 sm:$0xff]   ;;  %v12108_v58 = vld [vmem:[%s17543_s1 + $0xe0] ss:$16 sps:$4 sm:$0xff]  }
 0x21b   :  { %v2093_v60 = vmax.f32 %v1579_v42, %v2085_v3  ;;  %v2095_v54 = vmax.f32 %v1581_v31, %v2087_v55  ;;  %v2089_v30 = vadd.f32 %v2081_v56, %v14467_v12  ;;  %v2091_v51 = vadd.f32 %v2083_v39, %v14470_v63  ;;  %3836 = vmatpush1.bf16.msra.mxu0 %v12104_v61  ;;  %v12106_v55 = vld [vmem:[%s17543_s1 + $0xe4] ss:$16 sps:$4 sm:$0xff]   ;;  %v12111_v0 = vld [vmem:[%s17543_s1 + $0x20c] ss:$16 sps:$4 sm:$0xff]   ;;  %v12121_v39 = vld [vmem:[%s17543_s1 + $0x248] ss:$16 sps:$4 sm:$0xff]  }
 0x21c   :  { %v2100_v40 = vmax.f32 %v2092_v10, %v2094_v36  ;;  %v2096_v25 = vmax.f32 %v1582_v34, %v2088_v1  ;;  %v2098_v62 = vmax.f32 %v1584_v33, %v2090_v19  ;;  %3879 = vmatpush1.bf16.msra.mxu1 %v12105_v35  ;;  %3837 = vmatprep.subr.bf16.mxu0 %v12106_v55  ;;  %v12112_v36 = vld [vmem:[%s17543_s1 + $0x200] ss:$16 sps:$4 sm:$0xff]   ;;  %v2165_v55 = vld [vmem:[#allocation2 + $0x8] sm:$0x11] }
 0x21d   :  { %v2101_v41 = vmax.f32 %v2093_v60, %v2095_v54  ;;  %v2097_v42 = vmax.f32 %v1583_v49, %v2089_v30  ;;  %v2099_v31 = vmax.f32 %v1585_v11, %v2091_v51  ;;  %3880 = vmatprep.subr.bf16.mxu1 %v12107_v57  ;;  %v12109_v54 = vld [vmem:[%s17543_s1 + $0xe8] ss:$16 sps:$4 sm:$0xff]   ;;  %v12110_v49 = vld [vmem:[%s17543_s1 + $0x204] ss:$16 sps:$4 sm:$0xff]  }
 0x21e   :  { %v2104_v1 = vmax.f32 %v2100_v40, 0.0  ;;  %v2102_v33 = vmax.f32 %v2096_v25, %v2098_v62  ;;  %v12113_v60 = vld [vmem:[%s17543_s1 + $0x208] ss:$16 sps:$4 sm:$0xff]   ;;  %v12114_v30 = vld [vmem:[%s17543_s1 + $0x224] ss:$16 sps:$4 sm:$0xff]  }
 0x21f   :  { %v2105_v19 = vmax.f32 %v2101_v41, 0.0  ;;  %v2103_v34 = vmax.f32 %v2097_v42, %v2099_v31  ;;  %3838 = vmatpush1.bf16.msra.mxu0 %v12108_v58  ;;  %v2162_v35 = vld [vmem:[#allocation2] sm:$0xff]  ;;  %v11385_v62 = vld [vmem:[%s17546_s4 + $0x2c] ss:$16 sps:$4 sm:$0xff]  }
 0x220   :  { %v2106_v7 = vmax.f32 %v2102_v33, 0.0  ;;  %3881 = vmatpush1.bf16.msra.mxu1 %v12109_v54  ;;  %3909 = vmatprep.subr.bf16.mxu0 %v12110_v49  ;;  %v2168_v33 = vld [vmem:[#allocation2 + $0x10] sm:$0xff] }
 0x221   :  { %v10424_v25 = vpack.c.bf16 %v2105_v19, %v2104_v1  ;;  %v2107_v11 = vmax.f32 %v2103_v34, 0.0  ;;  %3952 = vmatprep.subr.bf16.mxu1 %v12111_v0  ;;  %v12116_v1 = vld [vmem:[%s17543_s1 + $0x220] ss:$16 sps:$4 sm:$0xff]   ;;  %v2171_v19 = vld [vmem:[#allocation2 + $0x18] sm:$0x11] }
 0x222   :  { %3856 = vmatmul.mubr.bf16.vlgmr.msra.gmra.mrb[12].mxu0 %v13580_v5  ;;  %v12117_v34 = vld [vmem:[%s17543_s1 + $0x228] ss:$16 sps:$4 sm:$0xff]   ;;  %v12118_v58 = vld [vmem:[%s17543_s1 + $0x244] ss:$16 sps:$4 sm:$0xff]  }
 0x223   :  { %v2136_v56 = vshrl.u32 %v10424_v25, 16  ;;  %v10425_v10 = vpack.c.bf16 %v2107_v11, %v2106_v7  ;;  %3899 = vmatmul.mubr.bf16.vlgmr.msra.gmra.mrb[12].mxu1 %v13580_v5  ;;  %3910 = vmatpush1.bf16.msra.mxu0 %v12112_v36  ;;  %v2139_v61 = vshll.u32 %v10424_v25, 16  ;;  %v12115_v5 = vld [vmem:[%s17543_s1 + $0x22c] ss:$16 sps:$4 sm:$0xff]  }
 0x224   :  { %3953 = vmatpush1.bf16.msra.mxu1 %v12113_v60  ;;  %3911 = vmatprep.subr.bf16.mxu0 %v12114_v30  ;;  %v12119_v11 = vld [vmem:[%s17543_s1 + $0x24c] ss:$16 sps:$4 sm:$0xff]  }
 0x225   :  { %v2138_v51 = vrot.slane %v2136_v56, 7  ;;  %v2144_v40 = vshrl.u32 %v10425_v10, 16  ;;  %3954 = vmatprep.subr.bf16.mxu1 %v12115_v5  ;;  %3941 = vmatprep.mubr.bf16.mxu0 %v17748_v44  ;;  %v2147_v57 = vshll.u32 %v10425_v10, 16  ;;  %v12120_v56 = vld [vmem:[%s17543_s1 + $0x240] ss:$16 sps:$4 sm:$0xff]  }
 0x226   :  { %3984 = vmatprep.mubr.bf16.mxu1 %v17748_v44  ;;  %v12122_v10 = vld [vmem:[%s17543_s1 + $0x264] ss:$16 sps:$4 sm:$0xff]   ;;  %v12123_v30 = vld [vmem:[%s17543_s1 + $0x26c] ss:$16 sps:$4 sm:$0xff]  }
 0x227   :  { %v2141_v41 = vor.u32 %v2139_v61, %v2138_v51  ;;  %v2142_v42 = vrot.slane %v2138_v51, 4  ;;  %v2146_v31 = vrot.slane %v2144_v40, 7  ;;  %3912 = vmatpush1.bf16.msra.mxu0 %v12116_v1  ;;  %v12124_v51 = vld [vmem:[%s17543_s1 + $0x260] ss:$16 sps:$4 sm:$0xff]   ;;  %v12125_v61 = vld [vmem:[%s17543_s1 + $0x268] ss:$16 sps:$4 sm:$0xff]  }
 0x228   :  { %3955 = vmatpush1.bf16.msra.mxu1 %v12117_v34  ;;  %3913 = vmatprep.subr.bf16.mxu0 %v12118_v58  ;;  %v12126_v40 = vld [vmem:[%s17543_s1 + $0x284] ss:$16 sps:$4 sm:$0xff]   ;;  %v17803_v58 = vld [vmem:[#allocation24_spill] sm:$0xff] }
 0x229   :  { %v2163_v7 = vsel %vm14593_vm4, %v2141_v41, %v2162_v35  ;;  %v2166_v54 = vsel %vm13868_vm9, %v2142_v42, %v2165_v55  ;;  %v2149_v49 = vor.u32 %v2147_v57, %v2146_v31  ;;  %v2150_v25 = vrot.slane %v2146_v31, 4  ;;  %3956 = vmatprep.subr.bf16.mxu1 %v12119_v11  ;;  %v12127_v35 = vld [vmem:[%s17543_s1 + $0x28c] ss:$16 sps:$4 sm:$0xff]   ;;  %v12128_v42 = vld [vmem:[%s17543_s1 + $0x280] ss:$16 sps:$4 sm:$0xff]  }
 0x22a   :  { %2164 = vst [vmem:[#allocation2] sm:$0xff] %v2163_v7  ;;  %2167 = vst [vmem:[#allocation2 + $0x8] sm:$0x11] %v2166_v54  ;;  %v12129_v57 = vld [vmem:[%s17543_s1 + $0x288] ss:$16 sps:$4 sm:$0xff]  }
 0x22b   :  { %v2169_v0 = vsel %vm14593_vm4, %v2149_v49, %v2168_v33  ;;  %v2172_v3 = vsel %vm13868_vm9, %v2150_v25, %v2171_v19  ;;  %3914 = vmatpush1.bf16.msra.mxu0 %v12120_v56  ;;  %v12130_v1 = vld [vmem:[%s17543_s1 + $0x2a4] ss:$16 sps:$4 sm:$0xff]   ;;  %v12131_v33 = vld [vmem:[%s17543_s1 + $0x2ac] ss:$16 sps:$4 sm:$0xff]  }
 0x22c   :  { %2170 = vst [vmem:[#allocation2 + $0x10] sm:$0xff] %v2169_v0  ;;  %2173 = vst [vmem:[#allocation2 + $0x18] sm:$0x11] %v2172_v3  ;;  %3957 = vmatpush1.bf16.msra.mxu1 %v12121_v39  ;;  %3915 = vmatprep.subr.bf16.mxu0 %v12122_v10  ;;  %v14627_v36 = vcombine.low %v2163_v7, %v2169_v0  ;;  %v14629_v60 = vcombine.high %v2163_v7, %v2169_v0  ;;  %v17801_v19 = vld [vmem:[#allocation22_spill] sm:$0xff]  ;;  %v17802_v34 = vld [vmem:[#allocation23_spill] sm:$0xff] }
 0x22d   :  { %3958 = vmatprep.subr.bf16.mxu1 %v12123_v30  ;;  %v17804_v7 = vld [vmem:[#allocation25_spill] sm:$0xff]  ;;  %v17805_v54 = vld [vmem:[#allocation56_spill] sm:$0xff]  ;;  %v17806_v49 = vld [vmem:[#allocation26_spill] sm:$0xff] }
 0x22e   :  { %v17807_v25 = vld [vmem:[#allocation27_spill] sm:$0xff]  ;;  %v17808_v11 = vld [vmem:[#allocation28_spill] sm:$0xff]  ;;  %v17809_v0 = vld [vmem:[#allocation29_spill] sm:$0xff] }
 0x22f   :  { %3916 = vmatpush1.bf16.msra.mxu0 %v12124_v51  ;;  %v17810_v3 = vld [vmem:[#allocation30_spill] sm:$0xff]  ;;  %v17811_v56 = vld [vmem:[#allocation31_spill] sm:$0xff]  ;;  %v17812_v39 = vld [vmem:[#allocation32_spill] sm:$0xff] }
 0x230   :  { %3959 = vmatpush1.bf16.msra.mxu1 %v12125_v61  ;;  %3917 = vmatprep.subr.bf16.mxu0 %v12126_v40  ;;  %v9472_v10 = vld [vmem:[%s17542_s0 + $0x18] sm:$0xf] }
 0x231   :  { %v2177_v5 = vld [vmem:[#allocation2 + $0x8] sm:$0x11]  ;;  %3960 = vmatprep.subr.bf16.mxu1 %v12127_v35  ;;  %v9474_v30 = vld [vmem:[%s17542_s0 + $0x38] sm:$0xf]  ;;  %v4102_v40 = vshrl.u32 %v9472_v10, 16 }
 0x232   :  { %v2178_v55 = vsel %vm13962_vm14, 0, %v2177_v5  ;;  %v17813_v51 = vld [vmem:[#allocation33_spill] sm:$0xff]  ;;  %v17814_v61 = vld [vmem:[#allocation34_spill] sm:$0xff]  ;;  %v4116_v5 = vshrl.u32 %v9474_v30, 16  ;;  %v4119_v35 = vshll.u32 %v9474_v30, 16 }
 0x233   :  { %2179 = vst [vmem:[#allocation2 + $0x8] sm:$0x11] %v2178_v55  ;;  %v2180_v41 = vld [vmem:[#allocation2 + $0x18] sm:$0x11]  ;;  %3918 = vmatpush1.bf16.msra.mxu0 %v12128_v42  ;;  %v17815_v55 = vld [vmem:[#allocation35_spill] sm:$0xff] }
 0x234   :  { %v2181_v31 = vsel %vm13962_vm14, 0, %v2180_v41  ;;  %3961 = vmatpush1.bf16.msra.mxu1 %v12129_v57  ;;  %3919 = vmatprep.subr.bf16.mxu0 %v12130_v1  ;;  %v17816_v41 = vld [vmem:[#allocation36_spill] sm:$0xff]  ;;  %v17817_v42 = vld [vmem:[#allocation37_spill] sm:$0xff]  ;;  %v4104_v57 = vrot.slane %v4102_v40, 4 }
 0x235   :  { %2182 = vst [vmem:[#allocation2 + $0x18] sm:$0x11] %v2181_v31  ;;  %3962 = vmatprep.subr.bf16.mxu1 %v12131_v33  ;;  %v17818_v31 = vld [vmem:[#allocation38_spill] sm:$0xff]  ;;  %v4118_v33 = vrot.slane %v4116_v5, 4  ;;  %v11292_v5 = vld [vmem:[%s17546_s4 + $0x244] ss:$16 sps:$4 sm:$0xff]  }
 0x236   :  { %v11281_v30 = vld [vmem:[%s17546_s4 + $0x208] ss:$16 sps:$4 sm:$0xff]   ;;  %v11284_v40 = vld [vmem:[%s17546_s4 + $0x220] ss:$16 sps:$4 sm:$0xff]  }
 0x237   :  { %3920 = vmatpush1.bf16.msra.mxu0 %v13767_v13 }
 0x238   :  { %3963 = vmatpush1.bf16.msra.mxu1 %v13772_v14  ;;  %3921 = vmatprep.subr.bf16.mxu0 %v13777_v15  ;;  %v6322_v14 = vld [vmem:[#allocation2] sm:$0xee]  ;;  %v6323_v15 = vld [vmem:[#allocation2 + $0x10] sm:$0xee] }
 0x239   :  { %3964 = vmatprep.subr.bf16.mxu1 %v13782_v16 }
 0x23a   :  { %v14677_v13 = vld [vmem:[#allocation2 + $0x8] sm:$0x11] }
 0x23b   :  { %3922 = vmatpush1.bf16.msra.mxu0 %v13787_v17  ;;  %v6333_v17 = vrot.slane %v14677_v13, 5 }
 0x23c   :  { %3965 = vmatpush1.bf16.msra.mxu1 %v13792_v18  ;;  %3923 = vmatprep.subr.bf16.mxu0 %v13797_v20  ;;  %v14683_v16 = vld [vmem:[#allocation2 + $0x18] sm:$0x11]  ;;  %v9935_v18 = vrot.slane %v6322_v14, 9  ;;  %v9936_v20 = vrot.slane %v6323_v15, 9  ;;  %v4121_v14 = vrot.slane %v4119_v35, 5  ;;  %v17819_v15 = vld [vmem:[#allocation39_spill] sm:$0xff] }
 0x23d   :  { %3966 = vmatprep.subr.bf16.mxu1 %v13802_v21  ;;  %v6337_v21 = vrot.slane %v14683_v16, 5  ;;  %v11295_v35 = vld [vmem:[%s17546_s4 + $0x24c] ss:$16 sps:$4 sm:$0xff]  }
 0x23f   :  { %3924 = vmatpush1.bf16.msra.mxu0 %v13811_v22  ;;  %v6334_v22 = vsel %vm14686_vm7, %v9935_v18, %v6333_v17  ;;  %v17820_v17 = vld [vmem:[#allocation40_spill] sm:$0xff]  ;;  %v9473_v18 = vld [vmem:[%s17542_s0 + $0x1c] sm:$0x1] }
 0x240   :  { %3967 = vmatpush1.bf16.msra.mxu1 %v13816_v37  ;;  %4003 = vmatprep.subr.bf16.mxu0 %v13821_v23  ;;  %v6338_v37 = vsel %vm14686_vm7, %v9936_v20, %v6337_v21  ;;  %v9475_v20 = vld [vmem:[%s17542_s0 + $0x3c] sm:$0x1]  ;;  %v17821_v21 = vld [vmem:[#allocation41_spill] sm:$0xff] }
 0x241   :  { %4046 = vmatprep.subr.bf16.mxu1 %v13826_v24  ;;  %v14700_v23 = vcombine.high %v6334_v22, %v6338_v37  ;;  %v14702_v24 = vcombine.low %v6334_v22, %v6338_v37  ;;  %v17822_v22 = vld [vmem:[#allocation42_spill] sm:$0xff] }
 0x242   :  { %3942 = vmatmul.mubr.bf16.vlgmr.msra.gmra.mrb[12].mxu0 %v14072_v2 }
 0x243   :  { %3985 = vmatmul.mubr.bf16.vlgmr.msra.gmra.mrb[12].mxu1 %v14072_v2  ;;  %4004 = vmatpush1.bf16.msra.mxu0 %v13843_v26  ;;  %v17787_v26 = vld [vmem:[#allocation8_spill] sm:$0xff] }
 0x244   :  { %4047 = vmatpush1.bf16.msra.mxu1 %v13848_v27  ;;  %4005 = vmatprep.subr.bf16.mxu0 %v13855_v4  ;;  %v17788_v27 = vld [vmem:[#allocation9_spill] sm:$0xff]  ;;  %v17789_v4 = vld [vmem:[#allocation10_spill] sm:$0xff] }
 0x245   :  { %4048 = vmatprep.subr.bf16.mxu1 %v13860_v8  ;;  %4035 = vmatprep.mubr.bf16.mxu0 %v17748_v44  ;;  %v17790_v8 = vld [vmem:[#allocation11_spill] sm:$0xff] }
 0x246   :  { %4078 = vmatprep.mubr.bf16.mxu1 %v17748_v44  ;;  %v11410_v2 = vld [vmem:[%s17546_s4 + $0xc0] ss:$16 sps:$4 sm:$0xff]  }
 0x247   :  { %4006 = vmatpush1.bf16.msra.mxu0 %v13875_v29  ;;  %v17791_v29 = vld [vmem:[#allocation12_spill] sm:$0xff] }
 0x248   :  { %4049 = vmatpush1.bf16.msra.mxu1 %v13880_v32  ;;  %4007 = vmatprep.subr.bf16.mxu0 %v13889_v38  ;;  %v17792_v32 = vld [vmem:[#allocation13_spill] sm:$0xff]  ;;  %v17793_v38 = vld [vmem:[#allocation14_spill] sm:$0xff] }
 0x249   :  { %4050 = vmatprep.subr.bf16.mxu1 %v13894_v43  ;;  %v17794_v43 = vld [vmem:[#allocation15_spill] sm:$0xff] }
 0x24b   :  { %4008 = vmatpush1.bf16.msra.mxu0 %v13907_v45  ;;  %v17795_v45 = vld [vmem:[#allocation16_spill] sm:$0xff] }
 0x24c   :  { %4051 = vmatpush1.bf16.msra.mxu1 %v13912_v46  ;;  %4009 = vmatprep.subr.bf16.mxu0 %v13917_v48  ;;  %v17796_v46 = vld [vmem:[#allocation17_spill] sm:$0xff]  ;;  %v17797_v48 = vld [vmem:[#allocation18_spill] sm:$0xff] }
 0x24d   :  { %4052 = vmatprep.subr.bf16.mxu1 %v13929_v50  ;;  %v17798_v50 = vld [vmem:[#allocation19_spill] sm:$0xff] }
 0x24f   :  { %4010 = vmatpush1.bf16.msra.mxu0 %v13937_v47  ;;  %v17799_v47 = vld [vmem:[#allocation20_spill] sm:$0xff] }
 0x250   :  { %4053 = vmatpush1.bf16.msra.mxu1 %v13942_v53  ;;  %4011 = vmatprep.subr.bf16.mxu0 %v17787_v26  ;;  %v17800_v53 = vld [vmem:[#allocation21_spill] sm:$0xff]  ;;  %v4111_v26 = vshll.u32 %v9473_v18, 16 }
 0x251   :  { %4054 = vmatprep.subr.bf16.mxu1 %v17788_v27  ;;  %v4122_v27 = vor.u32 %v4121_v14, %v4118_v33  ;;  %v11304_v33 = vld [vmem:[%s17546_s4 + $0x284] ss:$16 sps:$4 sm:$0xff]   ;;  %v11307_v14 = vld [vmem:[%s17546_s4 + $0x28c] ss:$16 sps:$4 sm:$0xff]  }
 0x252   :  { %v11310_v18 = vld [vmem:[%s17546_s4 + $0x2a4] ss:$16 sps:$4 sm:$0xff]  }
 0x253   :  { %4012 = vmatpush1.bf16.msra.mxu0 %v17789_v4  ;;  %v4125_v4 = vshll.u32 %v9475_v20, 16  ;;  %v11313_v20 = vld [vmem:[%s17546_s4 + $0x2ac] ss:$16 sps:$4 sm:$0xff]  }
 0x254   :  { %4055 = vmatpush1.bf16.msra.mxu1 %v17790_v8  ;;  %4013 = vmatprep.subr.bf16.mxu0 %v17791_v29  ;;  %v17823_v8 = vld [vmem:[#allocation43_spill] sm:$0xff]  ;;  %v17824_v29 = vld [vmem:[#allocation44_spill] sm:$0xff] }
 0x255   :  { %4056 = vmatprep.subr.bf16.mxu1 %v17792_v32  ;;  %v17825_v32 = vld [vmem:[#allocation45_spill] sm:$0xff] }
 0x257   :  { %4014 = vmatpush1.bf16.msra.mxu0 %v17793_v38  ;;  %v17826_v38 = vld [vmem:[#allocation46_spill] sm:$0xff] }
 0x258   :  { %4057 = vmatpush1.bf16.msra.mxu1 %v17794_v43  ;;  %4015 = vmatprep.subr.bf16.mxu0 %v17795_v45  ;;  %v4113_v45 = vrot.slane %v4111_v26, 5  ;;  %v11319_v26 = vld [vmem:[%s17546_s4 + $0x2cc] ss:$16 sps:$4 sm:$0xff]  }
 0x259   :  { %4058 = vmatprep.subr.bf16.mxu1 %v17796_v46  ;;  %v4123_v46 = vrot.slane %v4122_v27, 4  ;;  %v11314_v27 = vld [vmem:[%s17546_s4 + $0x2c0] ss:$16 sps:$4 sm:$0xff]  }
 0x25b   :  { %4016 = vmatpush1.bf16.msra.mxu0 %v17797_v48  ;;  %v4127_v48 = vrot.slane %v4125_v4, 5  ;;  %v11317_v4 = vld [vmem:[%s17546_s4 + $0x2c8] ss:$16 sps:$4 sm:$0xff]  }
 0x25c   :  { %4059 = vmatpush1.bf16.msra.mxu1 %v17798_v50  ;;  %4017 = vmatprep.subr.bf16.mxu0 %v17799_v47  ;;  %v17827_v50 = vld [vmem:[#allocation47_spill] sm:$0xff]  ;;  %v17828_v47 = vld [vmem:[#allocation48_spill] sm:$0xff] }
 0x25d   :  { %4060 = vmatprep.subr.bf16.mxu1 %v17800_v53  ;;  %v17829_v53 = vld [vmem:[#allocation49_spill] sm:$0xff] }
 0x25f   :  { %4018 = vmatpush1.bf16.msra.mxu0 %v17801_v19  ;;  %v17830_v19 = vld [vmem:[#allocation50_spill] sm:$0xff] }
 0x260   :  { %4061 = vmatpush1.bf16.msra.mxu1 %v17802_v34  ;;  %4133 = vmatprep.subr.bf16.mxu0 %v17803_v58  ;;  %v15575_v34 = vld [vmem:[%s17546_s4 + $0x620] ss:$16 sps:$4 sm:$0xff]  }
 0x261   :  { %4176 = vmatprep.subr.bf16.mxu1 %v17804_v7  ;;  %v4128_v7 = vsel %vm12892_vm2, %v4123_v46, %v4127_v48 }
 0x262   :  { %4036 = vmatmul.mubr.bf16.vlgmr.msra.gmra.mrb[12].mxu0 %v17805_v54 }
 0x263   :  { %4079 = vmatmul.mubr.bf16.vlgmr.msra.gmra.mrb[12].mxu1 %v17805_v54  ;;  %4134 = vmatpush1.bf16.msra.mxu0 %v17806_v49  ;;  %v17832_v54 = vld [vmem:[#allocation51_spill] sm:$0xff]  ;;  %v17833_v49 = vld [vmem:[#allocation52_spill] sm:$0xff] }
 0x264   :  { %4177 = vmatpush1.bf16.msra.mxu1 %v17807_v25  ;;  %4135 = vmatprep.subr.bf16.mxu0 %v17808_v11  ;;  %v11280_v25 = vld [vmem:[%s17546_s4 + $0x204] ss:$16 sps:$4 sm:$0xff]  }
 0x265   :  { %4178 = vmatprep.subr.bf16.mxu1 %v17809_v0  ;;  %4165 = vmatprep.mubr.bf16.mxu0 %v17748_v44  ;;  %v17834_v11 = vld [vmem:[#allocation53_spill] sm:$0xff]  ;;  %v11283_v0 = vld [vmem:[%s17546_s4 + $0x20c] ss:$16 sps:$4 sm:$0xff]  }
 0x266   :  { %4208 = vmatprep.mubr.bf16.mxu1 %v17748_v44  ;;  %v4105_v44 = vshll.u32 %v9472_v10, 16  ;;  %v17836_v10 = vld [vmem:[#allocation55_spill] sm:$0xff] }
 0x267   :  { %4136 = vmatpush1.bf16.msra.mxu0 %v17810_v3 }
 0x268   :  { %4179 = vmatpush1.bf16.msra.mxu1 %v17811_v56  ;;  %4137 = vmatprep.subr.bf16.mxu0 %v17812_v39  ;;  %v4107_v1 = vrot.slane %v4105_v44, 5  ;;  %v17835_v56 = vld [vmem:[#allocation54_spill] sm:$0xff] }
 0x269   :  { %4180 = vmatprep.subr.bf16.mxu1 %v17813_v51  ;;  %v11278_v39 = vld [vmem:[%s17546_s4 + $0x200] ss:$16 sps:$4 sm:$0xff]   ;;  %v11286_v51 = vld [vmem:[%s17546_s4 + $0x224] ss:$16 sps:$4 sm:$0xff]   ;;  %v11287_v44 = vld [vmem:[%s17546_s4 + $0x228] ss:$16 sps:$4 sm:$0xff]  }
 0x26a   :  { %v4108_v37 = vor.u32 %v4107_v1, %v4104_v57  ;;  %v11296_v57 = vld [vmem:[%s17546_s4 + $0x260] ss:$16 sps:$4 sm:$0xff]   ;;  %v11299_v1 = vld [vmem:[%s17546_s4 + $0x268] ss:$16 sps:$4 sm:$0xff]  }
 0x26b   :  { %4138 = vmatpush1.bf16.msra.mxu0 %v17814_v61  ;;  %v11289_v61 = vld [vmem:[%s17546_s4 + $0x22c] ss:$16 sps:$4 sm:$0xff]  }
 0x26c   :  { %4181 = vmatpush1.bf16.msra.mxu1 %v17815_v55  ;;  %4139 = vmatprep.subr.bf16.mxu0 %v17816_v41  ;;  %v4109_v43 = vrot.slane %v4108_v37, 4  ;;  %v11290_v55 = vld [vmem:[%s17546_s4 + $0x240] ss:$16 sps:$4 sm:$0xff]   ;;  %v11293_v41 = vld [vmem:[%s17546_s4 + $0x248] ss:$16 sps:$4 sm:$0xff]  }
 0x26d   :  { %4182 = vmatprep.subr.bf16.mxu1 %v17817_v42  ;;  %v11298_v42 = vld [vmem:[%s17546_s4 + $0x264] ss:$16 sps:$4 sm:$0xff]  }
 0x26e   :  { %v4114_v58 = vsel %vm12892_vm2, %v4109_v43, %v4113_v45  ;;  %v11316_v37 = vld [vmem:[%s17546_s4 + $0x2c4] ss:$16 sps:$4 sm:$0xff]  }
 0x26f   :  { %4140 = vmatpush1.bf16.msra.mxu0 %v17818_v31  ;;  %v9476_v3 = vcombine.low %v4114_v58, %v4128_v7  ;;  %v11301_v31 = vld [vmem:[%s17546_s4 + $0x26c] ss:$16 sps:$4 sm:$0xff]   ;;  %v11328_v58 = vld [vmem:[%s17546_s4 + $0x304] ss:$16 sps:$4 sm:$0xff]  }
 0x270   :  { %4183 = vmatpush1.bf16.msra.mxu1 %v17819_v15  ;;  %4141 = vmatprep.subr.bf16.mxu0 %v17820_v17  ;;  %v11302_v15 = vld [vmem:[%s17546_s4 + $0x280] ss:$16 sps:$4 sm:$0xff]   ;;  %v11305_v17 = vld [vmem:[%s17546_s4 + $0x288] ss:$16 sps:$4 sm:$0xff]   ;;  %v11331_v7 = vld [vmem:[%s17546_s4 + $0x30c] ss:$16 sps:$4 sm:$0xff]  }
 0x271   :  { %4184 = vmatprep.subr.bf16.mxu1 %v17821_v21  ;;  %v11308_v21 = vld [vmem:[%s17546_s4 + $0x2a0] ss:$16 sps:$4 sm:$0xff]  }
 0x273   :  { %4142 = vmatpush1.bf16.msra.mxu0 %v17822_v22  ;;  %v11311_v22 = vld [vmem:[%s17546_s4 + $0x2a8] ss:$16 sps:$4 sm:$0xff]  }
 0x274   :  { %4185 = vmatpush1.bf16.msra.mxu1 %v17823_v8  ;;  %4143 = vmatprep.subr.bf16.mxu0 %v17824_v29  ;;  %v11322_v8 = vld [vmem:[%s17546_s4 + $0x2e4] ss:$16 sps:$4 sm:$0xff]   ;;  %v11325_v29 = vld [vmem:[%s17546_s4 + $0x2ec] ss:$16 sps:$4 sm:$0xff]  }
 0x275   :  { %4186 = vmatprep.subr.bf16.mxu1 %v17825_v32  ;;  %v11320_v32 = vld [vmem:[%s17546_s4 + $0x2e0] ss:$16 sps:$4 sm:$0xff]  }
 0x277   :  { %4144 = vmatpush1.bf16.msra.mxu0 %v17826_v38  ;;  %v11323_v38 = vld [vmem:[%s17546_s4 + $0x2e8] ss:$16 sps:$4 sm:$0xff]  }
 0x278   :  { %4187 = vmatpush1.bf16.msra.mxu1 %v17827_v50  ;;  %4145 = vmatprep.subr.bf16.mxu0 %v17828_v47 }
 0x279   :  { %4188 = vmatprep.subr.bf16.mxu1 %v17829_v53 }
 0x27b   :  { %4146 = vmatpush1.bf16.msra.mxu0 %v17830_v19 }
 0x27c   :  { %4189 = vmatpush1.bf16.msra.mxu1 %v17832_v54  ;;  %4147 = vmatprep.subr.bf16.mxu0 %v17833_v49  ;;  %v11326_v54 = vld [vmem:[%s17546_s4 + $0x300] ss:$16 sps:$4 sm:$0xff]   ;;  %v11329_v49 = vld [vmem:[%s17546_s4 + $0x308] ss:$16 sps:$4 sm:$0xff]  }
 0x27d   :  { %4190 = vmatprep.subr.bf16.mxu1 %v17834_v11  ;;  %v11337_v11 = vld [vmem:[%s17546_s4 + $0x32c] ss:$16 sps:$4 sm:$0xff]  }
 0x27f   :  { %4148 = vmatpush1.bf16.msra.mxu0 %v17835_v56  ;;  %v11340_v56 = vld [vmem:[%s17546_s4 + $0x344] ss:$16 sps:$4 sm:$0xff]  }
 0x280   :  { %4191 = vmatpush1.bf16.msra.mxu1 %v17836_v10  ;;  %4782 = vmatprep.subr.bf16.mxu0 %v11280_v25  ;;  %v11334_v25 = vld [vmem:[%s17546_s4 + $0x324] ss:$16 sps:$4 sm:$0xff]   ;;  %v11338_v10 = vld [vmem:[%s17546_s4 + $0x340] ss:$16 sps:$4 sm:$0xff]  }
 0x281   :  { %4825 = vmatprep.subr.bf16.mxu1 %v11283_v0  ;;  %v11332_v0 = vld [vmem:[%s17546_s4 + $0x320] ss:$16 sps:$4 sm:$0xff]  }
 0x282   :  { %4166 = vmatmul.mubr.bf16.vlgmr.msra.gmra.mrb[12].mxu0 %v9476_v3 }
 0x283   :  { %4209 = vmatmul.mubr.bf16.vlgmr.msra.gmra.mrb[12].mxu1 %v9476_v3  ;;  %4783 = vmatpush1.bf16.msra.mxu0 %v11278_v39  ;;  %v11335_v3 = vld [vmem:[%s17546_s4 + $0x328] ss:$16 sps:$4 sm:$0xff]   ;;  %v11343_v39 = vld [vmem:[%s17546_s4 + $0x34c] ss:$16 sps:$4 sm:$0xff]  }
 0x284   :  { %4826 = vmatpush1.bf16.msra.mxu1 %v11281_v30  ;;  %4784 = vmatprep.subr.bf16.mxu0 %v11286_v51  ;;  %v11341_v30 = vld [vmem:[%s17546_s4 + $0x348] ss:$16 sps:$4 sm:$0xff]   ;;  %v11346_v51 = vld [vmem:[%s17546_s4 + $0x364] ss:$16 sps:$4 sm:$0xff]  }
 0x285   :  { %4827 = vmatprep.subr.bf16.mxu1 %v11289_v61  ;;  %v11349_v61 = vld [vmem:[%s17546_s4 + $0x36c] ss:$16 sps:$4 sm:$0xff]  }
 0x287   :  { %4785 = vmatpush1.bf16.msra.mxu0 %v11284_v40  ;;  %v11344_v40 = vld [vmem:[%s17546_s4 + $0x360] ss:$16 sps:$4 sm:$0xff]  }
 0x288   :  { %4828 = vmatpush1.bf16.msra.mxu1 %v11287_v44  ;;  %4786 = vmatprep.subr.bf16.mxu0 %v11292_v5  ;;  %v11347_v44 = vld [vmem:[%s17546_s4 + $0x368] ss:$16 sps:$4 sm:$0xff]   ;;  %v11352_v5 = vld [vmem:[%s17546_s4 + $0x384] ss:$16 sps:$4 sm:$0xff]  }
 0x289   :  { %4829 = vmatprep.subr.bf16.mxu1 %v11295_v35  ;;  %v11355_v35 = vld [vmem:[%s17546_s4 + $0x38c] ss:$16 sps:$4 sm:$0xff]  }
 0x28b   :  { %4787 = vmatpush1.bf16.msra.mxu0 %v11290_v55  ;;  %v11350_v55 = vld [vmem:[%s17546_s4 + $0x380] ss:$16 sps:$4 sm:$0xff]  }
 0x28c   :  { %4830 = vmatpush1.bf16.msra.mxu1 %v11293_v41  ;;  %4788 = vmatprep.subr.bf16.mxu0 %v11298_v42  ;;  %v11353_v41 = vld [vmem:[%s17546_s4 + $0x388] ss:$16 sps:$4 sm:$0xff]   ;;  %v4259_v42 = vld [vmem:[#allocation3] sm:$0x11] }
 0x28d   :  { %4831 = vmatprep.subr.bf16.mxu1 %v11301_v31  ;;  %v4260_v31 = vsel %vm13868_vm9, 0, %v4259_v42 }
 0x28e   :  { %4261 = vst [vmem:[#allocation3] sm:$0x11] %v4260_v31 }
 0x28f   :  { %4789 = vmatpush1.bf16.msra.mxu0 %v11296_v57  ;;  %v11358_v57 = vld [vmem:[%s17546_s4 + $0x3a4] ss:$16 sps:$4 sm:$0xff]  }
 0x290   :  { %4832 = vmatpush1.bf16.msra.mxu1 %v11299_v1  ;;  %4790 = vmatprep.subr.bf16.mxu0 %v11304_v33  ;;  %v11361_v1 = vld [vmem:[%s17546_s4 + $0x3ac] ss:$16 sps:$4 sm:$0xff]   ;;  %v4262_v33 = vld [vmem:[#allocation3 + $0x10] sm:$0x11] }
 0x291   :  { %4833 = vmatprep.subr.bf16.mxu1 %v11307_v14  ;;  %v11356_v14 = vld [vmem:[%s17546_s4 + $0x3a0] ss:$16 sps:$4 sm:$0xff]  }
 0x293   :  { %4791 = vmatpush1.bf16.msra.mxu0 %v11302_v15  ;;  %v11359_v15 = vld [vmem:[%s17546_s4 + $0x3a8] ss:$16 sps:$4 sm:$0xff]  }
 0x294   :  { %4834 = vmatpush1.bf16.msra.mxu1 %v11305_v17  ;;  %4792 = vmatprep.subr.bf16.mxu0 %v11310_v18  ;;  %v4263_v17 = vsel %vm13868_vm9, 0, %v4262_v33  ;;  %v11364_v18 = vld [vmem:[%s17546_s4 + $0x3c4] ss:$16 sps:$4 sm:$0xff]  }
 0x295   :  { %4835 = vmatprep.subr.bf16.mxu1 %v11313_v20  ;;  %4264 = vst [vmem:[#allocation3 + $0x10] sm:$0x11] %v4263_v17  ;;  %v11367_v20 = vld [vmem:[%s17546_s4 + $0x3cc] ss:$16 sps:$4 sm:$0xff]  }
 0x297   :  { %4793 = vmatpush1.bf16.msra.mxu0 %v11308_v21  ;;  %v11362_v21 = vld [vmem:[%s17546_s4 + $0x3c0] ss:$16 sps:$4 sm:$0xff]  }
 0x298   :  { %4836 = vmatpush1.bf16.msra.mxu1 %v11311_v22  ;;  %4794 = vmatprep.subr.bf16.mxu0 %v11316_v37  ;;  %v11365_v22 = vld [vmem:[%s17546_s4 + $0x3c8] ss:$16 sps:$4 sm:$0xff]   ;;  %v11370_v37 = vld [vmem:[%s17546_s4 + $0x3e4] ss:$16 sps:$4 sm:$0xff]  }
 0x299   :  { %4837 = vmatprep.subr.bf16.mxu1 %v11319_v26  ;;  %v11368_v26 = vld [vmem:[%s17546_s4 + $0x3e0] ss:$16 sps:$4 sm:$0xff]  }
 0x29b   :  { %4795 = vmatpush1.bf16.msra.mxu0 %v11314_v27  ;;  %v11371_v27 = vld [vmem:[%s17546_s4 + $0x3e8] ss:$16 sps:$4 sm:$0xff]  }
 0x29c   :  { %4838 = vmatpush1.bf16.msra.mxu1 %v11317_v4  ;;  %4796 = vmatprep.subr.bf16.mxu0 %v11322_v8  ;;  %v11373_v4 = vld [vmem:[%s17546_s4 + $0x3ec] ss:$16 sps:$4 sm:$0xff]   ;;  %v11376_v8 = vld [vmem:[%s17546_s4 + $0x4] ss:$16 sps:$4 sm:$0xff]  }
 0x29d   :  { %4839 = vmatprep.subr.bf16.mxu1 %v11325_v29  ;;  %v11379_v29 = vld [vmem:[%s17546_s4 + $0xc] ss:$16 sps:$4 sm:$0xff]  }
 0x29f   :  { %4797 = vmatpush1.bf16.msra.mxu0 %v11320_v32  ;;  %v17837_v32 = vld [vmem:[#allocation61_spill] sm:$0xff] }
 0x2a0   :  { %4840 = vmatpush1.bf16.msra.mxu1 %v11323_v38  ;;  %4798 = vmatprep.subr.bf16.mxu0 %v11328_v58  ;;  %v17838_v58 = vld [vmem:[#allocation62_spill] sm:$0xff] }
 0x2a1   :  { %4841 = vmatprep.subr.bf16.mxu1 %v11331_v7 }
 0x2a3   :  { %4799 = vmatpush1.bf16.msra.mxu0 %v11326_v54 }
 0x2a4   :  { %4842 = vmatpush1.bf16.msra.mxu1 %v11329_v49  ;;  %4800 = vmatprep.subr.bf16.mxu0 %v11334_v25  ;;  %v17839_v49 = vld [vmem:[#allocation63_spill] sm:$0xff] }
 0x2a5   :  { %4843 = vmatprep.subr.bf16.mxu1 %v11337_v11 }
 0x2a7   :  { %4801 = vmatpush1.bf16.msra.mxu0 %v11332_v0 }
 0x2a8   :  { %4844 = vmatpush1.bf16.msra.mxu1 %v11335_v3  ;;  %4802 = vmatprep.subr.bf16.mxu0 %v11340_v56 }
 0x2a9   :  { %4845 = vmatprep.subr.bf16.mxu1 %v11343_v39 }
 0x2ab   :  { %4803 = vmatpush1.bf16.msra.mxu0 %v11338_v10 }
 0x2ac   :  { %4846 = vmatpush1.bf16.msra.mxu1 %v11341_v30  ;;  %4804 = vmatprep.subr.bf16.mxu0 %v11346_v51 }
 0x2ad   :  { %4847 = vmatprep.subr.bf16.mxu1 %v11349_v61 }
 0x2af   :  { %4805 = vmatpush1.bf16.msra.mxu0 %v11344_v40 }
 0x2b0   :  { %4848 = vmatpush1.bf16.msra.mxu1 %v11347_v44  ;;  %4806 = vmatprep.subr.bf16.mxu0 %v11352_v5 }
 0x2b1   :  { %4849 = vmatprep.subr.bf16.mxu1 %v11355_v35 }
 0x2b3   :  { %4807 = vmatpush1.bf16.msra.mxu0 %v11350_v55 }
 0x2b4   :  { %4850 = vmatpush1.bf16.msra.mxu1 %v11353_v41  ;;  %4808 = vmatprep.subr.bf16.mxu0 %v11358_v57 }
 0x2b5   :  { %v14874_v43 = vpop.f32.mrb[8].mxu0  ;;  %v14876_v45 = vpop.f32.mrb[8].mxu1  ;;  %4851 = vmatprep.subr.bf16.mxu1 %v11361_v1 }
 0x2b6   :  { %v14878_v46 = vpop.f32.mrb[9].mxu0  ;;  %v14880_v48 = vpop.f32.mrb[9].mxu1  ;;  %v3721_v38 = vmul.f32 %v14874_v43, %v17837_v32  ;;  %v3723_v7 = vmul.f32 %v14876_v45, %v17838_v58 }
 0x2b7   :  { %v14882_v50 = vpop.f32.mrb[10].mxu0  ;;  %v14884_v47 = vpop.f32.mrb[10].mxu1  ;;  %4809 = vmatpush1.bf16.msra.mxu0 %v11356_v14  ;;  %v3722_v54 = vmul.f32 %v14878_v46, %v14447_v6  ;;  %v3724_v25 = vmul.f32 %v14880_v48, %v17839_v49 }
 0x2b8   :  { %v14886_v53 = vpop.f32.mrb[11].mxu0  ;;  %v14888_v19 = vpop.f32.mrb[11].mxu1  ;;  %4852 = vmatpush1.bf16.msra.mxu1 %v11359_v15  ;;  %4810 = vmatprep.subr.bf16.mxu0 %v11364_v18  ;;  %v3725_v11 = vmul.f32 %v14882_v50, %v17837_v32  ;;  %v3727_v0 = vmul.f32 %v14884_v47, %v17838_v58  ;;  %v3729_v43 = vadd.f32 %v3721_v38, %v14453_v52 }
 0x2b9   :  { %4853 = vmatprep.subr.bf16.mxu1 %v11367_v20  ;;  %v3726_v3 = vmul.f32 %v14886_v53, %v14447_v6  ;;  %v3731_v56 = vadd.f32 %v3723_v7, %v14456_v9  ;;  %v3730_v39 = vadd.f32 %v3722_v54, %v14467_v12  ;;  %v3732_v46 = vadd.f32 %v3724_v25, %v14470_v63 }
 0x2ba   :  { %v3728_v48 = vmul.f32 %v14888_v19, %v17839_v49  ;;  %v3733_v47 = vadd.f32 %v3725_v11, %v14453_v52  ;;  %v3735_v53 = vadd.f32 %v3727_v0, %v14456_v9 }
 0x2bb   :  { %4811 = vmatpush1.bf16.msra.mxu0 %v11362_v21  ;;  %v3734_v5 = vadd.f32 %v3726_v3, %v14467_v12 }
 0x2bc   :  { %4854 = vmatpush1.bf16.msra.mxu1 %v11365_v22  ;;  %4812 = vmatprep.subr.bf16.mxu0 %v11370_v37 }
 0x2bd   :  { %4855 = vmatprep.subr.bf16.mxu1 %v11373_v4 }
 0x2bf   :  { %4813 = vmatpush1.bf16.msra.mxu0 %v11368_v26 }
 0x2c0   :  { %4856 = vmatpush1.bf16.msra.mxu1 %v11371_v27  ;;  %5198 = vmatprep.subr.bf16.mxu0 %v11376_v8  ;;  %v3736_v27 = vadd.f32 %v3728_v48, %v14470_v63 }
 0x2c1   :  { %5241 = vmatprep.subr.bf16.mxu1 %v11379_v29 }
 0x355   :  { %v4167_v45 = vpop.f32.mrb[12].mxu0 }
 0x356   :  { %v4227_v50 = vmul.f32 %v4167_v45, %v17837_v32  ;;  %v4210_v10 = vpop.f32.mrb[12].mxu1  ;;  %v4169_v30 = vpop.f32.mrb[13].mxu0 }
 0x357   :  { %v4229_v51 = vmul.f32 %v4210_v10, %v17838_v58  ;;  %v4228_v61 = vmul.f32 %v4169_v30, %v14447_v6  ;;  %v4212_v40 = vpop.f32.mrb[13].mxu1  ;;  %v4171_v44 = vpop.f32.mrb[14].mxu0  ;;  %v4305_v30 = vld [vmem:[#allocation3 + $0x10] sm:$0xff] }
 0x358   :  { %v4235_v35 = vadd.f32 %v4227_v50, %v14453_v52  ;;  %v4230_v19 = vmul.f32 %v4212_v40, %v17839_v49  ;;  %v4231_v55 = vmul.f32 %v4171_v44, %v17837_v32  ;;  %v4214_v41 = vpop.f32.mrb[14].mxu1  ;;  %v4173_v42 = vpop.f32.mrb[15].mxu0 }
 0x359   :  { %v4237_v31 = vadd.f32 %v4229_v51, %v14456_v9  ;;  %v4236_v57 = vadd.f32 %v4228_v61, %v14467_v12  ;;  %v4233_v1 = vmul.f32 %v4214_v41, %v17838_v58  ;;  %v4232_v33 = vmul.f32 %v4173_v42, %v14447_v6  ;;  %v4216_v14 = vpop.f32.mrb[15].mxu1  ;;  %v11380_v42 = vld [vmem:[%s17546_s4 + $0x20] ss:$16 sps:$4 sm:$0xff]  }
 0x35a   :  { %v4243_v15 = vmax.f32 %v3729_v43, %v4235_v35  ;;  %v4238_v17 = vadd.f32 %v4230_v19, %v14470_v63  ;;  %v4239_v18 = vadd.f32 %v4231_v55, %v14453_v52  ;;  %v4234_v20 = vmul.f32 %v4216_v14, %v17839_v49  ;;  %v11374_v19 = vld [vmem:[%s17546_s4] ss:$16 sps:$4 sm:$0xff]   ;;  %v11377_v55 = vld [vmem:[%s17546_s4 + $0x8] ss:$16 sps:$4 sm:$0xff]  }
 0x35b   :  { %v4245_v21 = vmax.f32 %v3731_v56, %v4237_v31  ;;  %v4244_v22 = vmax.f32 %v3730_v39, %v4236_v57  ;;  %v4241_v37 = vadd.f32 %v4233_v1, %v14456_v9  ;;  %v4240_v26 = vadd.f32 %v4232_v33, %v14467_v12  ;;  %v4299_v39 = vld [vmem:[#allocation3] sm:$0xff]  ;;  %v11383_v31 = vld [vmem:[%s17546_s4 + $0x28] ss:$16 sps:$4 sm:$0xff]   ;;  %v11391_v33 = vld [vmem:[%s17546_s4 + $0x4c] ss:$16 sps:$4 sm:$0xff]  }
 0x35c   :  { %v4246_v4 = vmax.f32 %v3732_v46, %v4238_v17  ;;  %v4247_v8 = vmax.f32 %v3733_v47, %v4239_v18  ;;  %v4242_v6 = vadd.f32 %v4234_v20, %v14470_v63  ;;  %v4302_v46 = vld [vmem:[#allocation3 + $0x8] sm:$0x11]  ;;  %v4308_v47 = vld [vmem:[#allocation3 + $0x18] sm:$0x11]  ;;  %v11388_v1 = vld [vmem:[%s17546_s4 + $0x44] ss:$16 sps:$4 sm:$0xff]  }
 0x35d   :  { %v4251_v29 = vmax.f32 %v4243_v15, %v4245_v21  ;;  %v4249_v32 = vmax.f32 %v3735_v53, %v4241_v37  ;;  %v4248_v38 = vmax.f32 %v3734_v5, %v4240_v26  ;;  %v11389_v18 = vld [vmem:[%s17546_s4 + $0x48] ss:$16 sps:$4 sm:$0xff]   ;;  %v11394_v20 = vld [vmem:[%s17546_s4 + $0x64] ss:$16 sps:$4 sm:$0xff]   ;;  %v11392_v21 = vld [vmem:[%s17546_s4 + $0x60] ss:$16 sps:$4 sm:$0xff]  }
 0x35e   :  { %v4252_v58 = vmax.f32 %v4244_v22, %v4246_v4  ;;  %v4250_v7 = vmax.f32 %v3736_v27, %v4242_v6  ;;  %v11395_v22 = vld [vmem:[%s17546_s4 + $0x68] ss:$16 sps:$4 sm:$0xff]   ;;  %v11400_v37 = vld [vmem:[%s17546_s4 + $0x84] ss:$16 sps:$4 sm:$0xff]   ;;  %v11403_v26 = vld [vmem:[%s17546_s4 + $0x8c] ss:$16 sps:$4 sm:$0xff]  }
 0x35f   :  { %v4255_v52 = vmax.f32 %v4251_v29, 0.0  ;;  %v4253_v54 = vmax.f32 %v4247_v8, %v4249_v32  ;;  %v11398_v4 = vld [vmem:[%s17546_s4 + $0x80] ss:$16 sps:$4 sm:$0xff]   ;;  %v11401_v29 = vld [vmem:[%s17546_s4 + $0x88] ss:$16 sps:$4 sm:$0xff]  }
 0x360   :  { %v4256_v49 = vmax.f32 %v4252_v58, 0.0  ;;  %v4254_v25 = vmax.f32 %v4248_v38, %v4250_v7  ;;  %v11406_v58 = vld [vmem:[%s17546_s4 + $0xa4] ss:$16 sps:$4 sm:$0xff]   ;;  %v11409_v7 = vld [vmem:[%s17546_s4 + $0xac] ss:$16 sps:$4 sm:$0xff]  }
 0x361   :  { %v4257_v11 = vmax.f32 %v4253_v54, 0.0 }
 0x362   :  { %v10426_v0 = vpack.c.bf16 %v4256_v49, %v4255_v52  ;;  %v4258_v9 = vmax.f32 %v4254_v25, 0.0  ;;  %v11404_v25 = vld [vmem:[%s17546_s4 + $0xa0] ss:$16 sps:$4 sm:$0xff]  }
 0x364   :  { %v4280_v3 = vshrl.u32 %v10426_v0, 16  ;;  %v10427_v12 = vpack.c.bf16 %v4258_v9, %v4257_v11  ;;  %v4283_v56 = vshll.u32 %v10426_v0, 16  ;;  %v11407_v11 = vld [vmem:[%s17546_s4 + $0xa8] ss:$16 sps:$4 sm:$0xff]  }
 0x366   :  { %v4282_v43 = vrot.slane %v4280_v3, 7  ;;  %v4288_v45 = vshrl.u32 %v10427_v12, 16  ;;  %v4291_v10 = vshll.u32 %v10427_v12, 16  ;;  %v11412_v3 = vld [vmem:[%s17546_s4 + $0xc4] ss:$16 sps:$4 sm:$0xff]  }
 0x367   :  { %v11415_v12 = vld [vmem:[%s17546_s4 + $0xcc] ss:$16 sps:$4 sm:$0xff]  }
 0x368   :  { %v4285_v63 = vor.u32 %v4283_v56, %v4282_v43  ;;  %v4286_v48 = vrot.slane %v4282_v43, 4  ;;  %v4290_v50 = vrot.slane %v4288_v45, 7  ;;  %v11413_v45 = vld [vmem:[%s17546_s4 + $0xc8] ss:$16 sps:$4 sm:$0xff]  }
 0x36a   :  { %v4300_v53 = vsel %vm14593_vm4, %v4285_v63, %v4299_v39  ;;  %v4303_v51 = vsel %vm13868_vm9, %v4286_v48, %v4302_v46  ;;  %v4293_v61 = vor.u32 %v4291_v10, %v4290_v50  ;;  %v4294_v40 = vrot.slane %v4290_v50, 4  ;;  %v11418_v39 = vld [vmem:[%s17546_s4 + $0xe4] ss:$16 sps:$4 sm:$0xff]   ;;  %v11421_v46 = vld [vmem:[%s17546_s4 + $0xec] ss:$16 sps:$4 sm:$0xff]  }
 0x36b   :  { %4301 = vst [vmem:[#allocation3] sm:$0xff] %v4300_v53  ;;  %4304 = vst [vmem:[#allocation3 + $0x8] sm:$0x11] %v4303_v51  ;;  %v11416_v63 = vld [vmem:[%s17546_s4 + $0xe0] ss:$16 sps:$4 sm:$0xff]  }
 0x36c   :  { %v4306_v44 = vsel %vm14593_vm4, %v4293_v61, %v4305_v30  ;;  %v4309_v5 = vsel %vm13868_vm9, %v4294_v40, %v4308_v47  ;;  %v11419_v48 = vld [vmem:[%s17546_s4 + $0xe8] ss:$16 sps:$4 sm:$0xff]   ;;  %v11424_v50 = vld [vmem:[%s17546_s4 + $0x104] ss:$16 sps:$4 sm:$0xff]   ;;  %v11427_v10 = vld [vmem:[%s17546_s4 + $0x10c] ss:$16 sps:$4 sm:$0xff]  }
 0x36d   :  { %4307 = vst [vmem:[#allocation3 + $0x10] sm:$0xff] %v4306_v44  ;;  %4310 = vst [vmem:[#allocation3 + $0x18] sm:$0x11] %v4309_v5  ;;  %v15044_v35 = vcombine.high %v4300_v53, %v4306_v44  ;;  %v15052_v41 = vcombine.low %v4300_v53, %v4306_v44  ;;  %v11422_v30 = vld [vmem:[%s17546_s4 + $0x100] ss:$16 sps:$4 sm:$0xff]  }
 0x36e   :  { %v11425_v47 = vld [vmem:[%s17546_s4 + $0x108] ss:$16 sps:$4 sm:$0xff]   ;;  %v11430_v53 = vld [vmem:[%s17546_s4 + $0x124] ss:$16 sps:$4 sm:$0xff]   ;;  %v11433_v51 = vld [vmem:[%s17546_s4 + $0x12c] ss:$16 sps:$4 sm:$0xff]  }
 0x36f   :  { %4814 = vmatprep.mubr.bf16.mxu0 %v15044_v35  ;;  %4857 = vmatprep.mubr.bf16.mxu1 %v15044_v35  ;;  %v11428_v61 = vld [vmem:[%s17546_s4 + $0x120] ss:$16 sps:$4 sm:$0xff]   ;;  %v11431_v40 = vld [vmem:[%s17546_s4 + $0x128] ss:$16 sps:$4 sm:$0xff]   ;;  %v11436_v44 = vld [vmem:[%s17546_s4 + $0x144] ss:$16 sps:$4 sm:$0xff]  }
 0x370   :  { %4815 = vmatmul.mubr.bf16.vlgmr.msra.gmra.mrb[16].mxu0 %v15052_v41  ;;  %4858 = vmatmul.mubr.bf16.vlgmr.msra.gmra.mrb[16].mxu1 %v15052_v41  ;;  %v11439_v5 = vld [vmem:[%s17546_s4 + $0x14c] ss:$16 sps:$4 sm:$0xff]  }
 0x371   :  { %5199 = vmatpush1.bf16.msra.mxu0 %v11374_v19  ;;  %5242 = vmatpush1.bf16.msra.mxu1 %v11377_v55  ;;  %v11434_v19 = vld [vmem:[%s17546_s4 + $0x140] ss:$16 sps:$4 sm:$0xff]   ;;  %v11437_v55 = vld [vmem:[%s17546_s4 + $0x148] ss:$16 sps:$4 sm:$0xff]  }
 0x372   :  { %v4311_v57 = vld [vmem:[#allocation3 + $0x8] sm:$0x11]  ;;  %5230 = vmatprep.mubr.bf16.mxu0 %v14629_v60  ;;  %5273 = vmatprep.mubr.bf16.mxu1 %v14629_v60  ;;  %v11386_v60 = vld [vmem:[%s17546_s4 + $0x40] ss:$16 sps:$4 sm:$0xff]  }
 0x373   :  { %v4312_v14 = vsel %vm13962_vm14, 0, %v4311_v57  ;;  %5200 = vmatprep.subr.bf16.mxu0 %v11382_v28  ;;  %5243 = vmatprep.subr.bf16.mxu1 %v11385_v62  ;;  %v7244_v8 = vld [vmem:[#allocation3] sm:$0xee]  ;;  %v11445_v62 = vld [vmem:[%s17546_s4 + $0x16c] ss:$16 sps:$4 sm:$0xff]  }
 0x374   :  { %4313 = vst [vmem:[#allocation3 + $0x8] sm:$0x11] %v4312_v14  ;;  %v4314_v15 = vld [vmem:[#allocation3 + $0x18] sm:$0x11]  ;;  %v7245_v6 = vld [vmem:[#allocation3 + $0x10] sm:$0xee] }
 0x375   :  { %v4315_v17 = vsel %vm13962_vm14, 0, %v4314_v15  ;;  %5201 = vmatpush1.bf16.msra.mxu0 %v11380_v42  ;;  %5244 = vmatpush1.bf16.msra.mxu1 %v11383_v31  ;;  %v10067_v52 = vrot.slane %v7244_v8, 9  ;;  %v10068_v54 = vrot.slane %v7245_v6, 9  ;;  %v11442_v28 = vld [vmem:[%s17546_s4 + $0x164] ss:$16 sps:$4 sm:$0xff]  }
 0x376   :  { %4316 = vst [vmem:[#allocation3 + $0x18] sm:$0x11] %v4315_v17  ;;  %5202 = vmatprep.subr.bf16.mxu0 %v11388_v1  ;;  %5245 = vmatprep.subr.bf16.mxu1 %v11391_v33  ;;  %v11440_v42 = vld [vmem:[%s17546_s4 + $0x160] ss:$16 sps:$4 sm:$0xff]   ;;  %v11443_v31 = vld [vmem:[%s17546_s4 + $0x168] ss:$16 sps:$4 sm:$0xff]  }
 0x377   :  { %v11448_v57 = vld [vmem:[%s17546_s4 + $0x184] ss:$16 sps:$4 sm:$0xff]   ;;  %v11451_v1 = vld [vmem:[%s17546_s4 + $0x18c] ss:$16 sps:$4 sm:$0xff]   ;;  %v11446_v14 = vld [vmem:[%s17546_s4 + $0x180] ss:$16 sps:$4 sm:$0xff]  }
 0x378   :  { %v5286_v33 = vld [vmem:[#allocation2 + $0x10] sm:$0xff]  ;;  %v11449_v15 = vld [vmem:[%s17546_s4 + $0x188] ss:$16 sps:$4 sm:$0xff]   ;;  %v5284_v17 = vld [vmem:[#allocation2] sm:$0xff] }
 0x379   :  { %5203 = vmatpush1.bf16.msra.mxu0 %v11386_v60  ;;  %5246 = vmatpush1.bf16.msra.mxu1 %v11389_v18  ;;  %v11454_v60 = vld [vmem:[%s17546_s4 + $0x1a4] ss:$16 sps:$4 sm:$0xff]   ;;  %v11457_v18 = vld [vmem:[%s17546_s4 + $0x1ac] ss:$16 sps:$4 sm:$0xff]  }
 0x37a   :  { %5204 = vmatprep.subr.bf16.mxu0 %v11394_v20  ;;  %5247 = vmatprep.subr.bf16.mxu1 %v11397_v59  ;;  %v5303_v20 = vshrl.u32 %v5286_v33, 16  ;;  %v5306_v59 = vshll.u32 %v5286_v33, 16  ;;  %v11463_v8 = vld [vmem:[%s17546_s4 + $0x1cc] ss:$16 sps:$4 sm:$0xff]   ;;  %v11502_v33 = vld [vmem:[%s17546_s4 + $0x4a4] ss:$16 sps:$4 sm:$0xff]  }
 0x37b   :  { %v15106_v27 = vld [vmem:[#allocation3 + $0x8] sm:$0x11] }
 0x37c   :  { %v7252_v38 = vrot.slane %v15106_v27, 5  ;;  %v5305_v6 = vrot.slane %v5303_v20, 4  ;;  %v11506_v20 = vld [vmem:[%s17546_s4 + $0x4c0] ss:$16 sps:$4 sm:$0xff]  }
 0x37d   :  { %5205 = vmatpush1.bf16.msra.mxu0 %v11392_v21  ;;  %5248 = vmatpush1.bf16.msra.mxu1 %v11395_v22  ;;  %v15114_v32 = vld [vmem:[#allocation3 + $0x18] sm:$0x11]  ;;  %v5289_v21 = vshrl.u32 %v5284_v17, 16  ;;  %v5292_v22 = vshll.u32 %v5284_v17, 16 }
 0x37e   :  { %5206 = vmatprep.subr.bf16.mxu0 %v11400_v37  ;;  %5249 = vmatprep.subr.bf16.mxu1 %v11403_v26  ;;  %v7256_v49 = vrot.slane %v15114_v32, 5  ;;  %v7253_v0 = vsel %vm14686_vm7, %v10067_v52, %v7252_v38  ;;  %v11452_v37 = vld [vmem:[%s17546_s4 + $0x1a0] ss:$16 sps:$4 sm:$0xff]   ;;  %v11455_v26 = vld [vmem:[%s17546_s4 + $0x1a8] ss:$16 sps:$4 sm:$0xff]  }
 0x37f   :  { %v5291_v38 = vrot.slane %v5289_v21, 4  ;;  %v11458_v52 = vld [vmem:[%s17546_s4 + $0x1c0] ss:$16 sps:$4 sm:$0xff]   ;;  %v11503_v17 = vld [vmem:[%s17546_s4 + $0x4a8] ss:$16 sps:$4 sm:$0xff]  }
 0x380   :  { %v7257_v9 = vsel %vm14686_vm7, %v10068_v54, %v7256_v49  ;;  %v11461_v54 = vld [vmem:[%s17546_s4 + $0x1c8] ss:$16 sps:$4 sm:$0xff]   ;;  %v11466_v49 = vld [vmem:[%s17546_s4 + $0x1e4] ss:$16 sps:$4 sm:$0xff]  }
 0x381   :  { %5207 = vmatpush1.bf16.msra.mxu0 %v11398_v4  ;;  %5250 = vmatpush1.bf16.msra.mxu1 %v11401_v29  ;;  %v15140_v43 = vcombine.low %v7253_v0, %v7257_v9  ;;  %v15142_v56 = vcombine.high %v7253_v0, %v7257_v9  ;;  %v11460_v4 = vld [vmem:[%s17546_s4 + $0x1c4] ss:$16 sps:$4 sm:$0xff]   ;;  %v5308_v29 = vrot.slane %v5306_v59, 5  ;;  %v11509_v59 = vld [vmem:[%s17546_s4 + $0x4c8] ss:$16 sps:$4 sm:$0xff]  }
 0x382   :  { %5208 = vmatprep.subr.bf16.mxu0 %v11406_v58  ;;  %5251 = vmatprep.subr.bf16.mxu1 %v11409_v7  ;;  %v5294_v58 = vrot.slane %v5292_v22, 5  ;;  %v5312_v7 = vshll.u32 %v14683_v16, 16  ;;  %v11469_v16 = vld [vmem:[%s17546_s4 + $0x1ec] ss:$16 sps:$4 sm:$0xff]   ;;  %v11514_v21 = vld [vmem:[%s17546_s4 + $0x4e4] ss:$16 sps:$4 sm:$0xff]  }
 0x383   :  { %17840 = vst [vmem:[#allocation8_spill] sm:$0xff] %v15140_v43  ;;  %17841 = vst [vmem:[#allocation9_spill] sm:$0xff] %v15142_v56  ;;  %v11517_v22 = vld [vmem:[%s17546_s4 + $0x4ec] ss:$16 sps:$4 sm:$0xff]   ;;  %v15757_v43 = vld [vmem:[%s17546_s4 + $0x724] ss:$16 sps:$4 sm:$0xff]  }
 0x384   :  { %v5295_v0 = vor.u32 %v5294_v58, %v5291_v38  ;;  %v5314_v9 = vrot.slane %v5312_v7, 5  ;;  %v11526_v38 = vld [vmem:[%s17546_s4 + $0x524] ss:$16 sps:$4 sm:$0xff]   ;;  %v11529_v58 = vld [vmem:[%s17546_s4 + $0x52c] ss:$16 sps:$4 sm:$0xff]   ;;  %17847 = vst [vmem:[#allocation15_spill] sm:$0xff] %v15757_v43 }
 0x385   :  { %5209 = vmatpush1.bf16.msra.mxu0 %v11404_v25  ;;  %5252 = vmatpush1.bf16.msra.mxu1 %v11407_v11  ;;  %v5298_v25 = vshll.u32 %v14677_v13, 16  ;;  %v5309_v11 = vor.u32 %v5308_v29, %v5305_v6  ;;  %v11475_v13 = vld [vmem:[%s17546_s4 + $0x40c] ss:$16 sps:$4 sm:$0xff]   ;;  %v11518_v6 = vld [vmem:[%s17546_s4 + $0x500] ss:$16 sps:$4 sm:$0xff]  }
 0x386   :  { %5210 = vmatprep.subr.bf16.mxu0 %v11412_v3  ;;  %5253 = vmatprep.subr.bf16.mxu1 %v11415_v12  ;;  %v11464_v3 = vld [vmem:[%s17546_s4 + $0x1e0] ss:$16 sps:$4 sm:$0xff]   ;;  %v11467_v12 = vld [vmem:[%s17546_s4 + $0x1e8] ss:$16 sps:$4 sm:$0xff]   ;;  %v15763_v56 = vld [vmem:[%s17546_s4 + $0x72c] ss:$16 sps:$4 sm:$0xff]  }
 0x387   :  { %v11521_v29 = vld [vmem:[%s17546_s4 + $0x508] ss:$16 sps:$4 sm:$0xff]   ;;  %v11524_v7 = vld [vmem:[%s17546_s4 + $0x520] ss:$16 sps:$4 sm:$0xff]   ;;  %17848 = vst [vmem:[#allocation16_spill] sm:$0xff] %v15763_v56 }
 0x389   :  { %5211 = vmatpush1.bf16.msra.mxu0 %v11410_v2  ;;  %5254 = vmatpush1.bf16.msra.mxu1 %v11413_v45  ;;  %v11472_v2 = vld [vmem:[%s17546_s4 + $0x404] ss:$16 sps:$4 sm:$0xff]   ;;  %v5300_v45 = vrot.slane %v5298_v25, 5  ;;  %v11533_v25 = vld [vmem:[%s17546_s4 + $0x548] ss:$16 sps:$4 sm:$0xff]  }
 0x38a   :  { %5212 = vmatprep.subr.bf16.mxu0 %v11418_v39  ;;  %5255 = vmatprep.subr.bf16.mxu1 %v11421_v46  ;;  %v5310_v39 = vrot.slane %v5309_v11, 4  ;;  %v5296_v46 = vrot.slane %v5295_v0, 4  ;;  %v11538_v11 = vld [vmem:[%s17546_s4 + $0x564] ss:$16 sps:$4 sm:$0xff]   ;;  %v11541_v0 = vld [vmem:[%s17546_s4 + $0x56c] ss:$16 sps:$4 sm:$0xff]  }
 0x38d   :  { %5213 = vmatpush1.bf16.msra.mxu0 %v11416_v63  ;;  %5256 = vmatpush1.bf16.msra.mxu1 %v11419_v48  ;;  %v15268_v63 = vsel %vm12892_vm2, %v5310_v39, %v5314_v9  ;;  %v11470_v48 = vld [vmem:[%s17546_s4 + $0x400] ss:$16 sps:$4 sm:$0xff]   ;;  %v15442_v39 = vld [vmem:[%s17546_s4 + $0x588] ss:$16 sps:$4 sm:$0xff]  }
 0x38e   :  { %5214 = vmatprep.subr.bf16.mxu0 %v11424_v50  ;;  %5257 = vmatprep.subr.bf16.mxu1 %v11427_v10  ;;  %v11473_v50 = vld [vmem:[%s17546_s4 + $0x408] ss:$16 sps:$4 sm:$0xff]   ;;  %v15278_v10 = vsel %vm12892_vm2, %v5296_v46, %v5300_v45  ;;  %v11536_v9 = vld [vmem:[%s17546_s4 + $0x560] ss:$16 sps:$4 sm:$0xff]   ;;  %v15447_v46 = vld [vmem:[%s17546_s4 + $0x5a4] ss:$16 sps:$4 sm:$0xff]  }
 0x38f   :  { %v15435_v45 = vld [vmem:[%s17546_s4 + $0x580] ss:$16 sps:$4 sm:$0xff]  }
 0x391   :  { %5215 = vmatpush1.bf16.msra.mxu0 %v11422_v30  ;;  %5258 = vmatpush1.bf16.msra.mxu1 %v11425_v47  ;;  %v15282_v30 = vcombine.high %v15278_v10, %v15268_v63  ;;  %v11478_v47 = vld [vmem:[%s17546_s4 + $0x424] ss:$16 sps:$4 sm:$0xff]  }
 0x392   :  { %5216 = vmatprep.subr.bf16.mxu0 %v11430_v53  ;;  %5259 = vmatprep.subr.bf16.mxu1 %v11433_v51  ;;  %v11481_v53 = vld [vmem:[%s17546_s4 + $0x42c] ss:$16 sps:$4 sm:$0xff]   ;;  %v11476_v51 = vld [vmem:[%s17546_s4 + $0x420] ss:$16 sps:$4 sm:$0xff]  }
 0x395   :  { %5217 = vmatpush1.bf16.msra.mxu0 %v11428_v61  ;;  %5260 = vmatpush1.bf16.msra.mxu1 %v11431_v40  ;;  %v11479_v61 = vld [vmem:[%s17546_s4 + $0x428] ss:$16 sps:$4 sm:$0xff]   ;;  %v11484_v40 = vld [vmem:[%s17546_s4 + $0x444] ss:$16 sps:$4 sm:$0xff]  }
 0x396   :  { %5218 = vmatprep.subr.bf16.mxu0 %v11436_v44  ;;  %5261 = vmatprep.subr.bf16.mxu1 %v11439_v5  ;;  %v11482_v44 = vld [vmem:[%s17546_s4 + $0x440] ss:$16 sps:$4 sm:$0xff]   ;;  %v11485_v5 = vld [vmem:[%s17546_s4 + $0x448] ss:$16 sps:$4 sm:$0xff]  }
 0x399   :  { %5219 = vmatpush1.bf16.msra.mxu0 %v11434_v19  ;;  %5262 = vmatpush1.bf16.msra.mxu1 %v11437_v55  ;;  %v11490_v19 = vld [vmem:[%s17546_s4 + $0x464] ss:$16 sps:$4 sm:$0xff]   ;;  %v11493_v55 = vld [vmem:[%s17546_s4 + $0x46c] ss:$16 sps:$4 sm:$0xff]  }
 0x39a   :  { %5220 = vmatprep.subr.bf16.mxu0 %v11442_v28  ;;  %5263 = vmatprep.subr.bf16.mxu1 %v11445_v62  ;;  %v11488_v28 = vld [vmem:[%s17546_s4 + $0x460] ss:$16 sps:$4 sm:$0xff]   ;;  %v11491_v62 = vld [vmem:[%s17546_s4 + $0x468] ss:$16 sps:$4 sm:$0xff]  }
 0x39d   :  { %5221 = vmatpush1.bf16.msra.mxu0 %v11440_v42  ;;  %5264 = vmatpush1.bf16.msra.mxu1 %v11443_v31  ;;  %v11496_v42 = vld [vmem:[%s17546_s4 + $0x484] ss:$16 sps:$4 sm:$0xff]   ;;  %v11499_v31 = vld [vmem:[%s17546_s4 + $0x48c] ss:$16 sps:$4 sm:$0xff]  }
 0x39e   :  { %5222 = vmatprep.subr.bf16.mxu0 %v11448_v57  ;;  %5265 = vmatprep.subr.bf16.mxu1 %v11451_v1  ;;  %v11494_v57 = vld [vmem:[%s17546_s4 + $0x480] ss:$16 sps:$4 sm:$0xff]   ;;  %v11497_v1 = vld [vmem:[%s17546_s4 + $0x488] ss:$16 sps:$4 sm:$0xff]  }
 0x3a1   :  { %5223 = vmatpush1.bf16.msra.mxu0 %v11446_v14  ;;  %5266 = vmatpush1.bf16.msra.mxu1 %v11449_v15  ;;  %v11505_v14 = vld [vmem:[%s17546_s4 + $0x4ac] ss:$16 sps:$4 sm:$0xff]   ;;  %v11500_v15 = vld [vmem:[%s17546_s4 + $0x4a0] ss:$16 sps:$4 sm:$0xff]  }
 0x3a2   :  { %5224 = vmatprep.subr.bf16.mxu0 %v11454_v60  ;;  %5267 = vmatprep.subr.bf16.mxu1 %v11457_v18  ;;  %v11508_v60 = vld [vmem:[%s17546_s4 + $0x4c4] ss:$16 sps:$4 sm:$0xff]   ;;  %v11511_v18 = vld [vmem:[%s17546_s4 + $0x4cc] ss:$16 sps:$4 sm:$0xff]  }
 0x3a5   :  { %5225 = vmatpush1.bf16.msra.mxu0 %v11452_v37  ;;  %5268 = vmatpush1.bf16.msra.mxu1 %v11455_v26  ;;  %v11512_v37 = vld [vmem:[%s17546_s4 + $0x4e0] ss:$16 sps:$4 sm:$0xff]   ;;  %v11515_v26 = vld [vmem:[%s17546_s4 + $0x4e8] ss:$16 sps:$4 sm:$0xff]  }
 0x3a6   :  { %5226 = vmatprep.subr.bf16.mxu0 %v11460_v4  ;;  %5269 = vmatprep.subr.bf16.mxu1 %v11463_v8  ;;  %v11520_v4 = vld [vmem:[%s17546_s4 + $0x504] ss:$16 sps:$4 sm:$0xff]   ;;  %v11523_v8 = vld [vmem:[%s17546_s4 + $0x50c] ss:$16 sps:$4 sm:$0xff]  }
 0x3a9   :  { %5227 = vmatpush1.bf16.msra.mxu0 %v11458_v52  ;;  %5270 = vmatpush1.bf16.msra.mxu1 %v11461_v54  ;;  %v11527_v52 = vld [vmem:[%s17546_s4 + $0x528] ss:$16 sps:$4 sm:$0xff]   ;;  %v11532_v54 = vld [vmem:[%s17546_s4 + $0x544] ss:$16 sps:$4 sm:$0xff]  }
 0x3aa   :  { %5228 = vmatprep.subr.bf16.mxu0 %v11466_v49  ;;  %5271 = vmatprep.subr.bf16.mxu1 %v11469_v16  ;;  %v11535_v49 = vld [vmem:[%s17546_s4 + $0x54c] ss:$16 sps:$4 sm:$0xff]   ;;  %v11530_v16 = vld [vmem:[%s17546_s4 + $0x540] ss:$16 sps:$4 sm:$0xff]  }
 0x3ad   :  { %5229 = vmatpush1.bf16.msra.mxu0 %v11464_v3  ;;  %5272 = vmatpush1.bf16.msra.mxu1 %v11467_v12  ;;  %v15420_v3 = vld [vmem:[%s17546_s4 + $0x568] ss:$16 sps:$4 sm:$0xff]   ;;  %v15425_v12 = vld [vmem:[%s17546_s4 + $0x584] ss:$16 sps:$4 sm:$0xff]  }
 0x3ae   :  { %5709 = vmatprep.subr.bf16.mxu0 %v11472_v2  ;;  %5752 = vmatprep.subr.bf16.mxu1 %v11475_v13  ;;  %v15430_v2 = vld [vmem:[%s17546_s4 + $0x58c] ss:$16 sps:$4 sm:$0xff]   ;;  %v5805_v13 = vld [vmem:[#allocation3 + $0x10] sm:$0xff] }
 0x3b0   :  { %5231 = vmatmul.mubr.bf16.vlgmr.msra.gmra.mrb[16].mxu0 %v14627_v36  ;;  %5274 = vmatmul.mubr.bf16.vlgmr.msra.gmra.mrb[16].mxu1 %v14627_v36  ;;  %v11487_v36 = vld [vmem:[%s17546_s4 + $0x44c] ss:$16 sps:$4 sm:$0xff]  }
 0x3b1   :  { %5710 = vmatpush1.bf16.msra.mxu0 %v11470_v48  ;;  %5741 = vmatprep.mubr.bf16.mxu0 %v15282_v30  ;;  %v5803_v48 = vld [vmem:[#allocation3] sm:$0xff] }
 0x3b2   :  { %5753 = vmatpush1.bf16.msra.mxu1 %v11473_v50  ;;  %5784 = vmatprep.mubr.bf16.mxu1 %v15282_v30  ;;  %v15453_v50 = vld [vmem:[%s17546_s4 + $0x5ac] ss:$16 sps:$4 sm:$0xff]  }
 0x3b3   :  { %5711 = vmatprep.subr.bf16.mxu0 %v11478_v47  ;;  %5754 = vmatprep.subr.bf16.mxu1 %v11481_v53  ;;  %v5822_v47 = vshrl.u32 %v5805_v13, 16  ;;  %v5825_v53 = vshll.u32 %v5805_v13, 16  ;;  %v15649_v13 = vld [vmem:[%s17546_s4 + $0x680] ss:$16 sps:$4 sm:$0xff]  }
 0x3b5   :  { %5712 = vmatpush1.bf16.msra.mxu0 %v11476_v51  ;;  %v15459_v51 = vld [vmem:[%s17546_s4 + $0x5a0] ss:$16 sps:$4 sm:$0xff]  }
 0x3b6   :  { %5755 = vmatpush1.bf16.msra.mxu1 %v11479_v61  ;;  %5713 = vmatprep.subr.bf16.mxu0 %v11484_v40  ;;  %v5808_v61 = vshrl.u32 %v5803_v48, 16  ;;  %v5811_v40 = vshll.u32 %v5803_v48, 16  ;;  %v15656_v48 = vld [vmem:[%s17546_s4 + $0x688] ss:$16 sps:$4 sm:$0xff]  }
 0x3b7   :  { %5756 = vmatprep.subr.bf16.mxu1 %v11487_v36  ;;  %v15466_v36 = vld [vmem:[%s17546_s4 + $0x5a8] ss:$16 sps:$4 sm:$0xff]  }
 0x3b9   :  { %5714 = vmatpush1.bf16.msra.mxu0 %v11482_v44  ;;  %v15471_v44 = vld [vmem:[%s17546_s4 + $0x5c4] ss:$16 sps:$4 sm:$0xff]  }
 0x3ba   :  { %5757 = vmatpush1.bf16.msra.mxu1 %v11485_v5  ;;  %5715 = vmatprep.subr.bf16.mxu0 %v11490_v19  ;;  %v15477_v5 = vld [vmem:[%s17546_s4 + $0x5cc] ss:$16 sps:$4 sm:$0xff]   ;;  %v5824_v19 = vrot.slane %v5822_v47, 4  ;;  %v15661_v47 = vld [vmem:[%s17546_s4 + $0x6a4] ss:$16 sps:$4 sm:$0xff]  }
 0x3bb   :  { %5758 = vmatprep.subr.bf16.mxu1 %v11493_v55  ;;  %v5827_v55 = vrot.slane %v5825_v53, 5  ;;  %v15667_v53 = vld [vmem:[%s17546_s4 + $0x6ac] ss:$16 sps:$4 sm:$0xff]  }
 0x3bd   :  { %5716 = vmatpush1.bf16.msra.mxu0 %v11488_v28  ;;  %v15483_v28 = vld [vmem:[%s17546_s4 + $0x5c0] ss:$16 sps:$4 sm:$0xff]  }
 0x3be   :  { %5759 = vmatpush1.bf16.msra.mxu1 %v11491_v62  ;;  %5717 = vmatprep.subr.bf16.mxu0 %v11496_v42  ;;  %v5810_v62 = vrot.slane %v5808_v61, 4  ;;  %v5813_v42 = vrot.slane %v5811_v40, 5  ;;  %v15673_v61 = vld [vmem:[%s17546_s4 + $0x6a0] ss:$16 sps:$4 sm:$0xff]   ;;  %v15680_v40 = vld [vmem:[%s17546_s4 + $0x6a8] ss:$16 sps:$4 sm:$0xff]  }
 0x3bf   :  { %5760 = vmatprep.subr.bf16.mxu1 %v11499_v31  ;;  %v5831_v31 = vshll.u32 %v15114_v32, 16  ;;  %v15502_v32 = vld [vmem:[%s17546_s4 + $0x5ec] ss:$16 sps:$4 sm:$0xff]  }
 0x3c1   :  { %5718 = vmatpush1.bf16.msra.mxu0 %v11494_v57  ;;  %v15491_v57 = vld [vmem:[%s17546_s4 + $0x5c8] ss:$16 sps:$4 sm:$0xff]  }
 0x3c2   :  { %5761 = vmatpush1.bf16.msra.mxu1 %v11497_v1  ;;  %5719 = vmatprep.subr.bf16.mxu0 %v11502_v33  ;;  %v15496_v1 = vld [vmem:[%s17546_s4 + $0x5e4] ss:$16 sps:$4 sm:$0xff]   ;;  %v5817_v33 = vshll.u32 %v15106_v27, 16 }
 0x3c3   :  { %5762 = vmatprep.subr.bf16.mxu1 %v11505_v14  ;;  %v5828_v14 = vor.u32 %v5827_v55, %v5824_v19  ;;  %v15521_v27 = vld [vmem:[%s17546_s4 + $0x604] ss:$16 sps:$4 sm:$0xff]   ;;  %v15691_v55 = vld [vmem:[%s17546_s4 + $0x6cc] ss:$16 sps:$4 sm:$0xff]  }
 0x3c4   :  { %v15685_v19 = vld [vmem:[%s17546_s4 + $0x6c4] ss:$16 sps:$4 sm:$0xff]  }
 0x3c5   :  { %5720 = vmatpush1.bf16.msra.mxu0 %v11500_v15  ;;  %v15509_v15 = vld [vmem:[%s17546_s4 + $0x5e0] ss:$16 sps:$4 sm:$0xff]  }
 0x3c6   :  { %5763 = vmatpush1.bf16.msra.mxu1 %v11503_v17  ;;  %5721 = vmatprep.subr.bf16.mxu0 %v11508_v60  ;;  %v5814_v17 = vor.u32 %v5813_v42, %v5810_v62  ;;  %v5833_v60 = vrot.slane %v5831_v31, 5  ;;  %v15697_v62 = vld [vmem:[%s17546_s4 + $0x6c0] ss:$16 sps:$4 sm:$0xff]   ;;  %v15704_v42 = vld [vmem:[%s17546_s4 + $0x6c8] ss:$16 sps:$4 sm:$0xff]  }
 0x3c7   :  { %5764 = vmatprep.subr.bf16.mxu1 %v11511_v18  ;;  %v15516_v18 = vld [vmem:[%s17546_s4 + $0x5e8] ss:$16 sps:$4 sm:$0xff]   ;;  %v15709_v31 = vld [vmem:[%s17546_s4 + $0x6e4] ss:$16 sps:$4 sm:$0xff]  }
 0x3c9   :  { %5722 = vmatpush1.bf16.msra.mxu0 %v11506_v20  ;;  %v15527_v20 = vld [vmem:[%s17546_s4 + $0x60c] ss:$16 sps:$4 sm:$0xff]  }
 0x3ca   :  { %5765 = vmatpush1.bf16.msra.mxu1 %v11509_v59  ;;  %5723 = vmatprep.subr.bf16.mxu0 %v11514_v21  ;;  %v5819_v59 = vrot.slane %v5817_v33, 5  ;;  %v5829_v21 = vrot.slane %v5828_v14, 4  ;;  %v15715_v33 = vld [vmem:[%s17546_s4 + $0x6ec] ss:$16 sps:$4 sm:$0xff]   ;;  %v15721_v14 = vld [vmem:[%s17546_s4 + $0x6e0] ss:$16 sps:$4 sm:$0xff]  }
 0x3cb   :  { %5766 = vmatprep.subr.bf16.mxu1 %v11517_v22  ;;  %v15533_v22 = vld [vmem:[%s17546_s4 + $0x600] ss:$16 sps:$4 sm:$0xff]  }
 0x3cd   :  { %5724 = vmatpush1.bf16.msra.mxu0 %v11512_v37  ;;  %v5815_v37 = vrot.slane %v5814_v17, 4  ;;  %v15728_v17 = vld [vmem:[%s17546_s4 + $0x6e8] ss:$16 sps:$4 sm:$0xff]  }
 0x3ce   :  { %5767 = vmatpush1.bf16.msra.mxu1 %v11515_v26  ;;  %5725 = vmatprep.subr.bf16.mxu0 %v11520_v4  ;;  %v15537_v26 = vsel %vm12892_vm2, %v5829_v21, %v5833_v60  ;;  %v15542_v4 = vcombine.low %v15278_v10, %v15268_v63  ;;  %v15568_v10 = vld [vmem:[%s17546_s4 + $0x62c] ss:$16 sps:$4 sm:$0xff]   ;;  %17842 = vst [vmem:[#allocation10_spill] sm:$0xff] %v15728_v17  ;;  %v15733_v60 = vld [vmem:[%s17546_s4 + $0x704] ss:$16 sps:$4 sm:$0xff]  }
 0x3cf   :  { %5768 = vmatprep.subr.bf16.mxu1 %v11523_v8  ;;  %v15548_v8 = vld [vmem:[%s17546_s4 + $0x608] ss:$16 sps:$4 sm:$0xff]   ;;  %17843 = vst [vmem:[#allocation11_spill] sm:$0xff] %v15733_v60  ;;  %v15745_v21 = vld [vmem:[%s17546_s4 + $0x700] ss:$16 sps:$4 sm:$0xff]  }
 0x3d0   :  { %17845 = vst [vmem:[#allocation13_spill] sm:$0xff] %v15745_v21 }
 0x3d1   :  { %5726 = vmatpush1.bf16.msra.mxu0 %v11518_v6  ;;  %v15553_v6 = vsel %vm12892_vm2, %v5815_v37, %v5819_v59  ;;  %v15739_v59 = vld [vmem:[%s17546_s4 + $0x70c] ss:$16 sps:$4 sm:$0xff]   ;;  %v15752_v37 = vld [vmem:[%s17546_s4 + $0x708] ss:$16 sps:$4 sm:$0xff]   ;;  %vm7470_vm2 = vcmask 1041409  }
 0x3d2   :  { %5769 = vmatpush1.bf16.msra.mxu1 %v11521_v29  ;;  %5727 = vmatprep.subr.bf16.mxu0 %v11526_v38  ;;  %v15558_v29 = vld [vmem:[%s17546_s4 + $0x624] ss:$16 sps:$4 sm:$0xff]   ;;  %v15563_v63 = vcombine.high %v15553_v6, %v15537_v26  ;;  %v15582_v38 = vld [vmem:[%s17546_s4 + $0x628] ss:$16 sps:$4 sm:$0xff]   ;;  %17844 = vst [vmem:[#allocation12_spill] sm:$0xff] %v15739_v59  ;;  %17846 = vst [vmem:[#allocation14_spill] sm:$0xff] %v15752_v37 }
 0x3d3   :  { %5770 = vmatprep.subr.bf16.mxu1 %v11529_v58  ;;  %v15587_v58 = vld [vmem:[%s17546_s4 + $0x644] ss:$16 sps:$4 sm:$0xff]  }
 0x3d5   :  { %5728 = vmatpush1.bf16.msra.mxu0 %v11524_v7  ;;  %v15594_v7 = vld [vmem:[%s17546_s4 + $0x64c] ss:$16 sps:$4 sm:$0xff]  }
 0x3d6   :  { %5771 = vmatpush1.bf16.msra.mxu1 %v11527_v52  ;;  %5729 = vmatprep.subr.bf16.mxu0 %v11532_v54  ;;  %v15601_v52 = vld [vmem:[%s17546_s4 + $0x640] ss:$16 sps:$4 sm:$0xff]   ;;  %v15608_v54 = vld [vmem:[%s17546_s4 + $0x648] ss:$16 sps:$4 sm:$0xff]  }
 0x3d7   :  { %5772 = vmatprep.subr.bf16.mxu1 %v11535_v49  ;;  %v15613_v49 = vld [vmem:[%s17546_s4 + $0x664] ss:$16 sps:$4 sm:$0xff]  }
 0x3d9   :  { %5730 = vmatpush1.bf16.msra.mxu0 %v11530_v16  ;;  %v15619_v16 = vld [vmem:[%s17546_s4 + $0x66c] ss:$16 sps:$4 sm:$0xff]  }
 0x3da   :  { %5773 = vmatpush1.bf16.msra.mxu1 %v11533_v25  ;;  %5731 = vmatprep.subr.bf16.mxu0 %v11538_v11  ;;  %v15625_v25 = vld [vmem:[%s17546_s4 + $0x660] ss:$16 sps:$4 sm:$0xff]   ;;  %v15632_v11 = vld [vmem:[%s17546_s4 + $0x668] ss:$16 sps:$4 sm:$0xff]  }
 0x3db   :  { %5774 = vmatprep.subr.bf16.mxu1 %v11541_v0  ;;  %v15637_v0 = vld [vmem:[%s17546_s4 + $0x684] ss:$16 sps:$4 sm:$0xff]  }
 0x3dd   :  { %5732 = vmatpush1.bf16.msra.mxu0 %v11536_v9  ;;  %v15643_v9 = vld [vmem:[%s17546_s4 + $0x68c] ss:$16 sps:$4 sm:$0xff]  }
 0x3de   :  { %5775 = vmatpush1.bf16.msra.mxu1 %v15420_v3  ;;  %5733 = vmatprep.subr.bf16.mxu0 %v15425_v12 }
 0x3df   :  { %5776 = vmatprep.subr.bf16.mxu1 %v15430_v2 }
 0x3e1   :  { %5734 = vmatpush1.bf16.msra.mxu0 %v15435_v45 }
 0x3e2   :  { %5777 = vmatpush1.bf16.msra.mxu1 %v15442_v39  ;;  %5735 = vmatprep.subr.bf16.mxu0 %v15447_v46 }
 0x3e3   :  { %5778 = vmatprep.subr.bf16.mxu1 %v15453_v50 }
 0x3e5   :  { %5736 = vmatpush1.bf16.msra.mxu0 %v15459_v51 }
 0x3e6   :  { %5779 = vmatpush1.bf16.msra.mxu1 %v15466_v36  ;;  %5737 = vmatprep.subr.bf16.mxu0 %v15471_v44 }
 0x3e7   :  { %5780 = vmatprep.subr.bf16.mxu1 %v15477_v5 }
 0x3e9   :  { %5738 = vmatpush1.bf16.msra.mxu0 %v15483_v28 }
 0x3ea   :  { %5781 = vmatpush1.bf16.msra.mxu1 %v15491_v57  ;;  %5739 = vmatprep.subr.bf16.mxu0 %v15496_v1 }
 0x3eb   :  { %5782 = vmatprep.subr.bf16.mxu1 %v15502_v32 }
 0x3ed   :  { %5740 = vmatpush1.bf16.msra.mxu0 %v15509_v15 }
 0x3ee   :  { %5783 = vmatpush1.bf16.msra.mxu1 %v15516_v18  ;;  %6228 = vmatprep.subr.bf16.mxu0 %v15521_v27 }
 0x3ef   :  { %6271 = vmatprep.subr.bf16.mxu1 %v15527_v20 }
 0x3f0   :  { %5742 = vmatmul.mubr.bf16.vlgmr.msra.gmra.mrb[16].mxu0 %v15542_v4 }
 0x3f1   :  { %5785 = vmatmul.mubr.bf16.vlgmr.msra.gmra.mrb[16].mxu1 %v15542_v4  ;;  %6229 = vmatpush1.bf16.msra.mxu0 %v15533_v22 }
 0x3f2   :  { %6260 = vmatprep.mubr.bf16.mxu0 %v15563_v63  ;;  %6272 = vmatpush1.bf16.msra.mxu1 %v15548_v8 }
 0x3f3   :  { %6303 = vmatprep.mubr.bf16.mxu1 %v15563_v63  ;;  %6230 = vmatprep.subr.bf16.mxu0 %v15558_v29 }
 0x3f4   :  { %6273 = vmatprep.subr.bf16.mxu1 %v15568_v10 }
 0x3f5   :  { %6231 = vmatpush1.bf16.msra.mxu0 %v15575_v34 }
 0x3f6   :  { %6274 = vmatpush1.bf16.msra.mxu1 %v15582_v38  ;;  %6232 = vmatprep.subr.bf16.mxu0 %v15587_v58 }
 0x3f7   :  { %6275 = vmatprep.subr.bf16.mxu1 %v15594_v7 }
 0x3f9   :  { %6233 = vmatpush1.bf16.msra.mxu0 %v15601_v52 }
 0x3fa   :  { %6276 = vmatpush1.bf16.msra.mxu1 %v15608_v54  ;;  %6234 = vmatprep.subr.bf16.mxu0 %v15613_v49 }
 0x3fb   :  { %6277 = vmatprep.subr.bf16.mxu1 %v15619_v16 }
 0x3fd   :  { %6235 = vmatpush1.bf16.msra.mxu0 %v15625_v25 }
 0x3fe   :  { %6278 = vmatpush1.bf16.msra.mxu1 %v15632_v11  ;;  %6236 = vmatprep.subr.bf16.mxu0 %v15637_v0 }
 0x3ff   :  { %6279 = vmatprep.subr.bf16.mxu1 %v15643_v9 }
 0x401   :  { %6237 = vmatpush1.bf16.msra.mxu0 %v15649_v13 }
 0x402   :  { %6280 = vmatpush1.bf16.msra.mxu1 %v15656_v48  ;;  %6238 = vmatprep.subr.bf16.mxu0 %v15661_v47 }
 0x403   :  { %6281 = vmatprep.subr.bf16.mxu1 %v15667_v53 }
 0x405   :  { %6239 = vmatpush1.bf16.msra.mxu0 %v15673_v61 }
 0x406   :  { %6282 = vmatpush1.bf16.msra.mxu1 %v15680_v40  ;;  %6240 = vmatprep.subr.bf16.mxu0 %v15685_v19 }
 0x407   :  { %6283 = vmatprep.subr.bf16.mxu1 %v15691_v55 }
 0x409   :  { %6241 = vmatpush1.bf16.msra.mxu0 %v15697_v62 }
 0x40a   :  { %6284 = vmatpush1.bf16.msra.mxu1 %v15704_v42  ;;  %6242 = vmatprep.subr.bf16.mxu0 %v15709_v31 }
 0x40b   :  { %6285 = vmatprep.subr.bf16.mxu1 %v15715_v33 }
 0x40d   :  { %6243 = vmatpush1.bf16.msra.mxu0 %v15721_v14 }
 0x40e   :  { %6286 = vmatpush1.bf16.msra.mxu1 %v15728_v17  ;;  %6244 = vmatprep.subr.bf16.mxu0 %v15733_v60  ;;  %v15769_v60 = vld [vmem:[%s17546_s4 + $0x720] ss:$16 sps:$4 sm:$0xff]   ;;  %v15781_v17 = vld [vmem:[%s17546_s4 + $0x744] ss:$16 sps:$4 sm:$0xff]  }
 0x40f   :  { %6287 = vmatprep.subr.bf16.mxu1 %v15739_v59  ;;  %17849 = vst [vmem:[#allocation17_spill] sm:$0xff] %v15769_v60  ;;  %v15776_v59 = vld [vmem:[%s17546_s4 + $0x728] ss:$16 sps:$4 sm:$0xff]   ;;  %17851 = vst [vmem:[#allocation19_spill] sm:$0xff] %v15781_v17 }
 0x410   :  { %17850 = vst [vmem:[#allocation18_spill] sm:$0xff] %v15776_v59 }
 0x411   :  { %6245 = vmatpush1.bf16.msra.mxu0 %v15745_v21  ;;  %v15787_v21 = vld [vmem:[%s17546_s4 + $0x74c] ss:$16 sps:$4 sm:$0xff]  }
 0x412   :  { %6288 = vmatpush1.bf16.msra.mxu1 %v15752_v37  ;;  %6246 = vmatprep.subr.bf16.mxu0 %v15757_v43  ;;  %17852 = vst [vmem:[#allocation20_spill] sm:$0xff] %v15787_v21  ;;  %v15793_v43 = vld [vmem:[%s17546_s4 + $0x740] ss:$16 sps:$4 sm:$0xff]   ;;  %v15805_v37 = vld [vmem:[%s17546_s4 + $0x764] ss:$16 sps:$4 sm:$0xff]  }
 0x413   :  { %6289 = vmatprep.subr.bf16.mxu1 %v15763_v56  ;;  %17853 = vst [vmem:[#allocation21_spill] sm:$0xff] %v15793_v43  ;;  %v15800_v56 = vld [vmem:[%s17546_s4 + $0x748] ss:$16 sps:$4 sm:$0xff]   ;;  %17855 = vst [vmem:[#allocation23_spill] sm:$0xff] %v15805_v37 }
 0x414   :  { %17854 = vst [vmem:[#allocation22_spill] sm:$0xff] %v15800_v56 }
 0x415   :  { %6247 = vmatpush1.bf16.msra.mxu0 %v15769_v60  ;;  %v15811_v60 = vld [vmem:[%s17546_s4 + $0x76c] ss:$16 sps:$4 sm:$0xff]  }
 0x416   :  { %6290 = vmatpush1.bf16.msra.mxu1 %v15776_v59  ;;  %6248 = vmatprep.subr.bf16.mxu0 %v15781_v17  ;;  %17856 = vst [vmem:[#allocation24_spill] sm:$0xff] %v15811_v60  ;;  %v15817_v17 = vld [vmem:[%s17546_s4 + $0x760] ss:$16 sps:$4 sm:$0xff]   ;;  %v15829_v59 = vld [vmem:[%s17546_s4 + $0x784] ss:$16 sps:$4 sm:$0xff]  }
 0x417   :  { %6291 = vmatprep.subr.bf16.mxu1 %v15787_v21  ;;  %17857 = vst [vmem:[#allocation25_spill] sm:$0xff] %v15817_v17  ;;  %v15824_v21 = vld [vmem:[%s17546_s4 + $0x768] ss:$16 sps:$4 sm:$0xff]   ;;  %17859 = vst [vmem:[#allocation26_spill] sm:$0xff] %v15829_v59 }
 0x418   :  { %17858 = vst [vmem:[#allocation56_spill] sm:$0xff] %v15824_v21 }
 0x419   :  { %6249 = vmatpush1.bf16.msra.mxu0 %v15793_v43  ;;  %v15835_v43 = vld [vmem:[%s17546_s4 + $0x78c] ss:$16 sps:$4 sm:$0xff]  }
 0x41a   :  { %6292 = vmatpush1.bf16.msra.mxu1 %v15800_v56  ;;  %6250 = vmatprep.subr.bf16.mxu0 %v15805_v37  ;;  %17860 = vst [vmem:[#allocation27_spill] sm:$0xff] %v15835_v43  ;;  %v15841_v37 = vld [vmem:[%s17546_s4 + $0x780] ss:$16 sps:$4 sm:$0xff]   ;;  %v15853_v56 = vld [vmem:[%s17546_s4 + $0x7a4] ss:$16 sps:$4 sm:$0xff]  }
 0x41b   :  { %6293 = vmatprep.subr.bf16.mxu1 %v15811_v60  ;;  %17861 = vst [vmem:[#allocation28_spill] sm:$0xff] %v15841_v37  ;;  %v15848_v60 = vld [vmem:[%s17546_s4 + $0x788] ss:$16 sps:$4 sm:$0xff]   ;;  %17863 = vst [vmem:[#allocation30_spill] sm:$0xff] %v15853_v56 }
 0x41c   :  { %17862 = vst [vmem:[#allocation29_spill] sm:$0xff] %v15848_v60 }
 0x41d   :  { %6251 = vmatpush1.bf16.msra.mxu0 %v15817_v17  ;;  %v15859_v17 = vld [vmem:[%s17546_s4 + $0x7ac] ss:$16 sps:$4 sm:$0xff]  }
 0x41e   :  { %6294 = vmatpush1.bf16.msra.mxu1 %v15824_v21  ;;  %6252 = vmatprep.subr.bf16.mxu0 %v15829_v59  ;;  %17864 = vst [vmem:[#allocation31_spill] sm:$0xff] %v15859_v17  ;;  %v15865_v59 = vld [vmem:[%s17546_s4 + $0x7a0] ss:$16 sps:$4 sm:$0xff]   ;;  %v15877_v21 = vld [vmem:[%s17546_s4 + $0x7c4] ss:$16 sps:$4 sm:$0xff]  }
 0x41f   :  { %6295 = vmatprep.subr.bf16.mxu1 %v15835_v43  ;;  %17865 = vst [vmem:[#allocation32_spill] sm:$0xff] %v15865_v59  ;;  %v15872_v43 = vld [vmem:[%s17546_s4 + $0x7a8] ss:$16 sps:$4 sm:$0xff]   ;;  %17867 = vst [vmem:[#allocation34_spill] sm:$0xff] %v15877_v21 }
 0x420   :  { %17866 = vst [vmem:[#allocation33_spill] sm:$0xff] %v15872_v43 }
 0x421   :  { %6253 = vmatpush1.bf16.msra.mxu0 %v15841_v37  ;;  %v15883_v37 = vld [vmem:[%s17546_s4 + $0x7cc] ss:$16 sps:$4 sm:$0xff]  }
 0x422   :  { %6296 = vmatpush1.bf16.msra.mxu1 %v15848_v60  ;;  %6254 = vmatprep.subr.bf16.mxu0 %v15853_v56  ;;  %17868 = vst [vmem:[#allocation35_spill] sm:$0xff] %v15883_v37  ;;  %v15889_v56 = vld [vmem:[%s17546_s4 + $0x7c0] ss:$16 sps:$4 sm:$0xff]   ;;  %v15901_v60 = vld [vmem:[%s17546_s4 + $0x7e4] ss:$16 sps:$4 sm:$0xff]  }
 0x423   :  { %6297 = vmatprep.subr.bf16.mxu1 %v15859_v17  ;;  %17869 = vst [vmem:[#allocation36_spill] sm:$0xff] %v15889_v56  ;;  %v15896_v17 = vld [vmem:[%s17546_s4 + $0x7c8] ss:$16 sps:$4 sm:$0xff]   ;;  %17871 = vst [vmem:[#allocation38_spill] sm:$0xff] %v15901_v60 }
 0x424   :  { %17870 = vst [vmem:[#allocation37_spill] sm:$0xff] %v15896_v17 }
 0x425   :  { %6255 = vmatpush1.bf16.msra.mxu0 %v15865_v59  ;;  %v15907_v59 = vld [vmem:[%s17546_s4 + $0x7ec] ss:$16 sps:$4 sm:$0xff]  }
 0x426   :  { %6298 = vmatpush1.bf16.msra.mxu1 %v15872_v43  ;;  %6256 = vmatprep.subr.bf16.mxu0 %v15877_v21  ;;  %17872 = vst [vmem:[#allocation39_spill] sm:$0xff] %v15907_v59  ;;  %v15913_v21 = vld [vmem:[%s17546_s4 + $0x7e0] ss:$16 sps:$4 sm:$0xff]   ;;  %v15925_v43 = vld [vmem:[%s17546_s4 + $0x804] ss:$16 sps:$4 sm:$0xff]  }
 0x427   :  { %6299 = vmatprep.subr.bf16.mxu1 %v15883_v37  ;;  %17873 = vst [vmem:[#allocation40_spill] sm:$0xff] %v15913_v21  ;;  %v15920_v37 = vld [vmem:[%s17546_s4 + $0x7e8] ss:$16 sps:$4 sm:$0xff]   ;;  %17874 = vst [vmem:[#allocation41_spill] sm:$0xff] %v15925_v43 }
 0x429   :  { %6257 = vmatpush1.bf16.msra.mxu0 %v15889_v56  ;;  %v15931_v56 = vld [vmem:[%s17546_s4 + $0x80c] ss:$16 sps:$4 sm:$0xff]  }
 0x42a   :  { %6300 = vmatpush1.bf16.msra.mxu1 %v15896_v17  ;;  %6258 = vmatprep.subr.bf16.mxu0 %v15901_v60  ;;  %17875 = vst [vmem:[#allocation42_spill] sm:$0xff] %v15931_v56  ;;  %v15937_v60 = vld [vmem:[%s17546_s4 + $0x800] ss:$16 sps:$4 sm:$0xff]   ;;  %v15942_v17 = vcombine.low %v15553_v6, %v15537_v26  ;;  %v15960_v26 = vld [vmem:[%s17546_s4 + $0x82c] ss:$16 sps:$4 sm:$0xff]  }
 0x42b   :  { %6301 = vmatprep.subr.bf16.mxu1 %v15907_v59  ;;  %17876 = vst [vmem:[#allocation43_spill] sm:$0xff] %v15937_v60  ;;  %v15948_v59 = vld [vmem:[%s17546_s4 + $0x808] ss:$16 sps:$4 sm:$0xff]   ;;  %17879 = vst [vmem:[#allocation46_spill] sm:$0xff] %v15960_v26  ;;  %v15967_v6 = vld [vmem:[%s17546_s4 + $0x820] ss:$16 sps:$4 sm:$0xff]  }
 0x42c   :  { %17877 = vst [vmem:[#allocation44_spill] sm:$0xff] %v15948_v59  ;;  %17880 = vst [vmem:[#allocation47_spill] sm:$0xff] %v15967_v6 }
 0x42d   :  { %6259 = vmatpush1.bf16.msra.mxu0 %v15913_v21  ;;  %v15954_v21 = vld [vmem:[%s17546_s4 + $0x824] ss:$16 sps:$4 sm:$0xff]  }
 0x42e   :  { %6302 = vmatpush1.bf16.msra.mxu1 %v15920_v37  ;;  %6732 = vmatprep.subr.bf16.mxu0 %v15925_v43  ;;  %17878 = vst [vmem:[#allocation45_spill] sm:$0xff] %v15954_v21  ;;  %v15979_v43 = vld [vmem:[%s17546_s4 + $0x844] ss:$16 sps:$4 sm:$0xff]  }
 0x42f   :  { %6775 = vmatprep.subr.bf16.mxu1 %v15931_v56  ;;  %v15974_v56 = vld [vmem:[%s17546_s4 + $0x828] ss:$16 sps:$4 sm:$0xff]   ;;  %17882 = vst [vmem:[#allocation49_spill] sm:$0xff] %v15979_v43 }
 0x430   :  { %6261 = vmatmul.mubr.bf16.vlgmr.msra.gmra.mrb[16].mxu0 %v15942_v17  ;;  %17881 = vst [vmem:[#allocation48_spill] sm:$0xff] %v15974_v56 }
 0x431   :  { %6304 = vmatmul.mubr.bf16.vlgmr.msra.gmra.mrb[16].mxu1 %v15942_v17  ;;  %6733 = vmatpush1.bf16.msra.mxu0 %v15937_v60  ;;  %v15986_v60 = vld [vmem:[%s17546_s4 + $0x84c] ss:$16 sps:$4 sm:$0xff]  }
 0x432   :  { %6764 = vmatprep.mubr.bf16.mxu0 %v14700_v23  ;;  %6776 = vmatpush1.bf16.msra.mxu1 %v15948_v59  ;;  %17883 = vst [vmem:[#allocation50_spill] sm:$0xff] %v15986_v60  ;;  %v15993_v59 = vld [vmem:[%s17546_s4 + $0x840] ss:$16 sps:$4 sm:$0xff]  }
 0x433   :  { %6807 = vmatprep.mubr.bf16.mxu1 %v14700_v23  ;;  %6734 = vmatprep.subr.bf16.mxu0 %v15954_v21  ;;  %17884 = vst [vmem:[#allocation7_spill] sm:$0xff] %v15993_v59  ;;  %v16000_v21 = vld [vmem:[%s17546_s4 + $0x848] ss:$16 sps:$4 sm:$0xff]  }
 0x434   :  { %6777 = vmatprep.subr.bf16.mxu1 %v15960_v26  ;;  %17885 = vst [vmem:[#allocation51_spill] sm:$0xff] %v16000_v21  ;;  %v16005_v26 = vld [vmem:[%s17546_s4 + $0x864] ss:$16 sps:$4 sm:$0xff]  }
 0x435   :  { %6735 = vmatpush1.bf16.msra.mxu0 %v15967_v6  ;;  %17886 = vst [vmem:[#allocation52_spill] sm:$0xff] %v16005_v26  ;;  %v16011_v6 = vld [vmem:[%s17546_s4 + $0x86c] ss:$16 sps:$4 sm:$0xff]  }
 0x436   :  { %6778 = vmatpush1.bf16.msra.mxu1 %v15974_v56  ;;  %6736 = vmatprep.subr.bf16.mxu0 %v15979_v43  ;;  %17887 = vst [vmem:[#allocation53_spill] sm:$0xff] %v16011_v6  ;;  %v16017_v43 = vld [vmem:[%s17546_s4 + $0x860] ss:$16 sps:$4 sm:$0xff]   ;;  %v16029_v56 = vld [vmem:[%s17546_s4 + $0x884] ss:$16 sps:$4 sm:$0xff]  }
 0x437   :  { %6779 = vmatprep.subr.bf16.mxu1 %v15986_v60  ;;  %17888 = vst [vmem:[#allocation54_spill] sm:$0xff] %v16017_v43  ;;  %v16024_v60 = vld [vmem:[%s17546_s4 + $0x868] ss:$16 sps:$4 sm:$0xff]   ;;  %17890 = vst [vmem:[#allocation61_spill] sm:$0xff] %v16029_v56 }
 0x438   :  { %17889 = vst [vmem:[#allocation55_spill] sm:$0xff] %v16024_v60 }
 0x439   :  { %6737 = vmatpush1.bf16.msra.mxu0 %v15993_v59  ;;  %v16035_v59 = vld [vmem:[%s17546_s4 + $0x88c] ss:$16 sps:$4 sm:$0xff]  }
 0x43a   :  { %6780 = vmatpush1.bf16.msra.mxu1 %v16000_v21  ;;  %6738 = vmatprep.subr.bf16.mxu0 %v16005_v26  ;;  %17891 = vst [vmem:[#allocation62_spill] sm:$0xff] %v16035_v59  ;;  %v16041_v26 = vld [vmem:[%s17546_s4 + $0x880] ss:$16 sps:$4 sm:$0xff]   ;;  %v16053_v21 = vld [vmem:[%s17546_s4 + $0x8a4] ss:$16 sps:$4 sm:$0xff]  }
 0x43b   :  { %6781 = vmatprep.subr.bf16.mxu1 %v16011_v6  ;;  %17892 = vst [vmem:[#allocation63_spill] sm:$0xff] %v16041_v26  ;;  %v16048_v6 = vld [vmem:[%s17546_s4 + $0x888] ss:$16 sps:$4 sm:$0xff]   ;;  %17894 = vst [vmem:[#allocation65_spill] sm:$0xff] %v16053_v21 }
 0x43c   :  { %17893 = vst [vmem:[#allocation64_spill] sm:$0xff] %v16048_v6 }
 0x43d   :  { %6739 = vmatpush1.bf16.msra.mxu0 %v16017_v43  ;;  %v16059_v43 = vld [vmem:[%s17546_s4 + $0x8ac] ss:$16 sps:$4 sm:$0xff]  }
 0x43e   :  { %6782 = vmatpush1.bf16.msra.mxu1 %v16024_v60  ;;  %6740 = vmatprep.subr.bf16.mxu0 %v16029_v56  ;;  %17895 = vst [vmem:[#allocation66_spill] sm:$0xff] %v16059_v43  ;;  %v16065_v56 = vld [vmem:[%s17546_s4 + $0x8a0] ss:$16 sps:$4 sm:$0xff]   ;;  %v16077_v60 = vld [vmem:[%s17546_s4 + $0x8c4] ss:$16 sps:$4 sm:$0xff]  }
 0x43f   :  { %6783 = vmatprep.subr.bf16.mxu1 %v16035_v59  ;;  %17896 = vst [vmem:[#allocation67_spill] sm:$0xff] %v16065_v56  ;;  %v16072_v59 = vld [vmem:[%s17546_s4 + $0x8a8] ss:$16 sps:$4 sm:$0xff]   ;;  %17898 = vst [vmem:[#allocation69_spill] sm:$0xff] %v16077_v60 }
 0x440   :  { %17897 = vst [vmem:[#allocation68_spill] sm:$0xff] %v16072_v59 }
 0x441   :  { %6741 = vmatpush1.bf16.msra.mxu0 %v16041_v26  ;;  %v16083_v26 = vld [vmem:[%s17546_s4 + $0x8cc] ss:$16 sps:$4 sm:$0xff]  }
 0x442   :  { %6784 = vmatpush1.bf16.msra.mxu1 %v16048_v6  ;;  %6742 = vmatprep.subr.bf16.mxu0 %v16053_v21  ;;  %17899 = vst [vmem:[#allocation70_spill] sm:$0xff] %v16083_v26  ;;  %v16089_v21 = vld [vmem:[%s17546_s4 + $0x8c0] ss:$16 sps:$4 sm:$0xff]   ;;  %v16101_v6 = vld [vmem:[%s17546_s4 + $0x8e4] ss:$16 sps:$4 sm:$0xff]  }
 0x443   :  { %6785 = vmatprep.subr.bf16.mxu1 %v16059_v43  ;;  %17900 = vst [vmem:[#allocation71_spill] sm:$0xff] %v16089_v21  ;;  %v16096_v43 = vld [vmem:[%s17546_s4 + $0x8c8] ss:$16 sps:$4 sm:$0xff]   ;;  %17902 = vst [vmem:[#allocation73_spill] sm:$0xff] %v16101_v6 }
 0x444   :  { %17901 = vst [vmem:[#allocation72_spill] sm:$0xff] %v16096_v43 }
 0x445   :  { %6743 = vmatpush1.bf16.msra.mxu0 %v16065_v56  ;;  %v16107_v56 = vld [vmem:[%s17546_s4 + $0x8ec] ss:$16 sps:$4 sm:$0xff]  }
 0x446   :  { %6786 = vmatpush1.bf16.msra.mxu1 %v16072_v59  ;;  %6744 = vmatprep.subr.bf16.mxu0 %v16077_v60  ;;  %17903 = vst [vmem:[#allocation74_spill] sm:$0xff] %v16107_v56  ;;  %v16113_v60 = vld [vmem:[%s17546_s4 + $0x8e0] ss:$16 sps:$4 sm:$0xff]   ;;  %v16125_v59 = vld [vmem:[%s17546_s4 + $0x904] ss:$16 sps:$4 sm:$0xff]  }
 0x447   :  { %6787 = vmatprep.subr.bf16.mxu1 %v16083_v26  ;;  %17904 = vst [vmem:[#allocation75_spill] sm:$0xff] %v16113_v60  ;;  %v16120_v26 = vld [vmem:[%s17546_s4 + $0x8e8] ss:$16 sps:$4 sm:$0xff]   ;;  %17906 = vst [vmem:[#allocation77_spill] sm:$0xff] %v16125_v59 }
 0x448   :  { %17905 = vst [vmem:[#allocation76_spill] sm:$0xff] %v16120_v26 }
 0x449   :  { %6745 = vmatpush1.bf16.msra.mxu0 %v16089_v21  ;;  %v16131_v21 = vld [vmem:[%s17546_s4 + $0x90c] ss:$16 sps:$4 sm:$0xff]  }
 0x44a   :  { %6788 = vmatpush1.bf16.msra.mxu1 %v16096_v43  ;;  %6746 = vmatprep.subr.bf16.mxu0 %v16101_v6  ;;  %17907 = vst [vmem:[#allocation78_spill] sm:$0xff] %v16131_v21  ;;  %v16137_v6 = vld [vmem:[%s17546_s4 + $0x900] ss:$16 sps:$4 sm:$0xff]   ;;  %v16149_v43 = vld [vmem:[%s17546_s4 + $0x924] ss:$16 sps:$4 sm:$0xff]  }
 0x44b   :  { %6789 = vmatprep.subr.bf16.mxu1 %v16107_v56  ;;  %17908 = vst [vmem:[#allocation79_spill] sm:$0xff] %v16137_v6  ;;  %v16144_v56 = vld [vmem:[%s17546_s4 + $0x908] ss:$16 sps:$4 sm:$0xff]   ;;  %17910 = vst [vmem:[#allocation81_spill] sm:$0xff] %v16149_v43 }
 0x44c   :  { %17909 = vst [vmem:[#allocation80_spill] sm:$0xff] %v16144_v56 }
 0x44d   :  { %6747 = vmatpush1.bf16.msra.mxu0 %v16113_v60  ;;  %v16155_v60 = vld [vmem:[%s17546_s4 + $0x92c] ss:$16 sps:$4 sm:$0xff]  }
 0x44e   :  { %6790 = vmatpush1.bf16.msra.mxu1 %v16120_v26  ;;  %6748 = vmatprep.subr.bf16.mxu0 %v16125_v59  ;;  %17911 = vst [vmem:[#allocation82_spill] sm:$0xff] %v16155_v60  ;;  %v16161_v59 = vld [vmem:[%s17546_s4 + $0x920] ss:$16 sps:$4 sm:$0xff]   ;;  %v16173_v26 = vld [vmem:[%s17546_s4 + $0x944] ss:$16 sps:$4 sm:$0xff]  }
 0x44f   :  { %6791 = vmatprep.subr.bf16.mxu1 %v16131_v21  ;;  %17912 = vst [vmem:[#allocation83_spill] sm:$0xff] %v16161_v59  ;;  %v16168_v21 = vld [vmem:[%s17546_s4 + $0x928] ss:$16 sps:$4 sm:$0xff]   ;;  %17914 = vst [vmem:[#allocation85_spill] sm:$0xff] %v16173_v26 }
 0x450   :  { %17913 = vst [vmem:[#allocation84_spill] sm:$0xff] %v16168_v21 }
 0x451   :  { %6749 = vmatpush1.bf16.msra.mxu0 %v16137_v6  ;;  %v16179_v6 = vld [vmem:[%s17546_s4 + $0x94c] ss:$16 sps:$4 sm:$0xff]  }
 0x452   :  { %6792 = vmatpush1.bf16.msra.mxu1 %v16144_v56  ;;  %6750 = vmatprep.subr.bf16.mxu0 %v16149_v43  ;;  %17915 = vst [vmem:[#allocation86_spill] sm:$0xff] %v16179_v6  ;;  %v16185_v43 = vld [vmem:[%s17546_s4 + $0x940] ss:$16 sps:$4 sm:$0xff]   ;;  %v16197_v56 = vld [vmem:[%s17546_s4 + $0x964] ss:$16 sps:$4 sm:$0xff]  }
 0x453   :  { %6793 = vmatprep.subr.bf16.mxu1 %v16155_v60  ;;  %17916 = vst [vmem:[#allocation87_spill] sm:$0xff] %v16185_v43  ;;  %v16192_v60 = vld [vmem:[%s17546_s4 + $0x948] ss:$16 sps:$4 sm:$0xff]   ;;  %17918 = vst [vmem:[#allocation89_spill] sm:$0xff] %v16197_v56 }
 0x454   :  { %17917 = vst [vmem:[#allocation88_spill] sm:$0xff] %v16192_v60 }
 0x455   :  { %6751 = vmatpush1.bf16.msra.mxu0 %v16161_v59  ;;  %v16203_v59 = vld [vmem:[%s17546_s4 + $0x96c] ss:$16 sps:$4 sm:$0xff]  }
 0x456   :  { %6794 = vmatpush1.bf16.msra.mxu1 %v16168_v21  ;;  %6752 = vmatprep.subr.bf16.mxu0 %v16173_v26  ;;  %17919 = vst [vmem:[#allocation90_spill] sm:$0xff] %v16203_v59  ;;  %v16209_v26 = vld [vmem:[%s17546_s4 + $0x960] ss:$16 sps:$4 sm:$0xff]   ;;  %v16221_v21 = vld [vmem:[%s17546_s4 + $0x984] ss:$16 sps:$4 sm:$0xff]  }
 0x457   :  { %6795 = vmatprep.subr.bf16.mxu1 %v16179_v6  ;;  %17920 = vst [vmem:[#allocation91_spill] sm:$0xff] %v16209_v26  ;;  %v16216_v6 = vld [vmem:[%s17546_s4 + $0x968] ss:$16 sps:$4 sm:$0xff]   ;;  %17922 = vst [vmem:[#allocation93_spill] sm:$0xff] %v16221_v21 }
 0x458   :  { %17921 = vst [vmem:[#allocation92_spill] sm:$0xff] %v16216_v6 }
 0x459   :  { %6753 = vmatpush1.bf16.msra.mxu0 %v16185_v43  ;;  %v16227_v43 = vld [vmem:[%s17546_s4 + $0x98c] ss:$16 sps:$4 sm:$0xff]  }
 0x45a   :  { %6796 = vmatpush1.bf16.msra.mxu1 %v16192_v60  ;;  %6754 = vmatprep.subr.bf16.mxu0 %v16197_v56  ;;  %17923 = vst [vmem:[#allocation94_spill] sm:$0xff] %v16227_v43  ;;  %v16233_v56 = vld [vmem:[%s17546_s4 + $0x980] ss:$16 sps:$4 sm:$0xff]   ;;  %v16245_v60 = vld [vmem:[%s17546_s4 + $0x9a4] ss:$16 sps:$4 sm:$0xff]  }
 0x45b   :  { %6797 = vmatprep.subr.bf16.mxu1 %v16203_v59  ;;  %17924 = vst [vmem:[#allocation95_spill] sm:$0xff] %v16233_v56  ;;  %v16240_v59 = vld [vmem:[%s17546_s4 + $0x988] ss:$16 sps:$4 sm:$0xff]   ;;  %17926 = vst [vmem:[#allocation97_spill] sm:$0xff] %v16245_v60 }
 0x45c   :  { %17925 = vst [vmem:[#allocation96_spill] sm:$0xff] %v16240_v59 }
 0x45d   :  { %6755 = vmatpush1.bf16.msra.mxu0 %v16209_v26  ;;  %v16251_v26 = vld [vmem:[%s17546_s4 + $0x9ac] ss:$16 sps:$4 sm:$0xff]  }
 0x45e   :  { %6798 = vmatpush1.bf16.msra.mxu1 %v16216_v6  ;;  %6756 = vmatprep.subr.bf16.mxu0 %v16221_v21  ;;  %17927 = vst [vmem:[#allocation98_spill] sm:$0xff] %v16251_v26  ;;  %v16257_v21 = vld [vmem:[%s17546_s4 + $0x9a0] ss:$16 sps:$4 sm:$0xff]   ;;  %v16269_v6 = vld [vmem:[%s17546_s4 + $0x9c4] ss:$16 sps:$4 sm:$0xff]  }
 0x45f   :  { %6799 = vmatprep.subr.bf16.mxu1 %v16227_v43  ;;  %17928 = vst [vmem:[#allocation99_spill] sm:$0xff] %v16257_v21  ;;  %v16264_v43 = vld [vmem:[%s17546_s4 + $0x9a8] ss:$16 sps:$4 sm:$0xff]   ;;  %17929 = vst [vmem:[#allocation100_spill] sm:$0xff] %v16269_v6 }
 0x461   :  { %6757 = vmatpush1.bf16.msra.mxu0 %v16233_v56  ;;  %v16275_v56 = vld [vmem:[%s17546_s4 + $0x9cc] ss:$16 sps:$4 sm:$0xff]  }
 0x462   :  { %6800 = vmatpush1.bf16.msra.mxu1 %v16240_v59  ;;  %6758 = vmatprep.subr.bf16.mxu0 %v16245_v60  ;;  %17930 = vst [vmem:[#allocation101_spill] sm:$0xff] %v16275_v56  ;;  %v16281_v60 = vld [vmem:[%s17546_s4 + $0x9c0] ss:$16 sps:$4 sm:$0xff]   ;;  %v16293_v59 = vld [vmem:[%s17546_s4 + $0x9e4] ss:$16 sps:$4 sm:$0xff]  }
 0x463   :  { %6801 = vmatprep.subr.bf16.mxu1 %v16251_v26  ;;  %17931 = vst [vmem:[#allocation102_spill] sm:$0xff] %v16281_v60  ;;  %v16288_v26 = vld [vmem:[%s17546_s4 + $0x9c8] ss:$16 sps:$4 sm:$0xff]   ;;  %17932 = vst [vmem:[#allocation103_spill] sm:$0xff] %v16293_v59 }
 0x465   :  { %6759 = vmatpush1.bf16.msra.mxu0 %v16257_v21  ;;  %v16299_v21 = vld [vmem:[%s17546_s4 + $0x9ec] ss:$16 sps:$4 sm:$0xff]  }
 0x466   :  { %6802 = vmatpush1.bf16.msra.mxu1 %v16264_v43  ;;  %6760 = vmatprep.subr.bf16.mxu0 %v16269_v6  ;;  %v16305_v6 = vld [vmem:[%s17546_s4 + $0x9e0] ss:$16 sps:$4 sm:$0xff]  }
 0x467   :  { %6803 = vmatprep.subr.bf16.mxu1 %v16275_v56  ;;  %17933 = vst [vmem:[#allocation104_spill] sm:$0xff] %v16305_v6  ;;  %v16312_v56 = vld [vmem:[%s17546_s4 + $0x9e8] ss:$16 sps:$4 sm:$0xff]  }
 0x468   :  { %17934 = vst [vmem:[#allocation105_spill] sm:$0xff] %v16312_v56 }
 0x469   :  { %6761 = vmatpush1.bf16.msra.mxu0 %v16281_v60  ;;  %v12132_v60 = vld [vmem:[%s17546_s4 + $0x204] ss:$16 sps:$4 sm:$0xff]  }
 0x46a   :  { %6804 = vmatpush1.bf16.msra.mxu1 %v16288_v26  ;;  %6762 = vmatprep.subr.bf16.mxu0 %v16293_v59  ;;  %v12133_v59 = vld [vmem:[%s17546_s4 + $0x20c] ss:$16 sps:$4 sm:$0xff]  }
 0x46b   :  { %6805 = vmatprep.subr.bf16.mxu1 %v16299_v21 }
 0x46d   :  { %6763 = vmatpush1.bf16.msra.mxu0 %v16305_v6  ;;  %v12134_v6 = vld [vmem:[%s17546_s4 + $0x200] ss:$16 sps:$4 sm:$0xff]  }
 0x46e   :  { %6806 = vmatpush1.bf16.msra.mxu1 %v16312_v56  ;;  %6884 = vmatprep.subr.bf16.mxu0 %v12132_v60  ;;  %v12135_v60 = vld [vmem:[%s17546_s4 + $0x208] ss:$16 sps:$4 sm:$0xff]   ;;  %v12137_v56 = vld [vmem:[%s17546_s4 + $0x22c] ss:$16 sps:$4 sm:$0xff]  }
 0x46f   :  { %6927 = vmatprep.subr.bf16.mxu1 %v12133_v59  ;;  %v12136_v59 = vld [vmem:[%s17546_s4 + $0x224] ss:$16 sps:$4 sm:$0xff]  }
 0x470   :  { %6765 = vmatmul.mubr.bf16.vlgmr.msra.gmra.mrb[16].mxu0 %v14702_v24 }
 0x471   :  { %6808 = vmatmul.mubr.bf16.vlgmr.msra.gmra.mrb[16].mxu1 %v14702_v24  ;;  %6885 = vmatpush1.bf16.msra.mxu0 %v12134_v6  ;;  %v12138_v6 = vld [vmem:[%s17546_s4 + $0x220] ss:$16 sps:$4 sm:$0xff]  }
 0x472   :  { %6916 = vmatprep.mubr.bf16.mxu0 %v15282_v30  ;;  %6928 = vmatpush1.bf16.msra.mxu1 %v12135_v60  ;;  %v12139_v60 = vld [vmem:[%s17546_s4 + $0x228] ss:$16 sps:$4 sm:$0xff]  }
 0x473   :  { %6959 = vmatprep.mubr.bf16.mxu1 %v15282_v30  ;;  %6886 = vmatprep.subr.bf16.mxu0 %v12136_v59  ;;  %v12140_v30 = vld [vmem:[%s17546_s4 + $0x244] ss:$16 sps:$4 sm:$0xff]   ;;  %v12141_v59 = vld [vmem:[%s17546_s4 + $0x24c] ss:$16 sps:$4 sm:$0xff]  }
 0x474   :  { %6929 = vmatprep.subr.bf16.mxu1 %v12137_v56  ;;  %v12142_v56 = vld [vmem:[%s17546_s4 + $0x240] ss:$16 sps:$4 sm:$0xff]  }
 0x475   :  { %6887 = vmatpush1.bf16.msra.mxu0 %v12138_v6  ;;  %v12143_v6 = vld [vmem:[%s17546_s4 + $0x248] ss:$16 sps:$4 sm:$0xff]  }
 0x476   :  { %6930 = vmatpush1.bf16.msra.mxu1 %v12139_v60  ;;  %6888 = vmatprep.subr.bf16.mxu0 %v12140_v30  ;;  %v12144_v60 = vld [vmem:[%s17546_s4 + $0x264] ss:$16 sps:$4 sm:$0xff]   ;;  %v12145_v30 = vld [vmem:[%s17546_s4 + $0x26c] ss:$16 sps:$4 sm:$0xff]  }
 0x477   :  { %6931 = vmatprep.subr.bf16.mxu1 %v12141_v59  ;;  %v12146_v59 = vld [vmem:[%s17546_s4 + $0x260] ss:$16 sps:$4 sm:$0xff]  }
 0x479   :  { %6889 = vmatpush1.bf16.msra.mxu0 %v12142_v56  ;;  %v12147_v56 = vld [vmem:[%s17546_s4 + $0x268] ss:$16 sps:$4 sm:$0xff]  }
 0x47a   :  { %6932 = vmatpush1.bf16.msra.mxu1 %v12143_v6  ;;  %6890 = vmatprep.subr.bf16.mxu0 %v12144_v60  ;;  %v12148_v6 = vld [vmem:[%s17546_s4 + $0x284] ss:$16 sps:$4 sm:$0xff]   ;;  %v12149_v60 = vld [vmem:[%s17546_s4 + $0x28c] ss:$16 sps:$4 sm:$0xff]  }
 0x47b   :  { %6933 = vmatprep.subr.bf16.mxu1 %v12145_v30  ;;  %v12150_v30 = vld [vmem:[%s17546_s4 + $0x280] ss:$16 sps:$4 sm:$0xff]  }
 0x47d   :  { %6891 = vmatpush1.bf16.msra.mxu0 %v12146_v59  ;;  %v12151_v59 = vld [vmem:[%s17546_s4 + $0x288] ss:$16 sps:$4 sm:$0xff]  }
 0x47e   :  { %6934 = vmatpush1.bf16.msra.mxu1 %v12147_v56  ;;  %6892 = vmatprep.subr.bf16.mxu0 %v12148_v6  ;;  %v12152_v56 = vld [vmem:[%s17546_s4 + $0x2a4] ss:$16 sps:$4 sm:$0xff]   ;;  %v12153_v6 = vld [vmem:[%s17546_s4 + $0x2ac] ss:$16 sps:$4 sm:$0xff]  }
 0x47f   :  { %6935 = vmatprep.subr.bf16.mxu1 %v12149_v60  ;;  %v12154_v60 = vld [vmem:[%s17546_s4 + $0x2a0] ss:$16 sps:$4 sm:$0xff]  }
 0x481   :  { %6893 = vmatpush1.bf16.msra.mxu0 %v12150_v30  ;;  %v12155_v30 = vld [vmem:[%s17546_s4 + $0x2a8] ss:$16 sps:$4 sm:$0xff]  }
 0x482   :  { %6936 = vmatpush1.bf16.msra.mxu1 %v12151_v59  ;;  %6894 = vmatprep.subr.bf16.mxu0 %v12152_v56  ;;  %v12156_v59 = vld [vmem:[%s17546_s4 + $0x2c4] ss:$16 sps:$4 sm:$0xff]   ;;  %v12157_v56 = vld [vmem:[%s17546_s4 + $0x2cc] ss:$16 sps:$4 sm:$0xff]  }
 0x483   :  { %6937 = vmatprep.subr.bf16.mxu1 %v12153_v6  ;;  %v12158_v6 = vld [vmem:[%s17546_s4 + $0x2c0] ss:$16 sps:$4 sm:$0xff]  }
 0x485   :  { %6895 = vmatpush1.bf16.msra.mxu0 %v12154_v60  ;;  %v12159_v60 = vld [vmem:[%s17546_s4 + $0x2c8] ss:$16 sps:$4 sm:$0xff]  }
 0x486   :  { %6938 = vmatpush1.bf16.msra.mxu1 %v12155_v30  ;;  %6896 = vmatprep.subr.bf16.mxu0 %v12156_v59  ;;  %v12160_v30 = vld [vmem:[%s17546_s4 + $0x2e4] ss:$16 sps:$4 sm:$0xff]   ;;  %v12161_v59 = vld [vmem:[%s17546_s4 + $0x2ec] ss:$16 sps:$4 sm:$0xff]  }
 0x487   :  { %6939 = vmatprep.subr.bf16.mxu1 %v12157_v56  ;;  %v12162_v56 = vld [vmem:[%s17546_s4 + $0x2e0] ss:$16 sps:$4 sm:$0xff]  }
 0x489   :  { %6897 = vmatpush1.bf16.msra.mxu0 %v12158_v6  ;;  %v12163_v6 = vld [vmem:[%s17546_s4 + $0x2e8] ss:$16 sps:$4 sm:$0xff]  }
 0x48a   :  { %6940 = vmatpush1.bf16.msra.mxu1 %v12159_v60  ;;  %6898 = vmatprep.subr.bf16.mxu0 %v12160_v30  ;;  %v12164_v60 = vld [vmem:[%s17546_s4 + $0x304] ss:$16 sps:$4 sm:$0xff]   ;;  %v12165_v30 = vld [vmem:[%s17546_s4 + $0x30c] ss:$16 sps:$4 sm:$0xff]  }
 0x48b   :  { %6941 = vmatprep.subr.bf16.mxu1 %v12161_v59  ;;  %v12166_v59 = vld [vmem:[%s17546_s4 + $0x300] ss:$16 sps:$4 sm:$0xff]  }
 0x48d   :  { %6899 = vmatpush1.bf16.msra.mxu0 %v12162_v56  ;;  %v12167_v56 = vld [vmem:[%s17546_s4 + $0x308] ss:$16 sps:$4 sm:$0xff]  }
 0x48e   :  { %6942 = vmatpush1.bf16.msra.mxu1 %v12163_v6  ;;  %6900 = vmatprep.subr.bf16.mxu0 %v12164_v60  ;;  %v12168_v6 = vld [vmem:[%s17546_s4 + $0x324] ss:$16 sps:$4 sm:$0xff]   ;;  %v12169_v60 = vld [vmem:[%s17546_s4 + $0x32c] ss:$16 sps:$4 sm:$0xff]  }
 0x48f   :  { %6943 = vmatprep.subr.bf16.mxu1 %v12165_v30  ;;  %v12170_v30 = vld [vmem:[%s17546_s4 + $0x320] ss:$16 sps:$4 sm:$0xff]  }
 0x491   :  { %6901 = vmatpush1.bf16.msra.mxu0 %v12166_v59  ;;  %v12171_v59 = vld [vmem:[%s17546_s4 + $0x328] ss:$16 sps:$4 sm:$0xff]  }
 0x492   :  { %6944 = vmatpush1.bf16.msra.mxu1 %v12167_v56  ;;  %6902 = vmatprep.subr.bf16.mxu0 %v12168_v6  ;;  %v12172_v56 = vld [vmem:[%s17546_s4 + $0x344] ss:$16 sps:$4 sm:$0xff]   ;;  %v12173_v6 = vld [vmem:[%s17546_s4 + $0x34c] ss:$16 sps:$4 sm:$0xff]  }
 0x493   :  { %6945 = vmatprep.subr.bf16.mxu1 %v12169_v60  ;;  %v12174_v60 = vld [vmem:[%s17546_s4 + $0x340] ss:$16 sps:$4 sm:$0xff]  }
 0x495   :  { %6903 = vmatpush1.bf16.msra.mxu0 %v12170_v30  ;;  %v12175_v30 = vld [vmem:[%s17546_s4 + $0x348] ss:$16 sps:$4 sm:$0xff]  }
 0x496   :  { %6946 = vmatpush1.bf16.msra.mxu1 %v12171_v59  ;;  %6904 = vmatprep.subr.bf16.mxu0 %v12172_v56  ;;  %v12176_v59 = vld [vmem:[%s17546_s4 + $0x364] ss:$16 sps:$4 sm:$0xff]   ;;  %v12177_v56 = vld [vmem:[%s17546_s4 + $0x36c] ss:$16 sps:$4 sm:$0xff]  }
 0x497   :  { %6947 = vmatprep.subr.bf16.mxu1 %v12173_v6  ;;  %v12178_v6 = vld [vmem:[%s17546_s4 + $0x360] ss:$16 sps:$4 sm:$0xff]  }
 0x499   :  { %6905 = vmatpush1.bf16.msra.mxu0 %v12174_v60  ;;  %v12179_v60 = vld [vmem:[%s17546_s4 + $0x368] ss:$16 sps:$4 sm:$0xff]  }
 0x49a   :  { %6948 = vmatpush1.bf16.msra.mxu1 %v12175_v30  ;;  %6906 = vmatprep.subr.bf16.mxu0 %v12176_v59  ;;  %v12180_v30 = vld [vmem:[%s17546_s4 + $0x384] ss:$16 sps:$4 sm:$0xff]   ;;  %v12181_v59 = vld [vmem:[%s17546_s4 + $0x38c] ss:$16 sps:$4 sm:$0xff]  }
 0x49b   :  { %6949 = vmatprep.subr.bf16.mxu1 %v12177_v56  ;;  %v12182_v56 = vld [vmem:[%s17546_s4 + $0x380] ss:$16 sps:$4 sm:$0xff]  }
 0x49d   :  { %6907 = vmatpush1.bf16.msra.mxu0 %v12178_v6  ;;  %v12183_v6 = vld [vmem:[%s17546_s4 + $0x388] ss:$16 sps:$4 sm:$0xff]  }
 0x49e   :  { %6950 = vmatpush1.bf16.msra.mxu1 %v12179_v60  ;;  %6908 = vmatprep.subr.bf16.mxu0 %v12180_v30  ;;  %v12184_v60 = vld [vmem:[%s17546_s4 + $0x3a4] ss:$16 sps:$4 sm:$0xff]   ;;  %v12185_v30 = vld [vmem:[%s17546_s4 + $0x3ac] ss:$16 sps:$4 sm:$0xff]  }
 0x49f   :  { %6951 = vmatprep.subr.bf16.mxu1 %v12181_v59  ;;  %v12186_v59 = vld [vmem:[%s17546_s4 + $0x3a0] ss:$16 sps:$4 sm:$0xff]  }
 0x4a1   :  { %6909 = vmatpush1.bf16.msra.mxu0 %v12182_v56  ;;  %v12187_v56 = vld [vmem:[%s17546_s4 + $0x3a8] ss:$16 sps:$4 sm:$0xff]  }
 0x4a2   :  { %6952 = vmatpush1.bf16.msra.mxu1 %v12183_v6  ;;  %6910 = vmatprep.subr.bf16.mxu0 %v12184_v60  ;;  %v12188_v6 = vld [vmem:[%s17546_s4 + $0x3c4] ss:$16 sps:$4 sm:$0xff]   ;;  %v12189_v60 = vld [vmem:[%s17546_s4 + $0x3cc] ss:$16 sps:$4 sm:$0xff]  }
 0x4a3   :  { %6953 = vmatprep.subr.bf16.mxu1 %v12185_v30  ;;  %v12190_v30 = vld [vmem:[%s17546_s4 + $0x3c0] ss:$16 sps:$4 sm:$0xff]  }
 0x4a5   :  { %6911 = vmatpush1.bf16.msra.mxu0 %v12186_v59  ;;  %v12191_v59 = vld [vmem:[%s17546_s4 + $0x3c8] ss:$16 sps:$4 sm:$0xff]  }
 0x4a6   :  { %6954 = vmatpush1.bf16.msra.mxu1 %v12187_v56  ;;  %6912 = vmatprep.subr.bf16.mxu0 %v12188_v6  ;;  %v12192_v56 = vld [vmem:[%s17546_s4 + $0x3e4] ss:$16 sps:$4 sm:$0xff]   ;;  %v12193_v6 = vld [vmem:[%s17546_s4 + $0x3ec] ss:$16 sps:$4 sm:$0xff]  }
 0x4a7   :  { %6955 = vmatprep.subr.bf16.mxu1 %v12189_v60  ;;  %v12194_v60 = vld [vmem:[%s17546_s4 + $0x3e0] ss:$16 sps:$4 sm:$0xff]  }
 0x4a9   :  { %6913 = vmatpush1.bf16.msra.mxu0 %v12190_v30  ;;  %v12195_v30 = vld [vmem:[%s17546_s4 + $0x3e8] ss:$16 sps:$4 sm:$0xff]  }
 0x4aa   :  { %6956 = vmatpush1.bf16.msra.mxu1 %v12191_v59  ;;  %6914 = vmatprep.subr.bf16.mxu0 %v12192_v56  ;;  %v12196_v59 = vld [vmem:[%s17546_s4 + $0x4] ss:$16 sps:$4 sm:$0xff]   ;;  %v12197_v56 = vld [vmem:[%s17546_s4 + $0xc] ss:$16 sps:$4 sm:$0xff]  }
 0x4ab   :  { %6957 = vmatprep.subr.bf16.mxu1 %v12193_v6  ;;  %v12198_v6 = vld [vmem:[%s17546_s4] ss:$16 sps:$4 sm:$0xff]  }
 0x4ad   :  { %6915 = vmatpush1.bf16.msra.mxu0 %v12194_v60  ;;  %v12199_v60 = vld [vmem:[%s17546_s4 + $0x8] ss:$16 sps:$4 sm:$0xff]  }
 0x4ae   :  { %6958 = vmatpush1.bf16.msra.mxu1 %v12195_v30  ;;  %6970 = vmatprep.subr.bf16.mxu0 %v12196_v59  ;;  %v12200_v30 = vld [vmem:[%s17546_s4 + $0x24] ss:$16 sps:$4 sm:$0xff]   ;;  %v12202_v59 = vld [vmem:[%s17546_s4 + $0x20] ss:$16 sps:$4 sm:$0xff]  }
 0x4af   :  { %7013 = vmatprep.subr.bf16.mxu1 %v12197_v56  ;;  %v12203_v56 = vld [vmem:[%s17546_s4 + $0x28] ss:$16 sps:$4 sm:$0xff]  }
 0x4b0   :  { %6917 = vmatmul.mubr.bf16.vlgmr.msra.gmra.mrb[20].mxu0 %v15542_v4 }
 0x4b1   :  { %6960 = vmatmul.mubr.bf16.vlgmr.msra.gmra.mrb[20].mxu1 %v15542_v4  ;;  %6971 = vmatpush1.bf16.msra.mxu0 %v12198_v6  ;;  %v12201_v4 = vld [vmem:[%s17546_s4 + $0x2c] ss:$16 sps:$4 sm:$0xff]  }
 0x4b2   :  { %7002 = vmatprep.mubr.bf16.mxu0 %v15044_v35  ;;  %7014 = vmatpush1.bf16.msra.mxu1 %v12199_v60  ;;  %v12205_v6 = vld [vmem:[%s17546_s4 + $0x4c] ss:$16 sps:$4 sm:$0xff]   ;;  %v12206_v60 = vld [vmem:[%s17546_s4 + $0x40] ss:$16 sps:$4 sm:$0xff]  }
 0x4b3   :  { %7045 = vmatprep.mubr.bf16.mxu1 %v15044_v35  ;;  %6972 = vmatprep.subr.bf16.mxu0 %v12200_v30  ;;  %v12204_v35 = vld [vmem:[%s17546_s4 + $0x44] ss:$16 sps:$4 sm:$0xff]   ;;  %v12207_v30 = vld [vmem:[%s17546_s4 + $0x48] ss:$16 sps:$4 sm:$0xff]  }
 0x4b4   :  { %7015 = vmatprep.subr.bf16.mxu1 %v12201_v4  ;;  %v12208_v4 = vld [vmem:[%s17546_s4 + $0x64] ss:$16 sps:$4 sm:$0xff]  }
 0x4b5   :  { %6973 = vmatpush1.bf16.msra.mxu0 %v12202_v59  ;;  %v12209_v59 = vld [vmem:[%s17546_s4 + $0x6c] ss:$16 sps:$4 sm:$0xff]  }
 0x4b6   :  { %7016 = vmatpush1.bf16.msra.mxu1 %v12203_v56  ;;  %6974 = vmatprep.subr.bf16.mxu0 %v12204_v35  ;;  %v12210_v56 = vld [vmem:[%s17546_s4 + $0x60] ss:$16 sps:$4 sm:$0xff]   ;;  %v12211_v35 = vld [vmem:[%s17546_s4 + $0x68] ss:$16 sps:$4 sm:$0xff]  }
 0x4b7   :  { %7017 = vmatprep.subr.bf16.mxu1 %v12205_v6  ;;  %v12212_v6 = vld [vmem:[%s17546_s4 + $0x84] ss:$16 sps:$4 sm:$0xff]  }
 0x4b9   :  { %6975 = vmatpush1.bf16.msra.mxu0 %v12206_v60  ;;  %v12213_v60 = vld [vmem:[%s17546_s4 + $0x8c] ss:$16 sps:$4 sm:$0xff]  }
 0x4ba   :  { %7018 = vmatpush1.bf16.msra.mxu1 %v12207_v30  ;;  %6976 = vmatprep.subr.bf16.mxu0 %v12208_v4  ;;  %v12214_v30 = vld [vmem:[%s17546_s4 + $0x80] ss:$16 sps:$4 sm:$0xff]   ;;  %v12215_v4 = vld [vmem:[%s17546_s4 + $0x88] ss:$16 sps:$4 sm:$0xff]  }
 0x4bb   :  { %7019 = vmatprep.subr.bf16.mxu1 %v12209_v59  ;;  %v12216_v59 = vld [vmem:[%s17546_s4 + $0xa4] ss:$16 sps:$4 sm:$0xff]  }
 0x4bd   :  { %6977 = vmatpush1.bf16.msra.mxu0 %v12210_v56  ;;  %v12217_v56 = vld [vmem:[%s17546_s4 + $0xac] ss:$16 sps:$4 sm:$0xff]  }
 0x4be   :  { %7020 = vmatpush1.bf16.msra.mxu1 %v12211_v35  ;;  %6978 = vmatprep.subr.bf16.mxu0 %v12212_v6  ;;  %v12218_v35 = vld [vmem:[%s17546_s4 + $0xa0] ss:$16 sps:$4 sm:$0xff]   ;;  %v12219_v6 = vld [vmem:[%s17546_s4 + $0xa8] ss:$16 sps:$4 sm:$0xff]  }
 0x4bf   :  { %7021 = vmatprep.subr.bf16.mxu1 %v12213_v60  ;;  %v12220_v60 = vld [vmem:[%s17546_s4 + $0xc4] ss:$16 sps:$4 sm:$0xff]  }
 0x4c1   :  { %6979 = vmatpush1.bf16.msra.mxu0 %v12214_v30  ;;  %v12221_v30 = vld [vmem:[%s17546_s4 + $0xcc] ss:$16 sps:$4 sm:$0xff]  }
 0x4c2   :  { %7022 = vmatpush1.bf16.msra.mxu1 %v12215_v4  ;;  %6980 = vmatprep.subr.bf16.mxu0 %v12216_v59  ;;  %v12222_v4 = vld [vmem:[%s17546_s4 + $0xc0] ss:$16 sps:$4 sm:$0xff]   ;;  %v12223_v59 = vld [vmem:[%s17546_s4 + $0xc8] ss:$16 sps:$4 sm:$0xff]  }
 0x4c3   :  { %7023 = vmatprep.subr.bf16.mxu1 %v12217_v56  ;;  %v12224_v56 = vld [vmem:[%s17546_s4 + $0xe4] ss:$16 sps:$4 sm:$0xff]  }
 0x4c5   :  { %6981 = vmatpush1.bf16.msra.mxu0 %v12218_v35  ;;  %v12225_v35 = vld [vmem:[%s17546_s4 + $0xec] ss:$16 sps:$4 sm:$0xff]  }
 0x4c6   :  { %7024 = vmatpush1.bf16.msra.mxu1 %v12219_v6  ;;  %6982 = vmatprep.subr.bf16.mxu0 %v12220_v60  ;;  %v12226_v6 = vld [vmem:[%s17546_s4 + $0xe0] ss:$16 sps:$4 sm:$0xff]   ;;  %v12227_v60 = vld [vmem:[%s17546_s4 + $0xe8] ss:$16 sps:$4 sm:$0xff]  }
 0x4c7   :  { %7025 = vmatprep.subr.bf16.mxu1 %v12221_v30  ;;  %v12228_v30 = vld [vmem:[%s17546_s4 + $0x104] ss:$16 sps:$4 sm:$0xff]  }
 0x4c9   :  { %6983 = vmatpush1.bf16.msra.mxu0 %v12222_v4  ;;  %v12229_v4 = vld [vmem:[%s17546_s4 + $0x10c] ss:$16 sps:$4 sm:$0xff]  }
 0x4ca   :  { %7026 = vmatpush1.bf16.msra.mxu1 %v12223_v59  ;;  %6984 = vmatprep.subr.bf16.mxu0 %v12224_v56  ;;  %v12230_v59 = vld [vmem:[%s17546_s4 + $0x100] ss:$16 sps:$4 sm:$0xff]   ;;  %v12231_v56 = vld [vmem:[%s17546_s4 + $0x108] ss:$16 sps:$4 sm:$0xff]  }
 0x4cb   :  { %7027 = vmatprep.subr.bf16.mxu1 %v12225_v35  ;;  %v12232_v35 = vld [vmem:[%s17546_s4 + $0x124] ss:$16 sps:$4 sm:$0xff]  }
 0x4cd   :  { %6985 = vmatpush1.bf16.msra.mxu0 %v12226_v6  ;;  %v12233_v6 = vld [vmem:[%s17546_s4 + $0x12c] ss:$16 sps:$4 sm:$0xff]  }
 0x4ce   :  { %7028 = vmatpush1.bf16.msra.mxu1 %v12227_v60  ;;  %6986 = vmatprep.subr.bf16.mxu0 %v12228_v30  ;;  %v12234_v60 = vld [vmem:[%s17546_s4 + $0x120] ss:$16 sps:$4 sm:$0xff]   ;;  %v12235_v30 = vld [vmem:[%s17546_s4 + $0x128] ss:$16 sps:$4 sm:$0xff]  }
 0x4cf   :  { %7029 = vmatprep.subr.bf16.mxu1 %v12229_v4  ;;  %v12236_v4 = vld [vmem:[%s17546_s4 + $0x144] ss:$16 sps:$4 sm:$0xff]  }
 0x4d1   :  { %6987 = vmatpush1.bf16.msra.mxu0 %v12230_v59  ;;  %v12237_v59 = vld [vmem:[%s17546_s4 + $0x14c] ss:$16 sps:$4 sm:$0xff]  }
 0x4d2   :  { %7030 = vmatpush1.bf16.msra.mxu1 %v12231_v56  ;;  %6988 = vmatprep.subr.bf16.mxu0 %v12232_v35  ;;  %v12238_v56 = vld [vmem:[%s17546_s4 + $0x140] ss:$16 sps:$4 sm:$0xff]   ;;  %v12239_v35 = vld [vmem:[%s17546_s4 + $0x148] ss:$16 sps:$4 sm:$0xff]  }
 0x4d3   :  { %7031 = vmatprep.subr.bf16.mxu1 %v12233_v6  ;;  %v12240_v6 = vld [vmem:[%s17546_s4 + $0x164] ss:$16 sps:$4 sm:$0xff]  }
 0x4d5   :  { %6989 = vmatpush1.bf16.msra.mxu0 %v12234_v60  ;;  %v12241_v60 = vld [vmem:[%s17546_s4 + $0x16c] ss:$16 sps:$4 sm:$0xff]  }
 0x4d6   :  { %7032 = vmatpush1.bf16.msra.mxu1 %v12235_v30  ;;  %6990 = vmatprep.subr.bf16.mxu0 %v12236_v4  ;;  %v12242_v30 = vld [vmem:[%s17546_s4 + $0x160] ss:$16 sps:$4 sm:$0xff]   ;;  %v12243_v4 = vld [vmem:[%s17546_s4 + $0x168] ss:$16 sps:$4 sm:$0xff]  }
 0x4d7   :  { %7033 = vmatprep.subr.bf16.mxu1 %v12237_v59  ;;  %v12244_v59 = vld [vmem:[%s17546_s4 + $0x184] ss:$16 sps:$4 sm:$0xff]  }
 0x4d9   :  { %6991 = vmatpush1.bf16.msra.mxu0 %v12238_v56  ;;  %v12245_v56 = vld [vmem:[%s17546_s4 + $0x18c] ss:$16 sps:$4 sm:$0xff]  }
 0x4da   :  { %7034 = vmatpush1.bf16.msra.mxu1 %v12239_v35  ;;  %6992 = vmatprep.subr.bf16.mxu0 %v12240_v6  ;;  %v12246_v35 = vld [vmem:[%s17546_s4 + $0x180] ss:$16 sps:$4 sm:$0xff]   ;;  %v12247_v6 = vld [vmem:[%s17546_s4 + $0x188] ss:$16 sps:$4 sm:$0xff]  }
 0x4db   :  { %7035 = vmatprep.subr.bf16.mxu1 %v12241_v60  ;;  %v12248_v60 = vld [vmem:[%s17546_s4 + $0x1a4] ss:$16 sps:$4 sm:$0xff]  }
 0x4dd   :  { %6993 = vmatpush1.bf16.msra.mxu0 %v12242_v30  ;;  %v12249_v30 = vld [vmem:[%s17546_s4 + $0x1ac] ss:$16 sps:$4 sm:$0xff]  }
 0x4de   :  { %7036 = vmatpush1.bf16.msra.mxu1 %v12243_v4  ;;  %6994 = vmatprep.subr.bf16.mxu0 %v12244_v59  ;;  %v12250_v4 = vld [vmem:[%s17546_s4 + $0x1a0] ss:$16 sps:$4 sm:$0xff]   ;;  %v12251_v59 = vld [vmem:[%s17546_s4 + $0x1a8] ss:$16 sps:$4 sm:$0xff]  }
 0x4df   :  { %7037 = vmatprep.subr.bf16.mxu1 %v12245_v56  ;;  %v12252_v56 = vld [vmem:[%s17546_s4 + $0x1c4] ss:$16 sps:$4 sm:$0xff]  }
 0x4e1   :  { %6995 = vmatpush1.bf16.msra.mxu0 %v12246_v35  ;;  %v12253_v35 = vld [vmem:[%s17546_s4 + $0x1cc] ss:$16 sps:$4 sm:$0xff]  }
 0x4e2   :  { %7038 = vmatpush1.bf16.msra.mxu1 %v12247_v6  ;;  %6996 = vmatprep.subr.bf16.mxu0 %v12248_v60  ;;  %v12254_v6 = vld [vmem:[%s17546_s4 + $0x1c0] ss:$16 sps:$4 sm:$0xff]   ;;  %v12255_v60 = vld [vmem:[%s17546_s4 + $0x1c8] ss:$16 sps:$4 sm:$0xff]  }
 0x4e3   :  { %7039 = vmatprep.subr.bf16.mxu1 %v12249_v30  ;;  %v12256_v30 = vld [vmem:[%s17546_s4 + $0x1e4] ss:$16 sps:$4 sm:$0xff]  }
 0x4e5   :  { %6997 = vmatpush1.bf16.msra.mxu0 %v12250_v4  ;;  %v12257_v4 = vld [vmem:[%s17546_s4 + $0x1ec] ss:$16 sps:$4 sm:$0xff]  }
 0x4e6   :  { %7040 = vmatpush1.bf16.msra.mxu1 %v12251_v59  ;;  %6998 = vmatprep.subr.bf16.mxu0 %v12252_v56  ;;  %v12258_v59 = vld [vmem:[%s17546_s4 + $0x1e0] ss:$16 sps:$4 sm:$0xff]   ;;  %v12259_v56 = vld [vmem:[%s17546_s4 + $0x1e8] ss:$16 sps:$4 sm:$0xff]  }
 0x4e7   :  { %7041 = vmatprep.subr.bf16.mxu1 %v12253_v35  ;;  %v12260_v35 = vld [vmem:[%s17546_s4 + $0x404] ss:$16 sps:$4 sm:$0xff]  }
 0x4e9   :  { %6999 = vmatpush1.bf16.msra.mxu0 %v12254_v6  ;;  %v12261_v6 = vld [vmem:[%s17546_s4 + $0x40c] ss:$16 sps:$4 sm:$0xff]  }
 0x4ea   :  { %7042 = vmatpush1.bf16.msra.mxu1 %v12255_v60  ;;  %7000 = vmatprep.subr.bf16.mxu0 %v12256_v30  ;;  %v12262_v60 = vld [vmem:[%s17546_s4 + $0x400] ss:$16 sps:$4 sm:$0xff]   ;;  %v12263_v30 = vld [vmem:[%s17546_s4 + $0x408] ss:$16 sps:$4 sm:$0xff]  }
 0x4eb   :  { %7043 = vmatprep.subr.bf16.mxu1 %v12257_v4  ;;  %v12264_v4 = vld [vmem:[%s17546_s4 + $0x424] ss:$16 sps:$4 sm:$0xff]  }
 0x4ed   :  { %7001 = vmatpush1.bf16.msra.mxu0 %v12258_v59  ;;  %v12266_v59 = vld [vmem:[%s17546_s4 + $0x420] ss:$16 sps:$4 sm:$0xff]  }
 0x4ee   :  { %7044 = vmatpush1.bf16.msra.mxu1 %v12259_v56  ;;  %7056 = vmatprep.subr.bf16.mxu0 %v12260_v35  ;;  %v12267_v56 = vld [vmem:[%s17546_s4 + $0x428] ss:$16 sps:$4 sm:$0xff]   ;;  %v12269_v35 = vld [vmem:[%s17546_s4 + $0x44c] ss:$16 sps:$4 sm:$0xff]  }
 0x4ef   :  { %7099 = vmatprep.subr.bf16.mxu1 %v12261_v6  ;;  %v12270_v6 = vld [vmem:[%s17546_s4 + $0x440] ss:$16 sps:$4 sm:$0xff]  }
 0x4f0   :  { %7003 = vmatmul.mubr.bf16.vlgmr.msra.gmra.mrb[20].mxu0 %v15052_v41 }
 0x4f1   :  { %7046 = vmatmul.mubr.bf16.vlgmr.msra.gmra.mrb[20].mxu1 %v15052_v41  ;;  %7057 = vmatpush1.bf16.msra.mxu0 %v12262_v60  ;;  %v12265_v41 = vld [vmem:[%s17546_s4 + $0x42c] ss:$16 sps:$4 sm:$0xff]   ;;  %v12271_v60 = vld [vmem:[%s17546_s4 + $0x448] ss:$16 sps:$4 sm:$0xff]  }
 0x4f2   :  { %7088 = vmatprep.mubr.bf16.mxu0 %v15563_v63  ;;  %7100 = vmatpush1.bf16.msra.mxu1 %v12263_v30  ;;  %v12272_v30 = vld [vmem:[%s17546_s4 + $0x464] ss:$16 sps:$4 sm:$0xff]  }
 0x4f3   :  { %7131 = vmatprep.mubr.bf16.mxu1 %v15563_v63  ;;  %7058 = vmatprep.subr.bf16.mxu0 %v12264_v4  ;;  %v12268_v63 = vld [vmem:[%s17546_s4 + $0x444] ss:$16 sps:$4 sm:$0xff]   ;;  %v12273_v4 = vld [vmem:[%s17546_s4 + $0x46c] ss:$16 sps:$4 sm:$0xff]  }
 0x4f4   :  { %7101 = vmatprep.subr.bf16.mxu1 %v12265_v41  ;;  %v12274_v41 = vld [vmem:[%s17546_s4 + $0x460] ss:$16 sps:$4 sm:$0xff]  }
 0x4f5   :  { %7059 = vmatpush1.bf16.msra.mxu0 %v12266_v59  ;;  %v12275_v59 = vld [vmem:[%s17546_s4 + $0x468] ss:$16 sps:$4 sm:$0xff]  }
 0x4f6   :  { %7102 = vmatpush1.bf16.msra.mxu1 %v12267_v56  ;;  %7060 = vmatprep.subr.bf16.mxu0 %v12268_v63  ;;  %v12276_v56 = vld [vmem:[%s17546_s4 + $0x484] ss:$16 sps:$4 sm:$0xff]   ;;  %v12277_v63 = vld [vmem:[%s17546_s4 + $0x48c] ss:$16 sps:$4 sm:$0xff]  }
 0x4f7   :  { %7103 = vmatprep.subr.bf16.mxu1 %v12269_v35  ;;  %v12278_v35 = vld [vmem:[%s17546_s4 + $0x480] ss:$16 sps:$4 sm:$0xff]  }
 0x4f9   :  { %7061 = vmatpush1.bf16.msra.mxu0 %v12270_v6  ;;  %v12279_v6 = vld [vmem:[%s17546_s4 + $0x488] ss:$16 sps:$4 sm:$0xff]  }
 0x4fa   :  { %7104 = vmatpush1.bf16.msra.mxu1 %v12271_v60  ;;  %7062 = vmatprep.subr.bf16.mxu0 %v12272_v30  ;;  %v12280_v60 = vld [vmem:[%s17546_s4 + $0x4a4] ss:$16 sps:$4 sm:$0xff]   ;;  %v12281_v30 = vld [vmem:[%s17546_s4 + $0x4ac] ss:$16 sps:$4 sm:$0xff]  }
 0x4fb   :  { %7105 = vmatprep.subr.bf16.mxu1 %v12273_v4  ;;  %v12282_v4 = vld [vmem:[%s17546_s4 + $0x4a0] ss:$16 sps:$4 sm:$0xff]  }
 0x4fd   :  { %7063 = vmatpush1.bf16.msra.mxu0 %v12274_v41  ;;  %v12283_v41 = vld [vmem:[%s17546_s4 + $0x4a8] ss:$16 sps:$4 sm:$0xff]  }
 0x4fe   :  { %7106 = vmatpush1.bf16.msra.mxu1 %v12275_v59  ;;  %7064 = vmatprep.subr.bf16.mxu0 %v12276_v56  ;;  %v12284_v59 = vld [vmem:[%s17546_s4 + $0x4c4] ss:$16 sps:$4 sm:$0xff]   ;;  %v12285_v56 = vld [vmem:[%s17546_s4 + $0x4cc] ss:$16 sps:$4 sm:$0xff]  }
 0x4ff   :  { %7107 = vmatprep.subr.bf16.mxu1 %v12277_v63  ;;  %v12286_v63 = vld [vmem:[%s17546_s4 + $0x4c0] ss:$16 sps:$4 sm:$0xff]  }
 0x501   :  { %7065 = vmatpush1.bf16.msra.mxu0 %v12278_v35  ;;  %v12287_v35 = vld [vmem:[%s17546_s4 + $0x4c8] ss:$16 sps:$4 sm:$0xff]  }
 0x502   :  { %7108 = vmatpush1.bf16.msra.mxu1 %v12279_v6  ;;  %7066 = vmatprep.subr.bf16.mxu0 %v12280_v60  ;;  %v12288_v6 = vld [vmem:[%s17546_s4 + $0x4e4] ss:$16 sps:$4 sm:$0xff]   ;;  %v12289_v60 = vld [vmem:[%s17546_s4 + $0x4ec] ss:$16 sps:$4 sm:$0xff]  }
 0x503   :  { %7109 = vmatprep.subr.bf16.mxu1 %v12281_v30  ;;  %v12290_v30 = vld [vmem:[%s17546_s4 + $0x4e0] ss:$16 sps:$4 sm:$0xff]  }
 0x505   :  { %7067 = vmatpush1.bf16.msra.mxu0 %v12282_v4  ;;  %v12291_v4 = vld [vmem:[%s17546_s4 + $0x4e8] ss:$16 sps:$4 sm:$0xff]  }
 0x506   :  { %7110 = vmatpush1.bf16.msra.mxu1 %v12283_v41  ;;  %7068 = vmatprep.subr.bf16.mxu0 %v12284_v59  ;;  %v12292_v41 = vld [vmem:[%s17546_s4 + $0x504] ss:$16 sps:$4 sm:$0xff]   ;;  %v12293_v59 = vld [vmem:[%s17546_s4 + $0x50c] ss:$16 sps:$4 sm:$0xff]  }
 0x507   :  { %7111 = vmatprep.subr.bf16.mxu1 %v12285_v56  ;;  %v12294_v56 = vld [vmem:[%s17546_s4 + $0x500] ss:$16 sps:$4 sm:$0xff]  }
 0x509   :  { %7069 = vmatpush1.bf16.msra.mxu0 %v12286_v63  ;;  %v12295_v63 = vld [vmem:[%s17546_s4 + $0x508] ss:$16 sps:$4 sm:$0xff]  }
 0x50a   :  { %7112 = vmatpush1.bf16.msra.mxu1 %v12287_v35  ;;  %7070 = vmatprep.subr.bf16.mxu0 %v12288_v6  ;;  %v12296_v35 = vld [vmem:[%s17546_s4 + $0x524] ss:$16 sps:$4 sm:$0xff]   ;;  %v12297_v6 = vld [vmem:[%s17546_s4 + $0x52c] ss:$16 sps:$4 sm:$0xff]  }
 0x50b   :  { %7113 = vmatprep.subr.bf16.mxu1 %v12289_v60  ;;  %v12298_v60 = vld [vmem:[%s17546_s4 + $0x520] ss:$16 sps:$4 sm:$0xff]  }
 0x50d   :  { %7071 = vmatpush1.bf16.msra.mxu0 %v12290_v30  ;;  %v12299_v30 = vld [vmem:[%s17546_s4 + $0x528] ss:$16 sps:$4 sm:$0xff]  }
 0x50e   :  { %7114 = vmatpush1.bf16.msra.mxu1 %v12291_v4  ;;  %7072 = vmatprep.subr.bf16.mxu0 %v12292_v41  ;;  %v12300_v4 = vld [vmem:[%s17546_s4 + $0x544] ss:$16 sps:$4 sm:$0xff]   ;;  %v12301_v41 = vld [vmem:[%s17546_s4 + $0x54c] ss:$16 sps:$4 sm:$0xff]  }
 0x50f   :  { %7115 = vmatprep.subr.bf16.mxu1 %v12293_v59  ;;  %v12302_v59 = vld [vmem:[%s17546_s4 + $0x540] ss:$16 sps:$4 sm:$0xff]  }
 0x511   :  { %7073 = vmatpush1.bf16.msra.mxu0 %v12294_v56  ;;  %v12303_v56 = vld [vmem:[%s17546_s4 + $0x548] ss:$16 sps:$4 sm:$0xff]  }
 0x512   :  { %7116 = vmatpush1.bf16.msra.mxu1 %v12295_v63  ;;  %7074 = vmatprep.subr.bf16.mxu0 %v12296_v35  ;;  %v12304_v63 = vld [vmem:[%s17546_s4 + $0x564] ss:$16 sps:$4 sm:$0xff]   ;;  %v12305_v35 = vld [vmem:[%s17546_s4 + $0x56c] ss:$16 sps:$4 sm:$0xff]  }
 0x513   :  { %7117 = vmatprep.subr.bf16.mxu1 %v12297_v6  ;;  %v12306_v6 = vld [vmem:[%s17546_s4 + $0x560] ss:$16 sps:$4 sm:$0xff]  }
 0x515   :  { %7075 = vmatpush1.bf16.msra.mxu0 %v12298_v60  ;;  %v17979_v60 = vld [vmem:[#allocation51_spill] sm:$0xff] }
 0x516   :  { %7118 = vmatpush1.bf16.msra.mxu1 %v12299_v30  ;;  %7076 = vmatprep.subr.bf16.mxu0 %v12300_v4  ;;  %v17980_v30 = vld [vmem:[#allocation52_spill] sm:$0xff]  ;;  %v17981_v4 = vld [vmem:[#allocation53_spill] sm:$0xff] }
 0x517   :  { %7119 = vmatprep.subr.bf16.mxu1 %v12301_v41  ;;  %v17982_v41 = vld [vmem:[#allocation54_spill] sm:$0xff] }
 0x519   :  { %7077 = vmatpush1.bf16.msra.mxu0 %v12302_v59  ;;  %v17983_v59 = vld [vmem:[#allocation55_spill] sm:$0xff] }
 0x51a   :  { %7120 = vmatpush1.bf16.msra.mxu1 %v12303_v56  ;;  %7078 = vmatprep.subr.bf16.mxu0 %v12304_v63  ;;  %v17984_v56 = vld [vmem:[#allocation61_spill] sm:$0xff]  ;;  %v17985_v63 = vld [vmem:[#allocation62_spill] sm:$0xff] }
 0x51b   :  { %7121 = vmatprep.subr.bf16.mxu1 %v12305_v35  ;;  %v17986_v35 = vld [vmem:[#allocation63_spill] sm:$0xff] }
 0x51d   :  { %7079 = vmatpush1.bf16.msra.mxu0 %v12306_v6  ;;  %v17987_v6 = vld [vmem:[#allocation64_spill] sm:$0xff] }
 0x51e   :  { %7122 = vmatpush1.bf16.msra.mxu1 %v15420_v3  ;;  %7080 = vmatprep.subr.bf16.mxu0 %v15425_v12 }
 0x51f   :  { %7123 = vmatprep.subr.bf16.mxu1 %v15430_v2 }
 0x521   :  { %7081 = vmatpush1.bf16.msra.mxu0 %v15435_v45 }
 0x522   :  { %7124 = vmatpush1.bf16.msra.mxu1 %v15442_v39  ;;  %7082 = vmatprep.subr.bf16.mxu0 %v15447_v46 }
 0x523   :  { %7125 = vmatprep.subr.bf16.mxu1 %v15453_v50 }
 0x525   :  { %7083 = vmatpush1.bf16.msra.mxu0 %v15459_v51  ;;  %v17935_v51 = vld [vmem:[#allocation10_spill] sm:$0xff] }
 0x526   :  { %7126 = vmatpush1.bf16.msra.mxu1 %v15466_v36  ;;  %7084 = vmatprep.subr.bf16.mxu0 %v15471_v44  ;;  %v17936_v36 = vld [vmem:[#allocation11_spill] sm:$0xff]  ;;  %v17937_v44 = vld [vmem:[#allocation12_spill] sm:$0xff] }
 0x527   :  { %7127 = vmatprep.subr.bf16.mxu1 %v15477_v5  ;;  %v17938_v5 = vld [vmem:[#allocation13_spill] sm:$0xff] }
 0x529   :  { %7085 = vmatpush1.bf16.msra.mxu0 %v15483_v28  ;;  %v17939_v28 = vld [vmem:[#allocation14_spill] sm:$0xff] }
 0x52a   :  { %7128 = vmatpush1.bf16.msra.mxu1 %v15491_v57  ;;  %7086 = vmatprep.subr.bf16.mxu0 %v15496_v1  ;;  %v17940_v57 = vld [vmem:[#allocation15_spill] sm:$0xff]  ;;  %v17941_v1 = vld [vmem:[#allocation16_spill] sm:$0xff] }
 0x52b   :  { %7129 = vmatprep.subr.bf16.mxu1 %v15502_v32  ;;  %v17942_v32 = vld [vmem:[#allocation17_spill] sm:$0xff] }
 0x52d   :  { %7087 = vmatpush1.bf16.msra.mxu0 %v15509_v15  ;;  %v17943_v15 = vld [vmem:[#allocation18_spill] sm:$0xff] }
 0x52e   :  { %7130 = vmatpush1.bf16.msra.mxu1 %v15516_v18  ;;  %7150 = vmatprep.subr.bf16.mxu0 %v15521_v27  ;;  %v17944_v18 = vld [vmem:[#allocation19_spill] sm:$0xff]  ;;  %v17945_v27 = vld [vmem:[#allocation20_spill] sm:$0xff] }
 0x52f   :  { %7193 = vmatprep.subr.bf16.mxu1 %v15527_v20  ;;  %v17946_v20 = vld [vmem:[#allocation21_spill] sm:$0xff] }
 0x530   :  { %7089 = vmatmul.mubr.bf16.vlgmr.msra.gmra.mrb[20].mxu0 %v15942_v17 }
 0x531   :  { %7132 = vmatmul.mubr.bf16.vlgmr.msra.gmra.mrb[20].mxu1 %v15942_v17  ;;  %7151 = vmatpush1.bf16.msra.mxu0 %v15533_v22  ;;  %v17947_v22 = vld [vmem:[#allocation22_spill] sm:$0xff]  ;;  %v17976_v17 = vld [vmem:[#allocation49_spill] sm:$0xff] }
 0x532   :  { %7182 = vmatprep.mubr.bf16.mxu0 %v14700_v23  ;;  %7194 = vmatpush1.bf16.msra.mxu1 %v15548_v8  ;;  %v17948_v8 = vld [vmem:[#allocation23_spill] sm:$0xff] }
 0x533   :  { %7225 = vmatprep.mubr.bf16.mxu1 %v14700_v23  ;;  %7152 = vmatprep.subr.bf16.mxu0 %v15558_v29  ;;  %v17949_v29 = vld [vmem:[#allocation24_spill] sm:$0xff] }
 0x534   :  { %7195 = vmatprep.subr.bf16.mxu1 %v15568_v10  ;;  %v17950_v10 = vld [vmem:[#allocation25_spill] sm:$0xff] }
 0x535   :  { %7153 = vmatpush1.bf16.msra.mxu0 %v15575_v34  ;;  %v17951_v34 = vld [vmem:[#allocation56_spill] sm:$0xff] }
 0x536   :  { %7196 = vmatpush1.bf16.msra.mxu1 %v15582_v38  ;;  %7154 = vmatprep.subr.bf16.mxu0 %v15587_v58  ;;  %v17952_v38 = vld [vmem:[#allocation26_spill] sm:$0xff]  ;;  %v17953_v58 = vld [vmem:[#allocation27_spill] sm:$0xff] }
 0x537   :  { %7197 = vmatprep.subr.bf16.mxu1 %v15594_v7  ;;  %v17954_v7 = vld [vmem:[#allocation28_spill] sm:$0xff] }
 0x539   :  { %7155 = vmatpush1.bf16.msra.mxu0 %v15601_v52  ;;  %v17955_v52 = vld [vmem:[#allocation29_spill] sm:$0xff] }
 0x53a   :  { %7198 = vmatpush1.bf16.msra.mxu1 %v15608_v54  ;;  %7156 = vmatprep.subr.bf16.mxu0 %v15613_v49  ;;  %v17956_v54 = vld [vmem:[#allocation30_spill] sm:$0xff]  ;;  %v17957_v49 = vld [vmem:[#allocation31_spill] sm:$0xff] }
 0x53b   :  { %7199 = vmatprep.subr.bf16.mxu1 %v15619_v16  ;;  %v17958_v16 = vld [vmem:[#allocation32_spill] sm:$0xff] }
 0x53d   :  { %7157 = vmatpush1.bf16.msra.mxu0 %v15625_v25  ;;  %v17959_v25 = vld [vmem:[#allocation33_spill] sm:$0xff] }
 0x53e   :  { %7200 = vmatpush1.bf16.msra.mxu1 %v15632_v11  ;;  %7158 = vmatprep.subr.bf16.mxu0 %v15637_v0  ;;  %v17960_v11 = vld [vmem:[#allocation34_spill] sm:$0xff]  ;;  %v17961_v0 = vld [vmem:[#allocation35_spill] sm:$0xff] }
 0x53f   :  { %7201 = vmatprep.subr.bf16.mxu1 %v15643_v9  ;;  %v17962_v9 = vld [vmem:[#allocation36_spill] sm:$0xff] }
 0x541   :  { %7159 = vmatpush1.bf16.msra.mxu0 %v15649_v13  ;;  %v17963_v13 = vld [vmem:[#allocation37_spill] sm:$0xff] }
 0x542   :  { %7202 = vmatpush1.bf16.msra.mxu1 %v15656_v48  ;;  %7160 = vmatprep.subr.bf16.mxu0 %v15661_v47  ;;  %v17964_v48 = vld [vmem:[#allocation38_spill] sm:$0xff]  ;;  %v17965_v47 = vld [vmem:[#allocation39_spill] sm:$0xff] }
 0x543   :  { %v16896_v23 = vpop.f32.mrb[16].mxu0  ;;  %7203 = vmatprep.subr.bf16.mxu1 %v15667_v53  ;;  %v17966_v53 = vld [vmem:[#allocation40_spill] sm:$0xff] }
 0x544   :  { %v16899_v3 = vpop.f32.mrb[16].mxu1  ;;  %v16901_v12 = vpop.f32.mrb[17].mxu0 }
 0x545   :  { %v16903_v2 = vpop.f32.mrb[17].mxu1  ;;  %v16905_v45 = vpop.f32.mrb[18].mxu0  ;;  %7161 = vmatpush1.bf16.msra.mxu0 %v15673_v61  ;;  %v17967_v61 = vld [vmem:[#allocation41_spill] sm:$0xff] }
 0x546   :  { %v16908_v39 = vpop.f32.mrb[18].mxu1  ;;  %7204 = vmatpush1.bf16.msra.mxu1 %v15680_v40  ;;  %v16911_v46 = vpop.f32.mrb[19].mxu0  ;;  %7162 = vmatprep.subr.bf16.mxu0 %v15685_v19  ;;  %v17968_v40 = vld [vmem:[#allocation42_spill] sm:$0xff]  ;;  %v17969_v19 = vld [vmem:[#allocation43_spill] sm:$0xff] }
 0x547   :  { %v16914_v50 = vpop.f32.mrb[19].mxu1  ;;  %7205 = vmatprep.subr.bf16.mxu1 %v15691_v55  ;;  %v17970_v55 = vld [vmem:[#allocation9_spill] sm:$0xff] }
 0x549   :  { %7163 = vmatpush1.bf16.msra.mxu0 %v15697_v62  ;;  %v17971_v62 = vld [vmem:[#allocation44_spill] sm:$0xff] }
 0x54a   :  { %7206 = vmatpush1.bf16.msra.mxu1 %v15704_v42  ;;  %7164 = vmatprep.subr.bf16.mxu0 %v15709_v31  ;;  %v17972_v42 = vld [vmem:[#allocation45_spill] sm:$0xff]  ;;  %v17973_v31 = vld [vmem:[#allocation46_spill] sm:$0xff] }
 0x54b   :  { %7207 = vmatprep.subr.bf16.mxu1 %v15715_v33  ;;  %v17974_v33 = vld [vmem:[#allocation47_spill] sm:$0xff] }
 0x54d   :  { %7165 = vmatpush1.bf16.msra.mxu0 %v15721_v14  ;;  %v17975_v14 = vld [vmem:[#allocation48_spill] sm:$0xff] }
 0x54e   :  { %7208 = vmatpush1.bf16.msra.mxu1 %v17935_v51  ;;  %7166 = vmatprep.subr.bf16.mxu0 %v17936_v36  ;;  %v17988_v51 = vld [vmem:[#allocation65_spill] sm:$0xff]  ;;  %v17989_v36 = vld [vmem:[#allocation66_spill] sm:$0xff] }
 0x54f   :  { %7209 = vmatprep.subr.bf16.mxu1 %v17937_v44  ;;  %v17990_v44 = vld [vmem:[#allocation67_spill] sm:$0xff] }
 0x551   :  { %7167 = vmatpush1.bf16.msra.mxu0 %v17938_v5  ;;  %v17991_v5 = vld [vmem:[#allocation68_spill] sm:$0xff] }
 0x552   :  { %7210 = vmatpush1.bf16.msra.mxu1 %v17939_v28  ;;  %7168 = vmatprep.subr.bf16.mxu0 %v17940_v57  ;;  %v17992_v28 = vld [vmem:[#allocation69_spill] sm:$0xff]  ;;  %v17993_v57 = vld [vmem:[#allocation70_spill] sm:$0xff] }
 0x553   :  { %7211 = vmatprep.subr.bf16.mxu1 %v17941_v1  ;;  %v17994_v1 = vld [vmem:[#allocation71_spill] sm:$0xff] }
 0x555   :  { %7169 = vmatpush1.bf16.msra.mxu0 %v17942_v32  ;;  %v17995_v32 = vld [vmem:[#allocation72_spill] sm:$0xff] }
 0x556   :  { %7212 = vmatpush1.bf16.msra.mxu1 %v17943_v15  ;;  %7170 = vmatprep.subr.bf16.mxu0 %v17944_v18  ;;  %v17996_v15 = vld [vmem:[#allocation73_spill] sm:$0xff]  ;;  %v17997_v18 = vld [vmem:[#allocation74_spill] sm:$0xff] }
 0x557   :  { %7213 = vmatprep.subr.bf16.mxu1 %v17945_v27  ;;  %v17998_v27 = vld [vmem:[#allocation75_spill] sm:$0xff] }
 0x559   :  { %7171 = vmatpush1.bf16.msra.mxu0 %v17946_v20  ;;  %v17999_v20 = vld [vmem:[#allocation76_spill] sm:$0xff] }
 0x55a   :  { %7214 = vmatpush1.bf16.msra.mxu1 %v17947_v22  ;;  %7172 = vmatprep.subr.bf16.mxu0 %v17948_v8  ;;  %v18000_v22 = vld [vmem:[#allocation77_spill] sm:$0xff]  ;;  %v18001_v8 = vld [vmem:[#allocation78_spill] sm:$0xff] }
 0x55b   :  { %7215 = vmatprep.subr.bf16.mxu1 %v17949_v29  ;;  %v18002_v29 = vld [vmem:[#allocation79_spill] sm:$0xff] }
 0x55d   :  { %7173 = vmatpush1.bf16.msra.mxu0 %v17950_v10  ;;  %v18003_v10 = vld [vmem:[#allocation80_spill] sm:$0xff] }
 0x55e   :  { %7216 = vmatpush1.bf16.msra.mxu1 %v17951_v34  ;;  %7174 = vmatprep.subr.bf16.mxu0 %v17952_v38  ;;  %v18004_v34 = vld [vmem:[#allocation81_spill] sm:$0xff]  ;;  %v18005_v38 = vld [vmem:[#allocation82_spill] sm:$0xff] }
 0x55f   :  { %7217 = vmatprep.subr.bf16.mxu1 %v17953_v58  ;;  %v18006_v58 = vld [vmem:[#allocation83_spill] sm:$0xff] }
 0x561   :  { %7175 = vmatpush1.bf16.msra.mxu0 %v17954_v7  ;;  %v18007_v7 = vld [vmem:[#allocation84_spill] sm:$0xff] }
 0x562   :  { %7218 = vmatpush1.bf16.msra.mxu1 %v17955_v52  ;;  %7176 = vmatprep.subr.bf16.mxu0 %v17956_v54  ;;  %v18008_v52 = vld [vmem:[#allocation85_spill] sm:$0xff]  ;;  %v18009_v54 = vld [vmem:[#allocation86_spill] sm:$0xff] }
 0x563   :  { %7219 = vmatprep.subr.bf16.mxu1 %v17957_v49  ;;  %v18010_v49 = vld [vmem:[#allocation87_spill] sm:$0xff] }
 0x565   :  { %7177 = vmatpush1.bf16.msra.mxu0 %v17958_v16  ;;  %v18011_v16 = vld [vmem:[#allocation88_spill] sm:$0xff] }
 0x566   :  { %7220 = vmatpush1.bf16.msra.mxu1 %v17959_v25  ;;  %7178 = vmatprep.subr.bf16.mxu0 %v17960_v11  ;;  %v18012_v25 = vld [vmem:[#allocation89_spill] sm:$0xff]  ;;  %v18013_v11 = vld [vmem:[#allocation90_spill] sm:$0xff] }
 0x567   :  { %7221 = vmatprep.subr.bf16.mxu1 %v17961_v0  ;;  %v18014_v0 = vld [vmem:[#allocation91_spill] sm:$0xff] }
 0x569   :  { %7179 = vmatpush1.bf16.msra.mxu0 %v17962_v9  ;;  %v18015_v9 = vld [vmem:[#allocation92_spill] sm:$0xff] }
 0x56a   :  { %7222 = vmatpush1.bf16.msra.mxu1 %v17963_v13  ;;  %7180 = vmatprep.subr.bf16.mxu0 %v17964_v48  ;;  %v18016_v13 = vld [vmem:[#allocation93_spill] sm:$0xff]  ;;  %v18017_v48 = vld [vmem:[#allocation94_spill] sm:$0xff] }
 0x56b   :  { %7223 = vmatprep.subr.bf16.mxu1 %v17965_v47  ;;  %v18018_v47 = vld [vmem:[#allocation95_spill] sm:$0xff] }
 0x56d   :  { %7181 = vmatpush1.bf16.msra.mxu0 %v17966_v53  ;;  %v18019_v53 = vld [vmem:[#allocation96_spill] sm:$0xff] }
 0x56e   :  { %7224 = vmatpush1.bf16.msra.mxu1 %v15920_v37  ;;  %7266 = vmatprep.subr.bf16.mxu0 %v17967_v61  ;;  %v17977_v37 = vld [vmem:[#allocation50_spill] sm:$0xff]  ;;  %v18020_v61 = vld [vmem:[#allocation97_spill] sm:$0xff] }
 0x56f   :  { %7309 = vmatprep.subr.bf16.mxu1 %v17968_v40  ;;  %v18021_v40 = vld [vmem:[#allocation98_spill] sm:$0xff] }
 0x570   :  { %7183 = vmatmul.mubr.bf16.vlgmr.msra.gmra.mrb[20].mxu0 %v14702_v24 }
 0x571   :  { %7226 = vmatmul.mubr.bf16.vlgmr.msra.gmra.mrb[20].mxu1 %v14702_v24  ;;  %7267 = vmatpush1.bf16.msra.mxu0 %v17969_v19  ;;  %v17978_v24 = vld [vmem:[#allocation7_spill] sm:$0xff] }
 0x572   :  { %7298 = vmatprep.mubr.bf16.mxu0 %v17970_v55  ;;  %7310 = vmatpush1.bf16.msra.mxu1 %v17971_v62  ;;  %v18022_v19 = vld [vmem:[#allocation99_spill] sm:$0xff]  ;;  %v18024_v62 = vld [vmem:[#allocation101_spill] sm:$0xff] }
 0x573   :  { %7341 = vmatprep.mubr.bf16.mxu1 %v17970_v55  ;;  %7268 = vmatprep.subr.bf16.mxu0 %v17972_v42  ;;  %v18023_v55 = vld [vmem:[#allocation100_spill] sm:$0xff]  ;;  %v18025_v42 = vld [vmem:[#allocation102_spill] sm:$0xff] }
 0x574   :  { %7311 = vmatprep.subr.bf16.mxu1 %v17973_v31  ;;  %v18026_v31 = vld [vmem:[#allocation103_spill] sm:$0xff] }
 0x575   :  { %7269 = vmatpush1.bf16.msra.mxu0 %v17974_v33  ;;  %v11758_v33 = vld [vmem:[%s17549_s7 + $0xc0] sm:$0xff]  }
 0x576   :  { %7312 = vmatpush1.bf16.msra.mxu1 %v17975_v14  ;;  %7270 = vmatprep.subr.bf16.mxu0 %v17976_v17  ;;  %v18027_v14 = vld [vmem:[#allocation104_spill] sm:$0xff]  ;;  %v11759_v17 = vld [vmem:[%s17549_s7 + $0x80] sm:$0xff]  }
 0x577   :  { %7313 = vmatprep.subr.bf16.mxu1 %v17977_v37  ;;  %v18028_v37 = vld [vmem:[#allocation105_spill] sm:$0xff] }
 0x579   :  { %7271 = vmatpush1.bf16.msra.mxu0 %v17978_v24  ;;  %v11764_v24 = vld [vmem:[%s17549_s7 + $0x48] sm:$0xff]  }
 0x57a   :  { %7314 = vmatpush1.bf16.msra.mxu1 %v17979_v60  ;;  %7272 = vmatprep.subr.bf16.mxu0 %v17980_v30  ;;  %v18029_v60 = vld [vmem:[#allocation8_spill] sm:$0xff] }
 0x57b   :  { %7315 = vmatprep.subr.bf16.mxu1 %v17981_v4  ;;  %v11763_v30 = vld [vmem:[%s17549_s7 + $0x88] sm:$0xff]  }
 0x57c   :  { %v11765_v4 = vld [vmem:[%s17549_s7 + $0x8] sm:$0xff]  }
 0x57d   :  { %7273 = vmatpush1.bf16.msra.mxu0 %v17982_v41  ;;  %v11766_v41 = vld [vmem:[%s17549_s7 + $0xd0] sm:$0xff]  }
 0x57e   :  { %7316 = vmatpush1.bf16.msra.mxu1 %v17983_v59  ;;  %7274 = vmatprep.subr.bf16.mxu0 %v17984_v56  ;;  %v11768_v59 = vld [vmem:[%s17549_s7 + $0x50] sm:$0xff]  }
 0x57f   :  { %7317 = vmatprep.subr.bf16.mxu1 %v17985_v63  ;;  %v11767_v56 = vld [vmem:[%s17549_s7 + $0x90] sm:$0xff]  }
 0x580   :  { %v11769_v63 = vld [vmem:[%s17549_s7 + $0x10] sm:$0xff]  }
 0x581   :  { %7275 = vmatpush1.bf16.msra.mxu0 %v17986_v35  ;;  %v11770_v35 = vld [vmem:[%s17549_s7 + $0xd8] sm:$0xff]  }
 0x582   :  { %7318 = vmatpush1.bf16.msra.mxu1 %v17987_v6  ;;  %7276 = vmatprep.subr.bf16.mxu0 %v17988_v51  ;;  %v11771_v6 = vld [vmem:[%s17549_s7 + $0x98] sm:$0xff]  }
 0x583   :  { %7319 = vmatprep.subr.bf16.mxu1 %v17989_v36  ;;  %v11772_v51 = vld [vmem:[%s17549_s7 + $0x58] sm:$0xff]  }
 0x584   :  { %v11773_v36 = vld [vmem:[%s17549_s7 + $0x18] sm:$0xff]  }
 0x585   :  { %7277 = vmatpush1.bf16.msra.mxu0 %v17990_v44  ;;  %v11774_v44 = vld [vmem:[%s17549_s7 + $0xe0] sm:$0xff]  }
 0x586   :  { %7320 = vmatpush1.bf16.msra.mxu1 %v17991_v5  ;;  %7278 = vmatprep.subr.bf16.mxu0 %v17992_v28  ;;  %v11775_v5 = vld [vmem:[%s17549_s7 + $0xa0] sm:$0xff]  }
 0x587   :  { %7321 = vmatprep.subr.bf16.mxu1 %v17993_v57  ;;  %v11776_v28 = vld [vmem:[%s17549_s7 + $0x60] sm:$0xff]  }
 0x588   :  { %v11777_v57 = vld [vmem:[%s17549_s7 + $0x20] sm:$0xff]  }
 0x589   :  { %7279 = vmatpush1.bf16.msra.mxu0 %v17994_v1  ;;  %v11778_v1 = vld [vmem:[%s17549_s7 + $0xe8] sm:$0xff]  }
 0x58a   :  { %7322 = vmatpush1.bf16.msra.mxu1 %v17995_v32  ;;  %7280 = vmatprep.subr.bf16.mxu0 %v17996_v15  ;;  %v11779_v32 = vld [vmem:[%s17549_s7 + $0xa8] sm:$0xff]  }
 0x58b   :  { %7323 = vmatprep.subr.bf16.mxu1 %v17997_v18  ;;  %v11780_v15 = vld [vmem:[%s17549_s7 + $0x68] sm:$0xff]  }
 0x58c   :  { %v11781_v18 = vld [vmem:[%s17549_s7 + $0x28] sm:$0xff]  }
 0x58d   :  { %7281 = vmatpush1.bf16.msra.mxu0 %v17998_v27  ;;  %v11782_v27 = vld [vmem:[%s17549_s7 + $0xf0] sm:$0xff]  }
 0x58e   :  { %7324 = vmatpush1.bf16.msra.mxu1 %v17999_v20  ;;  %7282 = vmatprep.subr.bf16.mxu0 %v18000_v22  ;;  %v11784_v20 = vld [vmem:[%s17549_s7 + $0x70] sm:$0xff]  }
 0x58f   :  { %7325 = vmatprep.subr.bf16.mxu1 %v18001_v8  ;;  %v11783_v22 = vld [vmem:[%s17549_s7 + $0xb0] sm:$0xff]   ;;  %v11786_v8 = vld [vmem:[%s17549_s7 + $0xf8] sm:$0xff]  }
 0x591   :  { %7283 = vmatpush1.bf16.msra.mxu0 %v18002_v29  ;;  %v11785_v29 = vld [vmem:[%s17549_s7 + $0x30] sm:$0xff]  }
 0x592   :  { %7326 = vmatpush1.bf16.msra.mxu1 %v18003_v10  ;;  %7284 = vmatprep.subr.bf16.mxu0 %v18004_v34  ;;  %v11788_v10 = vld [vmem:[%s17549_s7 + $0x78] sm:$0xff]  }
 0x593   :  { %7327 = vmatprep.subr.bf16.mxu1 %v18005_v38  ;;  %v11787_v34 = vld [vmem:[%s17549_s7 + $0xb8] sm:$0xff]   ;;  %v11790_v38 = vld [vmem:[%s17549_s7 + $0x140] sm:$0xff]  }
 0x595   :  { %7285 = vmatpush1.bf16.msra.mxu0 %v18006_v58  ;;  %v11789_v58 = vld [vmem:[%s17549_s7 + $0x38] sm:$0xff]  }
 0x596   :  { %7328 = vmatpush1.bf16.msra.mxu1 %v18007_v7  ;;  %7286 = vmatprep.subr.bf16.mxu0 %v18008_v52  ;;  %v11792_v7 = vld [vmem:[%s17549_s7 + $0x1c0] sm:$0xff]  }
 0x597   :  { %7329 = vmatprep.subr.bf16.mxu1 %v18009_v54  ;;  %v4317_v52 = vld [vmem:[%s17547_s5] sm:$0xf] }
 0x598   :  { %v4318_v54 = vld [vmem:[%s17548_s6] sm:$0xf] }
 0x599   :  { %7287 = vmatpush1.bf16.msra.mxu0 %v18010_v49  ;;  %v18030_v49 = vld [vmem:[#allocation57_spill] sm:$0xff] }
 0x59a   :  { %7330 = vmatpush1.bf16.msra.mxu1 %v18011_v16  ;;  %7288 = vmatprep.subr.bf16.mxu0 %v18012_v25  ;;  %v6830_v16 = vrot.slane %v4317_v52, %v18030_v49  ;;  %v18031_v25 = vld [vmem:[#allocation58_spill] sm:$0xff] }
 0x59b   :  { %7331 = vmatprep.subr.bf16.mxu1 %v18013_v11  ;;  %v6838_v11 = vrot.slane %v4317_v52, %v18031_v25 }
 0x59d   :  { %7289 = vmatpush1.bf16.msra.mxu0 %v18014_v0  ;;  %v18032_v0 = vld [vmem:[#allocation59_spill] sm:$0xff] }
 0x59e   :  { %7332 = vmatpush1.bf16.msra.mxu1 %v18015_v9  ;;  %7290 = vmatprep.subr.bf16.mxu0 %v18016_v13  ;;  %v6834_v9 = vrot.slane %v4317_v52, %v18032_v0  ;;  %v18033_v13 = vld [vmem:[#allocation60_spill] sm:$0xff] }
 0x59f   :  { %7333 = vmatprep.subr.bf16.mxu1 %v18017_v48  ;;  %v6842_v48 = vrot.slane %v4317_v52, %v18033_v13 }
 0x5a1   :  { %7291 = vmatpush1.bf16.msra.mxu0 %v18018_v47  ;;  %v6859_v47 = vrot.slane %v4318_v54, %v18030_v49 }
 0x5a2   :  { %7334 = vmatpush1.bf16.msra.mxu1 %v18019_v53  ;;  %7292 = vmatprep.subr.bf16.mxu0 %v18020_v61  ;;  %v6847_v53 = vmul.f32 %v6830_v16, %v16896_v23  ;;  %v6849_v61 = vmul.f32 %v6838_v11, %v16899_v3 }
 0x5a3   :  { %7335 = vmatprep.subr.bf16.mxu1 %v18021_v40  ;;  %v6867_v40 = vrot.slane %v4318_v54, %v18031_v25 }
 0x5a5   :  { %7293 = vmatpush1.bf16.msra.mxu0 %v18022_v19  ;;  %v6863_v19 = vrot.slane %v4318_v54, %v18032_v0  ;;  %v6878_v23 = vadd.f32 %v6867_v40, %v6849_v61 }
 0x5a6   :  { %7336 = vmatpush1.bf16.msra.mxu1 %v16264_v43  ;;  %7294 = vmatprep.subr.bf16.mxu0 %v18023_v55  ;;  %v11760_v43 = vld [vmem:[%s17549_s7 + $0x40] sm:$0xff]   ;;  %v6848_v55 = vmul.f32 %v6834_v9, %v16901_v12 }
 0x5a7   :  { %7337 = vmatprep.subr.bf16.mxu1 %v18024_v62  ;;  %v6850_v62 = vmul.f32 %v6842_v48, %v16903_v2  ;;  %v6854_v2 = vmul.f32 %v6842_v48, %v16914_v50 }
 0x5a8   :  { %v6877_v3 = vadd.f32 %v6863_v19, %v6848_v55 }
 0x5a9   :  { %7295 = vmatpush1.bf16.msra.mxu0 %v18025_v42  ;;  %v6871_v42 = vrot.slane %v4318_v54, %v18033_v13 }
 0x5aa   :  { %7338 = vmatpush1.bf16.msra.mxu1 %v16288_v26  ;;  %7296 = vmatprep.subr.bf16.mxu0 %v18026_v31  ;;  %v11761_v26 = vld [vmem:[%s17549_s7] sm:$0xff]   ;;  %v6851_v31 = vmul.f32 %v6830_v16, %v16905_v45 }
 0x5ab   :  { %7339 = vmatprep.subr.bf16.mxu1 %v16299_v21  ;;  %v11762_v21 = vld [vmem:[%s17549_s7 + $0xc8] sm:$0xff]  }
 0x5ad   :  { %7297 = vmatpush1.bf16.msra.mxu0 %v18027_v14  ;;  %v6876_v14 = vadd.f32 %v6859_v47, %v6847_v53 }
 0x5ae   :  { %7340 = vmatpush1.bf16.msra.mxu1 %v18028_v37  ;;  %10428 = vmatprep.subr.bf16.mxu0 %v11758_v33  ;;  %v6853_v33 = vmul.f32 %v6838_v11, %v16908_v39  ;;  %v6879_v37 = vadd.f32 %v6871_v42, %v6850_v62 }
 0x5af   :  { %10450 = vmatprep.subr.bf16.mxu1 %v11760_v43  ;;  %v6852_v43 = vmul.f32 %v6834_v9, %v16911_v46 }
 0x5b0   :  { %7299 = vmatmul.mubr.bf16.vlgmr.msra.gmra.mrb[20].mxu0 %v18029_v60  ;;  %v6882_v12 = vadd.f32 %v6867_v40, %v6853_v33 }
 0x5b1   :  { %7342 = vmatmul.mubr.bf16.vlgmr.msra.gmra.mrb[20].mxu1 %v18029_v60  ;;  %10429 = vmatpush3.bf16.msra.mxu0 %v11759_v17 }
 0x5b2   :  { %10451 = vmatpush3.bf16.msra.mxu1 %v11761_v26  ;;  %10430 = vmatprep.subr.bf16.mxu0 %v11762_v21  ;;  %v6880_v26 = vadd.f32 %v6859_v47, %v6851_v31 }
 0x5b3   :  { %10452 = vmatprep.subr.bf16.mxu1 %v11764_v24 }
 0x5b5   :  { %10431 = vmatpush3.bf16.msra.mxu0 %v11763_v30 }
 0x5b6   :  { %10453 = vmatpush3.bf16.msra.mxu1 %v11765_v4  ;;  %10432 = vmatprep.subr.bf16.mxu0 %v11766_v41 }
 0x5b7   :  { %10454 = vmatprep.subr.bf16.mxu1 %v11768_v59  ;;  %v6881_v59 = vadd.f32 %v6863_v19, %v6852_v43 }
 0x5b9   :  { %10433 = vmatpush3.bf16.msra.mxu0 %v11767_v56 }
 0x5ba   :  { %10455 = vmatpush3.bf16.msra.mxu1 %v11769_v63  ;;  %10434 = vmatprep.subr.bf16.mxu0 %v11770_v35 }
 0x5bb   :  { %10456 = vmatprep.subr.bf16.mxu1 %v11772_v51 }
 0x5bd   :  { %10435 = vmatpush3.bf16.msra.mxu0 %v11771_v6 }
 0x5be   :  { %10457 = vmatpush3.bf16.msra.mxu1 %v11773_v36  ;;  %10436 = vmatprep.subr.bf16.mxu0 %v11774_v44 }
 0x5bf   :  { %10458 = vmatprep.subr.bf16.mxu1 %v11776_v28 }
 0x5c1   :  { %10437 = vmatpush3.bf16.msra.mxu0 %v11775_v5 }
 0x5c2   :  { %10459 = vmatpush3.bf16.msra.mxu1 %v11777_v57  ;;  %10438 = vmatprep.subr.bf16.mxu0 %v11778_v1 }
 0x5c3   :  { %10460 = vmatprep.subr.bf16.mxu1 %v11780_v15 }
 0x5c5   :  { %10439 = vmatpush3.bf16.msra.mxu0 %v11779_v32 }
 0x5c6   :  { %10440 = vmatprep.subr.bf16.mxu0 %v11782_v27  ;;  %10461 = vmatpush3.bf16.msra.mxu1 %v11781_v18 }
 0x5c7   :  { %10462 = vmatprep.subr.bf16.mxu1 %v11784_v20  ;;  %v6883_v20 = vadd.f32 %v6871_v42, %v6854_v2 }
 0x5c9   :  { %10441 = vmatpush3.bf16.msra.mxu0 %v11783_v22 }
 0x5ca   :  { %10442 = vmatprep.subr.bf16.mxu0 %v11786_v8  ;;  %10463 = vmatpush3.bf16.msra.mxu1 %v11785_v29 }
 0x5cb   :  { %10464 = vmatprep.subr.bf16.mxu1 %v11788_v10 }
 0x5cd   :  { %10443 = vmatpush3.bf16.msra.mxu0 %v11787_v34 }
 0x5ce   :  { %10472 = vmatprep.subr.bf16.mxu0 %v11790_v38  ;;  %10465 = vmatpush3.bf16.msra.mxu1 %v11789_v58 }
 0x5cf   :  { %10494 = vmatprep.subr.bf16.mxu1 %v11792_v7 }
 0x683   :  { %v7300_v17 = vpop.f32.mrb[20].mxu0 }
 0x684   :  { %v7360_v21 = vmul.f32 %v7300_v17, %v6830_v16  ;;  %v7343_v24 = vpop.f32.mrb[20].mxu1  ;;  %v7302_v60 = vpop.f32.mrb[21].mxu0 }
 0x685   :  { %v7362_v30 = vmul.f32 %v7343_v24, %v6838_v11  ;;  %v7361_v4 = vmul.f32 %v7302_v60, %v6834_v9  ;;  %v7345_v41 = vpop.f32.mrb[21].mxu1  ;;  %v7304_v45 = vpop.f32.mrb[22].mxu0 }
 0x686   :  { %v7368_v39 = vadd.f32 %v7360_v21, %v6859_v47  ;;  %v7363_v56 = vmul.f32 %v7345_v41, %v6842_v48  ;;  %v7364_v46 = vmul.f32 %v7304_v45, %v6830_v16  ;;  %v7347_v63 = vpop.f32.mrb[22].mxu1  ;;  %v7306_v35 = vpop.f32.mrb[23].mxu0  ;;  %v11791_v21 = vld [vmem:[%s17549_s7 + $0x100] sm:$0xff]  }
 0x687   :  { %v7370_v6 = vadd.f32 %v7362_v30, %v6867_v40  ;;  %v7369_v51 = vadd.f32 %v7361_v4, %v6863_v19  ;;  %v7366_v36 = vmul.f32 %v7347_v63, %v6838_v11  ;;  %v7365_v44 = vmul.f32 %v7306_v35, %v6834_v9  ;;  %v7349_v5 = vpop.f32.mrb[23].mxu1 }
 0x688   :  { %v7376_v28 = vmax.f32 %v6876_v14, %v7368_v39  ;;  %v7371_v57 = vadd.f32 %v7363_v56, %v6871_v42  ;;  %v7372_v1 = vadd.f32 %v7364_v46, %v6859_v47  ;;  %v7367_v32 = vmul.f32 %v7349_v5, %v6842_v48  ;;  %v11793_v39 = vld [vmem:[%s17549_s7 + $0x180] sm:$0xff]   ;;  %v11794_v56 = vld [vmem:[%s17549_s7 + $0x148] sm:$0xff]  }
 0x689   :  { %v7378_v50 = vmax.f32 %v6878_v23, %v7370_v6  ;;  %v7377_v15 = vmax.f32 %v6877_v3, %v7369_v51  ;;  %v7374_v18 = vadd.f32 %v7366_v36, %v6867_v40  ;;  %v7373_v27 = vadd.f32 %v7365_v44, %v6863_v19  ;;  %v11796_v6 = vld [vmem:[%s17549_s7 + $0x1c8] sm:$0xff]  }
 0x68a   :  { %v7379_v22 = vmax.f32 %v6879_v37, %v7371_v57  ;;  %v7380_v8 = vmax.f32 %v6880_v26, %v7372_v1  ;;  %v7375_v29 = vadd.f32 %v7367_v32, %v6871_v42 }
 0x68b   :  { %v7384_v10 = vmax.f32 %v7376_v28, %v7378_v50  ;;  %v7382_v34 = vmax.f32 %v6882_v12, %v7374_v18  ;;  %v7381_v38 = vmax.f32 %v6881_v59, %v7373_v27  ;;  %v11795_v28 = vld [vmem:[%s17549_s7 + $0x108] sm:$0xff]   ;;  %v11798_v50 = vld [vmem:[%s17549_s7 + $0x150] sm:$0xff]  }
 0x68c   :  { %v7385_v58 = vmax.f32 %v7377_v15, %v7379_v22  ;;  %v7383_v7 = vmax.f32 %v6883_v20, %v7375_v29  ;;  %v11797_v22 = vld [vmem:[%s17549_s7 + $0x188] sm:$0xff]   ;;  %v11800_v29 = vld [vmem:[%s17549_s7 + $0x1d0] sm:$0xff]  }
 0x68d   :  { %v7388_v52 = vmax.f32 %v7384_v10, 0.0  ;;  %v7386_v54 = vmax.f32 %v7380_v8, %v7382_v34 }
 0x68e   :  { %v7389_v49 = vmax.f32 %v7385_v58, 0.0  ;;  %v7387_v16 = vmax.f32 %v7381_v38, %v7383_v7  ;;  %v11799_v58 = vld [vmem:[%s17549_s7 + $0x110] sm:$0xff]  }
 0x68f   :  { %v7392_v25 = vpack.c.bf16 %v7388_v52, %v7388_v52  ;;  %v7390_v11 = vmax.f32 %v7386_v54, 0.0 }
 0x690   :  { %v7393_v0 = vpack.c.bf16 %v7389_v49, %v7389_v49  ;;  %v7391_v9 = vmax.f32 %v7387_v16, 0.0  ;;  %v11802_v16 = vld [vmem:[%s17549_s7 + $0x158] sm:$0xff]  }
 0x691   :  { %v17149_v13 = vunpack.c.l.b16 %v7392_v25  ;;  %v7394_v48 = vpack.c.bf16 %v7390_v11, %v7390_v11 }
 0x692   :  { %v17151_v47 = vunpack.c.l.b16 %v7393_v0  ;;  %v7395_v53 = vpack.c.bf16 %v7391_v9, %v7391_v9  ;;  %v11801_v9 = vld [vmem:[%s17549_s7 + $0x190] sm:$0xff]  }
 0x693   :  { %v17153_v61 = vunpack.c.l.b16 %v7394_v48  ;;  %v7469_v40 = vrot.slane %v17149_v13, 1  ;;  %v7791_v62 = vrot.slane %v17149_v13, 2  ;;  %v7971_v42 = vrot.slane %v17149_v13, 3 }
 0x694   :  { %v17156_v19 = vunpack.c.l.b16 %v7395_v53  ;;  %v7472_v55 = vrot.slane %v17151_v47, 1  ;;  %v7794_v33 = vrot.slane %v17151_v47, 2  ;;  %v7974_v37 = vrot.slane %v17151_v47, 3  ;;  %v11804_v53 = vld [vmem:[%s17549_s7 + $0x1d8] sm:$0xff]  }
 0x695   :  { %v7471_v31 = vsel %vm7470_vm2, %v17153_v61, %v7469_v40  ;;  %v7614_v43 = vrot.slane %v17153_v61, 7  ;;  %v7792_v14 = vrot.slane %v17153_v61, 1  ;;  %v8154_v41 = vrot.slane %v17151_v47, 4  ;;  %v11806_v40 = vld [vmem:[%s17549_s7 + $0x160] sm:$0xff]  }
 0x696   :  { %v7473_v23 = vsel %vm7470_vm2, %v17156_v19, %v7472_v55  ;;  %v7616_v17 = vrot.slane %v17156_v19, 7  ;;  %v7795_v3 = vrot.slane %v17156_v19, 1  ;;  %v7975_v60 = vrot.slane %v17156_v19, 2  ;;  %v11808_v55 = vld [vmem:[%s17549_s7 + $0x1e0] sm:$0xff]  }
 0x697   :  { %v7475_v26 = vpack.c.b16 %v7473_v23, %v7473_v23  ;;  %v7615_v24 = vsel %vm7470_vm2, %v7614_v43, %v17149_v13  ;;  %v17178_v12 = vsel %vm7470_vm2, %v7792_v14, %v7791_v62  ;;  %v7474_v2 = vpack.c.b16 %v7471_v31, %v7471_v31  ;;  %v11807_v62 = vld [vmem:[%s17549_s7 + $0x120] sm:$0xff]   ;;  %v11811_v43 = vld [vmem:[%s17549_s7 + $0x128] sm:$0xff]   ;;  %v11814_v14 = vld [vmem:[%s17549_s7 + $0x170] sm:$0xff]  }
 0x698   :  { %v7617_v30 = vsel %vm7470_vm2, %v7616_v17, %v17151_v47  ;;  %v7796_v4 = vsel %vm7470_vm2, %v7795_v3, %v7794_v33  ;;  %v7976_v46 = vsel %vm7470_vm2, %v7975_v60, %v7974_v37  ;;  %v8155_v63 = vrot.slane %v17156_v19, 3  ;;  %v11809_v31 = vld [vmem:[%s17549_s7 + $0x1a0] sm:$0xff]   ;;  %v11812_v33 = vld [vmem:[%s17549_s7 + $0x1e8] sm:$0xff]   ;;  %v11816_v17 = vld [vmem:[%s17549_s7 + $0x1f0] sm:$0xff]  }
 0x699   :  { %7606 = vmatprep.mubr.bf16.mxu0 %v7475_v26  ;;  %v7619_v45 = vpack.c.b16 %v7617_v30, %v7617_v30  ;;  %v7798_v59 = vpack.c.b16 %v7796_v4, %v7796_v4  ;;  %v7618_v35 = vpack.c.b16 %v7615_v24, %v7615_v24  ;;  %v7972_v51 = vrot.slane %v17153_v61, 2  ;;  %v11813_v23 = vld [vmem:[%s17549_s7 + $0x1a8] sm:$0xff]   ;;  %v11815_v3 = vld [vmem:[%s17549_s7 + $0x130] sm:$0xff]   ;;  %v11818_v37 = vld [vmem:[%s17549_s7 + $0x178] sm:$0xff]  }
 0x69a   :  { %7607 = vmatmul.mubr.bf16.vlgmr.msra.gmra.mrb[24].mxu0 %v7474_v2  ;;  %v8334_v36 = vrot.slane %v17151_v47, 5  ;;  %v8335_v44 = vrot.slane %v17156_v19, 4  ;;  %v7978_v5 = vpack.c.b16 %v7976_v46, %v7976_v46  ;;  %v17202_v57 = vsel %vm7470_vm2, %v8155_v63, %v8154_v41  ;;  %v11817_v26 = vld [vmem:[%s17549_s7 + $0x1b0] sm:$0xff]   ;;  %v11819_v24 = vld [vmem:[%s17549_s7 + $0x138] sm:$0xff]   ;;  %v11822_v60 = vld [vmem:[%s17549_s7 + $0x240] sm:$0xff]  }
 0x69b   :  { %10473 = vmatpush3.bf16.msra.mxu0 %v11791_v21  ;;  %7750 = vmatprep.mubr.bf16.mxu1 %v7619_v45  ;;  %v8151_v1 = vrot.slane %v17149_v13, 4  ;;  %v8152_v32 = vrot.slane %v17153_v61, 3  ;;  %v17210_v15 = vsel %vm7470_vm2, %v7972_v51, %v7971_v42  ;;  %v8514_v27 = vrot.slane %v17151_v47, 6  ;;  %v11810_v42 = vld [vmem:[%s17549_s7 + $0x168] sm:$0xff]   ;;  %v11820_v21 = vld [vmem:[%s17549_s7 + $0x1f8] sm:$0xff]   ;;  %v11824_v30 = vld [vmem:[%s17549_s7 + $0x2c0] sm:$0xff]  }
 0x69c   :  { %7929 = vmatprep.mubr.bf16.mxu0 %v7798_v59  ;;  %7751 = vmatmul.mubr.bf16.vlgmr.msra.gmra.mrb[24].mxu1 %v7618_v35  ;;  %v17213_v18 = vsel %vm7470_vm2, %v8335_v44, %v8334_v36  ;;  %v8515_v20 = vrot.slane %v17156_v19, 5  ;;  %v8331_v34 = vrot.slane %v17149_v13, 5  ;;  %v8332_v38 = vrot.slane %v17153_v61, 4  ;;  %v11821_v2 = vld [vmem:[%s17549_s7 + $0x1b8] sm:$0xff]   ;;  %v11823_v4 = vld [vmem:[%s17549_s7 + $0x200] sm:$0xff]   ;;  %v11826_v45 = vld [vmem:[%s17549_s7 + $0x248] sm:$0xff]  }
 0x69d   :  { %10495 = vmatpush3.bf16.msra.mxu1 %v11793_v39  ;;  %10474 = vmatprep.subr.bf16.mxu0 %v11794_v56  ;;  %v17221_v8 = vsel %vm7470_vm2, %v8152_v32, %v8151_v1  ;;  %v8694_v7 = vrot.slane %v17151_v47, 7  ;;  %v8695_v52 = vrot.slane %v17156_v19, 6  ;;  %v8511_v54 = vrot.slane %v17149_v13, 6  ;;  %v11805_v19 = vld [vmem:[%s17549_s7 + $0x198] sm:$0xff]   ;;  %v11825_v39 = vld [vmem:[%s17549_s7 + $0x280] sm:$0xff]   ;;  %v11827_v63 = vld [vmem:[%s17549_s7 + $0x208] sm:$0xff]  }
 0x69e   :  { %8109 = vmatprep.mubr.bf16.mxu1 %v7978_v5  ;;  %10496 = vmatprep.subr.bf16.mxu1 %v11796_v6  ;;  %v17227_v10 = vsel %vm7470_vm2, %v8515_v20, %v8514_v27  ;;  %v8512_v49 = vrot.slane %v17153_v61, 5  ;;  %v17242_v25 = vsel %vm7470_vm2, %v8332_v38, %v8331_v34  ;;  %v8691_v11 = vrot.slane %v17149_v13, 7  ;;  %v11830_v35 = vld [vmem:[%s17549_s7 + $0x250] sm:$0xff]   ;;  %v11829_v6 = vld [vmem:[%s17549_s7 + $0x288] sm:$0xff]   ;;  %v11834_v44 = vld [vmem:[%s17549_s7 + $0x258] sm:$0xff]  }
 0x69f   :  { %10475 = vmatpush3.bf16.msra.mxu0 %v11795_v28  ;;  %v8692_v0 = vrot.slane %v17153_v61, 6  ;;  %v17250_v48 = vsel %vm7470_vm2, %v8695_v52, %v8694_v7  ;;  %v11803_v61 = vld [vmem:[%s17549_s7 + $0x118] sm:$0xff]   ;;  %v7797_v41 = vpack.c.b16 %v17178_v12, %v17178_v12  ;;  %v8158_v59 = vpack.c.b16 %v17202_v57, %v17202_v57  ;;  %v11828_v12 = vld [vmem:[%s17549_s7 + $0x2c8] sm:$0xff]   ;;  %v11832_v51 = vld [vmem:[%s17549_s7 + $0x2d0] sm:$0xff]  }
 0x6a0   :  { %10476 = vmatprep.subr.bf16.mxu0 %v11798_v50  ;;  %v17253_v47 = vsel %vm7470_vm2, %v8512_v49, %v8511_v54  ;;  %v7977_v56 = vpack.c.b16 %v17210_v15, %v17210_v15  ;;  %v8338_v46 = vpack.c.b16 %v17213_v18, %v17213_v18  ;;  %v11831_v36 = vld [vmem:[%s17549_s7 + $0x210] sm:$0xff]   ;;  %v11836_v28 = vld [vmem:[%s17549_s7 + $0x2d8] sm:$0xff]   ;;  %v11838_v1 = vld [vmem:[%s17549_s7 + $0x260] sm:$0xff]  }
 0x6a1   :  { %10497 = vmatpush3.bf16.msra.mxu1 %v11797_v22  ;;  %v17259_v13 = vsel %vm7470_vm2, %v8692_v0, %v8691_v11  ;;  %v11833_v5 = vld [vmem:[%s17549_s7 + $0x290] sm:$0xff]   ;;  %v11835_v57 = vld [vmem:[%s17549_s7 + $0x218] sm:$0xff]   ;;  %v11840_v50 = vld [vmem:[%s17549_s7 + $0x2e0] sm:$0xff]  }
 0x6a2   :  { %10498 = vmatprep.subr.bf16.mxu1 %v11800_v29  ;;  %v11837_v32 = vld [vmem:[%s17549_s7 + $0x298] sm:$0xff]   ;;  %v11839_v15 = vld [vmem:[%s17549_s7 + $0x220] sm:$0xff]   ;;  %v11842_v18 = vld [vmem:[%s17549_s7 + $0x268] sm:$0xff]  }
 0x6a3   :  { %10477 = vmatpush3.bf16.msra.mxu0 %v11799_v58  ;;  %v11841_v27 = vld [vmem:[%s17549_s7 + $0x2a0] sm:$0xff]   ;;  %v11844_v20 = vld [vmem:[%s17549_s7 + $0x2e8] sm:$0xff]   ;;  %v11846_v29 = vld [vmem:[%s17549_s7 + $0x270] sm:$0xff]  }
 0x6a4   :  { %10478 = vmatprep.subr.bf16.mxu0 %v11802_v16  ;;  %v11843_v22 = vld [vmem:[%s17549_s7 + $0x228] sm:$0xff]   ;;  %v11848_v38 = vld [vmem:[%s17549_s7 + $0x2f0] sm:$0xff]   ;;  %v11850_v7 = vld [vmem:[%s17549_s7 + $0x278] sm:$0xff]  }
 0x6a5   :  { %10499 = vmatpush3.bf16.msra.mxu1 %v11801_v9  ;;  %v11845_v34 = vld [vmem:[%s17549_s7 + $0x2a8] sm:$0xff]   ;;  %v11847_v58 = vld [vmem:[%s17549_s7 + $0x230] sm:$0xff]   ;;  %v11852_v54 = vld [vmem:[%s17549_s7 + $0x2f8] sm:$0xff]  }
 0x6a6   :  { %10500 = vmatprep.subr.bf16.mxu1 %v11804_v53  ;;  %v11849_v52 = vld [vmem:[%s17549_s7 + $0x2b0] sm:$0xff]   ;;  %v11851_v49 = vld [vmem:[%s17549_s7 + $0x238] sm:$0xff]   ;;  %v11854_v16 = vld [vmem:[%s17549_s7 + $0x340] sm:$0xff]   ;;  %v8157_v53 = vpack.c.b16 %v17221_v8, %v17221_v8 }
 0x6a7   :  { %10479 = vmatpush3.bf16.msra.mxu0 %v11803_v61  ;;  %v11853_v11 = vld [vmem:[%s17549_s7 + $0x2b8] sm:$0xff]   ;;  %v11856_v0 = vld [vmem:[%s17549_s7 + $0x3c0] sm:$0xff]   ;;  %v11858_v61 = vld [vmem:[%s17549_s7 + $0x348] sm:$0xff]  }
 0x6a8   :  { %10480 = vmatprep.subr.bf16.mxu0 %v11806_v40  ;;  %v11855_v9 = vld [vmem:[%s17549_s7 + $0x300] sm:$0xff]   ;;  %v8518_v40 = vpack.c.b16 %v17227_v10, %v17227_v10  ;;  %v11860_v8 = vld [vmem:[%s17549_s7 + $0x3c8] sm:$0xff]  }
 0x6a9   :  { %10501 = vmatpush3.bf16.msra.mxu1 %v11805_v19  ;;  %v11857_v19 = vld [vmem:[%s17549_s7 + $0x380] sm:$0xff]   ;;  %v11859_v10 = vld [vmem:[%s17549_s7 + $0x308] sm:$0xff]  }
 0x6aa   :  { %10502 = vmatprep.subr.bf16.mxu1 %v11808_v55  ;;  %v8337_v55 = vpack.c.b16 %v17242_v25, %v17242_v25  ;;  %v11862_v25 = vld [vmem:[%s17549_s7 + $0x350] sm:$0xff]  }
 0x6ab   :  { %10481 = vmatpush3.bf16.msra.mxu0 %v11807_v62  ;;  %v8698_v62 = vpack.c.b16 %v17250_v48, %v17250_v48  ;;  %v11864_v48 = vld [vmem:[%s17549_s7 + $0x3d0] sm:$0xff]  }
 0x6ac   :  { %10482 = vmatprep.subr.bf16.mxu0 %v11810_v42  ;;  %v11861_v42 = vld [vmem:[%s17549_s7 + $0x388] sm:$0xff]  }
 0x6ad   :  { %10503 = vmatpush3.bf16.msra.mxu1 %v11809_v31  ;;  %v11863_v31 = vld [vmem:[%s17549_s7 + $0x310] sm:$0xff]  }
 0x6ae   :  { %10504 = vmatprep.subr.bf16.mxu1 %v11812_v33  ;;  %v11866_v33 = vld [vmem:[%s17549_s7 + $0x358] sm:$0xff]  }
 0x6af   :  { %10483 = vmatpush3.bf16.msra.mxu0 %v11811_v43  ;;  %v11865_v43 = vld [vmem:[%s17549_s7 + $0x390] sm:$0xff]  }
 0x6b0   :  { %10484 = vmatprep.subr.bf16.mxu0 %v11814_v14  ;;  %v11868_v14 = vld [vmem:[%s17549_s7 + $0x3d8] sm:$0xff]  }
 0x6b1   :  { %10505 = vmatpush3.bf16.msra.mxu1 %v11813_v23  ;;  %v11867_v23 = vld [vmem:[%s17549_s7 + $0x318] sm:$0xff]  }
 0x6b2   :  { %10506 = vmatprep.subr.bf16.mxu1 %v11816_v17  ;;  %v11870_v17 = vld [vmem:[%s17549_s7 + $0x360] sm:$0xff]  }
 0x6b3   :  { %10485 = vmatpush3.bf16.msra.mxu0 %v11815_v3  ;;  %v11869_v3 = vld [vmem:[%s17549_s7 + $0x398] sm:$0xff]  }
 0x6b4   :  { %10486 = vmatprep.subr.bf16.mxu0 %v11818_v37  ;;  %v11872_v37 = vld [vmem:[%s17549_s7 + $0x3e0] sm:$0xff]  }
 0x6b5   :  { %10507 = vmatpush3.bf16.msra.mxu1 %v11817_v26  ;;  %v11871_v26 = vld [vmem:[%s17549_s7 + $0x320] sm:$0xff]  }
 0x6b6   :  { %10508 = vmatprep.subr.bf16.mxu1 %v11820_v21  ;;  %v11874_v21 = vld [vmem:[%s17549_s7 + $0x368] sm:$0xff]  }
 0x6b7   :  { %10487 = vmatpush3.bf16.msra.mxu0 %v11819_v24  ;;  %v11873_v24 = vld [vmem:[%s17549_s7 + $0x3a0] sm:$0xff]  }
 0x6b8   :  { %10516 = vmatprep.subr.bf16.mxu0 %v11822_v60  ;;  %v11876_v60 = vld [vmem:[%s17549_s7 + $0x3e8] sm:$0xff]  }
 0x6b9   :  { %10509 = vmatpush3.bf16.msra.mxu1 %v11821_v2  ;;  %v11875_v2 = vld [vmem:[%s17549_s7 + $0x328] sm:$0xff]  }
 0x6ba   :  { %7930 = vmatmul.mubr.bf16.vlgmr.msra.gmra.mrb[28].mxu0 %v7797_v41  ;;  %10538 = vmatprep.subr.bf16.mxu1 %v11824_v30  ;;  %v11878_v30 = vld [vmem:[%s17549_s7 + $0x370] sm:$0xff]  }
 0x6bb   :  { %10517 = vmatpush3.bf16.msra.mxu0 %v11823_v4  ;;  %8289 = vmatprep.mubr.bf16.mxu0 %v8158_v59  ;;  %v11877_v4 = vld [vmem:[%s17549_s7 + $0x3a8] sm:$0xff]   ;;  %v11880_v41 = vld [vmem:[%s17549_s7 + $0x3f0] sm:$0xff]   ;;  %v11882_v59 = vld [vmem:[%s17549_s7 + $0x378] sm:$0xff]  }
 0x6bc   :  { %8110 = vmatmul.mubr.bf16.vlgmr.msra.gmra.mrb[28].mxu1 %v7977_v56  ;;  %10518 = vmatprep.subr.bf16.mxu0 %v11826_v45  ;;  %v11879_v45 = vld [vmem:[%s17549_s7 + $0x330] sm:$0xff]   ;;  %v11884_v56 = vld [vmem:[%s17549_s7 + $0x3f8] sm:$0xff]  }
 0x6bd   :  { %10539 = vmatpush3.bf16.msra.mxu1 %v11825_v39  ;;  %8469 = vmatprep.mubr.bf16.mxu1 %v8338_v46  ;;  %v11881_v39 = vld [vmem:[%s17549_s7 + $0x3b0] sm:$0xff]   ;;  %v11885_v46 = vld [vmem:[%s17549_s7 + $0x3b8] sm:$0xff]  }
 0x6be   :  { %10540 = vmatprep.subr.bf16.mxu1 %v11828_v12  ;;  %v11883_v12 = vld [vmem:[%s17549_s7 + $0x338] sm:$0xff]  }
 0x6bf   :  { %10519 = vmatpush3.bf16.msra.mxu0 %v11827_v63  ;;  %v8517_v63 = vpack.c.b16 %v17253_v47, %v17253_v47 }
 0x6c0   :  { %10520 = vmatprep.subr.bf16.mxu0 %v11830_v35  ;;  %v8697_v35 = vpack.c.b16 %v17259_v13, %v17259_v13 }
 0x6c1   :  { %10541 = vmatpush3.bf16.msra.mxu1 %v11829_v6 }
 0x6c2   :  { %10542 = vmatprep.subr.bf16.mxu1 %v11832_v51 }
 0x6c3   :  { %10521 = vmatpush3.bf16.msra.mxu0 %v11831_v36 }
 0x6c4   :  { %10522 = vmatprep.subr.bf16.mxu0 %v11834_v44 }
 0x6c5   :  { %10543 = vmatpush3.bf16.msra.mxu1 %v11833_v5 }
 0x6c6   :  { %10544 = vmatprep.subr.bf16.mxu1 %v11836_v28 }
 0x6c7   :  { %10523 = vmatpush3.bf16.msra.mxu0 %v11835_v57 }
 0x6c8   :  { %10524 = vmatprep.subr.bf16.mxu0 %v11838_v1 }
 0x6c9   :  { %10545 = vmatpush3.bf16.msra.mxu1 %v11837_v32 }
 0x6ca   :  { %10546 = vmatprep.subr.bf16.mxu1 %v11840_v50 }
 0x6cb   :  { %10525 = vmatpush3.bf16.msra.mxu0 %v11839_v15 }
 0x6cc   :  { %10526 = vmatprep.subr.bf16.mxu0 %v11842_v18 }
 0x6cd   :  { %10547 = vmatpush3.bf16.msra.mxu1 %v11841_v27 }
 0x6ce   :  { %10548 = vmatprep.subr.bf16.mxu1 %v11844_v20 }
 0x6cf   :  { %10527 = vmatpush3.bf16.msra.mxu0 %v11843_v22 }
 0x6d0   :  { %10528 = vmatprep.subr.bf16.mxu0 %v11846_v29 }
 0x6d1   :  { %10549 = vmatpush3.bf16.msra.mxu1 %v11845_v34 }
 0x6d2   :  { %10550 = vmatprep.subr.bf16.mxu1 %v11848_v38 }
 0x6d3   :  { %10529 = vmatpush3.bf16.msra.mxu0 %v11847_v58 }
 0x6d4   :  { %10530 = vmatprep.subr.bf16.mxu0 %v11850_v7 }
 0x6d5   :  { %10551 = vmatpush3.bf16.msra.mxu1 %v11849_v52 }
 0x6d6   :  { %10552 = vmatprep.subr.bf16.mxu1 %v11852_v54 }
 0x6d7   :  { %10531 = vmatpush3.bf16.msra.mxu0 %v11851_v49 }
 0x6d8   :  { %10560 = vmatprep.subr.bf16.mxu0 %v11854_v16 }
 0x6d9   :  { %10553 = vmatpush3.bf16.msra.mxu1 %v11853_v11 }
 0x6da   :  { %8290 = vmatmul.mubr.bf16.vlgmr.msra.gmra.mrb[32].mxu0 %v8157_v53  ;;  %10582 = vmatprep.subr.bf16.mxu1 %v11856_v0 }
 0x6db   :  { %10561 = vmatpush3.bf16.msra.mxu0 %v11855_v9  ;;  %8649 = vmatprep.mubr.bf16.mxu0 %v8518_v40 }
 0x6dc   :  { %8470 = vmatmul.mubr.bf16.vlgmr.msra.gmra.mrb[32].mxu1 %v8337_v55  ;;  %10562 = vmatprep.subr.bf16.mxu0 %v11858_v61 }
 0x6dd   :  { %10583 = vmatpush3.bf16.msra.mxu1 %v11857_v19  ;;  %8829 = vmatprep.mubr.bf16.mxu1 %v8698_v62 }
 0x6de   :  { %10584 = vmatprep.subr.bf16.mxu1 %v11860_v8 }
 0x6df   :  { %10563 = vmatpush3.bf16.msra.mxu0 %v11859_v10 }
 0x6e0   :  { %10564 = vmatprep.subr.bf16.mxu0 %v11862_v25 }
 0x6e1   :  { %10585 = vmatpush3.bf16.msra.mxu1 %v11861_v42 }
 0x6e2   :  { %10586 = vmatprep.subr.bf16.mxu1 %v11864_v48 }
 0x6e3   :  { %10565 = vmatpush3.bf16.msra.mxu0 %v11863_v31 }
 0x6e4   :  { %10566 = vmatprep.subr.bf16.mxu0 %v11866_v33 }
 0x6e5   :  { %10587 = vmatpush3.bf16.msra.mxu1 %v11865_v43 }
 0x6e6   :  { %10588 = vmatprep.subr.bf16.mxu1 %v11868_v14 }
 0x6e7   :  { %10567 = vmatpush3.bf16.msra.mxu0 %v11867_v23 }
 0x6e8   :  { %10568 = vmatprep.subr.bf16.mxu0 %v11870_v17 }
 0x6e9   :  { %10589 = vmatpush3.bf16.msra.mxu1 %v11869_v3  ;;  %v10423_v3 = vld [vmem:[%s17550_s8] ss:$0 sm:$0xff] }
 0x6ea   :  { %10590 = vmatprep.subr.bf16.mxu1 %v11872_v37 }
 0x6eb   :  { %10569 = vmatpush3.bf16.msra.mxu0 %v11871_v26 }
 0x6ec   :  { %10570 = vmatprep.subr.bf16.mxu0 %v11874_v21 }
 0x6ed   :  { %10591 = vmatpush3.bf16.msra.mxu1 %v11873_v24 }
 0x6ee   :  { %10592 = vmatprep.subr.bf16.mxu1 %v11876_v60 }
 0x6ef   :  { %10571 = vmatpush3.bf16.msra.mxu0 %v11875_v2 }
 0x6f0   :  { %10572 = vmatprep.subr.bf16.mxu0 %v11878_v30 }
 0x6f1   :  { %10593 = vmatpush3.bf16.msra.mxu1 %v11877_v4 }
 0x6f2   :  { %10594 = vmatprep.subr.bf16.mxu1 %v11880_v41 }
 0x6f3   :  { %10573 = vmatpush3.bf16.msra.mxu0 %v11879_v45 }
 0x6f4   :  { %10574 = vmatprep.subr.bf16.mxu0 %v11882_v59 }
 0x6f5   :  { %10595 = vmatpush3.bf16.msra.mxu1 %v11881_v39 }
 0x6f6   :  { %10596 = vmatprep.subr.bf16.mxu1 %v11884_v56 }
 0x6f7   :  { %10575 = vmatpush3.bf16.msra.mxu0 %v11883_v12 }
 0x6f9   :  { %10597 = vmatpush3.bf16.msra.mxu1 %v11885_v46 }
 0x6fa   :  { %8650 = vmatmul.mubr.bf16.vlgmr.msra.gmra.mrb[36].mxu0 %v8517_v63 }
 0x6fc   :  { %8830 = vmatmul.mubr.bf16.vlgmr.msra.gmra.mrb[36].mxu1 %v8697_v35 }
 0x76d   :  { %v10444_v6 = vpop.f32.mrb[24].mxu0 }
 0x76e   :  { %v10445_v51 = vpop.f32.mrb[25].mxu0 }
 0x76f   :  { %v10446_v36 = vadd.f32 %v10445_v51, %v10444_v6  ;;  %v10447_v44 = vpop.f32.mrb[26].mxu0  ;;  %v10466_v5 = vpop.f32.mrb[24].mxu1 }
 0x770   :  { %v10448_v28 = vpop.f32.mrb[27].mxu0  ;;  %v10467_v57 = vpop.f32.mrb[25].mxu1 }
 0x771   :  { %v10468_v1 = vadd.f32 %v10467_v57, %v10466_v5  ;;  %v10469_v32 = vpop.f32.mrb[26].mxu1 }
 0x772   :  { %v10470_v50 = vpop.f32.mrb[27].mxu1 }
 0x773   :  { %v7753_v15 = vadd.f32 %v10468_v1, %v10446_v36 }
 0x78d   :  { %v10488_v18 = vpop.f32.mrb[28].mxu0 }
 0x78e   :  { %v10489_v27 = vpop.f32.mrb[29].mxu0 }
 0x78f   :  { %v10490_v47 = vadd.f32 %v10489_v27, %v10488_v18  ;;  %v10491_v20 = vpop.f32.mrb[30].mxu0  ;;  %v10510_v22 = vpop.f32.mrb[28].mxu1 }
 0x790   :  { %v10492_v29 = vpop.f32.mrb[31].mxu0  ;;  %v10511_v34 = vpop.f32.mrb[29].mxu1 }
 0x791   :  { %v7937_v13 = vadd.f32 %v10490_v47, %v7753_v15  ;;  %v10512_v38 = vadd.f32 %v10511_v34, %v10510_v22  ;;  %v10513_v58 = vpop.f32.mrb[30].mxu1 }
 0x792   :  { %v10514_v7 = vpop.f32.mrb[31].mxu1 }
 0x793   :  { %v8117_v52 = vadd.f32 %v10512_v38, %v7937_v13 }
 0x7ad   :  { %v10532_v54 = vpop.f32.mrb[32].mxu0 }
 0x7ae   :  { %v10533_v49 = vpop.f32.mrb[33].mxu0 }
 0x7af   :  { %v10534_v16 = vadd.f32 %v10533_v49, %v10532_v54  ;;  %v10535_v11 = vpop.f32.mrb[34].mxu0  ;;  %v10554_v0 = vpop.f32.mrb[32].mxu1 }
 0x7b0   :  { %v10536_v9 = vpop.f32.mrb[35].mxu0  ;;  %v10555_v53 = vpop.f32.mrb[33].mxu1 }
 0x7b1   :  { %v8297_v61 = vadd.f32 %v10534_v16, %v8117_v52  ;;  %v10556_v40 = vadd.f32 %v10555_v53, %v10554_v0  ;;  %v10557_v19 = vpop.f32.mrb[34].mxu1 }
 0x7b2   :  { %v10558_v55 = vpop.f32.mrb[35].mxu1 }
 0x7b3   :  { %v8477_v8 = vadd.f32 %v10556_v40, %v8297_v61 }
 0x7cd   :  { %v10576_v62 = vpop.f32.mrb[36].mxu0 }
 0x7ce   :  { %v10577_v10 = vpop.f32.mrb[37].mxu0 }
 0x7cf   :  { %v10578_v25 = vadd.f32 %v10577_v10, %v10576_v62  ;;  %v10579_v42 = vpop.f32.mrb[38].mxu0  ;;  %v10598_v48 = vpop.f32.mrb[36].mxu1 }
 0x7d0   :  { %v10580_v31 = vpop.f32.mrb[39].mxu0  ;;  %v10599_v33 = vpop.f32.mrb[37].mxu1 }
 0x7d1   :  { %v8657_v43 = vadd.f32 %v10578_v25, %v8477_v8  ;;  %v10600_v14 = vadd.f32 %v10599_v33, %v10598_v48  ;;  %v10601_v23 = vpop.f32.mrb[38].mxu1 }
 0x7d2   :  { %v10602_v17 = vpop.f32.mrb[39].mxu1 }
 0x7d3   :  { %v8837_v37 = vadd.f32 %v10600_v14, %v8657_v43 }
 0x7d5   :  { %v8845_v26 = vadd.f32 %v10423_v3, %v8837_v37 }
 0x7d7   :  { %8846 = vst [vmem:[#allocation4] sm:$0x3] %v8845_v26 }
 0x7d8   :  { %12318 = shalt.err (!%p12315_p4)
}
 0x7d9   :  { %s12319_s15 = scalar_lea.hbm %s17551_s9, 32 }
 0x7da   :  { %p12320_p5 = scmp.ne.s32.totalorder %s17551_s9, %s12319_s15  ;;  %p12323_p6 = scmp.lt.u32.totalorder %s12319_s15, %s17551_s9 }
 0x7dc   :  { %p12325_p7 = pnand %p12323_p6, %p12320_p5 }
 0x7de   :  { %12328 = shalt.err (!%p12325_p7)
}
 0x7df   :  { %8856 = dma.vmem_to_hbm [thread:$0]  %s8854_s12, 32, %s17551_s9, [#allocation5]  }
 0x7e0   :  { %12329 = dma.done.wait [#allocation5], 32  }
 0x7e1   :  { %12330 = vsyncadd [#allocation5], 4294967264 }
 0x7e2   :  { %8860 = vsyncpa [#allocation5], 1 }

</bundles_post_ra>
